<compile_context>
chip_gen: v7x
topology: tpu7x:2x2x1
jax: 0.10.0
libtpu: 0.0.40
codegen_flags: <defaults>
</compile_context>

<pallas_src>
import math

import jax
import jax.numpy as jnp
from jax import lax
from jax.experimental import pallas as pl
from jax.experimental.pallas import tpu as pltpu


_CONV_DEFS = (   # (c_out, kernel, padding) for conv1..conv4
    (8, 7, 3),
    (8, 5, 2),
    (8, 3, 1),
    (64, 1, 0),
)
_C_PAD = 8            # channel blocks padded to one full sublane group
_N_CLASSES = 4
_MAX_PAD = 3          # conv1 padding == frame halo width
_MM_DTYPE = jnp.bfloat16   # conv matmul operand dtype (accumulation is f32)


def _round_up(x, m):
    return ((x + m - 1) // m) * m


# ------------------------------- fused kernel --------------------------------

def _make_fused_kernel(H, W, B):
    HP, WP = H + 2 * _MAX_PAD, W + 2 * _MAX_PAD
    F = HP * WP                          # flattened padded frame size (484)
    FP = _round_up(F, 128)               # lane-aligned per-sample frame (512)
    LBF = B * FP                         # lanes per grid step (batch folded)
    margin = _MAX_PAD * WP + _MAX_PAD    # max |flat shift| of any conv tap
    left = _round_up(margin, 128)        # 128-aligned frame placement in ext
    ext_w = left + LBF + left
    max_taps = _CONV_DEFS[0][1] ** 2     # 49
    max_rows = _round_up(max_taps, 2) * _C_PAD   # 400 im2col rows (pairs of taps)

    def kernel(x_ref, mask_ref,
               w1_ref, b1_ref, w2_ref, b2_ref, w3_ref, b3_ref,
               w4_ref, b4_ref, wf_ref, bf_ref,
               o_ref, ext_ref, patch_ref):
        mask = mask_ref[...]             # (1, LBF): 1.0 inside each valid HxW window

        # Zero only the two halo margins (the interior is fully overwritten by
        # every conv).  Every step, NOT gated on program_id: with megacore
        # sharding core 1 never executes step 0.
        ext_ref[:, 0:left] = jnp.zeros((_C_PAD, left), jnp.float32)
        ext_ref[:, left + LBF:ext_w] = jnp.zeros((_C_PAD, left), jnp.float32)

        def conv_relu(act, w_ref, b_ref, ksize, pad):
            # act: (8, LBF) f32 channel-major slab; halo / lane-pad cols are zero.
            if ksize == 1:
                acc = jnp.dot(w_ref[...], act.astype(_MM_DTYPE),
                              preferred_element_type=jnp.float32)
            else:
                ext_ref[:, left:left + LBF] = act
                shifts = [(ky - pad) * WP + (kx - pad)
                          for ky in range(ksize) for kx in range(ksize)]
                if len(shifts) % 2:
                    # duplicate the last tap; its weight columns are zero.
                    shifts.append(shifts[-1])
                for i in range(0, len(shifts), 2):
                    lo0 = left + shifts[i]
                    lo1 = left + shifts[i + 1]
                    pair = jnp.concatenate(
                        [ext_ref[:, lo0:lo0 + LBF],
                         ext_ref[:, lo1:lo1 + LBF]], axis=0)      # (16, LBF) f32
                    # 16-row, 16-aligned dense bf16 store (full packed tile).
                    patch_ref[i * _C_PAD:(i + 2) * _C_PAD, :] = (
                        pair.astype(_MM_DTYPE))
                k_rows = len(shifts) * _C_PAD
                acc = jnp.dot(w_ref[...], patch_ref[0:k_rows, :],
                              preferred_element_type=jnp.float32)
            # bias + fused ReLU; the mask re-zeroes halo / lane-pad columns so
            # they act as the next layer's zero padding.
            return jnp.maximum(acc + b_ref[...], 0.0) * mask

        a = x_ref[0]                                 # (8, LBF) padded input slab
        a = conv_relu(a, w1_ref, b1_ref, 7, 3)       # conv1 + relu (dropout = id)
        a = conv_relu(a, w2_ref, b2_ref, 5, 2)       # conv2 + relu
        a = conv_relu(a, w3_ref, b3_ref, 3, 1)       # conv3 + relu
        a = conv_relu(a, w4_ref, b4_ref, 1, 0)       # conv4 (1x1) + relu -> (64, LBF)

        # fc tail: channel reduction on the MXU (ones(1,64) @ (wf*a)), then one
        # small lane reduce per class/sample; keeps the XLU nearly idle.
        ones_ch = jnp.ones((1, 64), jnp.float32)
        lane = lax.broadcasted_iota(jnp.int32, (1, _N_CLASSES), 1)
        a_samples = [a[:, b * FP:(b + 1) * FP] for b in range(B)]   # aligned slices
        outs = [bf_ref[...] for _ in range(B)]                      # (1, n_classes)
        for o in range(_N_CLASSES):
            sel = (lane == o).astype(jnp.float32)
            wfo = wf_ref[o]                                         # (64, FP)
            for b in range(B):
                row = jnp.dot(ones_ch, wfo * a_samples[b],
                              preferred_element_type=jnp.float32)   # (1, FP)
                s = jnp.sum(row, axis=1, keepdims=True)             # (1, 1)
                outs[b] = outs[b] + s * sel
        for b in range(B):
            o_ref[b] = outs[b]

    return kernel, FP, ext_w, max_rows


def _fused_call(params, xf, mask, H, W, B):
    G = xf.shape[0]
    kernel, FP, ext_w, max_rows = _make_fused_kernel(H, W, B)
    LBF = B * FP
    c2 = lambda g: (0, 0)
    c3 = lambda g: (0, 0, 0)
    out = pl.pallas_call(
        kernel,
        out_shape=jax.ShapeDtypeStruct((G * B, 1, _N_CLASSES), jnp.float32),
        grid_spec=pltpu.PrefetchScalarGridSpec(
            num_scalar_prefetch=0,
            grid=(G,),
            in_specs=[
                pl.BlockSpec((1, _C_PAD, LBF), lambda g: (g, 0, 0)),   # input slab
                pl.BlockSpec((1, LBF), c2),                            # valid mask
                pl.BlockSpec(params["w1"].shape, c2),
                pl.BlockSpec(params["b1"].shape, c2),
                pl.BlockSpec(params["w2"].shape, c2),
                pl.BlockSpec(params["b2"].shape, c2),
                pl.BlockSpec(params["w3"].shape, c2),
                pl.BlockSpec(params["b3"].shape, c2),
                pl.BlockSpec(params["w4"].shape, c2),
                pl.BlockSpec(params["b4"].shape, c2),
                pl.BlockSpec(params["wf"].shape, c3),
                pl.BlockSpec(params["bf"].shape, c2),
            ],
            out_specs=pl.BlockSpec((B, 1, _N_CLASSES), lambda g: (g, 0, 0)),
            scratch_shapes=[
                pltpu.VMEM((_C_PAD, ext_w), jnp.float32),   # shift-extension buffer
                pltpu.VMEM((max_rows, LBF), _MM_DTYPE),     # im2col patch (bf16)
            ],
        ),
        compiler_params=pltpu.CompilerParams(
            dimension_semantics=("parallel",)),             # grid across TCs (v7x)
    )(xf, mask,
      params["w1"], params["b1"], params["w2"], params["b2"],
      params["w3"], params["b3"], params["w4"], params["b4"],
      params["wf"], params["bf"])
    return out.reshape(G * B, _N_CLASSES)


def _samples_per_block(N):
    """Samples folded into the lane dim per grid step.

    v7x has 2 TensorCores -> keep >= 2 grid steps so both get work; single-TC
    chips (v5e/v6e) fold the whole (small) batch into one step.  Capped so the
    patch scratch stays small.
    """
    try:
        kind = jax.devices()[0].device_kind.lower()
    except Exception:
        kind = ""
    cap = 4
    if "v7" in kind and N >= 2:
        cap = min(cap, N // 2)
    best = 1
    for b in range(1, min(N, cap) + 1):
        if N % b == 0:
            best = b
    return best


def forward(params, x_nchw):
    """x_nchw: (N, 3, H, W) float32 -> (N, 4) float32 logits."""
    N, C, H, W = x_nchw.shape
    B = _samples_per_block(N)
    G = N // B
    HP, WP = H + 2 * _MAX_PAD, W + 2 * _MAX_PAD
    F = HP * WP
    FP = _round_up(F, 128)
    # Boundary prep (tiny fused XLA op): zero-pad channels 3->8 and the spatial
    # halo, flatten to the lane-aligned frame, fold B samples into the lanes.
    xf = jnp.pad(x_nchw.astype(jnp.float32),
                 ((0, 0), (0, _C_PAD - C),
                  (_MAX_PAD, _MAX_PAD), (_MAX_PAD, _MAX_PAD)))
    xf = xf.reshape(N, _C_PAD, F)
    xf = jnp.pad(xf, ((0, 0), (0, 0), (0, FP - F)))
    xf = xf.reshape(G, B, _C_PAD, FP).transpose(0, 2, 1, 3).reshape(G, _C_PAD, B * FP)
    # Valid-region mask over the lane-aligned frame, replicated per sample.
    m = jnp.pad(jnp.ones((H, W), jnp.float32),
                ((_MAX_PAD, _MAX_PAD), (_MAX_PAD, _MAX_PAD))).reshape(F)
    m = jnp.pad(m, (0, FP - F))
    mask = jnp.tile(m, (B,)).reshape(1, B * FP)
    return _fused_call(params, xf, mask, H, W, B)


# ------------------------------ params / reference ----------------------------

def init_params(key, H, W):
    """Returns (kernel-layout params, raw torch-layout params for the reference)."""
    HP, WP = H + 2 * _MAX_PAD, W + 2 * _MAX_PAD
    F = HP * WP
    FP = _round_up(F, 128)
    keys = jax.random.split(key, 5)
    params, raw = {}, {}
    c_in = 3
    for i, (c_out, k, _) in enumerate(_CONV_DEFS):
        kw, kb = jax.random.split(keys[i])
        bound = 1.0 / math.sqrt(c_in * k * k)   # PyTorch default uniform init
        w = jax.random.uniform(kw, (c_out, c_in, k, k), jnp.float32, -bound, bound)
        b = jax.random.uniform(kb, (c_out,), jnp.float32, -bound, bound)
        raw[f"w{i + 1}"], raw[f"b{i + 1}"] = w, b
        # im2col layout: (c_out, n_taps*8) bf16; taps row-major, channels padded
        # to 8; odd tap counts padded to even with zero columns (the kernel
        # writes taps in pairs of 16 bf16 rows).
        wt = jnp.transpose(w, (0, 2, 3, 1))                     # (c_out, k, k, c_in)
        wt = jnp.pad(wt, ((0, 0), (0, 0), (0, 0), (0, _C_PAD - c_in)))
        wt = wt.reshape(c_out, k * k * _C_PAD)
        if k > 1 and (k * k) % 2:
            wt = jnp.pad(wt, ((0, 0), (0, _C_PAD)))
        params[f"w{i + 1}"] = wt.astype(_MM_DTYPE)
        params[f"b{i + 1}"] = b.reshape(c_out, 1)
        c_in = c_out

    # fc sized to the actual spatial size (64 * H * W, what
    # _calculate_fc_input_size would yield for an HxW probe).
    fc_in = 64 * H * W
    kw, kb = jax.random.split(keys[4])
    bound = 1.0 / math.sqrt(fc_in)
    wfc = jax.random.uniform(kw, (_N_CLASSES, fc_in), jnp.float32, -bound, bound)
    bfc = jax.random.uniform(kb, (_N_CLASSES,), jnp.float32, -bound, bound)
    raw["wfc"], raw["bfc"] = wfc, bfc
    # fc weight in (class, channel, frame) layout with zero halo / lane-pad cols.
    wf = wfc.reshape(_N_CLASSES, 64, H, W)
    wf = jnp.pad(wf, ((0, 0), (0, 0),
                      (_MAX_PAD, _MAX_PAD), (_MAX_PAD, _MAX_PAD)))
    wf = wf.reshape(_N_CLASSES, 64, F)
    wf = jnp.pad(wf, ((0, 0), (0, 0), (0, FP - F)))
    params["wf"] = wf
    params["bf"] = bfc.reshape(1, _N_CLASSES)
    return params, raw


def reference_forward(raw, x):
    """Pure-JAX (XLA) reference matching the PyTorch module in eval mode."""
    a = x
    for i, (_, _, pad) in enumerate(_CONV_DEFS):
        a = lax.conv_general_dilated(
            a, raw[f"w{i + 1}"], window_strides=(1, 1),
            padding=((pad, pad), (pad, pad)),
            dimension_numbers=("NCHW", "OIHW", "NCHW"),
            precision=lax.Precision.HIGHEST)
        a = jnp.maximum(a + raw[f"b{i + 1}"].reshape(1, -1, 1, 1), 0.0)
    a = a.reshape(a.shape[0], -1)
    return jnp.matmul(a, raw["wfc"].T, precision=lax.Precision.HIGHEST) + raw["bfc"]


if __name__ == "__main__":
    # TODO(synk): dropout is treated as identity (eval-mode semantics).
    N, C, H, W = 2, 3, 16, 16
    key = jax.random.PRNGKey(0)
    kx, kp = jax.random.split(key)
    x = jax.random.normal(kx, (N, C, H, W), jnp.float32)
    params, raw = init_params(kp, H, W)

    out = jax.jit(forward)(params, x)
    out = jax.block_until_ready(out)
    assert out.shape == (N, _N_CLASSES) and out.dtype == jnp.float32

    ref = jax.block_until_ready(reference_forward(raw, x))
    assert jnp.allclose(out, ref, rtol=5e-2, atol=5e-2), (out, ref)
    print("KERNEL_OK")
</pallas_src>

<mosaic_0001>
module attributes {stable_mosaic.version = 11 : i64} {
  func.func @kernel(%arg0: i32, %arg1: memref<1x8x1024xf32, #tpu.memory_space<vmem>>, %arg2: memref<1x1024xf32, #tpu.memory_space<vmem>>, %arg3: memref<8x400xbf16, #tpu.memory_space<vmem>>, %arg4: memref<8x1xf32, #tpu.memory_space<vmem>>, %arg5: memref<8x208xbf16, #tpu.memory_space<vmem>>, %arg6: memref<8x1xf32, #tpu.memory_space<vmem>>, %arg7: memref<8x80xbf16, #tpu.memory_space<vmem>>, %arg8: memref<8x1xf32, #tpu.memory_space<vmem>>, %arg9: memref<64x8xbf16, #tpu.memory_space<vmem>>, %arg10: memref<64x1xf32, #tpu.memory_space<vmem>>, %arg11: memref<4x64x512xf32, #tpu.memory_space<vmem>>, %arg12: memref<1x4xf32, #tpu.memory_space<vmem>>, %arg13: memref<2x1x4xf32, #tpu.memory_space<vmem>>, %arg14: memref<8x1280xf32, #tpu.memory_space<vmem>>, %arg15: memref<400x1024xbf16, #tpu.memory_space<vmem>>) attributes {dimension_semantics = [#tpu.dimension_semantics<parallel>], iteration_bounds = array<i64: 1>, scalar_prefetch = 0 : i64, scratch_operands = 2 : i64, tpu.core_type = #tpu.core_type<tc>, window_params = [{transform_indices = @transform_0, window_bounds = array<i64: 1, 8, 1024>}, {pipeline_mode = #tpu.pipeline_mode<synchronous>, transform_indices = @transform_1, window_bounds = array<i64: 1, 1024>}, {pipeline_mode = #tpu.pipeline_mode<synchronous>, transform_indices = @transform_2, window_bounds = array<i64: 8, 400>}, {pipeline_mode = #tpu.pipeline_mode<synchronous>, transform_indices = @transform_3, window_bounds = array<i64: 8, 1>}, {pipeline_mode = #tpu.pipeline_mode<synchronous>, transform_indices = @transform_4, window_bounds = array<i64: 8, 208>}, {pipeline_mode = #tpu.pipeline_mode<synchronous>, transform_indices = @transform_5, window_bounds = array<i64: 8, 1>}, {pipeline_mode = #tpu.pipeline_mode<synchronous>, transform_indices = @transform_6, window_bounds = array<i64: 8, 80>}, {pipeline_mode = #tpu.pipeline_mode<synchronous>, transform_indices = @transform_7, window_bounds = array<i64: 8, 1>}, {pipeline_mode = #tpu.pipeline_mode<synchronous>, transform_indices = @transform_8, window_bounds = array<i64: 64, 8>}, {pipeline_mode = #tpu.pipeline_mode<synchronous>, transform_indices = @transform_9, window_bounds = array<i64: 64, 1>}, {pipeline_mode = #tpu.pipeline_mode<synchronous>, transform_indices = @transform_10, window_bounds = array<i64: 4, 64, 512>}, {pipeline_mode = #tpu.pipeline_mode<synchronous>, transform_indices = @transform_11, window_bounds = array<i64: 1, 4>}, {transform_indices = @transform_12, window_bounds = array<i64: 2, 1, 4>}]} {
    %c0 = arith.constant 0 : index
    %c0_0 = arith.constant 0 : index
    %0 = vector.load %arg2[%c0, %c0_0] : memref<1x1024xf32, #tpu.memory_space<vmem>>, vector<1x1024xf32>
    %cst = arith.constant 0.000000e+00 : f32
    %1 = vector.broadcast %cst : f32 to vector<8x128xf32>
    %c0_1 = arith.constant 0 : index
    %c0_2 = arith.constant 0 : index
    %2 = vector.load %arg14[%c0_1, %c0_2] : memref<8x1280xf32, #tpu.memory_space<vmem>>, vector<8x128xf32>
    tpu.vector_store %arg14[%c0_1, %c0_2], %1 {strides = array<i32>} : memref<8x1280xf32, #tpu.memory_space<vmem>>, vector<8x128xf32>,
    %cst_3 = arith.constant 0.000000e+00 : f32
    %3 = vector.broadcast %cst_3 : f32 to vector<8x128xf32>
    %c0_4 = arith.constant 0 : index
    %c1152 = arith.constant 1152 : index
    %4 = vector.load %arg14[%c0_4, %c1152] : memref<8x1280xf32, #tpu.memory_space<vmem>>, vector<8x128xf32>
    tpu.vector_store %arg14[%c0_4, %c1152], %3 {strides = array<i32>} : memref<8x1280xf32, #tpu.memory_space<vmem>>, vector<8x128xf32>,
    %c0_5 = arith.constant 0 : index
    %c0_6 = arith.constant 0 : index
    %c0_7 = arith.constant 0 : index
    %5 = vector.load %arg1[%c0_5, %c0_6, %c0_7] : memref<1x8x1024xf32, #tpu.memory_space<vmem>>, vector<1x8x1024xf32>
    %6 = vector.shape_cast %5 : vector<1x8x1024xf32> to vector<8x1024xf32>
    %c0_8 = arith.constant 0 : index
    %c128 = arith.constant 128 : index
    %7 = vector.load %arg14[%c0_8, %c128] : memref<8x1280xf32, #tpu.memory_space<vmem>>, vector<8x1024xf32>
    tpu.vector_store %arg14[%c0_8, %c128], %6 {strides = array<i32>} : memref<8x1280xf32, #tpu.memory_space<vmem>>, vector<8x1024xf32>,
    %c0_9 = arith.constant 0 : index
    %c59 = arith.constant 59 : index
    %8 = vector.load %arg14[%c0_9, %c59] : memref<8x1280xf32, #tpu.memory_space<vmem>>, vector<8x1024xf32>
    %c0_10 = arith.constant 0 : index
    %c60 = arith.constant 60 : index
    %9 = vector.load %arg14[%c0_10, %c60] : memref<8x1280xf32, #tpu.memory_space<vmem>>, vector<8x1024xf32>
    %10 = tpu.concatenate %8, %9 in 0 : vector<8x1024xf32>, vector<8x1024xf32> -> vector<16x1024xf32>
    %11 = arith.truncf %10 : vector<16x1024xf32> to vector<16x1024xbf16>
    %c0_11 = arith.constant 0 : index
    %c0_12 = arith.constant 0 : index
    %12 = vector.load %arg15[%c0_11, %c0_12] : memref<400x1024xbf16, #tpu.memory_space<vmem>>, vector<16x1024xbf16>
    tpu.vector_store %arg15[%c0_11, %c0_12], %11 {strides = array<i32>} : memref<400x1024xbf16, #tpu.memory_space<vmem>>, vector<16x1024xbf16>,
    %c0_13 = arith.constant 0 : index
    %c61 = arith.constant 61 : index
    %13 = vector.load %arg14[%c0_13, %c61] : memref<8x1280xf32, #tpu.memory_space<vmem>>, vector<8x1024xf32>
    %c0_14 = arith.constant 0 : index
    %c62 = arith.constant 62 : index
    %14 = vector.load %arg14[%c0_14, %c62] : memref<8x1280xf32, #tpu.memory_space<vmem>>, vector<8x1024xf32>
    %15 = tpu.concatenate %13, %14 in 0 : vector<8x1024xf32>, vector<8x1024xf32> -> vector<16x1024xf32>
    %16 = arith.truncf %15 : vector<16x1024xf32> to vector<16x1024xbf16>
    %c16 = arith.constant 16 : index
    %c0_15 = arith.constant 0 : index
    %17 = vector.load %arg15[%c16, %c0_15] : memref<400x1024xbf16, #tpu.memory_space<vmem>>, vector<16x1024xbf16>
    tpu.vector_store %arg15[%c16, %c0_15], %16 {strides = array<i32>} : memref<400x1024xbf16, #tpu.memory_space<vmem>>, vector<16x1024xbf16>,
    %c0_16 = arith.constant 0 : index
    %c63 = arith.constant 63 : index
    %18 = vector.load %arg14[%c0_16, %c63] : memref<8x1280xf32, #tpu.memory_space<vmem>>, vector<8x1024xf32>
    %c0_17 = arith.constant 0 : index
    %c64 = arith.constant 64 : index
    %19 = vector.load %arg14[%c0_17, %c64] : memref<8x1280xf32, #tpu.memory_space<vmem>>, vector<8x1024xf32>
    %20 = tpu.concatenate %18, %19 in 0 : vector<8x1024xf32>, vector<8x1024xf32> -> vector<16x1024xf32>
    %21 = arith.truncf %20 : vector<16x1024xf32> to vector<16x1024xbf16>
    %c32 = arith.constant 32 : index
    %c0_18 = arith.constant 0 : index
    %22 = vector.load %arg15[%c32, %c0_18] : memref<400x1024xbf16, #tpu.memory_space<vmem>>, vector<16x1024xbf16>
    tpu.vector_store %arg15[%c32, %c0_18], %21 {strides = array<i32>} : memref<400x1024xbf16, #tpu.memory_space<vmem>>, vector<16x1024xbf16>,
    %c0_19 = arith.constant 0 : index
    %c65 = arith.constant 65 : index
    %23 = vector.load %arg14[%c0_19, %c65] : memref<8x1280xf32, #tpu.memory_space<vmem>>, vector<8x1024xf32>
    %c0_20 = arith.constant 0 : index
    %c81 = arith.constant 81 : index
    %24 = vector.load %arg14[%c0_20, %c81] : memref<8x1280xf32, #tpu.memory_space<vmem>>, vector<8x1024xf32>
    %25 = tpu.concatenate %23, %24 in 0 : vector<8x1024xf32>, vector<8x1024xf32> -> vector<16x1024xf32>
    %26 = arith.truncf %25 : vector<16x1024xf32> to vector<16x1024xbf16>
    %c48 = arith.constant 48 : index
    %c0_21 = arith.constant 0 : index
    %27 = vector.load %arg15[%c48, %c0_21] : memref<400x1024xbf16, #tpu.memory_space<vmem>>, vector<16x1024xbf16>
    tpu.vector_store %arg15[%c48, %c0_21], %26 {strides = array<i32>} : memref<400x1024xbf16, #tpu.memory_space<vmem>>, vector<16x1024xbf16>,
    %c0_22 = arith.constant 0 : index
    %c82 = arith.constant 82 : index
    %28 = vector.load %arg14[%c0_22, %c82] : memref<8x1280xf32, #tpu.memory_space<vmem>>, vector<8x1024xf32>
    %c0_23 = arith.constant 0 : index
    %c83 = arith.constant 83 : index
    %29 = vector.load %arg14[%c0_23, %c83] : memref<8x1280xf32, #tpu.memory_space<vmem>>, vector<8x1024xf32>
    %30 = tpu.concatenate %28, %29 in 0 : vector<8x1024xf32>, vector<8x1024xf32> -> vector<16x1024xf32>
    %31 = arith.truncf %30 : vector<16x1024xf32> to vector<16x1024xbf16>
    %c64_24 = arith.constant 64 : index
    %c0_25 = arith.constant 0 : index
    %32 = vector.load %arg15[%c64_24, %c0_25] : memref<400x1024xbf16, #tpu.memory_space<vmem>>, vector<16x1024xbf16>
    tpu.vector_store %arg15[%c64_24, %c0_25], %31 {strides = array<i32>} : memref<400x1024xbf16, #tpu.memory_space<vmem>>, vector<16x1024xbf16>,
    %c0_26 = arith.constant 0 : index
    %c84 = arith.constant 84 : index
    %33 = vector.load %arg14[%c0_26, %c84] : memref<8x1280xf32, #tpu.memory_space<vmem>>, vector<8x1024xf32>
    %c0_27 = arith.constant 0 : index
    %c85 = arith.constant 85 : index
    %34 = vector.load %arg14[%c0_27, %c85] : memref<8x1280xf32, #tpu.memory_space<vmem>>, vector<8x1024xf32>
    %35 = tpu.concatenate %33, %34 in 0 : vector<8x1024xf32>, vector<8x1024xf32> -> vector<16x1024xf32>
    %36 = arith.truncf %35 : vector<16x1024xf32> to vector<16x1024xbf16>
    %c80 = arith.constant 80 : index
    %c0_28 = arith.constant 0 : index
    %37 = vector.load %arg15[%c80, %c0_28] : memref<400x1024xbf16, #tpu.memory_space<vmem>>, vector<16x1024xbf16>
    tpu.vector_store %arg15[%c80, %c0_28], %36 {strides = array<i32>} : memref<400x1024xbf16, #tpu.memory_space<vmem>>, vector<16x1024xbf16>,
    %c0_29 = arith.constant 0 : index
    %c86 = arith.constant 86 : index
    %38 = vector.load %arg14[%c0_29, %c86] : memref<8x1280xf32, #tpu.memory_space<vmem>>, vector<8x1024xf32>
    %c0_30 = arith.constant 0 : index
    %c87 = arith.constant 87 : index
    %39 = vector.load %arg14[%c0_30, %c87] : memref<8x1280xf32, #tpu.memory_space<vmem>>, vector<8x1024xf32>
    %40 = tpu.concatenate %38, %39 in 0 : vector<8x1024xf32>, vector<8x1024xf32> -> vector<16x1024xf32>
    %41 = arith.truncf %40 : vector<16x1024xf32> to vector<16x1024xbf16>
    %c96 = arith.constant 96 : index
    %c0_31 = arith.constant 0 : index
    %42 = vector.load %arg15[%c96, %c0_31] : memref<400x1024xbf16, #tpu.memory_space<vmem>>, vector<16x1024xbf16>
    tpu.vector_store %arg15[%c96, %c0_31], %41 {strides = array<i32>} : memref<400x1024xbf16, #tpu.memory_space<vmem>>, vector<16x1024xbf16>,
    %c0_32 = arith.constant 0 : index
    %c103 = arith.constant 103 : index
    %43 = vector.load %arg14[%c0_32, %c103] : memref<8x1280xf32, #tpu.memory_space<vmem>>, vector<8x1024xf32>
    %c0_33 = arith.constant 0 : index
    %c104 = arith.constant 104 : index
    %44 = vector.load %arg14[%c0_33, %c104] : memref<8x1280xf32, #tpu.memory_space<vmem>>, vector<8x1024xf32>
    %45 = tpu.concatenate %43, %44 in 0 : vector<8x1024xf32>, vector<8x1024xf32> -> vector<16x1024xf32>
    %46 = arith.truncf %45 : vector<16x1024xf32> to vector<16x1024xbf16>
    %c112 = arith.constant 112 : index
    %c0_34 = arith.constant 0 : index
    %47 = vector.load %arg15[%c112, %c0_34] : memref<400x1024xbf16, #tpu.memory_space<vmem>>, vector<16x1024xbf16>
    tpu.vector_store %arg15[%c112, %c0_34], %46 {strides = array<i32>} : memref<400x1024xbf16, #tpu.memory_space<vmem>>, vector<16x1024xbf16>,
    %c0_35 = arith.constant 0 : index
    %c105 = arith.constant 105 : index
    %48 = vector.load %arg14[%c0_35, %c105] : memref<8x1280xf32, #tpu.memory_space<vmem>>, vector<8x1024xf32>
    %c0_36 = arith.constant 0 : index
    %c106 = arith.constant 106 : index
    %49 = vector.load %arg14[%c0_36, %c106] : memref<8x1280xf32, #tpu.memory_space<vmem>>, vector<8x1024xf32>
    %50 = tpu.concatenate %48, %49 in 0 : vector<8x1024xf32>, vector<8x1024xf32> -> vector<16x1024xf32>
    %51 = arith.truncf %50 : vector<16x1024xf32> to vector<16x1024xbf16>
    %c128_37 = arith.constant 128 : index
    %c0_38 = arith.constant 0 : index
    %52 = vector.load %arg15[%c128_37, %c0_38] : memref<400x1024xbf16, #tpu.memory_space<vmem>>, vector<16x1024xbf16>
    tpu.vector_store %arg15[%c128_37, %c0_38], %51 {strides = array<i32>} : memref<400x1024xbf16, #tpu.memory_space<vmem>>, vector<16x1024xbf16>,
    %c0_39 = arith.constant 0 : index
    %c107 = arith.constant 107 : index
    %53 = vector.load %arg14[%c0_39, %c107] : memref<8x1280xf32, #tpu.memory_space<vmem>>, vector<8x1024xf32>
    %c0_40 = arith.constant 0 : index
    %c108 = arith.constant 108 : index
    %54 = vector.load %arg14[%c0_40, %c108] : memref<8x1280xf32, #tpu.memory_space<vmem>>, vector<8x1024xf32>
    %55 = tpu.concatenate %53, %54 in 0 : vector<8x1024xf32>, vector<8x1024xf32> -> vector<16x1024xf32>
    %56 = arith.truncf %55 : vector<16x1024xf32> to vector<16x1024xbf16>
    %c144 = arith.constant 144 : index
    %c0_41 = arith.constant 0 : index
    %57 = vector.load %arg15[%c144, %c0_41] : memref<400x1024xbf16, #tpu.memory_space<vmem>>, vector<16x1024xbf16>
    tpu.vector_store %arg15[%c144, %c0_41], %56 {strides = array<i32>} : memref<400x1024xbf16, #tpu.memory_space<vmem>>, vector<16x1024xbf16>,
    %c0_42 = arith.constant 0 : index
    %c109 = arith.constant 109 : index
    %58 = vector.load %arg14[%c0_42, %c109] : memref<8x1280xf32, #tpu.memory_space<vmem>>, vector<8x1024xf32>
    %c0_43 = arith.constant 0 : index
    %c125 = arith.constant 125 : index
    %59 = vector.load %arg14[%c0_43, %c125] : memref<8x1280xf32, #tpu.memory_space<vmem>>, vector<8x1024xf32>
    %60 = tpu.concatenate %58, %59 in 0 : vector<8x1024xf32>, vector<8x1024xf32> -> vector<16x1024xf32>
    %61 = arith.truncf %60 : vector<16x1024xf32> to vector<16x1024xbf16>
    %c160 = arith.constant 160 : index
    %c0_44 = arith.constant 0 : index
    %62 = vector.load %arg15[%c160, %c0_44] : memref<400x1024xbf16, #tpu.memory_space<vmem>>, vector<16x1024xbf16>
    tpu.vector_store %arg15[%c160, %c0_44], %61 {strides = array<i32>} : memref<400x1024xbf16, #tpu.memory_space<vmem>>, vector<16x1024xbf16>,
    %c0_45 = arith.constant 0 : index
    %c126 = arith.constant 126 : index
    %63 = vector.load %arg14[%c0_45, %c126] : memref<8x1280xf32, #tpu.memory_space<vmem>>, vector<8x1024xf32>
    %c0_46 = arith.constant 0 : index
    %c127 = arith.constant 127 : index
    %64 = vector.load %arg14[%c0_46, %c127] : memref<8x1280xf32, #tpu.memory_space<vmem>>, vector<8x1024xf32>
    %65 = tpu.concatenate %63, %64 in 0 : vector<8x1024xf32>, vector<8x1024xf32> -> vector<16x1024xf32>
    %66 = arith.truncf %65 : vector<16x1024xf32> to vector<16x1024xbf16>
    %c176 = arith.constant 176 : index
    %c0_47 = arith.constant 0 : index
    %67 = vector.load %arg15[%c176, %c0_47] : memref<400x1024xbf16, #tpu.memory_space<vmem>>, vector<16x1024xbf16>
    tpu.vector_store %arg15[%c176, %c0_47], %66 {strides = array<i32>} : memref<400x1024xbf16, #tpu.memory_space<vmem>>, vector<16x1024xbf16>,
    %c0_48 = arith.constant 0 : index
    %c128_49 = arith.constant 128 : index
    %68 = vector.load %arg14[%c0_48, %c128_49] : memref<8x1280xf32, #tpu.memory_space<vmem>>, vector<8x1024xf32>
    %c0_50 = arith.constant 0 : index
    %c129 = arith.constant 129 : index
    %69 = vector.load %arg14[%c0_50, %c129] : memref<8x1280xf32, #tpu.memory_space<vmem>>, vector<8x1024xf32>
    %70 = tpu.concatenate %68, %69 in 0 : vector<8x1024xf32>, vector<8x1024xf32> -> vector<16x1024xf32>
    %71 = arith.truncf %70 : vector<16x1024xf32> to vector<16x1024xbf16>
    %c192 = arith.constant 192 : index
    %c0_51 = arith.constant 0 : index
    %72 = vector.load %arg15[%c192, %c0_51] : memref<400x1024xbf16, #tpu.memory_space<vmem>>, vector<16x1024xbf16>
    tpu.vector_store %arg15[%c192, %c0_51], %71 {strides = array<i32>} : memref<400x1024xbf16, #tpu.memory_space<vmem>>, vector<16x1024xbf16>,
    %c0_52 = arith.constant 0 : index
    %c130 = arith.constant 130 : index
    %73 = vector.load %arg14[%c0_52, %c130] : memref<8x1280xf32, #tpu.memory_space<vmem>>, vector<8x1024xf32>
    %c0_53 = arith.constant 0 : index
    %c131 = arith.constant 131 : index
    %74 = vector.load %arg14[%c0_53, %c131] : memref<8x1280xf32, #tpu.memory_space<vmem>>, vector<8x1024xf32>
    %75 = tpu.concatenate %73, %74 in 0 : vector<8x1024xf32>, vector<8x1024xf32> -> vector<16x1024xf32>
    %76 = arith.truncf %75 : vector<16x1024xf32> to vector<16x1024xbf16>
    %c208 = arith.constant 208 : index
    %c0_54 = arith.constant 0 : index
    %77 = vector.load %arg15[%c208, %c0_54] : memref<400x1024xbf16, #tpu.memory_space<vmem>>, vector<16x1024xbf16>
    tpu.vector_store %arg15[%c208, %c0_54], %76 {strides = array<i32>} : memref<400x1024xbf16, #tpu.memory_space<vmem>>, vector<16x1024xbf16>,
    %c0_55 = arith.constant 0 : index
    %c147 = arith.constant 147 : index
    %78 = vector.load %arg14[%c0_55, %c147] : memref<8x1280xf32, #tpu.memory_space<vmem>>, vector<8x1024xf32>
    %c0_56 = arith.constant 0 : index
    %c148 = arith.constant 148 : index
    %79 = vector.load %arg14[%c0_56, %c148] : memref<8x1280xf32, #tpu.memory_space<vmem>>, vector<8x1024xf32>
    %80 = tpu.concatenate %78, %79 in 0 : vector<8x1024xf32>, vector<8x1024xf32> -> vector<16x1024xf32>
    %81 = arith.truncf %80 : vector<16x1024xf32> to vector<16x1024xbf16>
    %c224 = arith.constant 224 : index
    %c0_57 = arith.constant 0 : index
    %82 = vector.load %arg15[%c224, %c0_57] : memref<400x1024xbf16, #tpu.memory_space<vmem>>, vector<16x1024xbf16>
    tpu.vector_store %arg15[%c224, %c0_57], %81 {strides = array<i32>} : memref<400x1024xbf16, #tpu.memory_space<vmem>>, vector<16x1024xbf16>,
    %c0_58 = arith.constant 0 : index
    %c149 = arith.constant 149 : index
    %83 = vector.load %arg14[%c0_58, %c149] : memref<8x1280xf32, #tpu.memory_space<vmem>>, vector<8x1024xf32>
    %c0_59 = arith.constant 0 : index
    %c150 = arith.constant 150 : index
    %84 = vector.load %arg14[%c0_59, %c150] : memref<8x1280xf32, #tpu.memory_space<vmem>>, vector<8x1024xf32>
    %85 = tpu.concatenate %83, %84 in 0 : vector<8x1024xf32>, vector<8x1024xf32> -> vector<16x1024xf32>
    %86 = arith.truncf %85 : vector<16x1024xf32> to vector<16x1024xbf16>
    %c240 = arith.constant 240 : index
    %c0_60 = arith.constant 0 : index
    %87 = vector.load %arg15[%c240, %c0_60] : memref<400x1024xbf16, #tpu.memory_space<vmem>>, vector<16x1024xbf16>
    tpu.vector_store %arg15[%c240, %c0_60], %86 {strides = array<i32>} : memref<400x1024xbf16, #tpu.memory_space<vmem>>, vector<16x1024xbf16>,
    %c0_61 = arith.constant 0 : index
    %c151 = arith.constant 151 : index
    %88 = vector.load %arg14[%c0_61, %c151] : memref<8x1280xf32, #tpu.memory_space<vmem>>, vector<8x1024xf32>
    %c0_62 = arith.constant 0 : index
    %c152 = arith.constant 152 : index
    %89 = vector.load %arg14[%c0_62, %c152] : memref<8x1280xf32, #tpu.memory_space<vmem>>, vector<8x1024xf32>
    %90 = tpu.concatenate %88, %89 in 0 : vector<8x1024xf32>, vector<8x1024xf32> -> vector<16x1024xf32>
    %91 = arith.truncf %90 : vector<16x1024xf32> to vector<16x1024xbf16>
    %c256 = arith.constant 256 : index
    %c0_63 = arith.constant 0 : index
    %92 = vector.load %arg15[%c256, %c0_63] : memref<400x1024xbf16, #tpu.memory_space<vmem>>, vector<16x1024xbf16>
    tpu.vector_store %arg15[%c256, %c0_63], %91 {strides = array<i32>} : memref<400x1024xbf16, #tpu.memory_space<vmem>>, vector<16x1024xbf16>,
    %c0_64 = arith.constant 0 : index
    %c153 = arith.constant 153 : index
    %93 = vector.load %arg14[%c0_64, %c153] : memref<8x1280xf32, #tpu.memory_space<vmem>>, vector<8x1024xf32>
    %c0_65 = arith.constant 0 : index
    %c169 = arith.constant 169 : index
    %94 = vector.load %arg14[%c0_65, %c169] : memref<8x1280xf32, #tpu.memory_space<vmem>>, vector<8x1024xf32>
    %95 = tpu.concatenate %93, %94 in 0 : vector<8x1024xf32>, vector<8x1024xf32> -> vector<16x1024xf32>
    %96 = arith.truncf %95 : vector<16x1024xf32> to vector<16x1024xbf16>
    %c272 = arith.constant 272 : index
    %c0_66 = arith.constant 0 : index
    %97 = vector.load %arg15[%c272, %c0_66] : memref<400x1024xbf16, #tpu.memory_space<vmem>>, vector<16x1024xbf16>
    tpu.vector_store %arg15[%c272, %c0_66], %96 {strides = array<i32>} : memref<400x1024xbf16, #tpu.memory_space<vmem>>, vector<16x1024xbf16>,
    %c0_67 = arith.constant 0 : index
    %c170 = arith.constant 170 : index
    %98 = vector.load %arg14[%c0_67, %c170] : memref<8x1280xf32, #tpu.memory_space<vmem>>, vector<8x1024xf32>
    %c0_68 = arith.constant 0 : index
    %c171 = arith.constant 171 : index
    %99 = vector.load %arg14[%c0_68, %c171] : memref<8x1280xf32, #tpu.memory_space<vmem>>, vector<8x1024xf32>
    %100 = tpu.concatenate %98, %99 in 0 : vector<8x1024xf32>, vector<8x1024xf32> -> vector<16x1024xf32>
    %101 = arith.truncf %100 : vector<16x1024xf32> to vector<16x1024xbf16>
    %c288 = arith.constant 288 : index
    %c0_69 = arith.constant 0 : index
    %102 = vector.load %arg15[%c288, %c0_69] : memref<400x1024xbf16, #tpu.memory_space<vmem>>, vector<16x1024xbf16>
    tpu.vector_store %arg15[%c288, %c0_69], %101 {strides = array<i32>} : memref<400x1024xbf16, #tpu.memory_space<vmem>>, vector<16x1024xbf16>,
    %c0_70 = arith.constant 0 : index
    %c172 = arith.constant 172 : index
    %103 = vector.load %arg14[%c0_70, %c172] : memref<8x1280xf32, #tpu.memory_space<vmem>>, vector<8x1024xf32>
    %c0_71 = arith.constant 0 : index
    %c173 = arith.constant 173 : index
    %104 = vector.load %arg14[%c0_71, %c173] : memref<8x1280xf32, #tpu.memory_space<vmem>>, vector<8x1024xf32>
    %105 = tpu.concatenate %103, %104 in 0 : vector<8x1024xf32>, vector<8x1024xf32> -> vector<16x1024xf32>
    %106 = arith.truncf %105 : vector<16x1024xf32> to vector<16x1024xbf16>
    %c304 = arith.constant 304 : index
    %c0_72 = arith.constant 0 : index
    %107 = vector.load %arg15[%c304, %c0_72] : memref<400x1024xbf16, #tpu.memory_space<vmem>>, vector<16x1024xbf16>
    tpu.vector_store %arg15[%c304, %c0_72], %106 {strides = array<i32>} : memref<400x1024xbf16, #tpu.memory_space<vmem>>, vector<16x1024xbf16>,
    %c0_73 = arith.constant 0 : index
    %c174 = arith.constant 174 : index
    %108 = vector.load %arg14[%c0_73, %c174] : memref<8x1280xf32, #tpu.memory_space<vmem>>, vector<8x1024xf32>
    %c0_74 = arith.constant 0 : index
    %c175 = arith.constant 175 : index
    %109 = vector.load %arg14[%c0_74, %c175] : memref<8x1280xf32, #tpu.memory_space<vmem>>, vector<8x1024xf32>
    %110 = tpu.concatenate %108, %109 in 0 : vector<8x1024xf32>, vector<8x1024xf32> -> vector<16x1024xf32>
    %111 = arith.truncf %110 : vector<16x1024xf32> to vector<16x1024xbf16>
    %c320 = arith.constant 320 : index
    %c0_75 = arith.constant 0 : index
    %112 = vector.load %arg15[%c320, %c0_75] : memref<400x1024xbf16, #tpu.memory_space<vmem>>, vector<16x1024xbf16>
    tpu.vector_store %arg15[%c320, %c0_75], %111 {strides = array<i32>} : memref<400x1024xbf16, #tpu.memory_space<vmem>>, vector<16x1024xbf16>,
    %c0_76 = arith.constant 0 : index
    %c191 = arith.constant 191 : index
    %113 = vector.load %arg14[%c0_76, %c191] : memref<8x1280xf32, #tpu.memory_space<vmem>>, vector<8x1024xf32>
    %c0_77 = arith.constant 0 : index
    %c192_78 = arith.constant 192 : index
    %114 = vector.load %arg14[%c0_77, %c192_78] : memref<8x1280xf32, #tpu.memory_space<vmem>>, vector<8x1024xf32>
    %115 = tpu.concatenate %113, %114 in 0 : vector<8x1024xf32>, vector<8x1024xf32> -> vector<16x1024xf32>
    %116 = arith.truncf %115 : vector<16x1024xf32> to vector<16x1024xbf16>
    %c336 = arith.constant 336 : index
    %c0_79 = arith.constant 0 : index
    %117 = vector.load %arg15[%c336, %c0_79] : memref<400x1024xbf16, #tpu.memory_space<vmem>>, vector<16x1024xbf16>
    tpu.vector_store %arg15[%c336, %c0_79], %116 {strides = array<i32>} : memref<400x1024xbf16, #tpu.memory_space<vmem>>, vector<16x1024xbf16>,
    %c0_80 = arith.constant 0 : index
    %c193 = arith.constant 193 : index
    %118 = vector.load %arg14[%c0_80, %c193] : memref<8x1280xf32, #tpu.memory_space<vmem>>, vector<8x1024xf32>
    %c0_81 = arith.constant 0 : index
    %c194 = arith.constant 194 : index
    %119 = vector.load %arg14[%c0_81, %c194] : memref<8x1280xf32, #tpu.memory_space<vmem>>, vector<8x1024xf32>
    %120 = tpu.concatenate %118, %119 in 0 : vector<8x1024xf32>, vector<8x1024xf32> -> vector<16x1024xf32>
    %121 = arith.truncf %120 : vector<16x1024xf32> to vector<16x1024xbf16>
    %c352 = arith.constant 352 : index
    %c0_82 = arith.constant 0 : index
    %122 = vector.load %arg15[%c352, %c0_82] : memref<400x1024xbf16, #tpu.memory_space<vmem>>, vector<16x1024xbf16>
    tpu.vector_store %arg15[%c352, %c0_82], %121 {strides = array<i32>} : memref<400x1024xbf16, #tpu.memory_space<vmem>>, vector<16x1024xbf16>,
    %c0_83 = arith.constant 0 : index
    %c195 = arith.constant 195 : index
    %123 = vector.load %arg14[%c0_83, %c195] : memref<8x1280xf32, #tpu.memory_space<vmem>>, vector<8x1024xf32>
    %c0_84 = arith.constant 0 : index
    %c196 = arith.constant 196 : index
    %124 = vector.load %arg14[%c0_84, %c196] : memref<8x1280xf32, #tpu.memory_space<vmem>>, vector<8x1024xf32>
    %125 = tpu.concatenate %123, %124 in 0 : vector<8x1024xf32>, vector<8x1024xf32> -> vector<16x1024xf32>
    %126 = arith.truncf %125 : vector<16x1024xf32> to vector<16x1024xbf16>
    %c368 = arith.constant 368 : index
    %c0_85 = arith.constant 0 : index
    %127 = vector.load %arg15[%c368, %c0_85] : memref<400x1024xbf16, #tpu.memory_space<vmem>>, vector<16x1024xbf16>
    tpu.vector_store %arg15[%c368, %c0_85], %126 {strides = array<i32>} : memref<400x1024xbf16, #tpu.memory_space<vmem>>, vector<16x1024xbf16>,
    %c0_86 = arith.constant 0 : index
    %c197 = arith.constant 197 : index
    %128 = vector.load %arg14[%c0_86, %c197] : memref<8x1280xf32, #tpu.memory_space<vmem>>, vector<8x1024xf32>
    %c0_87 = arith.constant 0 : index
    %c197_88 = arith.constant 197 : index
    %129 = vector.load %arg14[%c0_87, %c197_88] : memref<8x1280xf32, #tpu.memory_space<vmem>>, vector<8x1024xf32>
    %130 = tpu.concatenate %128, %129 in 0 : vector<8x1024xf32>, vector<8x1024xf32> -> vector<16x1024xf32>
    %131 = arith.truncf %130 : vector<16x1024xf32> to vector<16x1024xbf16>
    %c384 = arith.constant 384 : index
    %c0_89 = arith.constant 0 : index
    %132 = vector.load %arg15[%c384, %c0_89] : memref<400x1024xbf16, #tpu.memory_space<vmem>>, vector<16x1024xbf16>
    tpu.vector_store %arg15[%c384, %c0_89], %131 {strides = array<i32>} : memref<400x1024xbf16, #tpu.memory_space<vmem>>, vector<16x1024xbf16>,
    %c0_90 = arith.constant 0 : index
    %c0_91 = arith.constant 0 : index
    %133 = vector.load %arg3[%c0_90, %c0_91] : memref<8x400xbf16, #tpu.memory_space<vmem>>, vector<8x400xbf16>
    %c0_92 = arith.constant 0 : index
    %c0_93 = arith.constant 0 : index
    %134 = vector.load %arg15[%c0_92, %c0_93] : memref<400x1024xbf16, #tpu.memory_space<vmem>>, vector<400x1024xbf16>
    %cst_94 = arith.constant dense<0.000000e+00> : vector<8x1024xf32>
    %135 = tpu.matmul %133, %134, %cst_94 {dimension_numbers = #tpu.dot_dimension_numbers<[1], [0], [0], [1], [0, 0, 1, 1], [], []>} : vector<8x400xbf16>, vector<400x1024xbf16>, vector<8x1024xf32> -> vector<8x1024xf32>
    %c0_95 = arith.constant 0 : index
    %c0_96 = arith.constant 0 : index
    %136 = vector.load %arg4[%c0_95, %c0_96] : memref<8x1xf32, #tpu.memory_space<vmem>>, vector<8x1xf32>
    %137 = vector.broadcast %136 : vector<8x1xf32> to vector<8x1024xf32>
    %138 = arith.addf %135, %137 : vector<8x1024xf32>
    %cst_97 = arith.constant 0.000000e+00 : f32
    %139 = vector.broadcast %cst_97 : f32 to vector<8x1024xf32>
    %140 = arith.maximumf %138, %139 : vector<8x1024xf32>
    %141 = vector.broadcast %0 : vector<1x1024xf32> to vector<8x1024xf32>
    %142 = arith.mulf %140, %141 : vector<8x1024xf32>
    %c0_98 = arith.constant 0 : index
    %c128_99 = arith.constant 128 : index
    %143 = vector.load %arg14[%c0_98, %c128_99] : memref<8x1280xf32, #tpu.memory_space<vmem>>, vector<8x1024xf32>
    tpu.vector_store %arg14[%c0_98, %c128_99], %142 {strides = array<i32>} : memref<8x1280xf32, #tpu.memory_space<vmem>>, vector<8x1024xf32>,
    %c0_100 = arith.constant 0 : index
    %c82_101 = arith.constant 82 : index
    %144 = vector.load %arg14[%c0_100, %c82_101] : memref<8x1280xf32, #tpu.memory_space<vmem>>, vector<8x1024xf32>
    %c0_102 = arith.constant 0 : index
    %c83_103 = arith.constant 83 : index
    %145 = vector.load %arg14[%c0_102, %c83_103] : memref<8x1280xf32, #tpu.memory_space<vmem>>, vector<8x1024xf32>
    %146 = tpu.concatenate %144, %145 in 0 : vector<8x1024xf32>, vector<8x1024xf32> -> vector<16x1024xf32>
    %147 = arith.truncf %146 : vector<16x1024xf32> to vector<16x1024xbf16>
    %c0_104 = arith.constant 0 : index
    %c0_105 = arith.constant 0 : index
    %148 = vector.load %arg15[%c0_104, %c0_105] : memref<400x1024xbf16, #tpu.memory_space<vmem>>, vector<16x1024xbf16>
    tpu.vector_store %arg15[%c0_104, %c0_105], %147 {strides = array<i32>} : memref<400x1024xbf16, #tpu.memory_space<vmem>>, vector<16x1024xbf16>,
    %c0_106 = arith.constant 0 : index
    %c84_107 = arith.constant 84 : index
    %149 = vector.load %arg14[%c0_106, %c84_107] : memref<8x1280xf32, #tpu.memory_space<vmem>>, vector<8x1024xf32>
    %c0_108 = arith.constant 0 : index
    %c85_109 = arith.constant 85 : index
    %150 = vector.load %arg14[%c0_108, %c85_109] : memref<8x1280xf32, #tpu.memory_space<vmem>>, vector<8x1024xf32>
    %151 = tpu.concatenate %149, %150 in 0 : vector<8x1024xf32>, vector<8x1024xf32> -> vector<16x1024xf32>
    %152 = arith.truncf %151 : vector<16x1024xf32> to vector<16x1024xbf16>
    %c16_110 = arith.constant 16 : index
    %c0_111 = arith.constant 0 : index
    %153 = vector.load %arg15[%c16_110, %c0_111] : memref<400x1024xbf16, #tpu.memory_space<vmem>>, vector<16x1024xbf16>
    tpu.vector_store %arg15[%c16_110, %c0_111], %152 {strides = array<i32>} : memref<400x1024xbf16, #tpu.memory_space<vmem>>, vector<16x1024xbf16>,
    %c0_112 = arith.constant 0 : index
    %c86_113 = arith.constant 86 : index
    %154 = vector.load %arg14[%c0_112, %c86_113] : memref<8x1280xf32, #tpu.memory_space<vmem>>, vector<8x1024xf32>
    %c0_114 = arith.constant 0 : index
    %c104_115 = arith.constant 104 : index
    %155 = vector.load %arg14[%c0_114, %c104_115] : memref<8x1280xf32, #tpu.memory_space<vmem>>, vector<8x1024xf32>
    %156 = tpu.concatenate %154, %155 in 0 : vector<8x1024xf32>, vector<8x1024xf32> -> vector<16x1024xf32>
    %157 = arith.truncf %156 : vector<16x1024xf32> to vector<16x1024xbf16>
    %c32_116 = arith.constant 32 : index
    %c0_117 = arith.constant 0 : index
    %158 = vector.load %arg15[%c32_116, %c0_117] : memref<400x1024xbf16, #tpu.memory_space<vmem>>, vector<16x1024xbf16>
    tpu.vector_store %arg15[%c32_116, %c0_117], %157 {strides = array<i32>} : memref<400x1024xbf16, #tpu.memory_space<vmem>>, vector<16x1024xbf16>,
    %c0_118 = arith.constant 0 : index
    %c105_119 = arith.constant 105 : index
    %159 = vector.load %arg14[%c0_118, %c105_119] : memref<8x1280xf32, #tpu.memory_space<vmem>>, vector<8x1024xf32>
    %c0_120 = arith.constant 0 : index
    %c106_121 = arith.constant 106 : index
    %160 = vector.load %arg14[%c0_120, %c106_121] : memref<8x1280xf32, #tpu.memory_space<vmem>>, vector<8x1024xf32>
    %161 = tpu.concatenate %159, %160 in 0 : vector<8x1024xf32>, vector<8x1024xf32> -> vector<16x1024xf32>
    %162 = arith.truncf %161 : vector<16x1024xf32> to vector<16x1024xbf16>
    %c48_122 = arith.constant 48 : index
    %c0_123 = arith.constant 0 : index
    %163 = vector.load %arg15[%c48_122, %c0_123] : memref<400x1024xbf16, #tpu.memory_space<vmem>>, vector<16x1024xbf16>
    tpu.vector_store %arg15[%c48_122, %c0_123], %162 {strides = array<i32>} : memref<400x1024xbf16, #tpu.memory_space<vmem>>, vector<16x1024xbf16>,
    %c0_124 = arith.constant 0 : index
    %c107_125 = arith.constant 107 : index
    %164 = vector.load %arg14[%c0_124, %c107_125] : memref<8x1280xf32, #tpu.memory_space<vmem>>, vector<8x1024xf32>
    %c0_126 = arith.constant 0 : index
    %c108_127 = arith.constant 108 : index
    %165 = vector.load %arg14[%c0_126, %c108_127] : memref<8x1280xf32, #tpu.memory_space<vmem>>, vector<8x1024xf32>
    %166 = tpu.concatenate %164, %165 in 0 : vector<8x1024xf32>, vector<8x1024xf32> -> vector<16x1024xf32>
    %167 = arith.truncf %166 : vector<16x1024xf32> to vector<16x1024xbf16>
    %c64_128 = arith.constant 64 : index
    %c0_129 = arith.constant 0 : index
    %168 = vector.load %arg15[%c64_128, %c0_129] : memref<400x1024xbf16, #tpu.memory_space<vmem>>, vector<16x1024xbf16>
    tpu.vector_store %arg15[%c64_128, %c0_129], %167 {strides = array<i32>} : memref<400x1024xbf16, #tpu.memory_space<vmem>>, vector<16x1024xbf16>,
    %c0_130 = arith.constant 0 : index
    %c126_131 = arith.constant 126 : index
    %169 = vector.load %arg14[%c0_130, %c126_131] : memref<8x1280xf32, #tpu.memory_space<vmem>>, vector<8x1024xf32>
    %c0_132 = arith.constant 0 : index
    %c127_133 = arith.constant 127 : index
    %170 = vector.load %arg14[%c0_132, %c127_133] : memref<8x1280xf32, #tpu.memory_space<vmem>>, vector<8x1024xf32>
    %171 = tpu.concatenate %169, %170 in 0 : vector<8x1024xf32>, vector<8x1024xf32> -> vector<16x1024xf32>
    %172 = arith.truncf %171 : vector<16x1024xf32> to vector<16x1024xbf16>
    %c80_134 = arith.constant 80 : index
    %c0_135 = arith.constant 0 : index
    %173 = vector.load %arg15[%c80_134, %c0_135] : memref<400x1024xbf16, #tpu.memory_space<vmem>>, vector<16x1024xbf16>
    tpu.vector_store %arg15[%c80_134, %c0_135], %172 {strides = array<i32>} : memref<400x1024xbf16, #tpu.memory_space<vmem>>, vector<16x1024xbf16>,
    %c0_136 = arith.constant 0 : index
    %c128_137 = arith.constant 128 : index
    %174 = vector.load %arg14[%c0_136, %c128_137] : memref<8x1280xf32, #tpu.memory_space<vmem>>, vector<8x1024xf32>
    %c0_138 = arith.constant 0 : index
    %c129_139 = arith.constant 129 : index
    %175 = vector.load %arg14[%c0_138, %c129_139] : memref<8x1280xf32, #tpu.memory_space<vmem>>, vector<8x1024xf32>
    %176 = tpu.concatenate %174, %175 in 0 : vector<8x1024xf32>, vector<8x1024xf32> -> vector<16x1024xf32>
    %177 = arith.truncf %176 : vector<16x1024xf32> to vector<16x1024xbf16>
    %c96_140 = arith.constant 96 : index
    %c0_141 = arith.constant 0 : index
    %178 = vector.load %arg15[%c96_140, %c0_141] : memref<400x1024xbf16, #tpu.memory_space<vmem>>, vector<16x1024xbf16>
    tpu.vector_store %arg15[%c96_140, %c0_141], %177 {strides = array<i32>} : memref<400x1024xbf16, #tpu.memory_space<vmem>>, vector<16x1024xbf16>,
    %c0_142 = arith.constant 0 : index
    %c130_143 = arith.constant 130 : index
    %179 = vector.load %arg14[%c0_142, %c130_143] : memref<8x1280xf32, #tpu.memory_space<vmem>>, vector<8x1024xf32>
    %c0_144 = arith.constant 0 : index
    %c148_145 = arith.constant 148 : index
    %180 = vector.load %arg14[%c0_144, %c148_145] : memref<8x1280xf32, #tpu.memory_space<vmem>>, vector<8x1024xf32>
    %181 = tpu.concatenate %179, %180 in 0 : vector<8x1024xf32>, vector<8x1024xf32> -> vector<16x1024xf32>
    %182 = arith.truncf %181 : vector<16x1024xf32> to vector<16x1024xbf16>
    %c112_146 = arith.constant 112 : index
    %c0_147 = arith.constant 0 : index
    %183 = vector.load %arg15[%c112_146, %c0_147] : memref<400x1024xbf16, #tpu.memory_space<vmem>>, vector<16x1024xbf16>
    tpu.vector_store %arg15[%c112_146, %c0_147], %182 {strides = array<i32>} : memref<400x1024xbf16, #tpu.memory_space<vmem>>, vector<16x1024xbf16>,
    %c0_148 = arith.constant 0 : index
    %c149_149 = arith.constant 149 : index
    %184 = vector.load %arg14[%c0_148, %c149_149] : memref<8x1280xf32, #tpu.memory_space<vmem>>, vector<8x1024xf32>
    %c0_150 = arith.constant 0 : index
    %c150_151 = arith.constant 150 : index
    %185 = vector.load %arg14[%c0_150, %c150_151] : memref<8x1280xf32, #tpu.memory_space<vmem>>, vector<8x1024xf32>
    %186 = tpu.concatenate %184, %185 in 0 : vector<8x1024xf32>, vector<8x1024xf32> -> vector<16x1024xf32>
    %187 = arith.truncf %186 : vector<16x1024xf32> to vector<16x1024xbf16>
    %c128_152 = arith.constant 128 : index
    %c0_153 = arith.constant 0 : index
    %188 = vector.load %arg15[%c128_152, %c0_153] : memref<400x1024xbf16, #tpu.memory_space<vmem>>, vector<16x1024xbf16>
    tpu.vector_store %arg15[%c128_152, %c0_153], %187 {strides = array<i32>} : memref<400x1024xbf16, #tpu.memory_space<vmem>>, vector<16x1024xbf16>,
    %c0_154 = arith.constant 0 : index
    %c151_155 = arith.constant 151 : index
    %189 = vector.load %arg14[%c0_154, %c151_155] : memref<8x1280xf32, #tpu.memory_space<vmem>>, vector<8x1024xf32>
    %c0_156 = arith.constant 0 : index
    %c152_157 = arith.constant 152 : index
    %190 = vector.load %arg14[%c0_156, %c152_157] : memref<8x1280xf32, #tpu.memory_space<vmem>>, vector<8x1024xf32>
    %191 = tpu.concatenate %189, %190 in 0 : vector<8x1024xf32>, vector<8x1024xf32> -> vector<16x1024xf32>
    %192 = arith.truncf %191 : vector<16x1024xf32> to vector<16x1024xbf16>
    %c144_158 = arith.constant 144 : index
    %c0_159 = arith.constant 0 : index
    %193 = vector.load %arg15[%c144_158, %c0_159] : memref<400x1024xbf16, #tpu.memory_space<vmem>>, vector<16x1024xbf16>
    tpu.vector_store %arg15[%c144_158, %c0_159], %192 {strides = array<i32>} : memref<400x1024xbf16, #tpu.memory_space<vmem>>, vector<16x1024xbf16>,
    %c0_160 = arith.constant 0 : index
    %c170_161 = arith.constant 170 : index
    %194 = vector.load %arg14[%c0_160, %c170_161] : memref<8x1280xf32, #tpu.memory_space<vmem>>, vector<8x1024xf32>
    %c0_162 = arith.constant 0 : index
    %c171_163 = arith.constant 171 : index
    %195 = vector.load %arg14[%c0_162, %c171_163] : memref<8x1280xf32, #tpu.memory_space<vmem>>, vector<8x1024xf32>
    %196 = tpu.concatenate %194, %195 in 0 : vector<8x1024xf32>, vector<8x1024xf32> -> vector<16x1024xf32>
    %197 = arith.truncf %196 : vector<16x1024xf32> to vector<16x1024xbf16>
    %c160_164 = arith.constant 160 : index
    %c0_165 = arith.constant 0 : index
    %198 = vector.load %arg15[%c160_164, %c0_165] : memref<400x1024xbf16, #tpu.memory_space<vmem>>, vector<16x1024xbf16>
    tpu.vector_store %arg15[%c160_164, %c0_165], %197 {strides = array<i32>} : memref<400x1024xbf16, #tpu.memory_space<vmem>>, vector<16x1024xbf16>,
    %c0_166 = arith.constant 0 : index
    %c172_167 = arith.constant 172 : index
    %199 = vector.load %arg14[%c0_166, %c172_167] : memref<8x1280xf32, #tpu.memory_space<vmem>>, vector<8x1024xf32>
    %c0_168 = arith.constant 0 : index
    %c173_169 = arith.constant 173 : index
    %200 = vector.load %arg14[%c0_168, %c173_169] : memref<8x1280xf32, #tpu.memory_space<vmem>>, vector<8x1024xf32>
    %201 = tpu.concatenate %199, %200 in 0 : vector<8x1024xf32>, vector<8x1024xf32> -> vector<16x1024xf32>
    %202 = arith.truncf %201 : vector<16x1024xf32> to vector<16x1024xbf16>
    %c176_170 = arith.constant 176 : index
    %c0_171 = arith.constant 0 : index
    %203 = vector.load %arg15[%c176_170, %c0_171] : memref<400x1024xbf16, #tpu.memory_space<vmem>>, vector<16x1024xbf16>
    tpu.vector_store %arg15[%c176_170, %c0_171], %202 {strides = array<i32>} : memref<400x1024xbf16, #tpu.memory_space<vmem>>, vector<16x1024xbf16>,
    %c0_172 = arith.constant 0 : index
    %c174_173 = arith.constant 174 : index
    %204 = vector.load %arg14[%c0_172, %c174_173] : memref<8x1280xf32, #tpu.memory_space<vmem>>, vector<8x1024xf32>
    %c0_174 = arith.constant 0 : index
    %c174_175 = arith.constant 174 : index
    %205 = vector.load %arg14[%c0_174, %c174_175] : memref<8x1280xf32, #tpu.memory_space<vmem>>, vector<8x1024xf32>
    %206 = tpu.concatenate %204, %205 in 0 : vector<8x1024xf32>, vector<8x1024xf32> -> vector<16x1024xf32>
    %207 = arith.truncf %206 : vector<16x1024xf32> to vector<16x1024xbf16>
    %c192_176 = arith.constant 192 : index
    %c0_177 = arith.constant 0 : index
    %208 = vector.load %arg15[%c192_176, %c0_177] : memref<400x1024xbf16, #tpu.memory_space<vmem>>, vector<16x1024xbf16>
    tpu.vector_store %arg15[%c192_176, %c0_177], %207 {strides = array<i32>} : memref<400x1024xbf16, #tpu.memory_space<vmem>>, vector<16x1024xbf16>,
    %c0_178 = arith.constant 0 : index
    %c0_179 = arith.constant 0 : index
    %209 = vector.load %arg5[%c0_178, %c0_179] : memref<8x208xbf16, #tpu.memory_space<vmem>>, vector<8x208xbf16>
    %c0_180 = arith.constant 0 : index
    %c0_181 = arith.constant 0 : index
    %210 = vector.load %arg15[%c0_180, %c0_181] : memref<400x1024xbf16, #tpu.memory_space<vmem>>, vector<208x1024xbf16>
    %cst_182 = arith.constant dense<0.000000e+00> : vector<8x1024xf32>
    %211 = tpu.matmul %209, %210, %cst_182 {dimension_numbers = #tpu.dot_dimension_numbers<[1], [0], [0], [1], [0, 0, 1, 1], [], []>} : vector<8x208xbf16>, vector<208x1024xbf16>, vector<8x1024xf32> -> vector<8x1024xf32>
    %c0_183 = arith.constant 0 : index
    %c0_184 = arith.constant 0 : index
    %212 = vector.load %arg6[%c0_183, %c0_184] : memref<8x1xf32, #tpu.memory_space<vmem>>, vector<8x1xf32>
    %213 = vector.broadcast %212 : vector<8x1xf32> to vector<8x1024xf32>
    %214 = arith.addf %211, %213 : vector<8x1024xf32>
    %cst_185 = arith.constant 0.000000e+00 : f32
    %215 = vector.broadcast %cst_185 : f32 to vector<8x1024xf32>
    %216 = arith.maximumf %214, %215 : vector<8x1024xf32>
    %217 = vector.broadcast %0 : vector<1x1024xf32> to vector<8x1024xf32>
    %218 = arith.mulf %216, %217 : vector<8x1024xf32>
    %c0_186 = arith.constant 0 : index
    %c128_187 = arith.constant 128 : index
    %219 = vector.load %arg14[%c0_186, %c128_187] : memref<8x1280xf32, #tpu.memory_space<vmem>>, vector<8x1024xf32>
    tpu.vector_store %arg14[%c0_186, %c128_187], %218 {strides = array<i32>} : memref<8x1280xf32, #tpu.memory_space<vmem>>, vector<8x1024xf32>,
    %c0_188 = arith.constant 0 : index
    %c105_189 = arith.constant 105 : index
    %220 = vector.load %arg14[%c0_188, %c105_189] : memref<8x1280xf32, #tpu.memory_space<vmem>>, vector<8x1024xf32>
    %c0_190 = arith.constant 0 : index
    %c106_191 = arith.constant 106 : index
    %221 = vector.load %arg14[%c0_190, %c106_191] : memref<8x1280xf32, #tpu.memory_space<vmem>>, vector<8x1024xf32>
    %222 = tpu.concatenate %220, %221 in 0 : vector<8x1024xf32>, vector<8x1024xf32> -> vector<16x1024xf32>
    %223 = arith.truncf %222 : vector<16x1024xf32> to vector<16x1024xbf16>
    %c0_192 = arith.constant 0 : index
    %c0_193 = arith.constant 0 : index
    %224 = vector.load %arg15[%c0_192, %c0_193] : memref<400x1024xbf16, #tpu.memory_space<vmem>>, vector<16x1024xbf16>
    tpu.vector_store %arg15[%c0_192, %c0_193], %223 {strides = array<i32>} : memref<400x1024xbf16, #tpu.memory_space<vmem>>, vector<16x1024xbf16>,
    %c0_194 = arith.constant 0 : index
    %c107_195 = arith.constant 107 : index
    %225 = vector.load %arg14[%c0_194, %c107_195] : memref<8x1280xf32, #tpu.memory_space<vmem>>, vector<8x1024xf32>
    %c0_196 = arith.constant 0 : index
    %c127_197 = arith.constant 127 : index
    %226 = vector.load %arg14[%c0_196, %c127_197] : memref<8x1280xf32, #tpu.memory_space<vmem>>, vector<8x1024xf32>
    %227 = tpu.concatenate %225, %226 in 0 : vector<8x1024xf32>, vector<8x1024xf32> -> vector<16x1024xf32>
    %228 = arith.truncf %227 : vector<16x1024xf32> to vector<16x1024xbf16>
    %c16_198 = arith.constant 16 : index
    %c0_199 = arith.constant 0 : index
    %229 = vector.load %arg15[%c16_198, %c0_199] : memref<400x1024xbf16, #tpu.memory_space<vmem>>, vector<16x1024xbf16>
    tpu.vector_store %arg15[%c16_198, %c0_199], %228 {strides = array<i32>} : memref<400x1024xbf16, #tpu.memory_space<vmem>>, vector<16x1024xbf16>,
    %c0_200 = arith.constant 0 : index
    %c128_201 = arith.constant 128 : index
    %230 = vector.load %arg14[%c0_200, %c128_201] : memref<8x1280xf32, #tpu.memory_space<vmem>>, vector<8x1024xf32>
    %c0_202 = arith.constant 0 : index
    %c129_203 = arith.constant 129 : index
    %231 = vector.load %arg14[%c0_202, %c129_203] : memref<8x1280xf32, #tpu.memory_space<vmem>>, vector<8x1024xf32>
    %232 = tpu.concatenate %230, %231 in 0 : vector<8x1024xf32>, vector<8x1024xf32> -> vector<16x1024xf32>
    %233 = arith.truncf %232 : vector<16x1024xf32> to vector<16x1024xbf16>
    %c32_204 = arith.constant 32 : index
    %c0_205 = arith.constant 0 : index
    %234 = vector.load %arg15[%c32_204, %c0_205] : memref<400x1024xbf16, #tpu.memory_space<vmem>>, vector<16x1024xbf16>
    tpu.vector_store %arg15[%c32_204, %c0_205], %233 {strides = array<i32>} : memref<400x1024xbf16, #tpu.memory_space<vmem>>, vector<16x1024xbf16>,
    %c0_206 = arith.constant 0 : index
    %c149_207 = arith.constant 149 : index
    %235 = vector.load %arg14[%c0_206, %c149_207] : memref<8x1280xf32, #tpu.memory_space<vmem>>, vector<8x1024xf32>
    %c0_208 = arith.constant 0 : index
    %c150_209 = arith.constant 150 : index
    %236 = vector.load %arg14[%c0_208, %c150_209] : memref<8x1280xf32, #tpu.memory_space<vmem>>, vector<8x1024xf32>
    %237 = tpu.concatenate %235, %236 in 0 : vector<8x1024xf32>, vector<8x1024xf32> -> vector<16x1024xf32>
    %238 = arith.truncf %237 : vector<16x1024xf32> to vector<16x1024xbf16>
    %c48_210 = arith.constant 48 : index
    %c0_211 = arith.constant 0 : index
    %239 = vector.load %arg15[%c48_210, %c0_211] : memref<400x1024xbf16, #tpu.memory_space<vmem>>, vector<16x1024xbf16>
    tpu.vector_store %arg15[%c48_210, %c0_211], %238 {strides = array<i32>} : memref<400x1024xbf16, #tpu.memory_space<vmem>>, vector<16x1024xbf16>,
    %c0_212 = arith.constant 0 : index
    %c151_213 = arith.constant 151 : index
    %240 = vector.load %arg14[%c0_212, %c151_213] : memref<8x1280xf32, #tpu.memory_space<vmem>>, vector<8x1024xf32>
    %c0_214 = arith.constant 0 : index
    %c151_215 = arith.constant 151 : index
    %241 = vector.load %arg14[%c0_214, %c151_215] : memref<8x1280xf32, #tpu.memory_space<vmem>>, vector<8x1024xf32>
    %242 = tpu.concatenate %240, %241 in 0 : vector<8x1024xf32>, vector<8x1024xf32> -> vector<16x1024xf32>
    %243 = arith.truncf %242 : vector<16x1024xf32> to vector<16x1024xbf16>
    %c64_216 = arith.constant 64 : index
    %c0_217 = arith.constant 0 : index
    %244 = vector.load %arg15[%c64_216, %c0_217] : memref<400x1024xbf16, #tpu.memory_space<vmem>>, vector<16x1024xbf16>
    tpu.vector_store %arg15[%c64_216, %c0_217], %243 {strides = array<i32>} : memref<400x1024xbf16, #tpu.memory_space<vmem>>, vector<16x1024xbf16>,
    %c0_218 = arith.constant 0 : index
    %c0_219 = arith.constant 0 : index
    %245 = vector.load %arg7[%c0_218, %c0_219] : memref<8x80xbf16, #tpu.memory_space<vmem>>, vector<8x80xbf16>
    %c0_220 = arith.constant 0 : index
    %c0_221 = arith.constant 0 : index
    %246 = vector.load %arg15[%c0_220, %c0_221] : memref<400x1024xbf16, #tpu.memory_space<vmem>>, vector<80x1024xbf16>
    %cst_222 = arith.constant dense<0.000000e+00> : vector<8x1024xf32>
    %247 = tpu.matmul %245, %246, %cst_222 {dimension_numbers = #tpu.dot_dimension_numbers<[1], [0], [0], [1], [0, 0, 1, 1], [], []>} : vector<8x80xbf16>, vector<80x1024xbf16>, vector<8x1024xf32> -> vector<8x1024xf32>
    %c0_223 = arith.constant 0 : index
    %c0_224 = arith.constant 0 : index
    %248 = vector.load %arg8[%c0_223, %c0_224] : memref<8x1xf32, #tpu.memory_space<vmem>>, vector<8x1xf32>
    %249 = vector.broadcast %248 : vector<8x1xf32> to vector<8x1024xf32>
    %250 = arith.addf %247, %249 : vector<8x1024xf32>
    %cst_225 = arith.constant 0.000000e+00 : f32
    %251 = vector.broadcast %cst_225 : f32 to vector<8x1024xf32>
    %252 = arith.maximumf %250, %251 : vector<8x1024xf32>
    %253 = vector.broadcast %0 : vector<1x1024xf32> to vector<8x1024xf32>
    %254 = arith.mulf %252, %253 : vector<8x1024xf32>
    %c0_226 = arith.constant 0 : index
    %c0_227 = arith.constant 0 : index
    %255 = vector.load %arg9[%c0_226, %c0_227] : memref<64x8xbf16, #tpu.memory_space<vmem>>, vector<64x8xbf16>
    %256 = arith.truncf %254 : vector<8x1024xf32> to vector<8x1024xbf16>
    %cst_228 = arith.constant dense<0.000000e+00> : vector<64x1024xf32>
    %257 = tpu.matmul %255, %256, %cst_228 {dimension_numbers = #tpu.dot_dimension_numbers<[1], [0], [0], [1], [0, 0, 1, 1], [], []>} : vector<64x8xbf16>, vector<8x1024xbf16>, vector<64x1024xf32> -> vector<64x1024xf32>
    %c0_229 = arith.constant 0 : index
    %c0_230 = arith.constant 0 : index
    %258 = vector.load %arg10[%c0_229, %c0_230] : memref<64x1xf32, #tpu.memory_space<vmem>>, vector<64x1xf32>
    %259 = vector.broadcast %258 : vector<64x1xf32> to vector<64x1024xf32>
    %260 = arith.addf %257, %259 : vector<64x1024xf32>
    %cst_231 = arith.constant 0.000000e+00 : f32
    %261 = vector.broadcast %cst_231 : f32 to vector<64x1024xf32>
    %262 = arith.maximumf %260, %261 : vector<64x1024xf32>
    %263 = vector.broadcast %0 : vector<1x1024xf32> to vector<64x1024xf32>
    %264 = arith.mulf %262, %263 : vector<64x1024xf32>
    %cst_232 = arith.constant 1.000000e+00 : f32
    %265 = vector.broadcast %cst_232 : f32 to vector<1x64xf32>
    %266 = tpu.iota {dimensions = array<i32: 1>} : vector<1x4xi32>
    %267 = vector.extract_strided_slice %264 {offsets = [0, 0], sizes = [64, 512], strides = [1, 1]} : vector<64x1024xf32> to vector<64x512xf32>
    %268 = vector.extract_strided_slice %264 {offsets = [0, 512], sizes = [64, 512], strides = [1, 1]} : vector<64x1024xf32> to vector<64x512xf32>
    %c0_233 = arith.constant 0 : index
    %c0_234 = arith.constant 0 : index
    %269 = vector.load %arg12[%c0_233, %c0_234] : memref<1x4xf32, #tpu.memory_space<vmem>>, vector<1x4xf32>
    %c0_235 = arith.constant 0 : index
    %c0_236 = arith.constant 0 : index
    %270 = vector.load %arg12[%c0_235, %c0_236] : memref<1x4xf32, #tpu.memory_space<vmem>>, vector<1x4xf32>
    %c0_i32 = arith.constant 0 : i32
    %271 = vector.broadcast %c0_i32 : i32 to vector<1x4xi32>
    %272 = arith.cmpi eq, %266, %271 : vector<1x4xi32>
    %273 = arith.extui %272 : vector<1x4xi1> to vector<1x4xi32>
    %274 = arith.sitofp %273 : vector<1x4xi32> to vector<1x4xf32>
    %c0_237 = arith.constant 0 : index
    %c0_238 = arith.constant 0 : index
    %c0_239 = arith.constant 0 : index
    %275 = vector.load %arg11[%c0_237, %c0_238, %c0_239] : memref<4x64x512xf32, #tpu.memory_space<vmem>>, vector<1x64x512xf32>
    %276 = vector.shape_cast %275 : vector<1x64x512xf32> to vector<64x512xf32>
    %277 = arith.mulf %276, %267 : vector<64x512xf32>
    %cst_240 = arith.constant dense<0.000000e+00> : vector<1x512xf32>
    %278 = tpu.matmul %265, %277, %cst_240 {dimension_numbers = #tpu.dot_dimension_numbers<[1], [0], [0], [1], [0, 0, 1, 1], [], []>} : vector<1x64xf32>, vector<64x512xf32>, vector<1x512xf32> -> vector<1x512xf32>
    %cst_241 = arith.constant dense<0.000000e+00> : vector<1xf32>
    %279 = vector.multi_reduction <add>, %278, %cst_241 [1] : vector<1x512xf32> to vector<1xf32>
    %280 = vector.shape_cast %279 : vector<1xf32> to vector<1x1xf32>
    %281 = vector.broadcast %280 : vector<1x1xf32> to vector<1x4xf32>
    %282 = arith.mulf %281, %274 : vector<1x4xf32>
    %283 = arith.addf %269, %282 : vector<1x4xf32>
    %284 = arith.mulf %276, %268 : vector<64x512xf32>
    %cst_242 = arith.constant dense<0.000000e+00> : vector<1x512xf32>
    %285 = tpu.matmul %265, %284, %cst_242 {dimension_numbers = #tpu.dot_dimension_numbers<[1], [0], [0], [1], [0, 0, 1, 1], [], []>} : vector<1x64xf32>, vector<64x512xf32>, vector<1x512xf32> -> vector<1x512xf32>
    %cst_243 = arith.constant dense<0.000000e+00> : vector<1xf32>
    %286 = vector.multi_reduction <add>, %285, %cst_243 [1] : vector<1x512xf32> to vector<1xf32>
    %287 = vector.shape_cast %286 : vector<1xf32> to vector<1x1xf32>
    %288 = vector.broadcast %287 : vector<1x1xf32> to vector<1x4xf32>
    %289 = arith.mulf %288, %274 : vector<1x4xf32>
    %290 = arith.addf %270, %289 : vector<1x4xf32>
    %c1_i32 = arith.constant 1 : i32
    %291 = vector.broadcast %c1_i32 : i32 to vector<1x4xi32>
    %292 = arith.cmpi eq, %266, %291 : vector<1x4xi32>
    %293 = arith.extui %292 : vector<1x4xi1> to vector<1x4xi32>
    %294 = arith.sitofp %293 : vector<1x4xi32> to vector<1x4xf32>
    %c1 = arith.constant 1 : index
    %c0_244 = arith.constant 0 : index
    %c0_245 = arith.constant 0 : index
    %295 = vector.load %arg11[%c1, %c0_244, %c0_245] : memref<4x64x512xf32, #tpu.memory_space<vmem>>, vector<1x64x512xf32>
    %296 = vector.shape_cast %295 : vector<1x64x512xf32> to vector<64x512xf32>
    %297 = arith.mulf %296, %267 : vector<64x512xf32>
    %cst_246 = arith.constant dense<0.000000e+00> : vector<1x512xf32>
    %298 = tpu.matmul %265, %297, %cst_246 {dimension_numbers = #tpu.dot_dimension_numbers<[1], [0], [0], [1], [0, 0, 1, 1], [], []>} : vector<1x64xf32>, vector<64x512xf32>, vector<1x512xf32> -> vector<1x512xf32>
    %cst_247 = arith.constant dense<0.000000e+00> : vector<1xf32>
    %299 = vector.multi_reduction <add>, %298, %cst_247 [1] : vector<1x512xf32> to vector<1xf32>
    %300 = vector.shape_cast %299 : vector<1xf32> to vector<1x1xf32>
    %301 = vector.broadcast %300 : vector<1x1xf32> to vector<1x4xf32>
    %302 = arith.mulf %301, %294 : vector<1x4xf32>
    %303 = arith.addf %283, %302 : vector<1x4xf32>
    %304 = arith.mulf %296, %268 : vector<64x512xf32>
    %cst_248 = arith.constant dense<0.000000e+00> : vector<1x512xf32>
    %305 = tpu.matmul %265, %304, %cst_248 {dimension_numbers = #tpu.dot_dimension_numbers<[1], [0], [0], [1], [0, 0, 1, 1], [], []>} : vector<1x64xf32>, vector<64x512xf32>, vector<1x512xf32> -> vector<1x512xf32>
    %cst_249 = arith.constant dense<0.000000e+00> : vector<1xf32>
    %306 = vector.multi_reduction <add>, %305, %cst_249 [1] : vector<1x512xf32> to vector<1xf32>
    %307 = vector.shape_cast %306 : vector<1xf32> to vector<1x1xf32>
    %308 = vector.broadcast %307 : vector<1x1xf32> to vector<1x4xf32>
    %309 = arith.mulf %308, %294 : vector<1x4xf32>
    %310 = arith.addf %290, %309 : vector<1x4xf32>
    %c2_i32 = arith.constant 2 : i32
    %311 = vector.broadcast %c2_i32 : i32 to vector<1x4xi32>
    %312 = arith.cmpi eq, %266, %311 : vector<1x4xi32>
    %313 = arith.extui %312 : vector<1x4xi1> to vector<1x4xi32>
    %314 = arith.sitofp %313 : vector<1x4xi32> to vector<1x4xf32>
    %c2 = arith.constant 2 : index
    %c0_250 = arith.constant 0 : index
    %c0_251 = arith.constant 0 : index
    %315 = vector.load %arg11[%c2, %c0_250, %c0_251] : memref<4x64x512xf32, #tpu.memory_space<vmem>>, vector<1x64x512xf32>
    %316 = vector.shape_cast %315 : vector<1x64x512xf32> to vector<64x512xf32>
    %317 = arith.mulf %316, %267 : vector<64x512xf32>
    %cst_252 = arith.constant dense<0.000000e+00> : vector<1x512xf32>
    %318 = tpu.matmul %265, %317, %cst_252 {dimension_numbers = #tpu.dot_dimension_numbers<[1], [0], [0], [1], [0, 0, 1, 1], [], []>} : vector<1x64xf32>, vector<64x512xf32>, vector<1x512xf32> -> vector<1x512xf32>
    %cst_253 = arith.constant dense<0.000000e+00> : vector<1xf32>
    %319 = vector.multi_reduction <add>, %318, %cst_253 [1] : vector<1x512xf32> to vector<1xf32>
    %320 = vector.shape_cast %319 : vector<1xf32> to vector<1x1xf32>
    %321 = vector.broadcast %320 : vector<1x1xf32> to vector<1x4xf32>
    %322 = arith.mulf %321, %314 : vector<1x4xf32>
    %323 = arith.addf %303, %322 : vector<1x4xf32>
    %324 = arith.mulf %316, %268 : vector<64x512xf32>
    %cst_254 = arith.constant dense<0.000000e+00> : vector<1x512xf32>
    %325 = tpu.matmul %265, %324, %cst_254 {dimension_numbers = #tpu.dot_dimension_numbers<[1], [0], [0], [1], [0, 0, 1, 1], [], []>} : vector<1x64xf32>, vector<64x512xf32>, vector<1x512xf32> -> vector<1x512xf32>
    %cst_255 = arith.constant dense<0.000000e+00> : vector<1xf32>
    %326 = vector.multi_reduction <add>, %325, %cst_255 [1] : vector<1x512xf32> to vector<1xf32>
    %327 = vector.shape_cast %326 : vector<1xf32> to vector<1x1xf32>
    %328 = vector.broadcast %327 : vector<1x1xf32> to vector<1x4xf32>
    %329 = arith.mulf %328, %314 : vector<1x4xf32>
    %330 = arith.addf %310, %329 : vector<1x4xf32>
    %c3_i32 = arith.constant 3 : i32
    %331 = vector.broadcast %c3_i32 : i32 to vector<1x4xi32>
    %332 = arith.cmpi eq, %266, %331 : vector<1x4xi32>
    %333 = arith.extui %332 : vector<1x4xi1> to vector<1x4xi32>
    %334 = arith.sitofp %333 : vector<1x4xi32> to vector<1x4xf32>
    %c3 = arith.constant 3 : index
    %c0_256 = arith.constant 0 : index
    %c0_257 = arith.constant 0 : index
    %335 = vector.load %arg11[%c3, %c0_256, %c0_257] : memref<4x64x512xf32, #tpu.memory_space<vmem>>, vector<1x64x512xf32>
    %336 = vector.shape_cast %335 : vector<1x64x512xf32> to vector<64x512xf32>
    %337 = arith.mulf %336, %267 : vector<64x512xf32>
    %cst_258 = arith.constant dense<0.000000e+00> : vector<1x512xf32>
    %338 = tpu.matmul %265, %337, %cst_258 {dimension_numbers = #tpu.dot_dimension_numbers<[1], [0], [0], [1], [0, 0, 1, 1], [], []>} : vector<1x64xf32>, vector<64x512xf32>, vector<1x512xf32> -> vector<1x512xf32>
    %cst_259 = arith.constant dense<0.000000e+00> : vector<1xf32>
    %339 = vector.multi_reduction <add>, %338, %cst_259 [1] : vector<1x512xf32> to vector<1xf32>
    %340 = vector.shape_cast %339 : vector<1xf32> to vector<1x1xf32>
    %341 = vector.broadcast %340 : vector<1x1xf32> to vector<1x4xf32>
    %342 = arith.mulf %341, %334 : vector<1x4xf32>
    %343 = arith.addf %323, %342 : vector<1x4xf32>
    %344 = arith.mulf %336, %268 : vector<64x512xf32>
    %cst_260 = arith.constant dense<0.000000e+00> : vector<1x512xf32>
    %345 = tpu.matmul %265, %344, %cst_260 {dimension_numbers = #tpu.dot_dimension_numbers<[1], [0], [0], [1], [0, 0, 1, 1], [], []>} : vector<1x64xf32>, vector<64x512xf32>, vector<1x512xf32> -> vector<1x512xf32>
    %cst_261 = arith.constant dense<0.000000e+00> : vector<1xf32>
    %346 = vector.multi_reduction <add>, %345, %cst_261 [1] : vector<1x512xf32> to vector<1xf32>
    %347 = vector.shape_cast %346 : vector<1xf32> to vector<1x1xf32>
    %348 = vector.broadcast %347 : vector<1x1xf32> to vector<1x4xf32>
    %349 = arith.mulf %348, %334 : vector<1x4xf32>
    %350 = arith.addf %330, %349 : vector<1x4xf32>
    %c0_262 = arith.constant 0 : index
    %c0_263 = arith.constant 0 : index
    %c0_264 = arith.constant 0 : index
    %351 = vector.load %arg13[%c0_262, %c0_263, %c0_264] : memref<2x1x4xf32, #tpu.memory_space<vmem>>, vector<1x1x4xf32>
    %352 = vector.shape_cast %351 : vector<1x1x4xf32> to vector<1x4xf32>
    %353 = vector.shape_cast %343 : vector<1x4xf32> to vector<1x1x4xf32>
    tpu.vector_store %arg13[%c0_262, %c0_263, %c0_264], %353 {strides = array<i32>} : memref<2x1x4xf32, #tpu.memory_space<vmem>>, vector<1x1x4xf32>,
    %c1_265 = arith.constant 1 : index
    %c0_266 = arith.constant 0 : index
    %c0_267 = arith.constant 0 : index
    %354 = vector.load %arg13[%c1_265, %c0_266, %c0_267] : memref<2x1x4xf32, #tpu.memory_space<vmem>>, vector<1x1x4xf32>
    %355 = vector.shape_cast %354 : vector<1x1x4xf32> to vector<1x4xf32>
    %356 = vector.shape_cast %350 : vector<1x4xf32> to vector<1x1x4xf32>
    tpu.vector_store %arg13[%c1_265, %c0_266, %c0_267], %356 {strides = array<i32>} : memref<2x1x4xf32, #tpu.memory_space<vmem>>, vector<1x1x4xf32>,
    return
  }
  func.func @transform_0(%arg0: i32) -> (i32, i32, i32) {
    %c0_i32 = arith.constant 0 : i32
    %c0_i32_0 = arith.constant 0 : i32
    %c0_i32_1 = arith.constant 0 : i32
    return %arg0, %c0_i32, %c0_i32_0 : i32, i32, i32
  }
  func.func @transform_1(%arg0: i32) -> (i32, i32) {
    %c0_i32 = arith.constant 0 : i32
    %c0_i32_0 = arith.constant 0 : i32
    %c0_i32_1 = arith.constant 0 : i32
    return %c0_i32, %c0_i32_0 : i32, i32
  }
  func.func @transform_2(%arg0: i32) -> (i32, i32) {
    %c0_i32 = arith.constant 0 : i32
    %c0_i32_0 = arith.constant 0 : i32
    %c0_i32_1 = arith.constant 0 : i32
    return %c0_i32, %c0_i32_0 : i32, i32
  }
  func.func @transform_3(%arg0: i32) -> (i32, i32) {
    %c0_i32 = arith.constant 0 : i32
    %c0_i32_0 = arith.constant 0 : i32
    %c0_i32_1 = arith.constant 0 : i32
    return %c0_i32, %c0_i32_0 : i32, i32
  }
  func.func @transform_4(%arg0: i32) -> (i32, i32) {
    %c0_i32 = arith.constant 0 : i32
    %c0_i32_0 = arith.constant 0 : i32
    %c0_i32_1 = arith.constant 0 : i32
    return %c0_i32, %c0_i32_0 : i32, i32
  }
  func.func @transform_5(%arg0: i32) -> (i32, i32) {
    %c0_i32 = arith.constant 0 : i32
    %c0_i32_0 = arith.constant 0 : i32
    %c0_i32_1 = arith.constant 0 : i32
    return %c0_i32, %c0_i32_0 : i32, i32
  }
  func.func @transform_6(%arg0: i32) -> (i32, i32) {
    %c0_i32 = arith.constant 0 : i32
    %c0_i32_0 = arith.constant 0 : i32
    %c0_i32_1 = arith.constant 0 : i32
    return %c0_i32, %c0_i32_0 : i32, i32
  }
  func.func @transform_7(%arg0: i32) -> (i32, i32) {
    %c0_i32 = arith.constant 0 : i32
    %c0_i32_0 = arith.constant 0 : i32
    %c0_i32_1 = arith.constant 0 : i32
    return %c0_i32, %c0_i32_0 : i32, i32
  }
  func.func @transform_8(%arg0: i32) -> (i32, i32) {
    %c0_i32 = arith.constant 0 : i32
    %c0_i32_0 = arith.constant 0 : i32
    %c0_i32_1 = arith.constant 0 : i32
    return %c0_i32, %c0_i32_0 : i32, i32
  }
  func.func @transform_9(%arg0: i32) -> (i32, i32) {
    %c0_i32 = arith.constant 0 : i32
    %c0_i32_0 = arith.constant 0 : i32
    %c0_i32_1 = arith.constant 0 : i32
    return %c0_i32, %c0_i32_0 : i32, i32
  }
  func.func @transform_10(%arg0: i32) -> (i32, i32, i32) {
    %c0_i32 = arith.constant 0 : i32
    %c0_i32_0 = arith.constant 0 : i32
    %c0_i32_1 = arith.constant 0 : i32
    %c0_i32_2 = arith.constant 0 : i32
    return %c0_i32, %c0_i32_0, %c0_i32_1 : i32, i32, i32
  }
  func.func @transform_11(%arg0: i32) -> (i32, i32) {
    %c0_i32 = arith.constant 0 : i32
    %c0_i32_0 = arith.constant 0 : i32
    %c0_i32_1 = arith.constant 0 : i32
    return %c0_i32, %c0_i32_0 : i32, i32
  }
  func.func @transform_12(%arg0: i32) -> (i32, i32, i32) {
    %c0_i32 = arith.constant 0 : i32
    %c0_i32_0 = arith.constant 0 : i32
    %c0_i32_1 = arith.constant 0 : i32
    return %arg0, %c0_i32, %c0_i32_0 : i32, i32, i32
  }
}

</mosaic_0001>

<bundles_post_ra>
// kernel: forward.1
= control target key start
LH: loop header
LB: loop body
LE: loop exit
PB: predicated region body
PF: predicated region fallthrough
CT: control target
= control target key end

     0   :  { %s9473_s27 = smov 127   ;;  %v15682_v4 = vmov 0.0   ;;  %s15656_s0 = inlined_call_operand.vmem [shape: f32[1,8,1024], index: 0, kind: input, shape index: {}]   ;;  %s15657_s1 = inlined_call_operand.vmem [shape: f32[1,1024], index: 1, kind: input, shape index: {}]   ;;  %s15658_s2 = inlined_call_operand.vmem [shape: bf16[8,400], index: 2, kind: input, shape index: {}]   ;;  %s15659_s3 = inlined_call_operand.vmem [shape: f32[8,1], index: 3, kind: input, shape index: {}]   ;;  %s15660_s4 = inlined_call_operand.vmem [shape: bf16[8,208], index: 4, kind: input, shape index: {}]   ;;  %s15661_s5 = inlined_call_operand.vmem [shape: f32[8,1], index: 5, kind: input, shape index: {}]   ;;  %s15662_s6 = inlined_call_operand.vmem [shape: bf16[8,80], index: 6, kind: input, shape index: {}]   ;;  %s15663_s7 = inlined_call_operand.vmem [shape: f32[8,1], index: 7, kind: input, shape index: {}]   ;;  %s15664_s8 = inlined_call_operand.vmem [shape: bf16[64,8], index: 8, kind: input, shape index: {}]   ;;  %s15665_s9 = inlined_call_operand.vmem [shape: f32[64,1], index: 9, kind: input, shape index: {}]   ;;  %s15666_s10 = inlined_call_operand.vmem [shape: f32[4,64,512], index: 10, kind: input, shape index: {}]   ;;  %s15667_s11 = inlined_call_operand.vmem [shape: f32[1,4], index: 11, kind: input, shape index: {}]   ;;  %s15668_s12 = inlined_call_operand.hbm [shape: f32[2,1,4], index: 12, kind: output, shape index: {}]  }
   0x1   :  { %v9574_v0 = vld [vmem:[%s15656_s0] sm:$0xff]  ;;  %v9579_v1 = vld [vmem:[%s15656_s0 + $0x8] sm:$0xff]  ;;  %v9584_v2 = vld [vmem:[%s15656_s0 + $0x10] sm:$0xff] }
   0x2   :  { %v8535_v3 = vpack.i.bf16 %v9579_v1, %v9574_v0  ;;  %v8540_v5 = vpack.i.bf16 %v15682_v4, %v9584_v2 }
   0x4   :  { %8536 = vrot.lane.b32.xlu1 %v8535_v3, %s9473_s27  ;;  %8526 = vrot.lane.b32.xlu0 %v8535_v3, %s9473_s27 }
   0x5   :  { %17 = vsyncpa [#allocation5], 0  ;;  %s9475_s28 = smov 112   ;;  %v9603_v6 = vld [vmem:[%s15656_s0 + $0x18] sm:$0xff]  ;;  %v9608_v7 = vld [vmem:[%s15656_s0 + $0x20] sm:$0xff]  ;;  %v9640_v10 = vpack.i.bf16 %v9584_v2, %v9579_v1  ;;  %vm98_vm0 = vcmask 1039360  }
   0x6   :  { %v8585_v8 = vpack.i.bf16 %v9608_v7, %v9603_v6  ;;  %v9636_v9 = vpack.i.bf16 %v9574_v0, %v9603_v6  ;;  %s9476_s15 = smov 69   ;;  %vm441_vm1 = vcmask 916480   ;;  %s9477_s16 = smov 67   ;;  %vm152_vm2 = vcmask 564224  }
   0x7   :  { %s9478_s17 = smov 65   ;;  %s9479_s18 = smov 63   ;;  %vm266_vm3 = vcmask 547840   ;;  %vm380_vm4 = vcmask 531456   ;;  %vm495_vm5 = vcmask 515072   ;;  %vm609_vm6 = vcmask 375808  }
   0x8   :  { %8541 = vrot.lane.b32.xlu1 %v8540_v5, %s9473_s27  ;;  %8531 = vrot.lane.b32.xlu0 %v8540_v5, %s9473_s27  ;;  %s9480_s21 = smov 46   ;;  %s9481_s22 = smov 44   ;;  %vm723_vm7 = vcmask 359424   ;;  %vm15743_vm8 = vcmask 343040   ;;  %vm15733_vm9 = vcmask 203776   ;;  %vm15724_vm10 = vcmask 187392  }
   0x9   :  { %s15679_s23 = smov 42   ;;  %s15677_s24 = smov 25   ;;  %vm15732_vm11 = vcmask 171008   ;;  %vm15735_vm12 = vcmask 154624   ;;  %vm15741_vm13 = vcmask 15360   ;;  %vm15747_vm14 = vcmask 1031168  }
   0xa   :  { %s9484_s25 = smov 23   ;;  %s9485_s26 = smov 21   ;;  %vm1711_vm15 = vcmask 891904  }
   0xb   :  { %s15701_s13 = smov 19   ;;  %s15699_s14 = smov 2  }
   0xc   :  { %8551 = vrot.lane.b32.xlu1 %v8540_v5, %s9473_s27  ;;  %8546 = vrot.lane.b32.xlu0 %v8535_v3, %s9473_s27  ;;  %s9488_s19 = smov 126   ;;  %s15718_s30 = smov 107  }
   0xd   :  { %s15729_s29 = smov 103   ;;  %s9495_s20 = smov 82  }
  0x10   :  { %8561 = vrot.lane.b32.xlu1 %v8540_v5, %s9475_s28  ;;  %8556 = vrot.lane.b32.xlu0 %v8535_v3, %s9475_s28 }
  0x14   :  { %8571 = vrot.lane.b32.xlu1 %v8540_v5, %s9473_s27  ;;  %8566 = vrot.lane.b32.xlu0 %v8535_v3, %s9473_s27 }
  0x18   :  { %8581 = vrot.lane.b32.xlu1 %v8540_v5, %s9473_s27  ;;  %8576 = vrot.lane.b32.xlu0 %v8535_v3, %s9473_s27 }
  0x1c   :  { %8591 = vrot.lane.b32.xlu1 %v8535_v3, %s9473_s27  ;;  %8586 = vrot.lane.b32.xlu0 %v8585_v8, %s9473_s27 }
  0x20   :  { %8601 = vrot.lane.b32.xlu1 %v8585_v8, %s9473_s27  ;;  %8596 = vrot.lane.b32.xlu0 %v8540_v5, %s9473_s27 }
  0x24   :  { %8611 = vrot.lane.b32.xlu1 %v8540_v5, %s9473_s27  ;;  %8606 = vrot.lane.b32.xlu0 %v8535_v3, %s9473_s27 }
  0x28   :  { %8621 = vrot.lane.b32.xlu1 %v8535_v3, %s9473_s27  ;;  %8616 = vrot.lane.b32.xlu0 %v8585_v8, %s9473_s27 }
  0x2c   :  { %8631 = vrot.lane.b32.xlu1 %v8585_v8, %s9475_s28  ;;  %8626 = vrot.lane.b32.xlu0 %v8540_v5, %s9473_s27 }
  0x30   :  { %8641 = vrot.lane.b32.xlu1 %v8540_v5, %s9473_s27  ;;  %8636 = vrot.lane.b32.xlu0 %v8535_v3, %s9473_s27 }
  0x34   :  { %8651 = vrot.lane.b32.xlu1 %v8535_v3, %s9475_s28  ;;  %8646 = vrot.lane.b32.xlu0 %v8585_v8, %s9473_s27 }
  0x38   :  { %8661 = vrot.lane.b32.xlu1 %v8585_v8, %s9473_s27  ;;  %8656 = vrot.lane.b32.xlu0 %v8540_v5, %s9475_s28 }
  0x3c   :  { %8671 = vrot.lane.b32.xlu1 %v8540_v5, %s9473_s27  ;;  %8666 = vrot.lane.b32.xlu0 %v8535_v3, %s9473_s27 }
  0x40   :  { %8681 = vrot.lane.b32.xlu1 %v8585_v8, %s9473_s27  ;;  %8676 = vrot.lane.b32.xlu0 %v8585_v8, %s9473_s27 }
  0x44   :  { %8691 = vrot.lane.b32.xlu1 %v9636_v9, %s9473_s27  ;;  %8686 = vrot.lane.b32.xlu0 %v9640_v10, %s9473_s27 }
  0x48   :  { %8701 = vrot.lane.b32.xlu1 %v9640_v10, %s9473_s27  ;;  %8696 = vrot.lane.b32.xlu0 %v8585_v8, %s9473_s27 }
  0x4c   :  { %8711 = vrot.lane.b32.xlu1 %v8585_v8, %s9473_s27  ;;  %8706 = vrot.lane.b32.xlu0 %v9636_v9, %s9473_s27 }
  0x50   :  { %8721 = vrot.lane.b32.xlu1 %v9636_v9, %s9473_s27  ;;  %8716 = vrot.lane.b32.xlu0 %v9640_v10, %s9473_s27 }
  0x54   :  { %8726 = vrot.lane.b32.xlu1 %v8585_v8, %s9475_s28  ;;  %8731 = vrot.lane.b32.xlu0 %v9640_v10, %s9473_s27 }
  0x58   :  { %8736 = vrot.lane.b32.xlu1 %v9636_v9, %s9473_s27  ;;  %8746 = vrot.lane.b32.xlu0 %v9640_v10, %s9475_s28 }
  0x5c   :  { %8741 = vrot.lane.b32.xlu1 %v8585_v8, %s9473_s27  ;;  %8761 = vrot.lane.b32.xlu0 %v9636_v9, %s9473_s27 }
  0x60   :  { %8751 = vrot.lane.b32.xlu1 %v9636_v9, %s9475_s28 }
  0x64   :  { %8756 = vrot.lane.b32.xlu1 %v9640_v10, %s9473_s27 }
  0x76   :  { %v8537_v11 = vpop.permute.xlu1 %8536  ;;  %v8527_v12 = vpop.permute.xlu0 %8526 }
  0x77   :  { %v8529_v13 = vunpack.i.h.bf16 %v8527_v12  ;;  %v8528_v14 = vunpack.i.l.bf16 %v8527_v12  ;;  %v8539_v15 = vunpack.i.h.bf16 %v8537_v11  ;;  %v8538_v16 = vunpack.i.l.bf16 %v8537_v11 }
  0x79   :  { %v100_v17 = vsel %vm98_vm0, %v8528_v14, %v8529_v13  ;;  %v214_v27 = vsel %vm98_vm0, %v8538_v16, %v8539_v15 }
  0x7a   :  { %v9671_v18 = vpop.permute.xlu1 %8541  ;;  %v9673_v19 = vpop.permute.xlu0 %8531  ;;  %v117_v20 = vpack.c.bf16 %v100_v17, %v9574_v0  ;;  %v231_v36 = vpack.c.bf16 %v214_v27, %v9574_v0 }
  0x7b   :  { %v8543_v21 = vunpack.i.l.bf16 %v9671_v18  ;;  %v8534_v22 = vunpack.i.h.bf16 %v9673_v19  ;;  %v8533_v23 = vunpack.i.l.bf16 %v9673_v19  ;;  %v8544_v32 = vunpack.i.h.bf16 %v9671_v18 }
  0x7c   :  { %136 = vrot.lane.b32.xlu0 %v117_v20, %s9476_s15 }
  0x7d   :  { %v101_v24 = vsel %vm98_vm0, %v8529_v13, %v8533_v23  ;;  %v99_v25 = vsel %vm98_vm0, %v8534_v22, %v8528_v14  ;;  %v215_v26 = vsel %vm98_vm0, %v8539_v15, %v8543_v21  ;;  %v213_v43 = vsel %vm98_vm0, %v8544_v32, %v8538_v16  ;;  %v9742_v13 = vld [vmem:[%s15656_s0 + $0x28] sm:$0xff] }
  0x7e   :  { %v9688_v28 = vpop.permute.xlu1 %8551  ;;  %v8547_v29 = vpop.permute.xlu0 %8546  ;;  %v118_v30 = vpack.c.bf16 %v101_v24, %v9579_v1  ;;  %v116_v31 = vpack.c.bf16 %v99_v25, %v15682_v4  ;;  %v232_v35 = vpack.c.bf16 %v215_v26, %v9579_v1  ;;  %v230_v50 = vpack.c.bf16 %v213_v43, %v15682_v4 }
  0x7f   :  { %v8553_v33 = vunpack.i.l.bf16 %v9688_v28  ;;  %v8549_v34 = vunpack.i.h.bf16 %v8547_v29  ;;  %v8548_v37 = vunpack.i.l.bf16 %v8547_v29  ;;  %v8554_v51 = vunpack.i.h.bf16 %v9688_v28 }
  0x80   :  { %138 = vrot.lane.b32.xlu1 %v118_v30, %s9476_s15  ;;  %134 = vrot.lane.b32.xlu0 %v116_v31, %s9476_s15  ;;  %v9754_v17 = vpack.i.bf16 %v9742_v13, %v9608_v7 }
  0x81   :  { %v329_v38 = vsel %vm98_vm0, %v8549_v34, %v8553_v33  ;;  %v328_v47 = vsel %vm98_vm0, %v8548_v37, %v8549_v34  ;;  %v327_v58 = vsel %vm98_vm0, %v8554_v51, %v8548_v37 }
  0x82   :  { %v9701_v39 = vpop.permute.xlu1 %8561  ;;  %v8557_v40 = vpop.permute.xlu0 %8556  ;;  %v346_v44 = vpack.c.bf16 %v329_v38, %v9579_v1  ;;  %v345_v53 = vpack.c.bf16 %v328_v47, %v9574_v0  ;;  %v344_v5 = vpack.c.bf16 %v327_v58, %v15682_v4 }
  0x83   :  { %v8559_v41 = vunpack.i.h.bf16 %v8557_v40  ;;  %v8558_v42 = vunpack.i.l.bf16 %v8557_v40  ;;  %v8564_v45 = vunpack.i.h.bf16 %v9701_v39  ;;  %v8563_v54 = vunpack.i.l.bf16 %v9701_v39 }
  0x84   :  { %252 = vrot.lane.b32.xlu1 %v232_v35, %s9477_s16  ;;  %250 = vrot.lane.b32.xlu0 %v231_v36, %s9477_s16 }
  0x85   :  { %v443_v46 = vsel %vm441_vm1, %v8558_v42, %v8559_v41  ;;  %v442_v55 = vsel %vm441_vm1, %v8564_v45, %v8558_v42  ;;  %v444_v62 = vsel %vm441_vm1, %v8559_v41, %v8563_v54 }
  0x86   :  { %v9710_v48 = vpop.permute.xlu1 %8571  ;;  %v8567_v49 = vpop.permute.xlu0 %8566  ;;  %v460_v52 = vpack.c.bf16 %v443_v46, %v9574_v0  ;;  %v459_v59 = vpack.c.bf16 %v442_v55, %v15682_v4  ;;  %v461_v8 = vpack.c.bf16 %v444_v62, %v9579_v1 }
  0x87   :  { %v8569_v60 = vunpack.i.h.bf16 %v8567_v49  ;;  %v8568_v61 = vunpack.i.l.bf16 %v8567_v49  ;;  %v8574_v11 = vunpack.i.h.bf16 %v9710_v48  ;;  %v8573_v20 = vunpack.i.l.bf16 %v9710_v48 }
  0x88   :  { %366 = vrot.lane.b32.xlu1 %v346_v44, %s9478_s17  ;;  %248 = vrot.lane.b32.xlu0 %v230_v50, %s9477_s16 }
  0x89   :  { %v557_v12 = vsel %vm98_vm0, %v8568_v61, %v8569_v60  ;;  %v556_v22 = vsel %vm98_vm0, %v8574_v11, %v8568_v61  ;;  %v558_v30 = vsel %vm98_vm0, %v8569_v60, %v8573_v20 }
  0x8a   :  { %v9720_v56 = vpop.permute.xlu1 %8581  ;;  %v8577_v57 = vpop.permute.xlu0 %8576  ;;  %v574_v16 = vpack.c.bf16 %v557_v12, %v9574_v0  ;;  %v573_v26 = vpack.c.bf16 %v556_v22, %v15682_v4  ;;  %v575_v34 = vpack.c.bf16 %v558_v30, %v9579_v1 }
  0x8b   :  { %v8579_v27 = vunpack.i.h.bf16 %v8577_v57  ;;  %v8578_v29 = vunpack.i.l.bf16 %v8577_v57  ;;  %v8584_v35 = vunpack.i.h.bf16 %v9720_v56  ;;  %v8583_v40 = vunpack.i.l.bf16 %v9720_v56 }
  0x8c   :  { %479 = vrot.lane.b32.xlu1 %v460_v52, %s9479_s18  ;;  %364 = vrot.lane.b32.xlu0 %v345_v53, %s9478_s17 }
  0x8d   :  { %v671_v36 = vsel %vm98_vm0, %v8578_v29, %v8579_v27  ;;  %v670_v41 = vsel %vm98_vm0, %v8584_v35, %v8578_v29  ;;  %v672_v46 = vsel %vm98_vm0, %v8579_v27, %v8583_v40 }
  0x8e   :  { %v9729_v63 = vpop.permute.xlu1 %8591  ;;  %v9731_v3 = vpop.permute.xlu0 %8586  ;;  %v688_v38 = vpack.c.bf16 %v671_v36, %v9574_v0  ;;  %v687_v45 = vpack.c.bf16 %v670_v41, %v15682_v4  ;;  %v689_v51 = vpack.c.bf16 %v672_v46, %v9579_v1 }
  0x8f   :  { %v8588_v44 = vunpack.i.l.bf16 %v9731_v3  ;;  %v8594_v52 = vunpack.i.h.bf16 %v9729_v63  ;;  %v8593_v53 = vunpack.i.l.bf16 %v9729_v63  ;;  %v15673_v19 = vunpack.i.h.bf16 %v9731_v3 }
  0x90   :  { %477 = vrot.lane.b32.xlu1 %v459_v59, %s9479_s18  ;;  %362 = vrot.lane.b32.xlu0 %v344_v5, %s9478_s17 }
  0x91   :  { %v102_v47 = vsel %vm98_vm0, %v8533_v23, %v8588_v44  ;;  %v785_v23 = vsel %vm98_vm0, %v8593_v53, %v8594_v52  ;;  %v103_v60 = vsel %vm98_vm0, %v8588_v44, %v15673_v19 }
  0x92   :  { %v9744_v14 = vpop.permute.xlu1 %8601  ;;  %v9746_v15 = vpop.permute.xlu0 %8596  ;;  %v119_v55 = vpack.c.bf16 %v102_v47, %v9584_v2  ;;  %v802_v61 = vpack.c.bf16 %v785_v23, %v9574_v0  ;;  %v120_v62 = vpack.c.bf16 %v103_v60, %v9603_v6 }
  0x93   :  { %v8599_v59 = vunpack.i.h.bf16 %v9746_v15  ;;  %v8603_v63 = vunpack.i.l.bf16 %v9744_v14  ;;  %v8598_v5 = vunpack.i.l.bf16 %v9746_v15  ;;  %v15672_v18 = vunpack.i.h.bf16 %v9744_v14 }
  0x94   :  { %8771 = vrot.lane.b32.xlu1 %v9640_v10, %s9473_s27  ;;  %481 = vrot.lane.b32.xlu0 %v461_v8, %s9479_s18 }
  0x95   :  { %v784_v8 = vsel %vm98_vm0, %v8599_v59, %v8593_v53  ;;  %v216_v22 = vsel %vm98_vm0, %v8543_v21, %v8603_v63  ;;  %v217_v41 = vsel %vm98_vm0, %v8603_v63, %v15672_v18 }
  0x96   :  { %v9758_v24 = vpop.permute.xlu1 %8611  ;;  %v9760_v25 = vpop.permute.xlu0 %8606  ;;  %v233_v30 = vpack.c.bf16 %v216_v22, %v9584_v2  ;;  %v234_v46 = vpack.c.bf16 %v217_v41, %v9603_v6 }
  0x97   :  { %v8609_v21 = vunpack.i.h.bf16 %v9760_v25  ;;  %v8608_v35 = vunpack.i.l.bf16 %v9760_v25  ;;  %v8614_v36 = vunpack.i.h.bf16 %v9758_v24  ;;  %v8613_v47 = vunpack.i.l.bf16 %v9758_v24 }
  0x98   :  { %593 = vrot.lane.b32.xlu1 %v574_v16, %s9480_s21  ;;  %8766 = vrot.lane.b32.xlu0 %v9754_v17, %s9473_s27  ;;  %v801_v16 = vpack.c.bf16 %v784_v8, %v15682_v4 }
  0x99   :  { %v900_v60 = vsel %vm98_vm0, %v8609_v21, %v8613_v47 }
  0x9a   :  { %v9769_v31 = vpop.permute.xlu1 %8621  ;;  %v9771_v32 = vpop.permute.xlu0 %8616 }
  0x9b   :  { %v8624_v63 = vunpack.i.h.bf16 %v9769_v31  ;;  %v8623_v8 = vunpack.i.l.bf16 %v9769_v31  ;;  %v15671_v28 = vunpack.i.h.bf16 %v9771_v32 }
  0x9c   :  { %591 = vrot.lane.b32.xlu1 %v573_v26, %s9480_s21  ;;  %8776 = vrot.lane.b32.xlu0 %v9636_v9, %s9473_s27  ;;  %v786_v26 = vsel %vm98_vm0, %v8594_v52, %v8598_v5  ;;  %v898_v52 = vsel %vm98_vm0, %v8614_v36, %v8608_v35 }
  0x9d   :  { %v915_v23 = vpack.c.bf16 %v898_v52, %v15682_v4 }
  0x9e   :  { %v9779_v37 = vpop.permute.xlu1 %8631  ;;  %v9787_v42 = vpop.permute.xlu0 %8626 }
  0x9f   :  { %v8629_v22 = vunpack.i.h.bf16 %v9787_v42  ;;  %v8633_v36 = vunpack.i.l.bf16 %v9779_v37 }
  0xa0   :  { %8786 = vrot.lane.b32.xlu1 %v9640_v10, %s9473_s27  ;;  %595 = vrot.lane.b32.xlu0 %v575_v34, %s9480_s21  ;;  %v803_v34 = vpack.c.bf16 %v786_v26, %v9579_v1  ;;  %v1013_v26 = vsel %vm98_vm0, %v8623_v8, %v8624_v63 }
  0xa1   :  { %v1012_v41 = vsel %vm98_vm0, %v8629_v22, %v8623_v8 }
  0xa2   :  { %v9789_v43 = vpop.permute.xlu1 %8641  ;;  %v9802_v49 = vpop.permute.xlu0 %8636 }
  0xa3   :  { %v8638_v52 = vunpack.i.l.bf16 %v9802_v49  ;;  %v8644_v39 = vunpack.i.h.bf16 %v9789_v43 }
  0xa4   :  { %707 = vrot.lane.b32.xlu1 %v688_v38, %s9481_s22  ;;  %8781 = vrot.lane.b32.xlu0 %v9754_v17, %s9473_s27  ;;  %v899_v38 = vsel %vm98_vm0, %v8608_v35, %v8609_v21  ;;  %v1030_v21 = vpack.c.bf16 %v1013_v26, %v9574_v0  ;;  %v8643_v26 = vunpack.i.l.bf16 %v9789_v43 }
  0xa5   :  { %v916_v25 = vpack.c.bf16 %v899_v38, %v9574_v0  ;;  %v8628_v38 = vunpack.i.l.bf16 %v9787_v42  ;;  %v10159_v42 = vld [vmem:[%s15656_s0 + $0x10] sm:$0xff] }
  0xa6   :  { %v9804_v50 = vpop.permute.xlu1 %8651  ;;  %v9817_v57 = vpop.permute.xlu0 %8646 }
  0xa8   :  { %705 = vrot.lane.b32.xlu1 %v687_v45, %s9481_s22  ;;  %8791 = vrot.lane.b32.xlu0 %v9636_v9, %s9473_s27 }
  0xaa   :  { %v9819_v58 = vpop.permute.xlu1 %8661  ;;  %v9834_v11 = vpop.permute.xlu0 %8656 }
  0xac   :  { %140 = vrot.lane.b32.xlu1 %v119_v55, %s9476_s15  ;;  %709 = vrot.lane.b32.xlu0 %v689_v51, %s9481_s22  ;;  %v8618_v51 = vunpack.i.l.bf16 %v9771_v32 }
  0xae   :  { %v9836_v12 = vpop.permute.xlu1 %8671  ;;  %v9850_v27 = vpop.permute.xlu0 %8666  ;;  %v330_v59 = vsel %vm98_vm0, %v8553_v33, %v8618_v51 }
  0xb0   :  { %8801 = vrot.lane.b32.xlu1 %v9640_v10, %s9473_s27  ;;  %8796 = vrot.lane.b32.xlu0 %v9754_v17, %s9473_s27 }
  0xb2   :  { %v9852_v29 = vpop.permute.xlu1 %8681  ;;  %v9866_v44 = vpop.permute.xlu0 %8676 }
  0xb4   :  { %821 = vrot.lane.b32.xlu1 %v802_v61, %s15679_s23  ;;  %142 = vrot.lane.b32.xlu0 %v120_v62, %s9476_s15  ;;  %v347_v61 = vpack.c.bf16 %v330_v59, %v9584_v2  ;;  %v917_v62 = vpack.c.bf16 %v900_v60, %v9579_v1  ;;  %v1014_v59 = vsel %vm98_vm0, %v8624_v63, %v8628_v38 }
  0xb6   :  { %v9868_v45 = vpop.permute.xlu1 %8691  ;;  %v9881_v53 = vpop.permute.xlu0 %8686 }
  0xb8   :  { %819 = vrot.lane.b32.xlu1 %v801_v16, %s15679_s23  ;;  %8806 = vrot.lane.b32.xlu0 %v9636_v9, %s9473_s27 }
  0xba   :  { %v9883_v55 = vpop.permute.xlu1 %8701  ;;  %v9900_v33 = vpop.permute.xlu0 %8696 }
  0xbc   :  { %254 = vrot.lane.b32.xlu1 %v233_v30, %s9477_s16  ;;  %823 = vrot.lane.b32.xlu0 %v803_v34, %s15679_s23  ;;  %v331_v30 = vsel %vm98_vm0, %v8618_v51, %v15671_v28  ;;  %v8639_v51 = vunpack.i.h.bf16 %v9802_v49  ;;  %v15670_v49 = vunpack.i.h.bf16 %v9779_v37 }
  0xbd   :  { %v348_v35 = vpack.c.bf16 %v331_v30, %v9603_v6  ;;  %v1126_v30 = vsel %vm98_vm0, %v8644_v39, %v8638_v52  ;;  %v8654_v39 = vunpack.i.h.bf16 %v9804_v50 }
  0xbe   :  { %v9902_v16 = vpop.permute.xlu1 %8711  ;;  %v9915_v31 = vpop.permute.xlu0 %8706  ;;  %v446_v22 = vsel %vm441_vm1, %v8633_v36, %v15670_v49 }
  0xbf   :  { %16044 = vst [vmem:[#allocation7_spill] sm:$0xff] %v9902_v16 }
  0xc0   :  { %8816 = vrot.lane.b32.xlu1 %v9640_v10, %s9473_s27  ;;  %8811 = vrot.lane.b32.xlu0 %v9754_v17, %s9473_s27 }
  0xc2   :  { %v9917_v34 = vpop.permute.xlu1 %8721 }
  0xc4   :  { %935 = vrot.lane.b32.xlu1 %v916_v25, %s15677_s24  ;;  %256 = vrot.lane.b32.xlu0 %v234_v46, %s9477_s16  ;;  %v1029_v25 = vpack.c.bf16 %v1012_v41, %v15682_v4  ;;  %v9927_v46 = vpop.permute.xlu0 %8716  ;;  %v463_v41 = vpack.c.bf16 %v446_v22, %v9603_v6 }
  0xc6   :  { %v9937_v60 = vpop.permute.xlu1 %8726 }
  0xc7   :  { %16045 = vst [vmem:[#allocation8_spill] sm:$0xff] %v9937_v60 }
  0xc8   :  { %933 = vrot.lane.b32.xlu1 %v915_v23, %s15677_s24  ;;  %8821 = vrot.lane.b32.xlu0 %v9636_v9, %s9473_s27  ;;  %v445_v23 = vsel %vm441_vm1, %v8563_v54, %v8633_v36  ;;  %v1127_v54 = vsel %vm98_vm0, %v8638_v52, %v8639_v51  ;;  %v9949_v63 = vpop.permute.xlu0 %8731  ;;  %v15669_v52 = vunpack.i.h.bf16 %v9817_v57 }
  0xca   :  { %v9951_v8 = vpop.permute.xlu1 %8736 }
  0xcc   :  { %368 = vrot.lane.b32.xlu1 %v347_v61, %s9478_s17  ;;  %937 = vrot.lane.b32.xlu0 %v917_v62, %s15677_s24  ;;  %v462_v61 = vpack.c.bf16 %v445_v23, %v9584_v2  ;;  %v1031_v62 = vpack.c.bf16 %v1014_v59, %v9579_v1  ;;  %v9969_v36 = vpop.permute.xlu0 %8746 }
  0xce   :  { %v9975_v23 = vpop.permute.xlu1 %8741 }
  0xcf   :  { %16046 = vst [vmem:[#allocation9_spill] sm:$0xff] %v9975_v23 }
  0xd0   :  { %8831 = vrot.lane.b32.xlu1 %v9640_v10, %s9473_s27  ;;  %8826 = vrot.lane.b32.xlu0 %v9754_v17, %s9475_s28  ;;  %v9995_v22 = vpop.permute.xlu0 %8761 }
  0xd4   :  { %1049 = vrot.lane.b32.xlu1 %v1030_v21, %s9484_s25  ;;  %370 = vrot.lane.b32.xlu0 %v348_v35, %s9478_s17  ;;  %v9965_v21 = vld [vmem:[%s15656_s0 + $0x30] sm:$0xff]  ;;  %v1143_v35 = vpack.c.bf16 %v1126_v30, %v15682_v4 }
  0xd5   :  { %v9981_v59 = vpack.i.bf16 %v9965_v21, %v9742_v13 }
  0xd8   :  { %1047 = vrot.lane.b32.xlu1 %v1029_v25, %s9484_s25  ;;  %8836 = vrot.lane.b32.xlu0 %v9636_v9, %s9473_s27  ;;  %v1144_v9 = vpack.c.bf16 %v1127_v54, %v9574_v0  ;;  %v1128_v25 = vsel %vm98_vm0, %v8639_v51, %v8643_v26  ;;  %v15674_v54 = vunpack.i.l.bf16 %v9834_v11 }
  0xdc   :  { %483 = vrot.lane.b32.xlu1 %v462_v61, %s9479_s18  ;;  %1051 = vrot.lane.b32.xlu0 %v1031_v62, %s9484_s25  ;;  %v8648_v61 = vunpack.i.l.bf16 %v9817_v57  ;;  %v1145_v62 = vpack.c.bf16 %v1128_v25, %v9579_v1  ;;  %v1242_v25 = vsel %vm441_vm1, %v8654_v39, %v15674_v54  ;;  %v15688_v54 = vunpack.i.l.bf16 %v9836_v12 }
  0xde   :  { %v560_v51 = vsel %vm98_vm0, %v8648_v61, %v15669_v52 }
  0xdf   :  { %v577_v30 = vpack.c.bf16 %v560_v51, %v9603_v6 }
  0xe0   :  { %1163 = vrot.lane.b32.xlu1 %v1144_v9, %s9485_s26  ;;  %8841 = vrot.lane.b32.xlu0 %v9754_v17, %s9473_s27  ;;  %v9990_v9 = vpop.permute.xlu1 %8751 }
  0xe4   :  { %1161 = vrot.lane.b32.xlu1 %v1143_v35, %s9485_s26  ;;  %485 = vrot.lane.b32.xlu0 %v463_v41, %s9479_s18  ;;  %v8653_v35 = vunpack.i.l.bf16 %v9804_v50  ;;  %v559_v41 = vsel %vm98_vm0, %v8573_v20, %v8648_v61  ;;  %v10009_v52 = vpop.permute.xlu1 %8756  ;;  %v1259_v50 = vpack.c.bf16 %v1242_v25, %v9579_v1  ;;  %v8659_v61 = vunpack.i.h.bf16 %v9834_v11 }
  0xe5   :  { %v576_v48 = vpack.c.bf16 %v559_v41, %v9584_v2  ;;  %v8669_v41 = vunpack.i.h.bf16 %v9850_v27 }
  0xe6   :  { %v1241_v20 = vsel %vm441_vm1, %v8653_v35, %v8654_v39  ;;  %v8668_v39 = vunpack.i.l.bf16 %v9850_v27 }
  0xe7   :  { %v1258_v25 = vpack.c.bf16 %v1241_v20, %v9574_v0  ;;  %v8674_v20 = vunpack.i.h.bf16 %v9836_v12 }
  0xe8   :  { %8851 = vrot.lane.b32.xlu1 %v9981_v59, %s9473_s27  ;;  %1165 = vrot.lane.b32.xlu0 %v1145_v62, %s9485_s26  ;;  %v8663_v62 = vunpack.i.l.bf16 %v9819_v58  ;;  %v1355_v19 = vsel %vm98_vm0, %v8668_v39, %v8669_v41 }
  0xec   :  { %599 = vrot.lane.b32.xlu1 %v577_v30, %s9480_s21  ;;  %8846 = vrot.lane.b32.xlu0 %v9754_v17, %s9473_s27  ;;  %v673_v30 = vsel %vm98_vm0, %v8583_v40, %v8663_v62 }
  0xed   :  { %v690_v27 = vpack.c.bf16 %v673_v30, %v9584_v2  ;;  %v1372_v30 = vpack.c.bf16 %v1355_v19, %v9574_v0 }
  0xee   :  { %v137_v51 = vpop.permute.xlu0 %136 }
  0xf0   :  { %1279 = vrot.lane.b32.xlu1 %v1259_v50, %s15701_s13  ;;  %597 = vrot.lane.b32.xlu0 %v576_v48, %s9480_s21  ;;  %v1240_v48 = vsel %vm441_vm1, %v8659_v61, %v8653_v35 }
  0xf2   :  { %v10020_v49 = vpop.permute.xlu1 %138  ;;  %v135_v28 = vpop.permute.xlu0 %134 }
  0xf3   :  { %v154_v18 = vsel %vm152_vm2, %v137_v51, %v10020_v49  ;;  %v153_v50 = vsel %vm152_vm2, %v135_v28, %v137_v51  ;;  %v1257_v28 = vpack.c.bf16 %v1240_v48, %v15682_v4 }
  0xf4   :  { %8856 = vrot.lane.b32.xlu1 %v9754_v17, %s9473_s27  ;;  %3055 = vmatprep.subr.bf16.mxu0 %v154_v18  ;;  %v15681_v18 = vunpack.i.h.bf16 %v9819_v58 }
  0xf5   :  { %1277 = vrot.lane.b32.xlu0 %v1258_v25, %s15701_s13  ;;  %3056 = vmatpush1.bf16.msra.mxu0 %v153_v50  ;;  %v1354_v25 = vsel %vm98_vm0, %v8674_v20, %v8668_v39 }
  0xf6   :  { %v10032_v56 = vpop.permute.xlu1 %252  ;;  %v251_v40 = vpop.permute.xlu0 %250  ;;  %v674_v48 = vsel %vm98_vm0, %v8663_v62, %v15681_v18  ;;  %v1371_v39 = vpack.c.bf16 %v1354_v25, %v15682_v4 }
  0xf7   :  { %v268_v35 = vsel %vm266_vm3, %v251_v40, %v10032_v56  ;;  %v691_v20 = vpack.c.bf16 %v674_v48, %v9603_v6 }
  0xf8   :  { %711 = vrot.lane.b32.xlu1 %v690_v27, %s9481_s22  ;;  %3057 = vmatprep.subr.bf16.mxu0 %v268_v35 }
  0xf9   :  { %1275 = vrot.lane.b32.xlu0 %v1257_v28, %s15701_s13  ;;  %v1356_v28 = vsel %vm98_vm0, %v8669_v41, %v15688_v54 }
  0xfa   :  { %v10043_v51 = vpop.permute.xlu1 %366  ;;  %v249_v61 = vpop.permute.xlu0 %248  ;;  %v1373_v25 = vpack.c.bf16 %v1356_v28, %v9579_v1  ;;  %v8683_v28 = vunpack.i.l.bf16 %v9852_v29 }
  0xfb   :  { %v267_v50 = vsel %vm266_vm3, %v249_v61, %v251_v40  ;;  %v8678_v40 = vunpack.i.l.bf16 %v9866_v44 }
  0xfc   :  { %1391 = vrot.lane.b32.xlu1 %v1372_v30, %s15699_s14  ;;  %3058 = vmatpush1.bf16.msra.mxu0 %v267_v50 }
  0xfd   :  { %8861 = vrot.lane.b32.xlu0 %v9981_v59, %s9473_s27  ;;  %v787_v30 = vsel %vm98_vm0, %v8598_v5, %v8678_v40  ;;  %v15676_v5 = vunpack.i.h.bf16 %v9866_v44 }
  0xfe   :  { %v480_v27 = vpop.permute.xlu1 %479  ;;  %v365_v19 = vpop.permute.xlu0 %364 }
  0xff   :  { %v382_v62 = vsel %vm380_vm4, %v365_v19, %v10043_v51 }
 0x100   :  { %1389 = vrot.lane.b32.xlu1 %v1371_v39, %s15699_s14  ;;  %3059 = vmatprep.subr.bf16.mxu0 %v382_v62  ;;  %v804_v39 = vpack.c.bf16 %v787_v30, %v9584_v2  ;;  %v15675_v62 = vunpack.i.h.bf16 %v9852_v29  ;;  %v8689_v30 = vunpack.i.h.bf16 %v9881_v53 }
 0x101   :  { %713 = vrot.lane.b32.xlu0 %v691_v20, %s9481_s22 }
 0x102   :  { %v478_v35 = vpop.permute.xlu1 %477  ;;  %v363_v61 = vpop.permute.xlu0 %362 }
 0x103   :  { %v381_v50 = vsel %vm380_vm4, %v363_v61, %v365_v19  ;;  %v496_v15 = vsel %vm495_vm5, %v478_v35, %v480_v27  ;;  %v15684_v61 = vunpack.i.l.bf16 %v9868_v45 }
 0x104   :  { %8871 = vrot.lane.b32.xlu1 %v9754_v17, %s9473_s27  ;;  %3060 = vmatpush1.bf16.msra.mxu0 %v381_v50  ;;  %v8880_v17 = vpack.i.bf16 %v9608_v7, %v9574_v0 }
 0x105   :  { %1393 = vrot.lane.b32.xlu0 %v1373_v25, %s15699_s14  ;;  %v8885_v25 = vpack.i.bf16 %v9608_v7, %v9742_v13  ;;  %v8688_v7 = vunpack.i.l.bf16 %v9881_v53  ;;  %v8895_v53 = vpack.i.bf16 %v9742_v13, %v9742_v13 }
 0x106   :  { %v10073_v41 = vpop.permute.xlu1 %8771  ;;  %v10075_v48 = vpop.permute.xlu0 %481 }
 0x107   :  { %v497_v1 = vsel %vm495_vm5, %v480_v27, %v10075_v48  ;;  %v788_v27 = vsel %vm98_vm0, %v8678_v40, %v15676_v5 }
 0x108   :  { %825 = vrot.lane.b32.xlu1 %v804_v39, %s15679_s23  ;;  %3061 = vmatprep.subr.bf16.mxu0 %v497_v1  ;;  %v805_v40 = vpack.c.bf16 %v788_v27, %v9603_v6 }
 0x109   :  { %8866 = vrot.lane.b32.xlu0 %v9640_v10, %s9473_s27  ;;  %3062 = vmatpush1.bf16.msra.mxu0 %v496_v15  ;;  %v902_v10 = vsel %vm98_vm0, %v8683_v28, %v15675_v62 }
 0x10a   :  { %v594_v19 = vpop.permute.xlu1 %593  ;;  %v10087_v20 = vpop.permute.xlu0 %8766  ;;  %v919_v15 = vpack.c.bf16 %v902_v10, %v9603_v6 }
 0x10b   :  { %16047 = vst [vmem:[#allocation10_spill] sm:$0xff] %v10087_v20 }
 0x10c   :  { %8881 = vrot.lane.b32.xlu1 %v8880_v17, %s9473_s27  ;;  %v1546_v17 = vsel %vm98_vm0, %v8689_v30, %v15684_v61 }
 0x10d   :  { %8876 = vrot.lane.b32.xlu0 %v9981_v59, %s9473_s27  ;;  %v1563_v5 = vpack.c.bf16 %v1546_v17, %v9584_v2 }
 0x10e   :  { %v592_v0 = vpop.permute.xlu1 %591  ;;  %v10097_v35 = vpop.permute.xlu0 %8776 }
 0x10f   :  { %v610_v1 = vsel %vm609_vm6, %v592_v0, %v594_v19  ;;  %v8694_v0 = vunpack.i.h.bf16 %v9868_v45 }
 0x110   :  { %8891 = vrot.lane.b32.xlu1 %v9981_v59, %s9475_s28 }
 0x111   :  { %827 = vrot.lane.b32.xlu0 %v805_v40, %s15679_s23  ;;  %v901_v40 = vsel %vm98_vm0, %v8613_v47, %v8683_v28  ;;  %v1545_v47 = vsel %vm98_vm0, %v8688_v7, %v8689_v30  ;;  %v1544_v28 = vsel %vm98_vm0, %v8694_v0, %v8688_v7  ;;  %s9489_s23 = smov 109  }
 0x112   :  { %v10110_v50 = vpop.permute.xlu1 %8786  ;;  %v10112_v39 = vpop.permute.xlu0 %595  ;;  %v918_v24 = vpack.c.bf16 %v901_v40, %v9584_v2  ;;  %v8703_v2 = vunpack.i.l.bf16 %v9883_v55 }
 0x113   :  { %v611_v27 = vsel %vm609_vm6, %v594_v19, %v10112_v39  ;;  %v8698_v19 = vunpack.i.l.bf16 %v9900_v33 }
 0x114   :  { %941 = vrot.lane.b32.xlu1 %v919_v15, %s15677_s24  ;;  %3063 = vmatprep.subr.bf16.mxu0 %v611_v27 }
 0x115   :  { %8886 = vrot.lane.b32.xlu0 %v8885_v25, %s9473_s27  ;;  %3064 = vmatpush1.bf16.msra.mxu0 %v610_v1  ;;  %v8704_v1 = vunpack.i.h.bf16 %v9883_v55  ;;  %v1015_v30 = vsel %vm98_vm0, %v8628_v38, %v8698_v19  ;;  %v10165_v38 = vld [vmem:[%s15656_s0] sm:$0xff] }
 0x116   :  { %v708_v10 = vpop.permute.xlu1 %707  ;;  %v10128_v62 = vpop.permute.xlu0 %8781  ;;  %v1032_v55 = vpack.c.bf16 %v1015_v30, %v10159_v42  ;;  %v1561_v7 = vpack.c.bf16 %v1544_v28, %v10165_v38  ;;  %v8900_v28 = vpack.i.bf16 %v9742_v13, %v9965_v21 }
 0x118   :  { %1583 = vrot.lane.b32.xlu1 %v1563_v5, %s9488_s19  ;;  %v10149_v5 = vld [vmem:[%s15656_s0 + $0x8] sm:$0xff] }
 0x119   :  { %939 = vrot.lane.b32.xlu0 %v918_v24, %s15677_s24  ;;  %v1562_v17 = vpack.c.bf16 %v1545_v47, %v10149_v5  ;;  %v1659_v24 = vsel %vm98_vm0, %v8703_v2, %v8704_v1  ;;  %v15685_v47 = vunpack.i.h.bf16 %v9900_v33  ;;  %s15716_s24 = smov 105  }
 0x11a   :  { %v706_v25 = vpop.permute.xlu1 %705  ;;  %v10139_v15 = vpop.permute.xlu0 %8791  ;;  %v1676_v18 = vpack.c.bf16 %v1659_v24, %v10149_v5 }
 0x11b   :  { %v724_v0 = vsel %vm723_vm7, %v706_v25, %v708_v10  ;;  %v1016_v4 = vsel %vm98_vm0, %v8698_v19, %v15685_v47 }
 0x11c   :  { %8896 = vrot.lane.b32.xlu1 %v8895_v53, %s9473_s27  ;;  %v8709_v53 = vunpack.i.h.bf16 %v9915_v31  ;;  %v1033_v61 = vpack.c.bf16 %v1016_v4, %v9603_v6  ;;  %v15686_v6 = vunpack.i.h.bf16 %v9902_v16 }
 0x11d   :  { %1581 = vrot.lane.b32.xlu0 %v1562_v17, %s9488_s19 }
 0x11e   :  { %v141_v27 = vpop.permute.xlu1 %140  ;;  %v10154_v40 = vpop.permute.xlu0 %709 }
 0x11f   :  { %v725_v17 = vsel %vm723_vm7, %v708_v10, %v10154_v40  ;;  %v8713_v10 = vunpack.i.l.bf16 %v9902_v16  ;;  %v155_v4 = vsel %vm152_vm2, %v10020_v49, %v141_v27 }
 0x120   :  { %1053 = vrot.lane.b32.xlu1 %v1032_v55, %s9484_s25  ;;  %3065 = vmatprep.subr.bf16.mxu0 %v725_v17  ;;  %v1658_v55 = vsel %vm98_vm0, %v8709_v53, %v8703_v2  ;;  %v8719_v2 = vunpack.i.h.bf16 %v9927_v46  ;;  %v8718_v53 = vunpack.i.l.bf16 %v9927_v46 }
 0x121   :  { %1579 = vrot.lane.b32.xlu0 %v1561_v7, %s9488_s19  ;;  %3066 = vmatpush1.bf16.msra.mxu0 %v724_v0  ;;  %v15687_v7 = vunpack.i.l.bf16 %v9915_v31  ;;  %v1675_v24 = vpack.c.bf16 %v1658_v55, %v10165_v38  ;;  %v1129_v19 = vsel %vm98_vm0, %v8643_v26, %v8713_v10  ;;  %v8724_v55 = vunpack.i.h.bf16 %v9917_v34 }
 0x122   :  { %v10178_v30 = vpop.permute.xlu1 %8801  ;;  %v10180_v25 = vpop.permute.xlu0 %8796  ;;  %v1146_v26 = vpack.c.bf16 %v1129_v19, %v10159_v42 }
 0x123   :  { %16048 = vst [vmem:[#allocation11_spill] sm:$0xff] %v10180_v25 }
 0x124   :  { %1695 = vrot.lane.b32.xlu1 %v1676_v18, %s9489_s23 }
 0x125   :  { %8901 = vrot.lane.b32.xlu0 %v8900_v28, %s9473_s27  ;;  %v1660_v28 = vsel %vm98_vm0, %v8704_v1, %v15687_v7  ;;  %v10216_v1 = vld [vmem:[%s15656_s0 + $0x38] sm:$0xff] }
 0x126   :  { %v822_v0 = vpop.permute.xlu1 %821  ;;  %v10191_v17 = vpop.permute.xlu0 %142  ;;  %v1677_v49 = vpack.c.bf16 %v1660_v28, %v10159_v42  ;;  %v15689_v28 = vunpack.i.l.bf16 %v9917_v34 }
 0x127   :  { %16049 = vst [vmem:[#allocation12_spill] sm:$0xff] %v10191_v17  ;;  %v156_v18 = vsel %vm152_vm2, %v141_v27, %v10191_v17  ;;  %v1130_v27 = vsel %vm98_vm0, %v8713_v10, %v15686_v6 }
 0x128   :  { %1693 = vrot.lane.b32.xlu1 %v1675_v24, %s9489_s23  ;;  %3137 = vmatprep.subr.bf16.mxu1 %v156_v18  ;;  %v1773_v24 = vsel %vm98_vm0, %v8718_v53, %v8719_v2 }
 0x129   :  { %1055 = vrot.lane.b32.xlu0 %v1033_v61, %s9484_s25  ;;  %3138 = vmatpush1.bf16.msra.mxu1 %v155_v4  ;;  %v10225_v61 = vpack.i.bf16 %v10216_v1, %v9965_v21  ;;  %v1790_v4 = vpack.c.bf16 %v1773_v24, %v10149_v5 }
 0x12a   :  { %v820_v43 = vpop.permute.xlu1 %819  ;;  %v10210_v46 = vpop.permute.xlu0 %8806 }
 0x12b   :  { %v838_v10 = vsel %vm15743_vm8, %v820_v43, %v822_v0  ;;  %v1774_v43 = vsel %vm98_vm0, %v8719_v2, %v15689_v28  ;;  %v8739_v2 = vunpack.i.h.bf16 %v9951_v8 }
 0x12c   :  { %1167 = vrot.lane.b32.xlu1 %v1146_v26, %s9485_s26  ;;  %v8728_v26 = vunpack.i.l.bf16 %v9937_v60 }
 0x12d   :  { %1697 = vrot.lane.b32.xlu0 %v1677_v49, %s9489_s23  ;;  %v1772_v49 = vsel %vm98_vm0, %v8724_v55, %v8718_v53  ;;  %v10250_v53 = vld [vmem:[%s15656_s0 + $0x18] sm:$0xff] }
 0x12e   :  { %v255_v19 = vpop.permute.xlu1 %254  ;;  %v10230_v18 = vpop.permute.xlu0 %823  ;;  %v1789_v7 = vpack.c.bf16 %v1772_v49, %v10165_v38  ;;  %v1147_v55 = vpack.c.bf16 %v1130_v27, %v10250_v53 }
 0x12f   :  { %v839_v47 = vsel %vm15743_vm8, %v822_v0, %v10230_v18 }
 0x130   :  { %1809 = vrot.lane.b32.xlu1 %v1790_v4, %s15718_s30  ;;  %3067 = vmatprep.subr.bf16.mxu0 %v839_v47  ;;  %v16050_v47 = vunpack.i.l.bf16 %v9834_v11  ;;  %v8734_v4 = vunpack.i.h.bf16 %v9949_v63  ;;  %v1791_v11 = vpack.c.bf16 %v1774_v43, %v10159_v42  ;;  %v269_v43 = vsel %vm266_vm3, %v10032_v56, %v255_v19 }
 0x131   :  { %8906 = vrot.lane.b32.xlu0 %v10225_v61, %s9473_s27  ;;  %3068 = vmatpush1.bf16.msra.mxu0 %v838_v10  ;;  %v8733_v10 = vunpack.i.l.bf16 %v9949_v63  ;;  %v15694_v56 = vunpack.i.l.bf16 %v9951_v8 }
 0x132   :  { %v10242_v24 = vpop.permute.xlu1 %8816  ;;  %v10244_v6 = vpop.permute.xlu0 %8811  ;;  %v1243_v0 = vsel %vm441_vm1, %v16050_v47, %v8728_v26  ;;  %v10270_v47 = vld [vmem:[%s15658_s2] sm:$0xff] }
 0x133   :  { %v1260_v27 = vpack.c.bf16 %v1243_v0, %v10159_v42  ;;  %v1887_v63 = vsel %vm98_vm0, %v8733_v10, %v8734_v4  ;;  %v1886_v0 = vsel %vm98_vm0, %v8739_v2, %v8733_v10 }
 0x134   :  { %1807 = vrot.lane.b32.xlu1 %v1789_v7, %s15718_s30 }
 0x135   :  { %1169 = vrot.lane.b32.xlu0 %v1147_v55, %s9485_s26  ;;  %v10278_v55 = vcombine.high %v10270_v47, %v10270_v47 }
 0x136   :  { %v936_v49 = vpop.permute.xlu1 %935  ;;  %v10263_v54 = vpop.permute.xlu0 %256 }
 0x137   :  { %16051 = vst [vmem:[#allocation13_spill] sm:$0xff] %v10263_v54  ;;  %v270_v7 = vsel %vm266_vm3, %v255_v19, %v10263_v54  ;;  %16052 = vst [vmem:[#allocation14_spill] sm:$0xff] %v10278_v55  ;;  %v1904_v54 = vpack.c.bf16 %v1887_v63, %v10149_v5  ;;  %3087 = vmatprep.mubr.bf16.mxu0 %v10278_v55  ;;  %3169 = vmatprep.mubr.bf16.mxu1 %v10278_v55  ;;  %v16054_v55 = vunpack.i.h.bf16 %v9975_v23 }
 0x138   :  { %1281 = vrot.lane.b32.xlu1 %v1260_v27, %s15701_s13  ;;  %3139 = vmatprep.subr.bf16.mxu1 %v270_v7  ;;  %v16053_v27 = vunpack.i.h.bf16 %v9937_v60  ;;  %v1903_v63 = vpack.c.bf16 %v1886_v0, %v10165_v38  ;;  %v8743_v0 = vunpack.i.l.bf16 %v9975_v23 }
 0x139   :  { %1811 = vrot.lane.b32.xlu0 %v1791_v11, %s15718_s30  ;;  %3140 = vmatpush1.bf16.msra.mxu1 %v269_v43 }
 0x13a   :  { %v934_v28 = vpop.permute.xlu1 %933  ;;  %v10285_v17 = vpop.permute.xlu0 %8821  ;;  %v1244_v7 = vsel %vm441_vm1, %v8728_v26, %v16053_v27  ;;  %v8920_v27 = vpack.i.bf16 %v10250_v53, %v9965_v21 }
 0x13b   :  { %v1261_v2 = vpack.c.bf16 %v1244_v7, %v10250_v53  ;;  %v952_v43 = vsel %vm15733_vm9, %v934_v28, %v936_v49  ;;  %v8749_v28 = vunpack.i.h.bf16 %v9969_v36 }
 0x13c   :  { %1923 = vrot.lane.b32.xlu1 %v1904_v54, %s15716_s24  ;;  %v1888_v54 = vsel %vm98_vm0, %v8734_v4, %v15694_v56  ;;  %v1358_v4 = vsel %vm98_vm0, %v8743_v0, %v16054_v55  ;;  %v8754_v55 = vunpack.i.h.bf16 %v9990_v9 }
 0x13d   :  { %8911 = vrot.lane.b32.xlu0 %v9981_v59, %s9473_s27  ;;  %v1375_v56 = vpack.c.bf16 %v1358_v4, %v10250_v53 }
 0x13e   :  { %v369_v19 = vpop.permute.xlu1 %368  ;;  %v10298_v11 = vpop.permute.xlu0 %937 }
 0x13f   :  { %v953_v26 = vsel %vm15733_vm9, %v936_v49, %v10298_v11  ;;  %v1905_v49 = vpack.c.bf16 %v1888_v54, %v10159_v42  ;;  %v8748_v54 = vunpack.i.l.bf16 %v9969_v36  ;;  %v383_v4 = vsel %vm380_vm4, %v10043_v51, %v369_v19 }
 0x140   :  { %1921 = vrot.lane.b32.xlu1 %v1903_v63, %s15716_s24  ;;  %3069 = vmatprep.subr.bf16.mxu0 %v953_v26  ;;  %v15697_v63 = vunpack.i.l.bf16 %v9990_v9  ;;  %v8758_v51 = vunpack.i.l.bf16 %v10009_v52 }
 0x141   :  { %1283 = vrot.lane.b32.xlu0 %v1261_v2, %s15701_s13  ;;  %3070 = vmatpush1.bf16.msra.mxu0 %v952_v43  ;;  %v8915_v2 = vpack.i.bf16 %v9742_v13, %v10216_v1  ;;  %s15727_s13 = smov 86  }
 0x142   :  { %v10314_v7 = vpop.permute.xlu1 %8831  ;;  %v10316_v10 = vpop.permute.xlu0 %8826  ;;  %v2002_v23 = vsel %vm441_vm1, %v8749_v28, %v15697_v63 }
 0x143   :  { %v2019_v36 = vpack.c.bf16 %v2002_v23, %v10159_v42 }
 0x144   :  { %8921 = vrot.lane.b32.xlu1 %v8920_v27, %s9473_s27 }
 0x145   :  { %1925 = vrot.lane.b32.xlu0 %v1905_v49, %s15716_s24  ;;  %v16056_v49 = vunpack.i.l.bf16 %v9836_v12 }
 0x146   :  { %v1050_v26 = vpop.permute.xlu1 %1049  ;;  %v10328_v43 = vpop.permute.xlu0 %370 }
 0x147   :  { %16055 = vst [vmem:[#allocation15_spill] sm:$0xff] %v10328_v43  ;;  %v384_v27 = vsel %vm380_vm4, %v369_v19, %v10328_v43  ;;  %v1357_v13 = vsel %vm98_vm0, %v16056_v49, %v8743_v0  ;;  %v2000_v43 = vsel %vm441_vm1, %v8754_v55, %v8748_v54  ;;  %v2001_v0 = vsel %vm441_vm1, %v8748_v54, %v8749_v28 }
 0x148   :  { %1397 = vrot.lane.b32.xlu1 %v1375_v56, %s15699_s14  ;;  %3141 = vmatprep.subr.bf16.mxu1 %v384_v27  ;;  %v1374_v12 = vpack.c.bf16 %v1357_v13, %v10159_v42  ;;  %v8759_v56 = vunpack.i.h.bf16 %v10009_v52  ;;  %v2017_v23 = vpack.c.bf16 %v2000_v43, %v10165_v38  ;;  %v8764_v27 = vunpack.i.h.bf16 %v9995_v22  ;;  %v10369_v43 = vld [vmem:[%s15656_s0 + $0x20] sm:$0xff] }
 0x149   :  { %8916 = vrot.lane.b32.xlu0 %v8915_v2, %s9473_s27  ;;  %3142 = vmatpush1.bf16.msra.mxu1 %v383_v4  ;;  %v2018_v28 = vpack.c.bf16 %v2001_v0, %v10149_v5  ;;  %v8925_v49 = vpack.i.bf16 %v10216_v1, %v10369_v43 }
 0x14a   :  { %v1048_v60 = vpop.permute.xlu1 %1047  ;;  %v10345_v63 = vpop.permute.xlu0 %8836  ;;  %v2115_v55 = vsel %vm98_vm0, %v8758_v51, %v8759_v56 }
 0x14b   :  { %v1066_v52 = vsel %vm15724_vm10, %v1048_v60, %v1050_v26  ;;  %v15704_v60 = vunpack.i.l.bf16 %v9995_v22 }
 0x14c   :  { %2039 = vrot.lane.b32.xlu1 %v2019_v36, %s15729_s29  ;;  %v2132_v36 = vpack.c.bf16 %v2115_v55, %v10149_v5  ;;  %v15703_v55 = vunpack.i.h.bf16 %v10087_v20 }
 0x14d   :  { %1395 = vrot.lane.b32.xlu0 %v1374_v12, %s15699_s14  ;;  %v2114_v12 = vsel %vm98_vm0, %v8764_v27, %v8758_v51  ;;  %v8768_v51 = vunpack.i.l.bf16 %v10087_v20  ;;  %s9494_s14 = smov 84   ;;  %v8798_v20 = vunpack.i.l.bf16 %v10180_v25 }
 0x14e   :  { %v484_v19 = vpop.permute.xlu1 %483  ;;  %v10355_v2 = vpop.permute.xlu0 %1051 }
 0x14f   :  { %v1067_v54 = vsel %vm15724_vm10, %v1050_v26, %v10355_v2 }
 0x150   :  { %2035 = vrot.lane.b32.xlu1 %v2017_v23, %s15729_s29  ;;  %3071 = vmatprep.subr.bf16.mxu0 %v1067_v54  ;;  %v2131_v23 = vpack.c.bf16 %v2114_v12, %v10165_v38  ;;  %v498_v54 = vsel %vm495_vm5, %v10075_v48, %v484_v19  ;;  %v1548_v12 = vsel %vm98_vm0, %v8768_v51, %v15703_v55 }
 0x151   :  { %2037 = vrot.lane.b32.xlu0 %v2018_v28, %s15729_s29  ;;  %3072 = vmatpush1.bf16.msra.mxu0 %v1066_v52  ;;  %v2116_v28 = vsel %vm98_vm0, %v8759_v56, %v15704_v60 }
 0x152   :  { %v1164_v13 = vpop.permute.xlu1 %1163  ;;  %v10373_v4 = vpop.permute.xlu0 %8841 }
 0x154   :  { %2151 = vrot.lane.b32.xlu1 %v2132_v36, %s15727_s13  ;;  %v8774_v36 = vunpack.i.h.bf16 %v10073_v41 }
 0x155   :  { %8926 = vrot.lane.b32.xlu0 %v8925_v49, %s9473_s27  ;;  %v2133_v49 = vpack.c.bf16 %v2116_v28, %v10159_v42  ;;  %v10414_v28 = vld [vmem:[%s15656_s0 + $0x28] sm:$0xff] }
 0x156   :  { %v1162_v26 = vpop.permute.xlu1 %1161  ;;  %v10380_v0 = vpop.permute.xlu0 %485 }
 0x157   :  { %16057 = vst [vmem:[#allocation16_spill] sm:$0xff] %v10380_v0  ;;  %v499_v27 = vsel %vm495_vm5, %v484_v19, %v10380_v0  ;;  %v1180_v19 = vsel %vm15732_vm11, %v1162_v26, %v1164_v13  ;;  %v8773_v26 = vunpack.i.l.bf16 %v10073_v41 }
 0x158   :  { %2149 = vrot.lane.b32.xlu1 %v2131_v23, %s15727_s13  ;;  %3143 = vmatprep.subr.bf16.mxu1 %v499_v27  ;;  %v15706_v23 = vunpack.i.l.bf16 %v10097_v35  ;;  %v8935_v27 = vpack.i.bf16 %v10414_v28, %v10216_v1 }
 0x159   :  { %8931 = vrot.lane.b32.xlu0 %v9981_v59, %s9473_s27  ;;  %3144 = vmatpush1.bf16.msra.mxu1 %v498_v54 }
 0x15a   :  { %v10395_v52 = vpop.permute.xlu1 %8851  ;;  %v10397_v56 = vpop.permute.xlu0 %1165 }
 0x15b   :  { %v1181_v48 = vsel %vm15732_vm11, %v1164_v13, %v10397_v56  ;;  %v2230_v13 = vsel %vm98_vm0, %v8774_v36, %v15706_v23 }
 0x15c   :  { %8941 = vrot.lane.b32.xlu1 %v9981_v59, %s9473_s27  ;;  %3073 = vmatprep.subr.bf16.mxu0 %v1181_v48  ;;  %v1565_v59 = vpack.c.bf16 %v1548_v12, %v10369_v43  ;;  %v2247_v0 = vpack.c.bf16 %v2230_v13, %v10159_v42  ;;  %v8783_v12 = vunpack.i.l.bf16 %v10128_v62 }
 0x15d   :  { %2153 = vrot.lane.b32.xlu0 %v2133_v49, %s15727_s13  ;;  %3074 = vmatpush1.bf16.msra.mxu0 %v1180_v19  ;;  %v16059_v49 = vunpack.i.l.bf16 %v9868_v45 }
 0x15e   :  { %v10418_v54 = vpop.permute.xlu1 %599  ;;  %v10420_v55 = vpop.permute.xlu0 %8846 }
 0x15f   :  { %16058 = vst [vmem:[#allocation17_spill] sm:$0xff] %v10418_v54  ;;  %v1547_v48 = vsel %vm98_vm0, %v16059_v49, %v8768_v51  ;;  %v2229_v51 = vsel %vm98_vm0, %v8773_v26, %v8774_v36  ;;  %v16060_v36 = vunpack.i.l.bf16 %v9915_v31 }
 0x160   :  { %1587 = vrot.lane.b32.xlu1 %v1565_v59, %s9488_s19  ;;  %v1564_v41 = vpack.c.bf16 %v1547_v48, %v10250_v53  ;;  %v8779_v59 = vunpack.i.h.bf16 %v10097_v35 }
 0x161   :  { %8936 = vrot.lane.b32.xlu0 %v8935_v27, %s9475_s28  ;;  %v10446_v27 = vpack.i.bf16 %v10216_v1, %v10216_v1 }
 0x162   :  { %v10432_v19 = vpop.permute.xlu1 %1279  ;;  %v598_v60 = vpop.permute.xlu0 %597  ;;  %v2228_v48 = vsel %vm98_vm0, %v8779_v59, %v8773_v26  ;;  %v15710_v26 = vunpack.i.h.bf16 %v10128_v62 }
 0x163   :  { %v613_v23 = vsel %vm609_vm6, %v598_v60, %v10418_v54  ;;  %v612_v45 = vsel %vm609_vm6, %v10112_v39, %v598_v60  ;;  %v8789_v39 = vunpack.i.h.bf16 %v10110_v50  ;;  %v8788_v60 = vunpack.i.l.bf16 %v10110_v50 }
 0x164   :  { %3145 = vmatprep.subr.bf16.mxu1 %v613_v23  ;;  %2267 = vrot.lane.b32.xlu1 %v2247_v0, %s9494_s14  ;;  %v1661_v23 = vsel %vm98_vm0, %v16060_v36, %v8783_v12  ;;  %v2246_v0 = vpack.c.bf16 %v2229_v51, %v10149_v5  ;;  %v8794_v36 = vunpack.i.h.bf16 %v10139_v15  ;;  %v2245_v51 = vpack.c.bf16 %v2228_v48, %v10165_v38 }
 0x165   :  { %1585 = vrot.lane.b32.xlu0 %v1564_v41, %s9488_s19  ;;  %3146 = vmatpush1.bf16.msra.mxu1 %v612_v45  ;;  %v1678_v50 = vpack.c.bf16 %v1661_v23, %v10250_v53  ;;  %v2343_v31 = vsel %vm98_vm0, %v8788_v60, %v8789_v39  ;;  %v1662_v48 = vsel %vm98_vm0, %v8783_v12, %v15710_v26 }
 0x166   :  { %v10449_v13 = vpop.permute.xlu1 %8856  ;;  %v2342_v23 = vsel %vm98_vm0, %v8794_v36, %v8788_v60  ;;  %v8804_v60 = vunpack.i.h.bf16 %v10178_v30  ;;  %v16061_v36 = vunpack.i.l.bf16 %v9917_v34 }
 0x167   :  { %v1278_v49 = vpop.permute.xlu0 %1277 }
 0x168   :  { %v1295_v41 = vsel %vm15735_vm12, %v1278_v49, %v10432_v19  ;;  %8946 = vrot.lane.b32.xlu1 %v10446_v27, %s9473_s27 }
 0x169   :  { %3075 = vmatprep.subr.bf16.mxu0 %v1295_v41  ;;  %2265 = vrot.lane.b32.xlu0 %v2246_v0, %s9494_s14  ;;  %v2360_v41 = vpack.c.bf16 %v2343_v31, %v10149_v5  ;;  %v8803_v31 = vunpack.i.l.bf16 %v10178_v30 }
 0x16a   :  { %v712_v45 = vpop.permute.xlu1 %711 }
 0x16b   :  { %v1276_v54 = vpop.permute.xlu0 %1275  ;;  %v726_v34 = vsel %vm723_vm7, %v10154_v40, %v712_v45 }
 0x16c   :  { %v1294_v59 = vsel %vm15735_vm12, %v1276_v54, %v1278_v49  ;;  %1699 = vrot.lane.b32.xlu1 %v1678_v50, %s9489_s23  ;;  %v15712_v54 = vunpack.i.l.bf16 %v10139_v15  ;;  %v2359_v50 = vpack.c.bf16 %v2342_v23, %v10165_v38 }
 0x16d   :  { %3076 = vmatpush1.bf16.msra.mxu0 %v1294_v59  ;;  %2263 = vrot.lane.b32.xlu0 %v2245_v51, %s9494_s14  ;;  %v1775_v51 = vsel %vm98_vm0, %v16061_v36, %v8798_v20  ;;  %v1679_v59 = vpack.c.bf16 %v1662_v48, %v10369_v43  ;;  %v2457_v48 = vsel %vm98_vm0, %v8803_v31, %v8804_v60  ;;  %v8809_v36 = vunpack.i.h.bf16 %v10210_v46 }
 0x16e   :  { %v1392_v0 = vpop.permute.xlu1 %1391  ;;  %v1792_v23 = vpack.c.bf16 %v1775_v51, %v10250_v53 }
 0x16f   :  { %v10474_v16 = vpop.permute.xlu0 %8861 }
 0x170   :  { %2379 = vrot.lane.b32.xlu1 %v2360_v41, %s9495_s20  ;;  %v2344_v41 = vsel %vm98_vm0, %v8789_v39, %v15712_v54  ;;  %v15711_v39 = vunpack.i.h.bf16 %v10180_v25 }
 0x171   :  { %8951 = vrot.lane.b32.xlu0 %v10225_v61, %s9475_s28 }
 0x172   :  { %v1390_v49 = vpop.permute.xlu1 %1389 }
 0x173   :  { %v10489_v12 = vpop.permute.xlu0 %713  ;;  %v1408_v40 = vsel %vm15741_vm13, %v1390_v49, %v1392_v0  ;;  %v8819_v49 = vunpack.i.h.bf16 %v10242_v24 }
 0x174   :  { %16062 = vst [vmem:[#allocation18_spill] sm:$0xff] %v10489_v12  ;;  %v727_v61 = vsel %vm723_vm7, %v712_v45, %v10489_v12  ;;  %2377 = vrot.lane.b32.xlu1 %v2359_v50, %s9495_s20  ;;  %v2361_v50 = vpack.c.bf16 %v2344_v41, %v10159_v42  ;;  %v8955_v45 = vpack.i.bf16 %v9965_v21, %v10414_v28  ;;  %v16064_v12 = vunpack.i.l.bf16 %v10210_v46 }
 0x175   :  { %3147 = vmatprep.subr.bf16.mxu1 %v727_v61  ;;  %1701 = vrot.lane.b32.xlu0 %v1679_v59, %s9489_s23  ;;  %v2474_v61 = vpack.c.bf16 %v2457_v48, %v10149_v5  ;;  %v1776_v41 = vsel %vm98_vm0, %v8798_v20, %v15711_v39  ;;  %v16063_v39 = vunpack.i.l.bf16 %v9951_v8 }
 0x176   :  { %3148 = vmatpush1.bf16.msra.mxu1 %v726_v34  ;;  %v10501_v30 = vpop.permute.xlu1 %8871  ;;  %v2456_v34 = vsel %vm98_vm0, %v8809_v36, %v8803_v31  ;;  %v1793_v36 = vpack.c.bf16 %v1776_v41, %v10369_v43 }
 0x177   :  { %v10507_v26 = vpop.permute.xlu0 %1393  ;;  %v2473_v31 = vpack.c.bf16 %v2456_v34, %v10165_v38 }
 0x178   :  { %v1409_v59 = vsel %vm15741_vm13, %v1392_v0, %v10507_v26  ;;  %1813 = vrot.lane.b32.xlu1 %v1792_v23, %s15718_s30  ;;  %v8813_v23 = vunpack.i.l.bf16 %v10244_v6 }
 0x179   :  { %3077 = vmatprep.subr.bf16.mxu0 %v1409_v59  ;;  %2381 = vrot.lane.b32.xlu0 %v2361_v50, %s9495_s20 }
 0x17a   :  { %3078 = vmatpush1.bf16.msra.mxu0 %v1408_v40  ;;  %v826_v51 = vpop.permute.xlu1 %825  ;;  %v8818_v40 = vunpack.i.l.bf16 %v10242_v24 }
 0x17b   :  { %v10523_v59 = vpop.permute.xlu0 %8866 }
 0x17c   :  { %v15714_v0 = vunpack.i.h.bf16 %v10523_v59  ;;  %v8868_v21 = vunpack.i.l.bf16 %v10523_v59  ;;  %2493 = vrot.lane.b32.xlu1 %v2474_v61, %s9478_s17  ;;  %v1889_v61 = vsel %vm98_vm0, %v16063_v39, %v8813_v23  ;;  %v2570_v34 = vsel %vm98_vm0, %v8818_v40, %v8819_v49 }
 0x17d   :  { %8956 = vrot.lane.b32.xlu0 %v8955_v45, %s9473_s27  ;;  %v1906_v41 = vpack.c.bf16 %v1889_v61, %v10250_v53  ;;  %v8828_v61 = vunpack.i.l.bf16 %v10316_v10 }
 0x17e   :  { %v10531_v48 = vpop.permute.xlu1 %8881  ;;  %v1477_v20 = vsel %vm98_vm0, %v8868_v21, %v15714_v0  ;;  %v2458_v0 = vsel %vm98_vm0, %v8804_v60, %v16064_v12  ;;  %v15720_v12 = vunpack.i.h.bf16 %v10244_v6 }
 0x17f   :  { %v8883_v45 = vunpack.i.l.bf16 %v10531_v48  ;;  %v10543_v54 = vpop.permute.xlu0 %8876  ;;  %v1493_v50 = vpack.c.bf16 %v1477_v20, %v10149_v5  ;;  %v8824_v20 = vunpack.i.h.bf16 %v10285_v17  ;;  %v2475_v60 = vpack.c.bf16 %v2458_v0, %v10159_v42 }
 0x180   :  { %2491 = vrot.lane.b32.xlu1 %v2473_v31, %s9478_s17 }
 0x181   :  { %3079 = vmatprep.subr.bf16.mxu0 %v1493_v50  ;;  %1815 = vrot.lane.b32.xlu0 %v1793_v36, %s15718_s30  ;;  %v1476_v24 = vsel %vm98_vm0, %v8883_v45, %v8868_v21  ;;  %v840_v21 = vsel %vm15743_vm8, %v10230_v18, %v826_v51  ;;  %v2587_v36 = vpack.c.bf16 %v2570_v34, %v10149_v5  ;;  %v16065_v34 = vunpack.i.l.bf16 %v9990_v9  ;;  %s9496_s30 = smov 61  }
 0x182   :  { %v10552_v8 = vpop.permute.xlu1 %8891  ;;  %v1492_v39 = vpack.c.bf16 %v1476_v24, %v10165_v38  ;;  %v2569_v0 = vsel %vm98_vm0, %v8824_v20, %v8818_v40  ;;  %v1890_v24 = vsel %vm98_vm0, %v8813_v23, %v15720_v12  ;;  %v8834_v40 = vunpack.i.h.bf16 %v10314_v7 }
 0x183   :  { %v10558_v25 = vpop.permute.xlu0 %827  ;;  %v2003_v20 = vsel %vm441_vm1, %v16065_v34, %v8828_v61 }
 0x184   :  { %3080 = vmatpush1.bf16.msra.mxu0 %v1492_v39  ;;  %v841_v50 = vsel %vm15743_vm8, %v826_v51, %v10558_v25  ;;  %1927 = vrot.lane.b32.xlu1 %v1906_v41, %s15716_s24  ;;  %v15721_v39 = vunpack.i.l.bf16 %v10285_v17  ;;  %v2586_v51 = vpack.c.bf16 %v2569_v0, %v10165_v38  ;;  %v8833_v41 = vunpack.i.l.bf16 %v10314_v7 }
 0x185   :  { %3149 = vmatprep.subr.bf16.mxu1 %v841_v50  ;;  %2495 = vrot.lane.b32.xlu0 %v2475_v60, %s9478_s17  ;;  %v1907_v60 = vpack.c.bf16 %v1890_v24, %v10369_v43  ;;  %v2020_v7 = vpack.c.bf16 %v2003_v20, %v10250_v53  ;;  %v10614_v20 = vld [vmem:[%s15656_s0 + $0x30] sm:$0xff]  ;;  %vm2281_vm8 = vcmask 687104  }
 0x186   :  { %3150 = vmatpush1.bf16.msra.mxu1 %v840_v21  ;;  %v10568_v31 = vpop.permute.xlu1 %941  ;;  %v2571_v50 = vsel %vm98_vm0, %v8819_v49, %v15721_v39  ;;  %v2683_v0 = vsel %vm98_vm0, %v8833_v41, %v8834_v40  ;;  %v8839_v49 = vunpack.i.h.bf16 %v10345_v63 }
 0x187   :  { %v10573_v45 = vpop.permute.xlu0 %8886  ;;  %v2588_v34 = vpack.c.bf16 %v2571_v50, %v10159_v42  ;;  %v2700_v50 = vpack.c.bf16 %v2683_v0, %v10149_v5 }
 0x188   :  { %2606 = vrot.lane.b32.xlu1 %v2587_v36, %s9479_s18 }
 0x189   :  { %8961 = vrot.lane.b32.xlu0 %v10446_v27, %s9473_s27 }
 0x18a   :  { %v10582_v18 = vpop.permute.xlu1 %1583 }
 0x18b   :  { %v940_v23 = vpop.permute.xlu0 %939 }
 0x18c   :  { %v955_v21 = vsel %vm15733_vm9, %v940_v23, %v10568_v31  ;;  %2604 = vrot.lane.b32.xlu1 %v2586_v51, %s9479_s18  ;;  %v954_v36 = vsel %vm15733_vm9, %v10298_v11, %v940_v23  ;;  %v15722_v51 = vunpack.i.h.bf16 %v10316_v10  ;;  %v10618_v23 = vpack.i.bf16 %v10216_v1, %v10614_v20 }
 0x18d   :  { %3151 = vmatprep.subr.bf16.mxu1 %v955_v21  ;;  %1929 = vrot.lane.b32.xlu0 %v1907_v60, %s15716_s24  ;;  %v2682_v21 = vsel %vm98_vm0, %v8839_v49, %v8833_v41  ;;  %v15723_v41 = vunpack.i.h.bf16 %v10373_v4  ;;  %v8843_v49 = vunpack.i.l.bf16 %v10373_v4  ;;  %s9497_s24 = smov 59   ;;  %vm15752_vm9 = vcmask 859136  }
 0x18e   :  { %3152 = vmatpush1.bf16.msra.mxu1 %v954_v36  ;;  %v10600_v9 = vpop.permute.xlu1 %8896  ;;  %v2699_v0 = vpack.c.bf16 %v2682_v21, %v10165_v38 }
 0x18f   :  { %v1582_v24 = vpop.permute.xlu0 %1581  ;;  %v2118_v21 = vsel %vm98_vm0, %v8843_v49, %v15723_v41  ;;  %v16066_v41 = vunpack.i.l.bf16 %v9995_v22  ;;  %v15725_v22 = vunpack.i.h.bf16 %v10420_v55 }
 0x190   :  { %v1599_v11 = vsel %vm15747_vm14, %v1582_v24, %v10582_v18  ;;  %2041 = vrot.lane.b32.xlu1 %v2020_v7, %s15729_s29  ;;  %v2004_v7 = vsel %vm441_vm1, %v8828_v61, %v15722_v51 }
 0x191   :  { %3081 = vmatprep.subr.bf16.mxu0 %v1599_v11  ;;  %2608 = vrot.lane.b32.xlu0 %v2588_v34, %s9479_s18  ;;  %v15726_v34 = vunpack.i.l.bf16 %v10345_v63  ;;  %v2021_v61 = vpack.c.bf16 %v2004_v7, %v10369_v43 }
 0x192   :  { %v1054_v60 = vpop.permute.xlu1 %1053 }
 0x193   :  { %v1580_v36 = vpop.permute.xlu0 %1579 }
 0x194   :  { %v1598_v11 = vsel %vm15747_vm14, %v1580_v36, %v1582_v24  ;;  %2719 = vrot.lane.b32.xlu1 %v2700_v50, %s9496_s30  ;;  %v2684_v24 = vsel %vm98_vm0, %v8834_v40, %v15726_v34  ;;  %v1068_v40 = vsel %vm15724_vm10, %v10355_v2, %v1054_v60  ;;  %v2771_v2 = vpack.c.bf16 %v10159_v42, %v10159_v42 }
 0x195   :  { %3082 = vmatpush1.bf16.msra.mxu0 %v1598_v11  ;;  %8966 = vrot.lane.b32.xlu0 %v10618_v23, %s9473_s27  ;;  %v2701_v11 = vpack.c.bf16 %v2684_v24, %v10159_v42  ;;  %v2135_v24 = vpack.c.bf16 %v2118_v21, %v10369_v43  ;;  %v2770_v42 = vpack.c.bf16 %v10149_v5, %v10149_v5  ;;  %v8858_v34 = vunpack.i.l.bf16 %v10449_v13 }
 0x196   :  { %v1696_v12 = vpop.permute.xlu1 %1695 }
 0x197   :  { %v10633_v39 = vpop.permute.xlu0 %8901 }
 0x198   :  { %2717 = vrot.lane.b32.xlu1 %v2699_v0, %s9496_s30  ;;  %v10656_v0 = vpack.i.bf16 %v10614_v20, %v10216_v1 }
 0x199   :  { %2043 = vrot.lane.b32.xlu0 %v2021_v61, %s15729_s29  ;;  %s16101_s29 = smov 2  }
 0x19a   :  { %v1694_v50 = vpop.permute.xlu1 %1693 }
 0x19b   :  { %v10644_v36 = vpop.permute.xlu0 %1055 }
 0x19c   :  { %v1069_v7 = vsel %vm15724_vm10, %v1054_v60, %v10644_v36  ;;  %8976 = vrot.lane.b32.xlu1 %v10446_v27, %s9473_s27  ;;  %v2117_v27 = vsel %vm98_vm0, %v16066_v41, %v8843_v49  ;;  %v1712_v60 = vsel %vm1711_vm15, %v1694_v50, %v1696_v12  ;;  %v8848_v41 = vunpack.i.l.bf16 %v10420_v55 }
 0x19d   :  { %3153 = vmatprep.subr.bf16.mxu1 %v1069_v7  ;;  %2721 = vrot.lane.b32.xlu0 %v2701_v11, %s9496_s30  ;;  %v2134_v7 = vpack.c.bf16 %v2117_v27, %v10250_v53  ;;  %vm1825_vm10 = vcmask 875520  }
 0x19e   :  { %3154 = vmatpush1.bf16.msra.mxu1 %v1068_v40  ;;  %v1168_v61 = vpop.permute.xlu1 %1167  ;;  %v2232_v50 = vsel %vm98_vm0, %v8848_v41, %v15725_v22 }
 0x19f   :  { %v10659_v51 = vpop.permute.xlu0 %1697  ;;  %v1182_v5 = vsel %vm15732_vm11, %v10397_v56, %v1168_v61  ;;  %v10707_v56 = vld [vmem:[%s15658_s2 + $0x8] sm:$0xff]  ;;  %s16085_s2 = smov 42  }
 0x1a0   :  { %v1713_v11 = vsel %vm1711_vm15, %v1696_v12, %v10659_v51  ;;  %2157 = vrot.lane.b32.xlu1 %v2135_v24, %s15727_s13  ;;  %v15731_v12 = vunpack.i.h.bf16 %v10395_v52 }
 0x1a1   :  { %3083 = vmatprep.subr.bf16.mxu0 %v1713_v11  ;;  %8971 = vrot.lane.b32.xlu0 %v10656_v0, %s9473_s27  ;;  %v8853_v11 = vunpack.i.l.bf16 %v10395_v52 }
 0x1a2   :  { %3084 = vmatpush1.bf16.msra.mxu0 %v1712_v60  ;;  %v1810_v21 = vpop.permute.xlu1 %1809 }
 0x1a3   :  { %v10674_v49 = vpop.permute.xlu0 %8906  ;;  %v105_v22 = vsel %vm98_vm0, %v8853_v11, %v15731_v12 }
 0x1a4   :  { %2791 = vrot.lane.b32.xlu1 %v2771_v2, %s9497_s24  ;;  %v2769_v2 = vpack.c.bf16 %v10165_v38, %v10165_v38  ;;  %v16067_v38 = vunpack.i.l.bf16 %v10097_v35  ;;  %v122_v35 = vpack.c.bf16 %v105_v22, %v10414_v28 }
 0x1a5   :  { %2155 = vrot.lane.b32.xlu0 %v2134_v7, %s15727_s13  ;;  %v2249_v7 = vpack.c.bf16 %v2232_v50, %v10369_v43  ;;  %s16098_s13 = smov 19  }
 0x1a6   :  { %v1808_v40 = vpop.permute.xlu1 %1807 }
 0x1a7   :  { %v10685_v24 = vpop.permute.xlu0 %1169  ;;  %v1826_v50 = vsel %vm1825_vm10, %v1808_v40, %v1810_v21 }
 0x1a8   :  { %v1183_v27 = vsel %vm15732_vm11, %v1168_v61, %v10685_v24  ;;  %8981 = vrot.lane.b32.xlu1 %v10618_v23, %s9473_s27  ;;  %v2231_v61 = vsel %vm98_vm0, %v16067_v38, %v8848_v41  ;;  %v10724_v41 = vcombine.high %v10707_v56, %v10707_v56  ;;  %v16068_v38 = vunpack.i.l.bf16 %v10139_v15 }
 0x1a9   :  { %3155 = vmatprep.subr.bf16.mxu1 %v1183_v27  ;;  %2789 = vrot.lane.b32.xlu0 %v2770_v42, %s9497_s24  ;;  %vm3051_vm11 = vcmask 130048  }
 0x1aa   :  { %3156 = vmatpush1.bf16.msra.mxu1 %v1182_v5  ;;  %v1282_v60 = vpop.permute.xlu1 %1281  ;;  %v10719_v5 = vcombine.low %v10270_v47, %v10270_v47  ;;  %v16069_v47 = vunpack.i.h.bf16 %v9731_v3 }
 0x1ab   :  { %v10702_v27 = vpop.permute.xlu0 %1811 }
 0x1ac   :  { %v1827_v42 = vsel %vm1825_vm10, %v1810_v21, %v10702_v27  ;;  %2271 = vrot.lane.b32.xlu1 %v2249_v7, %s9494_s14  ;;  %v2345_v7 = vsel %vm98_vm0, %v16068_v38, %v8858_v34  ;;  %v2248_v21 = vpack.c.bf16 %v2231_v61, %v10250_v53  ;;  %v104_v40 = vsel %vm98_vm0, %v16069_v47, %v8853_v11 }
 0x1ad   :  { %3085 = vmatprep.subr.bf16.mxu0 %v1827_v42  ;;  %2787 = vrot.lane.b32.xlu0 %v2769_v2, %s9497_s24  ;;  %v8863_v2 = vunpack.i.l.bf16 %v10474_v16  ;;  %v2362_v22 = vpack.c.bf16 %v2345_v7, %v10250_v53  ;;  %v121_v3 = vpack.c.bf16 %v104_v40, %v10369_v43  ;;  %v15734_v11 = vunpack.i.h.bf16 %v10449_v13 }
 0x1ae   :  { %3086 = vmatpush1.bf16.msra.mxu0 %v1826_v50  ;;  %v1924_v12 = vpop.permute.xlu1 %1923  ;;  %v16070_v50 = vunpack.i.h.bf16 %v9744_v14  ;;  %v1296_v7 = vsel %vm15735_vm12, %v10432_v19, %v1282_v60  ;;  %v8873_v47 = vunpack.i.l.bf16 %v10501_v30 }
 0x1af   :  { %v10730_v42 = vpop.permute.xlu0 %8911 }
 0x1b0   :  { %146 = vrot.lane.b32.xlu1 %v122_v35, %s9476_s15  ;;  %v218_v61 = vsel %vm98_vm0, %v16070_v50, %v8863_v2  ;;  %v15736_v50 = vunpack.i.h.bf16 %v10474_v16 }
 0x1b1   :  { %2269 = vrot.lane.b32.xlu0 %v2248_v21, %s9494_s14  ;;  %3088 = vmatmul.mubr.bf16.vlgmr.msra.gmra.mrb[0].mxu0 %v10719_v5  ;;  %v235_v21 = vpack.c.bf16 %v218_v61, %v10369_v43  ;;  %v16072_v61 = vunpack.i.l.bf16 %v10210_v46 }
 0x1b2   :  { %v1922_v15 = vpop.permute.xlu1 %1921  ;;  %8058 = vmatprep.mubr.msk.bf16.mxu0 %vm3051_vm11, %v10724_v41 }
 0x1b3   :  { %v10745_v38 = vpop.permute.xlu0 %1283  ;;  %v1940_v19 = vsel %vm15752_vm9, %v1922_v15, %v1924_v12 }
 0x1b4   :  { %v1297_v35 = vsel %vm15735_vm12, %v1282_v60, %v10745_v38  ;;  %2383 = vrot.lane.b32.xlu1 %v2362_v22, %s9495_s20  ;;  %v2346_v22 = vsel %vm98_vm0, %v8858_v34, %v15734_v11  ;;  %v2459_v34 = vsel %vm98_vm0, %v16072_v61, %v8873_v47  ;;  %v15737_v61 = vunpack.i.h.bf16 %v10501_v30 }
 0x1b5   :  { %3157 = vmatprep.subr.bf16.mxu1 %v1297_v35  ;;  %144 = vrot.lane.b32.xlu0 %v121_v3, %s9476_s15  ;;  %v8878_v35 = vunpack.i.l.bf16 %v10543_v54  ;;  %v2363_v11 = vpack.c.bf16 %v2346_v22, %v10369_v43  ;;  %v2476_v46 = vpack.c.bf16 %v2459_v34, %v10250_v53  ;;  %vm15754_vm12 = vcmask 842752  }
 0x1b6   :  { %3158 = vmatpush1.bf16.msra.mxu1 %v1296_v7  ;;  %v10755_v14 = vpop.permute.xlu1 %8921  ;;  %v15738_v34 = vunpack.i.l.bf16 %v10573_v45 }
 0x1b7   :  { %v10759_v40 = vpop.permute.xlu0 %1925 }
 0x1b8   :  { %v1941_v3 = vsel %vm15752_vm9, %v1924_v12, %v10759_v40  ;;  %258 = vrot.lane.b32.xlu1 %v235_v21, %s9477_s16  ;;  %v219_v12 = vsel %vm98_vm0, %v8863_v2, %v15736_v50  ;;  %v16073_v21 = vunpack.i.h.bf16 %v9771_v32 }
 0x1b9   :  { %3096 = vmatprep.subr.bf16.mxu0 %v1941_v3  ;;  %8986 = vrot.lane.b32.xlu0 %v10618_v23, %s9473_s27  ;;  %v236_v22 = vpack.c.bf16 %v219_v12, %v10414_v28 }
 0x1ba   :  { %3097 = vmatpush1.bf16.msra.mxu0 %v1940_v19  ;;  %v10771_v60 = vpop.permute.xlu1 %1397  ;;  %v332_v3 = vsel %vm98_vm0, %v16073_v21, %v8878_v35  ;;  %v16074_v21 = vmov 0.0  }
 0x1bb   :  { %16071 = vst [vmem:[#allocation19_spill] sm:$0xff] %v10771_v60  ;;  %v10777_v7 = vpop.permute.xlu0 %8916  ;;  %v9000_v50 = vpack.i.bf16 %v16074_v21, %v10216_v1 }
 0x1bc   :  { %8991 = vrot.lane.b32.xlu1 %v10656_v0, %s9473_s27 }
 0x1bd   :  { %2385 = vrot.lane.b32.xlu0 %v2363_v11, %s9495_s20  ;;  %v349_v11 = vpack.c.bf16 %v332_v3, %v10369_v43  ;;  %v8884_v3 = vunpack.i.h.bf16 %v10531_v48 }
 0x1be   :  { %v10786_v15 = vpop.permute.xlu1 %2039 }
 0x1bf   :  { %v1396_v19 = vpop.permute.xlu0 %1395 }
 0x1c0   :  { %v1411_v2 = vsel %vm15741_vm13, %v1396_v19, %v10771_v60  ;;  %2497 = vrot.lane.b32.xlu1 %v2476_v46, %s9478_s17  ;;  %v1410_v0 = vsel %vm15741_vm13, %v10507_v26, %v1396_v19  ;;  %v2460_v46 = vsel %vm98_vm0, %v8873_v47, %v15737_v61  ;;  %v15739_v26 = vunpack.i.h.bf16 %v10543_v54 }
 0x1c1   :  { %3159 = vmatprep.subr.bf16.mxu1 %v1411_v2  ;;  %260 = vrot.lane.b32.xlu0 %v236_v22, %s9477_s16  ;;  %v8924_v2 = vunpack.i.h.bf16 %v10755_v14  ;;  %v15745_v47 = vunpack.i.h.bf16 %v10552_v8  ;;  %vm2167_vm13 = vcmask 703488  }
 0x1c2   :  { %3160 = vmatpush1.bf16.msra.mxu1 %v1410_v0  ;;  %v2036_v32 = vpop.permute.xlu1 %2035  ;;  %v2573_v0 = vsel %vm98_vm0, %v8884_v3, %v15738_v34  ;;  %v333_v48 = vsel %vm98_vm0, %v8878_v35, %v15739_v26 }
 0x1c3   :  { %v2038_v12 = vpop.permute.xlu0 %2037  ;;  %v2590_v34 = vpack.c.bf16 %v2573_v0, %v10369_v43 }
 0x1c4   :  { %v2055_v19 = vsel %vm15754_vm12, %v2038_v12, %v10786_v15  ;;  %372 = vrot.lane.b32.xlu1 %v349_v11, %s9478_s17  ;;  %v2054_v22 = vsel %vm15754_vm12, %v2036_v32, %v2038_v12  ;;  %v2477_v32 = vpack.c.bf16 %v2460_v46, %v10369_v43  ;;  %v16075_v12 = vunpack.i.h.bf16 %v10523_v59 }
 0x1c5   :  { %3098 = vmatprep.subr.bf16.mxu0 %v2055_v19  ;;  %8996 = vrot.lane.b32.xlu0 %v10618_v23, %s9475_s28  ;;  %v8893_v23 = vunpack.i.l.bf16 %v10552_v8  ;;  %v350_v59 = vpack.c.bf16 %v333_v48, %v10414_v28 }
 0x1c6   :  { %3099 = vmatpush1.bf16.msra.mxu0 %v2054_v22  ;;  %v2152_v1 = vpop.permute.xlu1 %2151  ;;  %v1478_v19 = vsel %vm98_vm0, %v16075_v12, %v8924_v2  ;;  %v16076_v12 = vunpack.i.l.bf16 %v10285_v17  ;;  %v16077_v17 = vunpack.i.l.bf16 %v10345_v63 }
 0x1c7   :  { %v10820_v61 = vpop.permute.xlu0 %8926  ;;  %v448_v35 = vsel %vm441_vm1, %v8893_v23, %v15745_v47 }
 0x1c8   :  { %v15742_v11 = vunpack.i.l.bf16 %v10820_v61  ;;  %9001 = vrot.lane.b32.xlu1 %v9000_v50, %s9473_s27  ;;  %v8889_v50 = vunpack.i.h.bf16 %v10573_v45  ;;  %v2572_v60 = vsel %vm98_vm0, %v16076_v12, %v8884_v3  ;;  %v465_v48 = vpack.c.bf16 %v448_v35, %v10414_v28 }
 0x1c9   :  { %2499 = vrot.lane.b32.xlu0 %v2477_v32, %s9478_s17  ;;  %v2589_v12 = vpack.c.bf16 %v2572_v60, %v10250_v53  ;;  %v16080_v60 = vunpack.i.h.bf16 %v9817_v57 }
 0x1ca   :  { %v2150_v22 = vpop.permute.xlu1 %2149  ;;  %v1479_v46 = vsel %vm98_vm0, %v8924_v2, %v15742_v11  ;;  %v9434_v2 = vld [vmem:[%s15656_s0 + $0x10] sm:$0xff]  ;;  %v2685_v3 = vsel %vm98_vm0, %v16077_v17, %v8889_v50 }
 0x1cb   :  { %v10841_v26 = vpop.permute.xlu0 %8931  ;;  %v1495_v32 = vpack.c.bf16 %v1479_v46, %v10250_v53  ;;  %v1494_v0 = vpack.c.bf16 %v1478_v19, %v9434_v2  ;;  %v16078_v19 = vunpack.i.h.bf16 %v9779_v37  ;;  %v2168_v35 = vsel %vm2167_vm13, %v2150_v22, %v2152_v1  ;;  %v10886_v22 = vld [vmem:[%s15656_s0 + $0x38] sm:$0xff] }
 0x1cc   :  { %2612 = vrot.lane.b32.xlu1 %v2590_v34, %s9479_s18  ;;  %v8899_v34 = vunpack.i.h.bf16 %v10600_v9  ;;  %v2702_v2 = vpack.c.bf16 %v2685_v3, %v10250_v53  ;;  %v9005_v57 = vpack.i.bf16 %v10886_v22, %v10614_v20 }
 0x1cd   :  { %3161 = vmatprep.subr.bf16.mxu1 %v1495_v32  ;;  %374 = vrot.lane.b32.xlu0 %v350_v59, %s9478_s17  ;;  %v447_v32 = vsel %vm441_vm1, %v16078_v19, %v8893_v23  ;;  %v10900_v19 = vpack.i.bf16 %v10614_v20, %v16074_v21 }
 0x1ce   :  { %3162 = vmatpush1.bf16.msra.mxu1 %v1494_v0  ;;  %v10853_v11 = vpop.permute.xlu1 %8941  ;;  %v561_v37 = vsel %vm98_vm0, %v16080_v60, %v8899_v34  ;;  %v464_v0 = vpack.c.bf16 %v447_v32, %v10369_v43 }
 0x1cf   :  { %v10860_v46 = vpop.permute.xlu0 %2153 }
 0x1d0   :  { %v2169_v59 = vsel %vm2167_vm13, %v2152_v1, %v10860_v46  ;;  %489 = vrot.lane.b32.xlu1 %v465_v48, %s9479_s18  ;;  %v15744_v1 = vunpack.i.l.bf16 %v10600_v9  ;;  %v578_v48 = vpack.c.bf16 %v561_v37, %v10369_v43  ;;  %v9436_v37 = vld [vmem:[%s15656_s0 + $0x18] sm:$0xff] }
 0x1d1   :  { %3100 = vmatprep.subr.bf16.mxu0 %v2169_v59  ;;  %2610 = vrot.lane.b32.xlu0 %v2589_v12, %s9479_s18  ;;  %v15746_v59 = vunpack.i.l.bf16 %v10633_v39 }
 0x1d2   :  { %3101 = vmatpush1.bf16.msra.mxu0 %v2168_v35  ;;  %v10871_v63 = vpop.permute.xlu1 %1587  ;;  %v2686_v32 = vsel %vm98_vm0, %v8889_v50, %v15744_v1  ;;  %v8909_v1 = vunpack.i.h.bf16 %v10674_v49 }
 0x1d3   :  { %16079 = vst [vmem:[#allocation20_spill] sm:$0xff] %v10871_v63  ;;  %v10877_v23 = vpop.permute.xlu0 %8936  ;;  %v2703_v50 = vpack.c.bf16 %v2686_v32, %v10369_v43 }
 0x1d4   :  { %2723 = vrot.lane.b32.xlu1 %v2702_v2, %s9496_s30  ;;  %v8904_v2 = vunpack.i.h.bf16 %v10633_v39 }
 0x1d5   :  { %487 = vrot.lane.b32.xlu0 %v464_v0, %s9479_s18  ;;  %v2772_v0 = vpack.c.bf16 %v9436_v37, %v9436_v37 }
 0x1d6   :  { %v10890_v53 = vpop.permute.xlu1 %2267 }
 0x1d7   :  { %v1586_v17 = vpop.permute.xlu0 %1585 }
 0x1d8   :  { %601 = vrot.lane.b32.xlu1 %v578_v48, %s9480_s21  ;;  %v1601_v3 = vsel %vm15747_vm14, %v1586_v17, %v10871_v63  ;;  %v1600_v12 = vsel %vm15747_vm14, %v10582_v18, %v1586_v17  ;;  %v562_v48 = vsel %vm98_vm0, %v8899_v34, %v15746_v59  ;;  %vm2395_vm14 = vcmask 670720  }
 0x1d9   :  { %3163 = vmatprep.subr.bf16.mxu1 %v1601_v3  ;;  %9006 = vrot.lane.b32.xlu0 %v9005_v57, %s9473_s27  ;;  %v16081_v3 = vunpack.i.h.bf16 %v9819_v58  ;;  %v579_v37 = vpack.c.bf16 %v562_v48, %v10414_v28  ;;  %v10933_v58 = vpack.i.bf16 %v16074_v21, %v10886_v22  ;;  %v2773_v48 = vpack.c.bf16 %v10369_v43, %v10369_v43 }
 0x1da   :  { %3164 = vmatpush1.bf16.msra.mxu1 %v1600_v12  ;;  %v10907_v35 = vpop.permute.xlu1 %8946  ;;  %v8918_v63 = vunpack.i.l.bf16 %v10777_v7 }
 0x1db   :  { %v2266_v18 = vpop.permute.xlu0 %2265  ;;  %v675_v12 = vsel %vm98_vm0, %v16081_v3, %v8904_v2 }
 0x1dc   :  { %9011 = vrot.lane.b32.xlu1 %v10900_v19, %s9473_s27  ;;  %v2283_v60 = vsel %vm2281_vm8, %v2266_v18, %v10890_v53 }
 0x1dd   :  { %3102 = vmatprep.subr.bf16.mxu0 %v2283_v60  ;;  %2725 = vrot.lane.b32.xlu0 %v2703_v50, %s9496_s30  ;;  %v692_v60 = vpack.c.bf16 %v675_v12, %v10369_v43  ;;  %v16082_v50 = vunpack.i.h.bf16 %v10395_v52  ;;  %v15750_v12 = vunpack.i.h.bf16 %v10730_v42  ;;  %v8913_v52 = vunpack.i.l.bf16 %v10730_v42 }
 0x1de   :  { %v1700_v17 = vpop.permute.xlu1 %1699 }
 0x1df   :  { %v2264_v32 = vpop.permute.xlu0 %2263  ;;  %v106_v3 = vsel %vm98_vm0, %v16082_v50, %v8909_v1  ;;  %v1714_v50 = vsel %vm1711_vm15, %v10659_v51, %v1700_v17 }
 0x1e0   :  { %v2282_v47 = vsel %vm2281_vm8, %v2264_v32, %v2266_v18  ;;  %2793 = vrot.lane.b32.xlu1 %v2772_v0, %s9497_s24  ;;  %v15751_v18 = vunpack.i.l.bf16 %v10674_v49  ;;  %v123_v0 = vpack.c.bf16 %v106_v3, %v10614_v20 }
 0x1e1   :  { %3103 = vmatpush1.bf16.msra.mxu0 %v2282_v47  ;;  %603 = vrot.lane.b32.xlu0 %v579_v37, %s9480_s21 }
 0x1e2   :  { %v2380_v34 = vpop.permute.xlu1 %2379 }
 0x1e3   :  { %v10938_v59 = vpop.permute.xlu0 %8951 }
 0x1e4   :  { %715 = vrot.lane.b32.xlu1 %v692_v60, %s9481_s22  ;;  %v676_v60 = vsel %vm98_vm0, %v8904_v2, %v15751_v18 }
 0x1e5   :  { %9016 = vrot.lane.b32.xlu0 %v10933_v58, %s9473_s27  ;;  %v693_v51 = vpack.c.bf16 %v676_v60, %v10414_v28  ;;  %v16086_v60 = vunpack.i.h.bf16 %v9866_v44 }
 0x1e6   :  { %v2378_v47 = vpop.permute.xlu1 %2377 }
 0x1e7   :  { %v10949_v32 = vpop.permute.xlu0 %1701 }
 0x1e8   :  { %16083 = vst [vmem:[#allocation21_spill] sm:$0xff] %v10949_v32  ;;  %148 = vrot.lane.b32.xlu1 %v123_v0, %s9476_s15  ;;  %v1715_v37 = vsel %vm1711_vm15, %v1700_v17, %v10949_v32  ;;  %v790_v0 = vsel %vm98_vm0, %v8913_v52, %v15750_v12  ;;  %v2396_v17 = vsel %vm2395_vm14, %v2378_v47, %v2380_v34 }
 0x1e9   :  { %3165 = vmatprep.subr.bf16.mxu1 %v1715_v37  ;;  %2795 = vrot.lane.b32.xlu0 %v2773_v48, %s9497_s24  ;;  %v807_v37 = vpack.c.bf16 %v790_v0, %v10414_v28  ;;  %v8923_v0 = vunpack.i.l.bf16 %v10755_v14 }
 0x1ea   :  { %3166 = vmatpush1.bf16.msra.mxu1 %v1714_v50  ;;  %v1814_v3 = vpop.permute.xlu1 %1813  ;;  %v16084_v50 = vunpack.i.h.bf16 %v10474_v16  ;;  %v8919_v16 = vunpack.i.h.bf16 %v10777_v7 }
 0x1eb   :  { %v10964_v32 = vpop.permute.xlu0 %2381 }
 0x1ec   :  { %9021 = vrot.lane.b32.xlu1 %v9005_v57, %s9473_s27  ;;  %v2397_v2 = vsel %vm2395_vm14, %v2380_v34, %v10964_v32  ;;  %v220_v12 = vsel %vm98_vm0, %v16084_v50, %v8918_v63  ;;  %v124_v57 = vpack.c.bf16 %v8909_v1, %v10886_v22  ;;  %v789_v34 = vsel %vm98_vm0, %v16086_v60, %v8913_v52 }
 0x1ed   :  { %3104 = vmatprep.subr.bf16.mxu0 %v2397_v2  ;;  %717 = vrot.lane.b32.xlu0 %v693_v51, %s9481_s22  ;;  %v237_v2 = vpack.c.bf16 %v220_v12, %v10614_v20  ;;  %v806_v44 = vpack.c.bf16 %v789_v34, %v10369_v43  ;;  %v9030_v52 = vpack.i.bf16 %v10614_v20, %v10886_v22  ;;  %v16087_v60 = vunpack.i.h.bf16 %v10543_v54 }
 0x1ee   :  { %3105 = vmatpush1.bf16.msra.mxu0 %v2396_v17  ;;  %v2494_v48 = vpop.permute.xlu1 %2493  ;;  %v1828_v12 = vsel %vm1825_vm10, %v10702_v27, %v1814_v3  ;;  %v904_v17 = vsel %vm98_vm0, %v8919_v16, %v8923_v0 }
 0x1ef   :  { %v10976_v18 = vpop.permute.xlu0 %8956 }
 0x1f0   :  { %831 = vrot.lane.b32.xlu1 %v807_v37, %s16085_s2  ;;  %v8929_v37 = vunpack.i.h.bf16 %v10820_v61 }
 0x1f1   :  { %150 = vrot.lane.b32.xlu0 %v124_v57, %s9476_s15  ;;  %s16088_s15 = smov 25  }
 0x1f2   :  { %v2492_v47 = vpop.permute.xlu1 %2491  ;;  %v334_v34 = vsel %vm98_vm0, %v16087_v60, %v8929_v37 }
 0x1f3   :  { %v10987_v51 = vpop.permute.xlu0 %1815  ;;  %v2509_v57 = vsel %vm380_vm4, %v2492_v47, %v2494_v48  ;;  %v16089_v47 = vunpack.i.h.bf16 %v9852_v29  ;;  %v351_v54 = vpack.c.bf16 %v334_v34, %v10614_v20  ;;  %v11036_v29 = vld [vmem:[%s15656_s0 + $0x20] sm:$0xff] }
 0x1f4   :  { %262 = vrot.lane.b32.xlu1 %v237_v2, %s9477_s16  ;;  %v1829_v1 = vsel %vm1825_vm10, %v1814_v3, %v10987_v51  ;;  %v921_v3 = vpack.c.bf16 %v904_v17, %v10414_v28 }
 0x1f5   :  { %3167 = vmatprep.subr.bf16.mxu1 %v1829_v1  ;;  %829 = vrot.lane.b32.xlu0 %v806_v44, %s16085_s2  ;;  %v8934_v44 = vunpack.i.h.bf16 %v10841_v26 }
 0x1f6   :  { %3168 = vmatpush1.bf16.msra.mxu1 %v1828_v12  ;;  %v1928_v7 = vpop.permute.xlu1 %1927 }
 0x1f7   :  { %v11002_v50 = vpop.permute.xlu0 %2495  ;;  %v1942_v17 = vsel %vm15752_vm9, %v10759_v40, %v1928_v7  ;;  %v8938_v40 = vunpack.i.l.bf16 %v10877_v23 }
 0x1f8   :  { %9031 = vrot.lane.b32.xlu1 %v9030_v52, %s9473_s27  ;;  %v2510_v43 = vsel %vm380_vm4, %v2494_v48, %v11002_v50  ;;  %v238_v48 = vpack.c.bf16 %v8918_v63, %v10886_v22  ;;  %v8933_v52 = vunpack.i.l.bf16 %v10841_v26 }
 0x1f9   :  { %3106 = vmatprep.subr.bf16.mxu0 %v2510_v43  ;;  %3170 = vmatmul.mubr.bf16.vlgmr.msra.gmra.mrb[0].mxu1 %v10719_v5 }
 0x1fa   :  { %9026 = vrot.lane.b32.xlu0 %v10900_v19, %s9473_s27  ;;  %3107 = vmatpush1.bf16.msra.mxu0 %v2509_v57  ;;  %v2607_v27 = vpop.permute.xlu1 %2606  ;;  %v903_v19 = vsel %vm98_vm0, %v16089_v47, %v8919_v16  ;;  %v1018_v57 = vsel %vm98_vm0, %v8933_v52, %v8934_v44  ;;  %v15753_v47 = vunpack.i.h.bf16 %v10853_v11 }
 0x1fb   :  { %v11015_v2 = vpop.permute.xlu0 %8961  ;;  %8059 = vmatprep.mubr.msk.bf16.mxu1 %vm3051_vm11, %v10724_v41  ;;  %v920_v16 = vpack.c.bf16 %v903_v19, %v11036_v29 }
 0x1fc   :  { %945 = vrot.lane.b32.xlu1 %v921_v3, %s16088_s15 }
 0x1fe   :  { %264 = vrot.lane.b32.xlu0 %v238_v48, %s9477_s16  ;;  %v2605_v1 = vpop.permute.xlu1 %2604  ;;  %v1035_v48 = vpack.c.bf16 %v1018_v57, %v10414_v28  ;;  %v16091_v57 = vunpack.i.h.bf16 %v10552_v8  ;;  %v8939_v8 = vunpack.i.h.bf16 %v10877_v23  ;;  %s16111_s16 = smov 107  }
 0x1ff   :  { %v11028_v12 = vpop.permute.xlu0 %1929  ;;  %v2622_v34 = vsel %vm495_vm5, %v2605_v1, %v2607_v27 }
 0x200   :  { %376 = vrot.lane.b32.xlu1 %v351_v54, %s9478_s17  ;;  %v1943_v63 = vsel %vm15752_vm9, %v1928_v7, %v11028_v12  ;;  %v8943_v54 = vunpack.i.l.bf16 %v10853_v11  ;;  %vm2735_vm9 = vcmask 498688  }
 0x201   :  { %3178 = vmatprep.subr.bf16.mxu1 %v1943_v63  ;;  %v467_v63 = vpack.c.bf16 %v8938_v40, %v10886_v22 }
 0x202   :  { %943 = vrot.lane.b32.xlu0 %v920_v16, %s16088_s15  ;;  %3179 = vmatpush1.bf16.msra.mxu1 %v1942_v17  ;;  %v2042_v43 = vpop.permute.xlu1 %2041  ;;  %v1132_v28 = vsel %vm98_vm0, %v8943_v54, %v15753_v47  ;;  %v8948_v17 = vunpack.i.l.bf16 %v10907_v35 }
 0x203   :  { %v11045_v3 = vpop.permute.xlu0 %2608 }
 0x204   :  { %9036 = vrot.lane.b32.xlu1 %v10933_v58, %s9473_s27  ;;  %v2623_v60 = vsel %vm495_vm5, %v2607_v27, %v11045_v3  ;;  %v352_v58 = vpack.c.bf16 %v8929_v37, %v10886_v22  ;;  %v16090_v27 = vunpack.i.h.bf16 %v9900_v33 }
 0x205   :  { %3108 = vmatprep.subr.bf16.mxu0 %v2623_v60  ;;  %v449_v60 = vsel %vm441_vm1, %v16091_v57, %v8938_v40  ;;  %v16092_v40 = vunpack.i.l.bf16 %v10633_v39 }
 0x206   :  { %1998 = vrot.lane.b32.xlu0 %v16074_v21, %s9475_s28  ;;  %3109 = vmatpush1.bf16.msra.mxu0 %v2622_v34  ;;  %v2720_v7 = vpop.permute.xlu1 %2719  ;;  %v1017_v1 = vsel %vm98_vm0, %v16090_v27, %v8933_v52  ;;  %v2056_v34 = vsel %vm15754_vm12, %v10786_v15, %v2042_v43  ;;  %s16122_s28 = smov 86  }
 0x207   :  { %v11057_v19 = vpop.permute.xlu0 %8966  ;;  %v1034_v52 = vpack.c.bf16 %v1017_v1, %v11036_v29  ;;  %v563_v1 = vsel %vm98_vm0, %v16092_v40, %v8948_v17 }
 0x208   :  { %1059 = vrot.lane.b32.xlu1 %v1035_v48, %s9484_s25  ;;  %v580_v23 = vpack.c.bf16 %v563_v1, %v10614_v20  ;;  %v16097_v1 = vunpack.i.l.bf16 %v10674_v49 }
 0x20a   :  { %378 = vrot.lane.b32.xlu0 %v352_v58, %s9478_s17  ;;  %v2718_v16 = vpop.permute.xlu1 %2717  ;;  %v11088_v58 = vld [vmem:[%s15656_s0 + $0x28] sm:$0xff] }
 0x20b   :  { %v11071_v37 = vpop.permute.xlu0 %2043  ;;  %v1149_v27 = vpack.c.bf16 %v1132_v28, %v11088_v58  ;;  %v2736_v28 = vsel %vm2735_vm9, %v2718_v16, %v2720_v7 }
 0x20c   :  { %493 = vrot.lane.b32.xlu1 %v467_v63, %s9479_s18  ;;  %v2057_v33 = vsel %vm15754_vm12, %v2042_v43, %v11071_v37  ;;  %v466_v63 = vpack.c.bf16 %v449_v60, %v10614_v20  ;;  %v8949_v60 = vunpack.i.h.bf16 %v10907_v35  ;;  %vm15761_vm12 = vcmask 482304  }
 0x20d   :  { %3180 = vmatprep.subr.bf16.mxu1 %v2057_v33  ;;  %v16093_v33 = vld [vmem:[#allocation7_spill] sm:$0xff] }
 0x20e   :  { %1057 = vrot.lane.b32.xlu0 %v1034_v52, %s9484_s25  ;;  %3181 = vmatpush1.bf16.msra.mxu1 %v2056_v34  ;;  %v11083_v48 = vpop.permute.xlu1 %8976  ;;  %v16094_v52 = vunpack.i.h.bf16 %v16093_v33  ;;  %v16095_v34 = vld [vmem:[#allocation8_spill] sm:$0xff] }
 0x20f   :  { %v11095_v15 = vpop.permute.xlu0 %2721 }
 0x210   :  { %1173 = vrot.lane.b32.xlu1 %v1149_v27, %s9485_s26  ;;  %v2737_v43 = vsel %vm2735_vm9, %v2720_v7, %v11095_v15  ;;  %v1131_v57 = vsel %vm98_vm0, %v16094_v52, %v8943_v54  ;;  %v16096_v27 = vunpack.i.h.bf16 %v16095_v34 }
 0x211   :  { %3110 = vmatprep.subr.bf16.mxu0 %v2737_v43  ;;  %v1148_v7 = vpack.c.bf16 %v1131_v57, %v11036_v29  ;;  %v677_v43 = vsel %vm98_vm0, %v16097_v1, %v8949_v60  ;;  %v8953_v57 = vunpack.i.l.bf16 %v10938_v59 }
 0x212   :  { %491 = vrot.lane.b32.xlu0 %v466_v63, %s9479_s18  ;;  %3111 = vmatpush1.bf16.msra.mxu0 %v2736_v28  ;;  %v11106_v39 = vpop.permute.xlu1 %2157  ;;  %v1245_v40 = vsel %vm441_vm1, %v16096_v27, %v8939_v8  ;;  %v8958_v63 = vunpack.i.l.bf16 %v10976_v18  ;;  %v694_v28 = vpack.c.bf16 %v677_v43, %v10614_v20 }
 0x213   :  { %v11113_v47 = vpop.permute.xlu0 %8971  ;;  %v1262_v16 = vpack.c.bf16 %v1245_v40, %v11036_v29 }
 0x214   :  { %605 = vrot.lane.b32.xlu1 %v580_v23, %s9480_s21  ;;  %v16099_v23 = vld [vmem:[#allocation9_spill] sm:$0xff] }
 0x215   :  { %v16100_v34 = vunpack.i.h.bf16 %v16099_v23  ;;  %v15755_v23 = vunpack.i.h.bf16 %v10976_v18 }
 0x216   :  { %1171 = vrot.lane.b32.xlu0 %v1148_v7, %s9485_s26  ;;  %v11118_v54 = vpop.permute.xlu1 %2791  ;;  %v581_v7 = vpack.c.bf16 %v8948_v17, %v10886_v22 }
 0x217   :  { %v2156_v33 = vpop.permute.xlu0 %2155  ;;  %v1359_v27 = vsel %vm98_vm0, %v16100_v34, %v8958_v63 }
 0x218   :  { %1285 = vrot.lane.b32.xlu1 %v1262_v16, %s16098_s13  ;;  %v2171_v35 = vsel %vm2167_vm13, %v2156_v33, %v11106_v39  ;;  %v2170_v52 = vsel %vm2167_vm13, %v10860_v46, %v2156_v33  ;;  %v1246_v16 = vsel %vm441_vm1, %v8939_v8, %v8953_v57  ;;  %v1376_v43 = vpack.c.bf16 %v1359_v27, %v11036_v29 }
 0x219   :  { %3182 = vmatprep.subr.bf16.mxu1 %v2171_v35  ;;  %v8963_v33 = vunpack.i.l.bf16 %v11015_v2  ;;  %v11158_v8 = vcombine.low %v10707_v56, %v10707_v56  ;;  %v8964_v27 = vunpack.i.h.bf16 %v11015_v2  ;;  %v1360_v2 = vsel %vm98_vm0, %v8958_v63, %v15755_v23 }
 0x21a   :  { %9041 = vrot.lane.b32.xlu0 %v16074_v21, %s9473_s27  ;;  %3183 = vmatpush1.bf16.msra.mxu1 %v2170_v52  ;;  %v11133_v49 = vpop.permute.xlu1 %8981  ;;  %v1263_v52 = vpack.c.bf16 %v1246_v16, %v11088_v58  ;;  %v695_v16 = vpack.c.bf16 %v8949_v60, %v10886_v22  ;;  %v1377_v63 = vpack.c.bf16 %v1360_v2, %v11088_v58 }
 0x21b   :  { %v2790_v40 = vpop.permute.xlu0 %2789 }
 0x21c   :  { %719 = vrot.lane.b32.xlu1 %v694_v28, %s9481_s22  ;;  %v2807_v46 = vsel %vm15761_vm12, %v2790_v40, %v11118_v54  ;;  %v9045_v28 = vpack.i.bf16 %v10614_v20, %v11088_v58 }
 0x21d   :  { %3112 = vmatprep.subr.bf16.mxu0 %v2807_v46 }
 0x21e   :  { %607 = vrot.lane.b32.xlu0 %v581_v7, %s9480_s21  ;;  %v11147_v1 = vpop.permute.xlu1 %2271 }
 0x21f   :  { %v2788_v35 = vpop.permute.xlu0 %2787 }
 0x220   :  { %v2806_v17 = vsel %vm15761_vm12, %v2788_v35, %v2790_v40  ;;  %1399 = vrot.lane.b32.xlu1 %v1376_v43, %s16101_s29  ;;  %v16102_v40 = vunpack.i.h.bf16 %v10730_v42  ;;  %v16103_v42 = vld [vmem:[#allocation14_spill] sm:$0xff] }
 0x221   :  { %3113 = vmatpush1.bf16.msra.mxu0 %v2806_v17  ;;  %v905_v17 = vsel %vm98_vm0, %v8923_v0, %v8964_v27 }
 0x222   :  { %1287 = vrot.lane.b32.xlu0 %v1263_v52, %s16098_s13  ;;  %v11162_v34 = vpop.permute.xlu1 %146  ;;  %v791_v7 = vsel %vm98_vm0, %v16102_v40, %v8963_v33  ;;  %v16104_v40 = vld [vmem:[#allocation12_spill] sm:$0xff]  ;;  %v922_v0 = vpack.c.bf16 %v905_v17, %v10614_v20 }
 0x223   :  { %v2270_v46 = vpop.permute.xlu0 %2269  ;;  %v808_v35 = vpack.c.bf16 %v791_v7, %v10614_v20  ;;  %v16105_v7 = vld [vmem:[#allocation10_spill] sm:$0xff] }
 0x224   :  { %9046 = vrot.lane.b32.xlu1 %v9045_v28, %s9473_s27  ;;  %v2285_v56 = vsel %vm2281_vm8, %v2270_v46, %v11147_v1  ;;  %v2284_v43 = vsel %vm2281_vm8, %v10890_v53, %v2270_v46  ;;  %3129 = vmatmul.mubr.bf16.vlgmr.msra.gmra.mrb[0].mxu0 %v11158_v8  ;;  %v8968_v53 = vunpack.i.l.bf16 %v11057_v19 }
 0x225   :  { %3184 = vmatprep.subr.bf16.mxu1 %v2285_v56  ;;  %3251 = vmatprep.mubr.bf16.mxu0 %v16103_v42 }
 0x226   :  { %721 = vrot.lane.b32.xlu0 %v695_v16, %s9481_s22  ;;  %3185 = vmatpush1.bf16.msra.mxu1 %v2284_v43  ;;  %v2384_v60 = vpop.permute.xlu1 %2383  ;;  %v16106_v16 = vunpack.i.h.bf16 %v16105_v7  ;;  %v15759_v7 = vunpack.i.l.bf16 %v11083_v48 }
 0x227   :  { %v145_v52 = vpop.permute.xlu0 %144 }
 0x228   :  { %833 = vrot.lane.b32.xlu1 %v808_v35, %s16085_s2  ;;  %v158_v28 = vsel %vm152_vm2, %v145_v52, %v11162_v34  ;;  %v157_v46 = vsel %vm152_vm2, %v16104_v40, %v145_v52  ;;  %v1549_v56 = vsel %vm98_vm0, %v16106_v16, %v8968_v53  ;;  %v8969_v40 = vunpack.i.h.bf16 %v11057_v19 }
 0x229   :  { %3219 = vmatprep.subr.bf16.mxu0 %v158_v28  ;;  %v1566_v35 = vpack.c.bf16 %v1549_v56, %v11088_v58  ;;  %v9055_v28 = vpack.i.bf16 %v10886_v22, %v16074_v21  ;;  %v8974_v16 = vunpack.i.h.bf16 %v11113_v47  ;;  %v16123_v19 = vunpack.i.h.bf16 %v10420_v55 }
 0x22a   :  { %1401 = vrot.lane.b32.xlu0 %v1377_v63, %s16101_s29  ;;  %3220 = vmatpush1.bf16.msra.mxu0 %v157_v46  ;;  %v259_v14 = vpop.permute.xlu1 %258  ;;  %v809_v63 = vpack.c.bf16 %v8963_v33, %v10886_v22  ;;  %v2398_v46 = vsel %vm2395_vm14, %v10964_v32, %v2384_v60  ;;  %v1550_v32 = vsel %vm98_vm0, %v8968_v53, %v8969_v40 }
 0x22b   :  { %v11196_v43 = vpop.permute.xlu0 %8986  ;;  %v1567_v53 = vpack.c.bf16 %v1550_v32, %v10614_v20 }
 0x22c   :  { %947 = vrot.lane.b32.xlu1 %v922_v0, %s16088_s15  ;;  %v8973_v0 = vunpack.i.l.bf16 %v11113_v47 }
 0x22e   :  { %9051 = vrot.lane.b32.xlu0 %v16074_v21, %s9473_s27  ;;  %v11201_v2 = vpop.permute.xlu1 %8991  ;;  %v1037_v47 = vpack.c.bf16 %v8973_v0, %v10886_v22 }
 0x22f   :  { %v11204_v52 = vpop.permute.xlu0 %2385 }
 0x230   :  { %1589 = vrot.lane.b32.xlu1 %v1566_v35, %s9488_s19  ;;  %v2399_v17 = vsel %vm2395_vm14, %v2384_v60, %v11204_v52  ;;  %v923_v35 = vpack.c.bf16 %v8964_v27, %v10886_v22  ;;  %v16107_v60 = vld [vmem:[#allocation13_spill] sm:$0xff] }
 0x231   :  { %3186 = vmatprep.subr.bf16.mxu1 %v2399_v17 }
 0x232   :  { %835 = vrot.lane.b32.xlu0 %v809_v63, %s16085_s2  ;;  %3187 = vmatpush1.bf16.msra.mxu1 %v2398_v46  ;;  %v2498_v33 = vpop.permute.xlu1 %2497  ;;  %v271_v63 = vsel %vm266_vm3, %v16107_v60, %v259_v14  ;;  %v15756_v46 = vmov 0   ;;  %v15758_v60 = vunpack.i.h.bf16 %v11133_v49 }
 0x233   :  { %v11219_v56 = vpop.permute.xlu0 %260  ;;  %9060 = vset.pattern.permute.xlu1 %v15756_v46  ;;  %9331 = vset.pattern.permute.xlu0 %v15756_v46  ;;  %v8979_v46 = vunpack.i.h.bf16 %v11083_v48 }
 0x234   :  { %9056 = vrot.lane.b32.xlu1 %v9055_v28, %s9473_s27  ;;  %v272_v17 = vsel %vm266_vm3, %v259_v14, %v11219_v56  ;;  %v1664_v28 = vsel %vm98_vm0, %v8974_v16, %v15759_v7  ;;  %v1019_v14 = vsel %vm98_vm0, %v8934_v44, %v8973_v0  ;;  %v16108_v44 = vunpack.i.h.bf16 %v10128_v62 }
 0x235   :  { %3221 = vmatprep.subr.bf16.mxu0 %v272_v17  ;;  %v1681_v17 = vpack.c.bf16 %v1664_v28, %v10614_v20  ;;  %v1036_v32 = vpack.c.bf16 %v1019_v14, %v10614_v20  ;;  %v2511_v28 = vsel %vm380_vm4, %v11002_v50, %v2498_v33 }
 0x236   :  { %949 = vrot.lane.b32.xlu0 %v923_v35, %s16088_s15  ;;  %3222 = vmatpush1.bf16.msra.mxu0 %v271_v63  ;;  %v373_v27 = vpop.permute.xlu1 %372  ;;  %v1663_v0 = vsel %vm98_vm0, %v16108_v44, %v8974_v16  ;;  %v8954_v44 = vunpack.i.h.bf16 %v10938_v59  ;;  %s16115_s15 = smov 105   ;;  %v16116_v59 = vunpack.i.h.bf16 %v10244_v6 }
 0x237   :  { %v11236_v23 = vpop.permute.xlu0 %8996  ;;  %v1680_v16 = vpack.c.bf16 %v1663_v0, %v11088_v58  ;;  %v11287_v0 = vld [vmem:[%s15656_s0 + $0x30] sm:$0xff] }
 0x238   :  { %1063 = vrot.lane.b32.xlu1 %v1037_v47, %s9484_s25  ;;  %v8983_v47 = vunpack.i.l.bf16 %v11133_v49 }
 0x23a   :  { %1591 = vrot.lane.b32.xlu0 %v1567_v53, %s9488_s19  ;;  %v11245_v35 = vpop.permute.xlu1 %9001  ;;  %v1151_v53 = vpack.c.bf16 %v8979_v46, %v10886_v22  ;;  %v1778_v20 = vsel %vm98_vm0, %v8983_v47, %v15758_v60 }
 0x23b   :  { %v11249_v63 = vpop.permute.xlu0 %2499 }
 0x23c   :  { %1705 = vrot.lane.b32.xlu1 %v1681_v17, %s9489_s23  ;;  %v2512_v26 = vsel %vm380_vm4, %v2498_v33, %v11249_v63  ;;  %v16109_v33 = vunpack.i.h.bf16 %v10853_v11  ;;  %v1795_v11 = vpack.c.bf16 %v1778_v20, %v11287_v0  ;;  %v1265_v20 = vpack.c.bf16 %v8954_v44, %v10886_v22 }
 0x23d   :  { %3188 = vmatprep.subr.bf16.mxu1 %v2512_v26 }
 0x23e   :  { %1061 = vrot.lane.b32.xlu0 %v1036_v32, %s9484_s25  ;;  %3189 = vmatpush1.bf16.msra.mxu1 %v2511_v28  ;;  %v11264_v17 = vpop.permute.xlu1 %2612  ;;  %v1133_v14 = vsel %vm98_vm0, %v16109_v33, %v8979_v46  ;;  %v16110_v32 = vld [vmem:[#allocation15_spill] sm:$0xff]  ;;  %v15760_v46 = vunpack.i.h.bf16 %v11196_v43 }
 0x23f   :  { %v11269_v62 = vpop.permute.xlu0 %374  ;;  %v385_v26 = vsel %vm380_vm4, %v16110_v32, %v373_v27  ;;  %v16112_v32 = vld [vmem:[#allocation11_spill] sm:$0xff] }
 0x240   :  { %1177 = vrot.lane.b32.xlu1 %v1151_v53, %s9485_s26  ;;  %v386_v50 = vsel %vm380_vm4, %v373_v27, %v11269_v62  ;;  %v8988_v53 = vunpack.i.l.bf16 %v11196_v43  ;;  %v1150_v27 = vpack.c.bf16 %v1133_v14, %v11287_v0 }
 0x241   :  { %3223 = vmatprep.subr.bf16.mxu0 %v386_v50 }
 0x242   :  { %1703 = vrot.lane.b32.xlu0 %v1680_v16, %s9489_s23  ;;  %3224 = vmatpush1.bf16.msra.mxu0 %v385_v26  ;;  %v11282_v28 = vpop.permute.xlu1 %489  ;;  %v16113_v26 = vunpack.i.h.bf16 %v16112_v32  ;;  %v1892_v14 = vsel %vm98_vm0, %v8988_v53, %v15760_v46  ;;  %v8993_v46 = vunpack.i.l.bf16 %v11201_v2 }
 0x243   :  { %v2611_v50 = vpop.permute.xlu0 %2610  ;;  %v1909_v32 = vpack.c.bf16 %v1892_v14, %v11287_v0 }
 0x244   :  { %1819 = vrot.lane.b32.xlu1 %v1795_v11, %s16111_s16  ;;  %v2625_v16 = vsel %vm495_vm5, %v2611_v50, %v11264_v17  ;;  %v2624_v33 = vsel %vm495_vm5, %v11045_v3, %v2611_v50  ;;  %v1777_v60 = vsel %vm98_vm0, %v16113_v26, %v8983_v47  ;;  %v16114_v47 = vld [vmem:[#allocation16_spill] sm:$0xff]  ;;  %v8999_v26 = vunpack.i.h.bf16 %v11236_v23 }
 0x245   :  { %3190 = vmatprep.subr.bf16.mxu1 %v2625_v16  ;;  %v1794_v3 = vpack.c.bf16 %v1777_v60, %v11088_v58  ;;  %v8998_v60 = vunpack.i.l.bf16 %v11236_v23 }
 0x246   :  { %1175 = vrot.lane.b32.xlu0 %v1150_v27, %s9485_s26  ;;  %3191 = vmatpush1.bf16.msra.mxu1 %v2624_v33  ;;  %v2724_v7 = vpop.permute.xlu1 %2723  ;;  %v1247_v27 = vsel %vm441_vm1, %v8953_v57, %v8954_v44  ;;  %v1891_v57 = vsel %vm98_vm0, %v16116_v59, %v8988_v53  ;;  %v1379_v44 = vpack.c.bf16 %v8993_v46, %v10886_v22  ;;  %v16117_v53 = vunpack.i.h.bf16 %v10976_v18 }
 0x247   :  { %v488_v11 = vpop.permute.xlu0 %487  ;;  %v1908_v6 = vpack.c.bf16 %v1891_v57, %v11088_v58  ;;  %v16118_v59 = vunpack.i.h.bf16 %v10373_v4  ;;  %v9004_v18 = vunpack.i.h.bf16 %v11245_v35  ;;  %v16121_v4 = vld [vmem:[#allocation17_spill] sm:$0xff] }
 0x248   :  { %1291 = vrot.lane.b32.xlu1 %v1265_v20, %s16098_s13  ;;  %v501_v50 = vsel %vm495_vm5, %v488_v11, %v11282_v28  ;;  %v500_v16 = vsel %vm495_vm5, %v16114_v47, %v488_v11  ;;  %v1264_v11 = vpack.c.bf16 %v1247_v27, %v11287_v0 }
 0x249   :  { %3225 = vmatprep.subr.bf16.mxu0 %v501_v50  ;;  %v2006_v50 = vsel %vm441_vm1, %v8998_v60, %v8999_v26 }
 0x24a   :  { %1817 = vrot.lane.b32.xlu0 %v1794_v3, %s16111_s16  ;;  %3226 = vmatpush1.bf16.msra.mxu0 %v500_v16  ;;  %v602_v33 = vpop.permute.xlu1 %601  ;;  %v8994_v3 = vunpack.i.h.bf16 %v11201_v2  ;;  %v1361_v16 = vsel %vm98_vm0, %v16117_v53, %v8993_v46  ;;  %v2738_v2 = vsel %vm2735_vm9, %v11095_v15, %v2724_v7 }
 0x24b   :  { %v11319_v20 = vpop.permute.xlu0 %9006 }
 0x24c   :  { %1933 = vrot.lane.b32.xlu1 %v1909_v32, %s16115_s15  ;;  %v2119_v57 = vsel %vm98_vm0, %v16118_v59, %v8994_v3 }
 0x24e   :  { %1289 = vrot.lane.b32.xlu0 %v1264_v11, %s16098_s13  ;;  %v11329_v14 = vpop.permute.xlu1 %9011  ;;  %v2023_v11 = vpack.c.bf16 %v2006_v50, %v11287_v0  ;;  %s16119_s13 = smov 103   ;;  %v614_v50 = vsel %vm609_vm6, %v16121_v4, %v602_v33 }
 0x24f   :  { %v11335_v47 = vpop.permute.xlu0 %2725 }
 0x250   :  { %1405 = vrot.lane.b32.xlu1 %v1379_v44, %s16101_s29  ;;  %v2739_v27 = vsel %vm2735_vm9, %v2724_v7, %v11335_v47  ;;  %v1378_v44 = vpack.c.bf16 %v1361_v16, %v11287_v0  ;;  %v1551_v16 = vsel %vm98_vm0, %v8969_v40, %v9004_v18 }
 0x251   :  { %3192 = vmatprep.subr.bf16.mxu1 %v2739_v27  ;;  %v2136_v27 = vpack.c.bf16 %v2119_v57, %v11088_v58  ;;  %v1568_v59 = vpack.c.bf16 %v1551_v16, %v10886_v22  ;;  %v9013_v57 = vunpack.i.l.bf16 %v11329_v14 }
 0x252   :  { %1931 = vrot.lane.b32.xlu0 %v1908_v6, %s16115_s15  ;;  %v2794_v32 = vpop.permute.xlu1 %2793  ;;  %3193 = vmatpush1.bf16.msra.mxu1 %v2738_v2  ;;  %v16120_v6 = vunpack.i.h.bf16 %v10316_v10  ;;  %v9008_v10 = vunpack.i.l.bf16 %v11319_v20 }
 0x253   :  { %v11352_v46 = vpop.permute.xlu0 %603  ;;  %v2808_v55 = vsel %vm15761_vm12, %v11118_v54, %v2794_v32 }
 0x254   :  { %2047 = vrot.lane.b32.xlu1 %v2023_v11, %s16119_s13  ;;  %v2005_v15 = vsel %vm441_vm1, %v16120_v6, %v8998_v60  ;;  %v615_v7 = vsel %vm609_vm6, %v602_v33, %v11352_v46  ;;  %v9003_v11 = vunpack.i.l.bf16 %v11245_v35  ;;  %v2233_v40 = vsel %vm98_vm0, %v16123_v19, %v9008_v10 }
 0x255   :  { %3227 = vmatprep.subr.bf16.mxu0 %v615_v7  ;;  %v2022_v2 = vpack.c.bf16 %v2005_v15, %v11088_v58  ;;  %v2250_v4 = vpack.c.bf16 %v2233_v40, %v11088_v58  ;;  %v16126_v40 = vunpack.i.h.bf16 %v10449_v13 }
 0x256   :  { %1403 = vrot.lane.b32.xlu0 %v1378_v44, %s16101_s29  ;;  %v716_v53 = vpop.permute.xlu1 %715  ;;  %3228 = vmatpush1.bf16.msra.mxu0 %v614_v50  ;;  %v2120_v15 = vsel %vm98_vm0, %v8994_v3, %v9003_v11  ;;  %v9014_v50 = vunpack.i.h.bf16 %v11329_v14  ;;  %v16125_v14 = vld [vmem:[#allocation18_spill] sm:$0xff] }
 0x257   :  { %v11369_v60 = vpop.permute.xlu0 %9016  ;;  %v2137_v54 = vpack.c.bf16 %v2120_v15, %v11287_v0 }
 0x258   :  { %2159 = vrot.lane.b32.xlu1 %v2136_v27, %s16122_s28  ;;  %v16124_v27 = vunpack.i.l.bf16 %v11083_v48  ;;  %v728_v48 = vsel %vm723_vm7, %v16125_v14, %v716_v53 }
 0x25a   :  { %2045 = vrot.lane.b32.xlu0 %v2022_v2, %s16119_s13  ;;  %v149_v33 = vpop.permute.xlu1 %148  ;;  %v1665_v16 = vsel %vm98_vm0, %v16124_v27, %v9013_v57 }
 0x25b   :  { %v11380_v44 = vpop.permute.xlu0 %2795  ;;  %v1682_v19 = vpack.c.bf16 %v1665_v16, %v10886_v22  ;;  %v159_v27 = vsel %vm152_vm2, %v11162_v34, %v149_v33 }
 0x25c   :  { %1593 = vrot.lane.b32.xlu1 %v1568_v59, %s9488_s19  ;;  %v2809_v6 = vsel %vm15761_vm12, %v2794_v32, %v11380_v44  ;;  %v9009_v32 = vunpack.i.h.bf16 %v11319_v20  ;;  %vm16128_vm12 = vcmask 343040  }
 0x25d   :  { %3194 = vmatprep.subr.bf16.mxu1 %v2809_v6  ;;  %v2347_v6 = vsel %vm98_vm0, %v16126_v40, %v9014_v50  ;;  %v16130_v40 = vunpack.i.h.bf16 %v10501_v30 }
 0x25e   :  { %1474 = vrot.lane.b32.xlu0 %v16074_v21, %s9473_s27  ;;  %v11392_v7 = vpop.permute.xlu1 %9021  ;;  %3195 = vmatpush1.bf16.msra.mxu1 %v2808_v55  ;;  %v9019_v55 = vunpack.i.h.bf16 %v11369_v60  ;;  %v2234_v13 = vsel %vm98_vm0, %v9008_v10, %v9009_v32 }
 0x25f   :  { %v11399_v2 = vpop.permute.xlu0 %717  ;;  %v2251_v34 = vpack.c.bf16 %v2234_v13, %v11287_v0 }
 0x260   :  { %2273 = vrot.lane.b32.xlu1 %v2250_v4, %s9494_s14  ;;  %v729_v3 = vsel %vm723_vm7, %v716_v53, %v11399_v2  ;;  %v1569_v53 = vpack.c.bf16 %v9004_v18, %v16074_v21 }
 0x261   :  { %3211 = vmatmul.mubr.bf16.vlgmr.msra.gmra.mrb[0].mxu1 %v11158_v8  ;;  %3229 = vmatprep.subr.bf16.mxu0 %v729_v3  ;;  %v2364_v3 = vpack.c.bf16 %v2347_v6, %v11088_v58 }
 0x262   :  { %v11409_v59 = vpop.permute.xlu1 %831  ;;  %2161 = vrot.lane.b32.xlu0 %v2137_v54, %s16122_s28  ;;  %3230 = vmatpush1.bf16.msra.mxu0 %v728_v48  ;;  %v16127_v54 = vunpack.i.h.bf16 %v11133_v49  ;;  %v9018_v49 = vunpack.i.l.bf16 %v11369_v60 }
 0x263   :  { %v151_v15 = vpop.permute.xlu0 %150  ;;  %3333 = vmatprep.mubr.bf16.mxu1 %v16103_v42  ;;  %v9023_v42 = vunpack.i.l.bf16 %v11392_v7 }
 0x264   :  { %1707 = vrot.lane.b32.xlu1 %v1682_v19, %s9489_s23  ;;  %v160_v4 = vsel %vm152_vm2, %v149_v33, %v151_v15  ;;  %v1779_v14 = vsel %vm98_vm0, %v16127_v54, %v9019_v55  ;;  %vm16129_vm2 = vmmov %vm16128_vm12 }
 0x265   :  { %3301 = vmatprep.subr.bf16.mxu1 %v160_v4  ;;  %v1796_v19 = vpack.c.bf16 %v1779_v14, %v10886_v22  ;;  %v2461_v6 = vsel %vm98_vm0, %v16130_v40, %v9023_v42  ;;  %v2348_v4 = vsel %vm98_vm0, %v9014_v50, %v9018_v49  ;;  %v9024_v50 = vunpack.i.h.bf16 %v11392_v7 }
 0x266   :  { %v263_v16 = vpop.permute.xlu1 %262  ;;  %1595 = vrot.lane.b32.xlu0 %v1569_v53, %s9488_s19  ;;  %3302 = vmatpush1.bf16.msra.mxu1 %v159_v27  ;;  %v1683_v53 = vpack.c.bf16 %v9013_v57, %v16074_v21  ;;  %v2478_v27 = vpack.c.bf16 %v2461_v6, %v11088_v58  ;;  %v1797_v6 = vpack.c.bf16 %v9019_v55, %v16074_v21 }
 0x267   :  { %v830_v18 = vpop.permute.xlu0 %829 }
 0x268   :  { %2387 = vrot.lane.b32.xlu1 %v2364_v3, %s9495_s20  ;;  %v843_v10 = vsel %vm16128_vm12, %v830_v18, %v11409_v59  ;;  %v842_v33 = vsel %vm16129_vm2, %v10558_v25, %v830_v18  ;;  %v16131_v3 = vunpack.i.h.bf16 %v11196_v43  ;;  %v2365_v18 = vpack.c.bf16 %v2348_v4, %v11287_v0 }
 0x269   :  { %3231 = vmatprep.subr.bf16.mxu0 %v843_v10  ;;  %v273_v10 = vsel %vm266_vm3, %v11219_v56, %v263_v16  ;;  %vm16133_vm12 = vcmask 203776  }
 0x26a   :  { %v11439_v48 = vpop.permute.xlu1 %9031  ;;  %2275 = vrot.lane.b32.xlu0 %v2251_v34, %s9494_s14  ;;  %3232 = vmatpush1.bf16.msra.mxu0 %v842_v33  ;;  %v16132_v33 = vunpack.i.l.bf16 %v10573_v45  ;;  %v2462_v45 = vsel %vm98_vm0, %v9023_v42, %v9024_v50 }
 0x26b   :  { %v9034_v4 = vunpack.i.h.bf16 %v11439_v48  ;;  %v9033_v42 = vunpack.i.l.bf16 %v11439_v48 }
 0x26c   :  { %v9027_v15 = vpop.permute.xlu0 %9026  ;;  %1821 = vrot.lane.b32.xlu1 %v1796_v19, %s16111_s16 }
 0x26d   :  { %v9028_v25 = vunpack.i.l.bf16 %v9027_v15  ;;  %v9029_v30 = vunpack.i.h.bf16 %v9027_v15 }
 0x26e   :  { %v11451_v13 = vpop.permute.xlu1 %945  ;;  %1709 = vrot.lane.b32.xlu0 %v1683_v53, %s9489_s23 }
 0x26f   :  { %v1893_v54 = vsel %vm98_vm0, %v16131_v3, %v9028_v25  ;;  %v2574_v19 = vsel %vm98_vm0, %v16132_v33, %v9029_v30  ;;  %v1911_v23 = vpack.c.bf16 %v9028_v25, %v16074_v21 }
 0x270   :  { %v265_v14 = vpop.permute.xlu0 %264  ;;  %2501 = vrot.lane.b32.xlu1 %v2478_v27, %s9478_s17  ;;  %v1910_v43 = vpack.c.bf16 %v1893_v54, %v10886_v22  ;;  %v2591_v53 = vpack.c.bf16 %v2574_v19, %v11088_v58  ;;  %v2479_v27 = vpack.c.bf16 %v2462_v45, %v11287_v0 }
 0x271   :  { %v274_v57 = vsel %vm266_vm3, %v263_v16, %v265_v14  ;;  %vm16134_vm3 = vmmov %vm16133_vm12  ;;  %v16135_v14 = vunpack.i.l.bf16 %v10600_v9 }
 0x272   :  { %3303 = vmatprep.subr.bf16.mxu1 %v274_v57  ;;  %v377_v34 = vpop.permute.xlu1 %376  ;;  %2389 = vrot.lane.b32.xlu0 %v2365_v18, %s9495_s20 }
 0x273   :  { %3304 = vmatpush1.bf16.msra.mxu1 %v273_v10  ;;  %v2687_v57 = vsel %vm98_vm0, %v16135_v14, %v9034_v4  ;;  %v387_v9 = vsel %vm380_vm4, %v11269_v62, %v377_v34 }
 0x274   :  { %v944_v40 = vpop.permute.xlu0 %943  ;;  %1935 = vrot.lane.b32.xlu1 %v1910_v43, %s16115_s15  ;;  %v2575_v43 = vsel %vm98_vm0, %v9029_v30, %v9033_v42  ;;  %v2704_v19 = vpack.c.bf16 %v2687_v57, %v11088_v58 }
 0x275   :  { %v957_v15 = vsel %vm16133_vm12, %v944_v40, %v11451_v13  ;;  %v956_v56 = vsel %vm16134_vm3, %v10568_v31, %v944_v40  ;;  %vm16138_vm12 = vcmask 171008  }
 0x276   :  { %3233 = vmatprep.subr.bf16.mxu0 %v957_v15  ;;  %v11478_v16 = vpop.permute.xlu1 %9036  ;;  %1823 = vrot.lane.b32.xlu0 %v1797_v6, %s16111_s16  ;;  %v2592_v6 = vpack.c.bf16 %v2575_v43, %v11287_v0  ;;  %vm16139_vm3 = vmmov %vm16138_vm12 }
 0x277   :  { %3234 = vmatpush1.bf16.msra.mxu0 %v956_v56  ;;  %v9039_v18 = vunpack.i.h.bf16 %v11478_v16  ;;  %v2774_v56 = vpack.c.bf16 %v11088_v58, %v11088_v58 }
 0x278   :  { %v1999_v55 = vpop.permute.xlu0 %1998  ;;  %2614 = vrot.lane.b32.xlu1 %v2591_v53, %s9479_s18 }
 0x279   :  { %v2007_v31 = vsel %vm441_vm1, %v8999_v26, %v1999_v55  ;;  %v2121_v40 = vsel %vm98_vm0, %v9003_v11, %v9039_v18  ;;  %vm16136_vm1 = vcmask 187392   ;;  %v2025_v45 = vpack.c.bf16 %v1999_v55, %v16074_v21 }
 0x27a   :  { %v2024_v3 = vpack.c.bf16 %v2007_v31, %v10886_v22  ;;  %v11490_v54 = vpop.permute.xlu1 %1059  ;;  %2503 = vrot.lane.b32.xlu0 %v2479_v27, %s9478_s17  ;;  %vm16137_vm2 = vmmov %vm16136_vm1  ;;  %v2138_v11 = vpack.c.bf16 %v2121_v40, %v10886_v22  ;;  %v2139_v57 = vpack.c.bf16 %v9039_v18, %v16074_v21 }
 0x27c   :  { %v379_v10 = vpop.permute.xlu0 %378  ;;  %2049 = vrot.lane.b32.xlu1 %v2024_v3, %s16119_s13 }
 0x27d   :  { %v388_v26 = vsel %vm380_vm4, %v377_v34, %v379_v10  ;;  %v9038_v34 = vunpack.i.l.bf16 %v11478_v16 }
 0x27e   :  { %3305 = vmatprep.subr.bf16.mxu1 %v388_v26  ;;  %v494_v33 = vpop.permute.xlu1 %493  ;;  %1937 = vrot.lane.b32.xlu0 %v1911_v23, %s16115_s15 }
 0x27f   :  { %3306 = vmatpush1.bf16.msra.mxu1 %v387_v9  ;;  %v2688_v22 = vsel %vm98_vm0, %v9034_v4, %v9038_v34 }
 0x280   :  { %v1058_v25 = vpop.permute.xlu0 %1057  ;;  %2727 = vrot.lane.b32.xlu1 %v2704_v19, %s9496_s30  ;;  %v2705_v3 = vpack.c.bf16 %v2688_v22, %v11287_v0 }
 0x281   :  { %v1071_v30 = vsel %vm16136_vm1, %v1058_v25, %v11490_v54  ;;  %v1070_v62 = vsel %vm16137_vm2, %v10644_v36, %v1058_v25  ;;  %vm16140_vm1 = vcmask 154624  }
 0x282   :  { %3235 = vmatprep.subr.bf16.mxu0 %v1071_v30  ;;  %v11517_v35 = vpop.permute.xlu1 %1173  ;;  %2616 = vrot.lane.b32.xlu0 %v2592_v6, %s9479_s18  ;;  %vm16141_vm2 = vmmov %vm16140_vm1 }
 0x283   :  { %3236 = vmatpush1.bf16.msra.mxu0 %v1070_v62 }
 0x284   :  { %v492_v15 = vpop.permute.xlu0 %491  ;;  %2163 = vrot.lane.b32.xlu1 %v2138_v11, %s16122_s28 }
 0x285   :  { %v503_v36 = vsel %vm495_vm5, %v492_v15, %v494_v33  ;;  %v502_v53 = vsel %vm495_vm5, %v11282_v28, %v492_v15  ;;  %v11549_v33 = vld [vmem:[%s15656_s0 + $0x38] sm:$0xff] }
 0x286   :  { %3307 = vmatprep.subr.bf16.mxu1 %v503_v36  ;;  %v606_v31 = vpop.permute.xlu1 %605  ;;  %2051 = vrot.lane.b32.xlu0 %v2025_v45, %s16119_s13 }
 0x287   :  { %3308 = vmatpush1.bf16.msra.mxu1 %v502_v53 }
 0x288   :  { %v1172_v27 = vpop.permute.xlu0 %1171  ;;  %2797 = vrot.lane.b32.xlu1 %v2774_v56, %s9497_s24 }
 0x289   :  { %v1185_v55 = vsel %vm16138_vm12, %v1172_v27, %v11517_v35  ;;  %v1184_v28 = vsel %vm16139_vm3, %v10685_v24, %v1172_v27  ;;  %v2775_v24 = vpack.c.bf16 %v11287_v0, %v11287_v0  ;;  %vm16142_vm12 = vcmask 15360  }
 0x28a   :  { %3237 = vmatprep.subr.bf16.mxu0 %v1185_v55  ;;  %v1286_v14 = vpop.permute.xlu1 %1285  ;;  %2729 = vrot.lane.b32.xlu0 %v2705_v3, %s9496_s30  ;;  %v16143_v55 = vunpack.i.l.bf16 %v10820_v61  ;;  %vm16145_vm3 = vmmov %vm16142_vm12 }
 0x28b   :  { %3238 = vmatpush1.bf16.msra.mxu0 %v1184_v28  ;;  %v1298_v6 = vsel %vm16141_vm2, %v10745_v38, %v1286_v14  ;;  %v16144_v28 = vld [vmem:[#allocation19_spill] sm:$0xff] }
 0x28c   :  { %v9042_v4 = vpop.permute.xlu0 %9041 }
 0x28d   :  { %v9044_v10 = vunpack.i.h.bf16 %v9042_v4  ;;  %v9043_v23 = vunpack.i.l.bf16 %v9042_v4 }
 0x28e   :  { %v720_v26 = vpop.permute.xlu1 %719  ;;  %2165 = vrot.lane.b32.xlu0 %v2139_v57, %s16122_s28 }
 0x28f   :  { %v2235_v43 = vsel %vm98_vm0, %v9009_v32, %v9043_v23  ;;  %v2349_v19 = vsel %vm98_vm0, %v9018_v49, %v9044_v10  ;;  %v616_v32 = vsel %vm609_vm6, %v11352_v46, %v606_v31  ;;  %v2253_v60 = vpack.c.bf16 %v9043_v23, %v16074_v21 }
 0x290   :  { %v608_v9 = vpop.permute.xlu0 %607  ;;  %v2252_v18 = vpack.c.bf16 %v2235_v43, %v11549_v33  ;;  %v2366_v30 = vpack.c.bf16 %v2349_v19, %v11549_v33  ;;  %v2367_v56 = vpack.c.bf16 %v9044_v10, %v16074_v21  ;;  %v730_v38 = vsel %vm723_vm7, %v11399_v2, %v720_v26 }
 0x291   :  { %v617_v20 = vsel %vm609_vm6, %v606_v31, %v608_v9 }
 0x292   :  { %3309 = vmatprep.subr.bf16.mxu1 %v617_v20  ;;  %2277 = vrot.lane.b32.xlu1 %v2252_v18, %s9494_s14  ;;  %v1400_v40 = vpop.permute.xlu1 %1399 }
 0x293   :  { %2799 = vrot.lane.b32.xlu0 %v2775_v24, %s9497_s24  ;;  %3310 = vmatpush1.bf16.msra.mxu1 %v616_v32 }
 0x294   :  { %v11560_v25 = vpop.permute.xlu0 %1287 }
 0x295   :  { %v1299_v49 = vsel %vm16140_vm1, %v1286_v14, %v11560_v25  ;;  %v1412_v14 = vsel %vm16145_vm3, %v16144_v28, %v1400_v40  ;;  %vm16146_vm1 = vcmask 343040  }
 0x296   :  { %3239 = vmatprep.subr.bf16.mxu0 %v1299_v49  ;;  %2391 = vrot.lane.b32.xlu1 %v2366_v30, %s9495_s20  ;;  %v11569_v46 = vpop.permute.xlu1 %9046  ;;  %vm16147_vm2 = vmmov %vm16146_vm1 }
 0x297   :  { %2279 = vrot.lane.b32.xlu0 %v2253_v60, %s9494_s14  ;;  %3240 = vmatpush1.bf16.msra.mxu0 %v1298_v6  ;;  %v9049_v62 = vunpack.i.h.bf16 %v11569_v46  ;;  %v9048_v11 = vunpack.i.l.bf16 %v11569_v46 }
 0x298   :  { %v722_v15 = vpop.permute.xlu0 %721 }
 0x299   :  { %v731_v45 = vsel %vm723_vm7, %v720_v26, %v722_v15  ;;  %v1481_v36 = vsel %vm98_vm0, %v9048_v11, %v9049_v62  ;;  %v1480_v3 = vsel %vm98_vm0, %v16143_v55, %v9048_v11  ;;  %v16155_v55 = vld [vmem:[#allocation21_spill] sm:$0xff] }
 0x29a   :  { %3311 = vmatprep.subr.bf16.mxu1 %v731_v45  ;;  %v834_v53 = vpop.permute.xlu1 %833  ;;  %v1497_v31 = vpack.c.bf16 %v1481_v36, %v11088_v58  ;;  %v1496_v23 = vpack.c.bf16 %v1480_v3, %v11036_v29  ;;  %v15763_v45 = vmov 0.0|0.0  }
 0x29b   :  { %2393 = vrot.lane.b32.xlu0 %v2367_v56, %s9495_s20  ;;  %3312 = vmatpush1.bf16.msra.mxu1 %v730_v38  ;;  %v844_v29 = vsel %vm16147_vm2, %v11409_v59, %v834_v53 }
 0x29c   :  { %v11582_v22 = vpop.permute.xlu0 %1401 }
 0x29d   :  { %v1413_v27 = vsel %vm16142_vm12, %v1400_v40, %v11582_v22  ;;  %vm16148_vm12 = vcmask 203776  }
 0x29e   :  { %3241 = vmatprep.subr.bf16.mxu0 %v1413_v27  ;;  %v948_v2 = vpop.permute.xlu1 %947  ;;  %vm16149_vm3 = vmmov %vm16148_vm12 }
 0x29f   :  { %3242 = vmatpush1.bf16.msra.mxu0 %v1412_v14  ;;  %v958_v40 = vsel %vm16149_vm3, %v11451_v13, %v948_v2  ;;  %v2776_v13 = vpack.c.bf16 %v11549_v33, %v11549_v33 }
 0x2a0   :  { %v9052_v4 = vpop.permute.xlu0 %9051  ;;  %3243 = vmatprep.subr.bf16.mxu0 %v1497_v31 }
 0x2a1   :  { %v9054_v57 = vunpack.i.h.bf16 %v9052_v4  ;;  %v9053_v10 = vunpack.i.l.bf16 %v9052_v4 }
 0x2a2   :  { %v1590_v58 = vpop.permute.xlu1 %1589 }
 0x2a3   :  { %v2463_v26 = vsel %vm98_vm0, %v9024_v50, %v9053_v10  ;;  %v2481_v61 = vpack.c.bf16 %v9053_v10, %v16074_v21  ;;  %3244 = vmatpush1.bf16.msra.mxu0 %v1496_v23  ;;  %v2576_v9 = vsel %vm98_vm0, %v9033_v42, %v9054_v57  ;;  %v2594_v50 = vpack.c.bf16 %v9054_v57, %v16074_v21 }
 0x2a4   :  { %v836_v43 = vpop.permute.xlu0 %835  ;;  %v2480_v24 = vpack.c.bf16 %v2463_v26, %v11549_v33  ;;  %v2593_v42 = vpack.c.bf16 %v2576_v9, %v11549_v33 }
 0x2a5   :  { %2507 = vrot.lane.b32.xlu0 %v2481_v61, %s9478_s17  ;;  %v845_v18 = vsel %vm16146_vm1, %v834_v53, %v836_v43  ;;  %vm16150_vm1 = vcmask 1031168   ;;  %v3032_v53 = vld [vmem:[%s15659_s3] sm:$0xff] }
 0x2a6   :  { %3313 = vmatprep.subr.bf16.mxu1 %v845_v18  ;;  %2505 = vrot.lane.b32.xlu1 %v2480_v24, %s9478_s17  ;;  %v11606_v7 = vpop.permute.xlu1 %9056  ;;  %vm16152_vm2 = vmmov %vm16150_vm1 }
 0x2a7   :  { %3314 = vmatpush1.bf16.msra.mxu1 %v844_v29  ;;  %v9058_v19 = vunpack.i.l.bf16 %v11606_v7 }
 0x2a8   :  { %v950_v48 = vpop.permute.xlu0 %949 }
 0x2a9   :  { %v2689_v20 = vsel %vm98_vm0, %v9038_v34, %v9058_v19  ;;  %v2707_v32 = vpack.c.bf16 %v9058_v19, %v16074_v21  ;;  %2620 = vrot.lane.b32.xlu0 %v2594_v50, %s9479_s18  ;;  %v959_v59 = vsel %vm16148_vm12, %v948_v2, %v950_v48  ;;  %v16151_v34 = vld [vmem:[#allocation20_spill] sm:$0xff]  ;;  %vm16153_vm12 = vcmask 187392  }
 0x2aa   :  { %3315 = vmatprep.subr.bf16.mxu1 %v959_v59  ;;  %2618 = vrot.lane.b32.xlu1 %v2593_v42, %s9479_s18  ;;  %v1064_v30 = vpop.permute.xlu1 %1063  ;;  %v2706_v60 = vpack.c.bf16 %v2689_v20, %v11549_v33  ;;  %v1602_v6 = vsel %vm16152_vm2, %v16151_v34, %v1590_v58  ;;  %vm16154_vm3 = vmmov %vm16153_vm12  ;;  %v9059_v48 = vunpack.i.h.bf16 %v11606_v7 }
 0x2ab   :  { %3316 = vmatpush1.bf16.msra.mxu1 %v958_v40 }
 0x2ac   :  { %v11621_v49 = vpop.permute.xlu0 %1591  ;;  %v1482_v59 = vsel %vm98_vm0, %v9049_v62, %v9059_v48 }
 0x2ad   :  { %v1603_v16 = vsel %vm16150_vm1, %v1590_v58, %v11621_v49  ;;  %2733 = vrot.lane.b32.xlu0 %v2707_v32, %s9496_s30  ;;  %vm16156_vm1 = vcmask 171008  }
 0x2ae   :  { %3245 = vmatprep.subr.bf16.mxu0 %v1603_v16  ;;  %2731 = vrot.lane.b32.xlu1 %v2706_v60, %s9496_s30  ;;  %v11629_v11 = vpop.permute.xlu1 %1705  ;;  %vm16157_vm2 = vmmov %vm16156_vm1  ;;  %v1498_v60 = vpack.c.bf16 %v1482_v59, %v11287_v0 }
 0x2af   :  { %3246 = vmatpush1.bf16.msra.mxu0 %v1602_v6 }
 0x2b0   :  { %v1062_v15 = vpop.permute.xlu0 %1061 }
 0x2b1   :  { %v1073_v56 = vsel %vm16153_vm12, %v1062_v15, %v1064_v30  ;;  %2803 = vrot.lane.b32.xlu0 %v15763_v45, %s9497_s24  ;;  %v1072_v36 = vsel %vm16154_vm3, %v11490_v54, %v1062_v15  ;;  %vm16158_vm12 = vcmask 154624  }
 0x2b2   :  { %3317 = vmatprep.subr.bf16.mxu1 %v1073_v56  ;;  %2801 = vrot.lane.b32.xlu1 %v2776_v13, %s9497_s24  ;;  %v1178_v38 = vpop.permute.xlu1 %1177  ;;  %vm16159_vm3 = vmmov %vm16158_vm12 }
 0x2b3   :  { %3318 = vmatpush1.bf16.msra.mxu1 %v1072_v36 }
 0x2b4   :  { %v1704_v31 = vpop.permute.xlu0 %1703 }
 0x2b5   :  { %v1717_v27 = vsel %vm1711_vm15, %v1704_v31, %v11629_v11  ;;  %v1716_v3 = vsel %vm1711_vm15, %v16155_v55, %v1704_v31 }
 0x2b6   :  { %3247 = vmatprep.subr.bf16.mxu0 %v1717_v27  ;;  %3035 = vperm.xlu1 %9060, %v3032_v53   ;;  %v11646_v28 = vpop.permute.xlu1 %1819 }
 0x2b7   :  { %3248 = vmatpush1.bf16.msra.mxu0 %v1716_v3 }
 0x2b8   :  { %v1176_v54 = vpop.permute.xlu0 %1175 }
 0x2b9   :  { %v1187_v14 = vsel %vm16156_vm1, %v1176_v54, %v1178_v38  ;;  %v1186_v2 = vsel %vm16157_vm2, %v11517_v35, %v1176_v54  ;;  %vm16160_vm1 = vcmask 859136  }
 0x2ba   :  { %3319 = vmatprep.subr.bf16.mxu1 %v1187_v14  ;;  %v1292_v4 = vpop.permute.xlu1 %1291  ;;  %vm16161_vm2 = vmmov %vm16160_vm1 }
 0x2bb   :  { %3320 = vmatpush1.bf16.msra.mxu1 %v1186_v2 }
 0x2bc   :  { %v1818_v57 = vpop.permute.xlu0 %1817 }
 0x2bd   :  { %v1831_v10 = vsel %vm1825_vm10, %v1818_v57, %v11646_v28  ;;  %v1830_v23 = vsel %vm1825_vm10, %v10987_v51, %v1818_v57 }
 0x2be   :  { %3249 = vmatprep.subr.bf16.mxu0 %v1831_v10  ;;  %v11655_v58 = vpop.permute.xlu1 %1933 }
 0x2bf   :  { %3250 = vmatpush1.bf16.msra.mxu0 %v1830_v23 }
 0x2c0   :  { %v1290_v26 = vpop.permute.xlu0 %1289 }
 0x2c1   :  { %v1301_v61 = vsel %vm16158_vm12, %v1290_v26, %v1292_v4  ;;  %v1300_v35 = vsel %vm16159_vm3, %v11560_v25, %v1290_v26  ;;  %vm16162_vm12 = vcmask 15360  }
 0x2c2   :  { %3321 = vmatprep.subr.bf16.mxu1 %v1301_v61  ;;  %v1406_v43 = vpop.permute.xlu1 %1405  ;;  %3252 = vmatmul.mubr.bf16.vlgmr.msra.gmra.mrb[4].mxu0 %v10719_v5  ;;  %vm16163_vm3 = vmmov %vm16162_vm12 }
 0x2c3   :  { %3322 = vmatpush1.bf16.msra.mxu1 %v1300_v35  ;;  %8060 = vmatprep.mubr.msk.bf16.mxu0 %vm3051_vm11, %v10724_v41 }
 0x2c4   :  { %v1932_v24 = vpop.permute.xlu0 %1931 }
 0x2c5   :  { %v1945_v51 = vsel %vm16160_vm1, %v1932_v24, %v11655_v58  ;;  %v1944_v9 = vsel %vm16161_vm2, %v11028_v12, %v1932_v24  ;;  %vm16164_vm1 = vcmask 842752  }
 0x2c6   :  { %3260 = vmatprep.subr.bf16.mxu0 %v1945_v51  ;;  %v11667_v18 = vpop.permute.xlu1 %2047  ;;  %vm16165_vm2 = vmmov %vm16164_vm1 }
 0x2c7   :  { %3261 = vmatpush1.bf16.msra.mxu0 %v1944_v9 }
 0x2c8   :  { %v1404_v25 = vpop.permute.xlu0 %1403 }
 0x2c9   :  { %v1415_v29 = vsel %vm16162_vm12, %v1404_v25, %v1406_v43  ;;  %v1414_v50 = vsel %vm16163_vm3, %v11582_v22, %v1404_v25  ;;  %vm16166_vm12 = vcmask 1031168  }
 0x2ca   :  { %3323 = vmatprep.subr.bf16.mxu1 %v1415_v29  ;;  %v2160_v19 = vpop.permute.xlu1 %2159  ;;  %vm16167_vm3 = vmmov %vm16166_vm12 }
 0x2cb   :  { %3324 = vmatpush1.bf16.msra.mxu1 %v1414_v50  ;;  %v2172_v46 = vsel %vm2167_vm13, %v11106_v39, %v2160_v19 }
 0x2cc   :  { %v2046_v42 = vpop.permute.xlu0 %2045 }
 0x2cd   :  { %v2059_v20 = vsel %vm16164_vm1, %v2046_v42, %v11667_v18  ;;  %v2058_v12 = vsel %vm16165_vm2, %v11071_v37, %v2046_v42 }
 0x2ce   :  { %3262 = vmatprep.subr.bf16.mxu0 %v2059_v20  ;;  %v1594_v32 = vpop.permute.xlu1 %1593 }
 0x2cf   :  { %3263 = vmatpush1.bf16.msra.mxu0 %v2058_v12  ;;  %v1604_v0 = vsel %vm16167_vm3, %v11621_v49, %v1594_v32 }
 0x2d0   :  { %v1475_v22 = vpop.permute.xlu0 %1474 }
 0x2d1   :  { %v1483_v40 = vsel %vm98_vm0, %v9059_v48, %v1475_v22 }
 0x2d2   :  { %v1499_v30 = vpack.c.bf16 %v1483_v40, %v11549_v33  ;;  %v2274_v7 = vpop.permute.xlu1 %2273 }
 0x2d3   :  { %v2286_v39 = vsel %vm2281_vm8, %v11147_v1, %v2274_v7 }
 0x2d4   :  { %3325 = vmatprep.subr.bf16.mxu1 %v1499_v30  ;;  %v11683_v16 = vpop.permute.xlu0 %2161 }
 0x2d5   :  { %3326 = vmatpush1.bf16.msra.mxu1 %v1498_v60  ;;  %v2173_v37 = vsel %vm2167_vm13, %v2160_v19, %v11683_v16 }
 0x2d6   :  { %v1708_v34 = vpop.permute.xlu1 %1707  ;;  %3264 = vmatprep.subr.bf16.mxu0 %v2173_v37 }
 0x2d7   :  { %3265 = vmatpush1.bf16.msra.mxu0 %v2172_v46  ;;  %v1718_v49 = vsel %vm1711_vm15, %v11629_v11, %v1708_v34 }
 0x2d8   :  { %v1596_v62 = vpop.permute.xlu0 %1595 }
 0x2d9   :  { %v1605_v6 = vsel %vm16166_vm12, %v1594_v32, %v1596_v62  ;;  %vm16171_vm12 = vcmask 482304  }
 0x2da   :  { %v2388_v33 = vpop.permute.xlu1 %2387  ;;  %3327 = vmatprep.subr.bf16.mxu1 %v1605_v6  ;;  %vm16172_vm3 = vmmov %vm16171_vm12 }
 0x2db   :  { %3328 = vmatpush1.bf16.msra.mxu1 %v1604_v0  ;;  %v2400_v1 = vsel %vm2395_vm14, %v11204_v52, %v2388_v33 }
 0x2dc   :  { %v11692_v13 = vpop.permute.xlu0 %2275 }
 0x2dd   :  { %v2287_v15 = vsel %vm2281_vm8, %v2274_v7, %v11692_v13 }
 0x2de   :  { %v1822_v56 = vpop.permute.xlu1 %1821  ;;  %3266 = vmatprep.subr.bf16.mxu0 %v2287_v15 }
 0x2df   :  { %3267 = vmatpush1.bf16.msra.mxu0 %v2286_v39  ;;  %v1832_v11 = vsel %vm1825_vm10, %v11646_v28, %v1822_v56 }
 0x2e0   :  { %v1710_v36 = vpop.permute.xlu0 %1709 }
 0x2e1   :  { %v1719_v38 = vsel %vm1711_vm15, %v1708_v34, %v1710_v36  ;;  %vm16168_vm15 = vcmask 859136  }
 0x2e2   :  { %v2502_v53 = vpop.permute.xlu1 %2501  ;;  %3329 = vmatprep.subr.bf16.mxu1 %v1719_v38  ;;  %vm16169_vm1 = vmmov %vm16168_vm15 }
 0x2e3   :  { %3330 = vmatpush1.bf16.msra.mxu1 %v1718_v49  ;;  %v2513_v57 = vsel %vm380_vm4, %v11249_v63, %v2502_v53 }
 0x2e4   :  { %v11701_v31 = vpop.permute.xlu0 %2389 }
 0x2e5   :  { %v2401_v27 = vsel %vm2395_vm14, %v2388_v33, %v11701_v31 }
 0x2e6   :  { %v1936_v55 = vpop.permute.xlu1 %1935  ;;  %3268 = vmatprep.subr.bf16.mxu0 %v2401_v27 }
 0x2e7   :  { %3269 = vmatpush1.bf16.msra.mxu0 %v2400_v1  ;;  %v1946_v28 = vsel %vm16169_vm1, %v11655_v58, %v1936_v55  ;;  %vm16178_vm1 = vcmask 343040  }
 0x2e8   :  { %v1824_v3 = vpop.permute.xlu0 %1823 }
 0x2e9   :  { %v1833_v54 = vsel %vm1825_vm10, %v1822_v56, %v1824_v3 }
 0x2ea   :  { %v2615_v14 = vpop.permute.xlu1 %2614  ;;  %3331 = vmatprep.subr.bf16.mxu1 %v1833_v54  ;;  %v11763_v54 = vld [vmem:[%s15657_s1] sm:$0xff]  ;;  %s9500_s1 = smov 110  }
 0x2eb   :  { %3332 = vmatpush1.bf16.msra.mxu1 %v1832_v11 }
 0x2ec   :  { %v2504_v2 = vpop.permute.xlu0 %2503 }
 0x2ed   :  { %v2514_v4 = vsel %vm380_vm4, %v2502_v53, %v2504_v2 }
 0x2ee   :  { %3270 = vmatprep.subr.bf16.mxu0 %v2514_v4  ;;  %3334 = vmatmul.mubr.bf16.vlgmr.msra.gmra.mrb[4].mxu1 %v10719_v5  ;;  %v2050_v52 = vpop.permute.xlu1 %2049  ;;  %v2626_v5 = vsel %vm495_vm5, %v11264_v17, %v2615_v14 }
 0x2ef   :  { %3271 = vmatpush1.bf16.msra.mxu0 %v2513_v57  ;;  %8061 = vmatprep.mubr.msk.bf16.mxu1 %vm3051_vm11, %v10724_v41  ;;  %vm16170_vm11 = vmmov %vm16165_vm2  ;;  %v2060_v58 = vsel %vm16165_vm2, %v11667_v18, %v2050_v52  ;;  %vm16180_vm2 = vcmask 187392  }
 0x2f0   :  { %v1938_v10 = vpop.permute.xlu0 %1937 }
 0x2f1   :  { %v1947_v23 = vsel %vm16168_vm15, %v1936_v55, %v1938_v10  ;;  %vm16174_vm15 = vmmov %vm16172_vm3 }
 0x2f2   :  { %3342 = vmatprep.subr.bf16.mxu1 %v1947_v23  ;;  %v2728_v61 = vpop.permute.xlu1 %2727 }
 0x2f3   :  { %3343 = vmatpush1.bf16.msra.mxu1 %v1946_v28  ;;  %v2740_v17 = vsel %vm2735_vm9, %v11335_v47, %v2728_v61 }
 0x2f4   :  { %v2617_v26 = vpop.permute.xlu0 %2616 }
 0x2f5   :  { %v2627_v35 = vsel %vm495_vm5, %v2615_v14, %v2617_v26 }
 0x2f6   :  { %3272 = vmatprep.subr.bf16.mxu0 %v2627_v35  ;;  %v2164_v25 = vpop.permute.xlu1 %2163 }
 0x2f7   :  { %v11722_v63 = vpop.f32.mrb[0].mxu0  ;;  %3273 = vmatpush1.bf16.msra.mxu0 %v2626_v5  ;;  %v2174_v20 = vsel %vm2167_vm13, %v11683_v16, %v2164_v25 }
 0x2f8   :  { %v11724_v41 = vpop.f32.mrb[1].mxu0  ;;  %v2052_v43 = vpop.permute.xlu0 %2051 }
 0x2f9   :  { %v3134_v24 = vpop.f32.mrb[2].mxu0  ;;  %v2061_v51 = vsel %vm16170_vm11, %v2050_v52, %v2052_v43  ;;  %vm16179_vm11 = vmmov %vm16178_vm1 }
 0x2fa   :  { %v3135_v9 = vpop.f32.mrb[3].mxu0  ;;  %3344 = vmatprep.subr.bf16.mxu1 %v2061_v51  ;;  %v2798_v48 = vpop.permute.xlu1 %2797 }
 0x2fb   :  { %3345 = vmatpush1.bf16.msra.mxu1 %v2060_v58  ;;  %v2810_v59 = vsel %vm16172_vm3, %v11380_v44, %v2798_v48 }
 0x2fc   :  { %v2730_v29 = vpop.permute.xlu0 %2729 }
 0x2fd   :  { %v2741_v50 = vsel %vm2735_vm9, %v2728_v61, %v2730_v29 }
 0x2fe   :  { %3274 = vmatprep.subr.bf16.mxu0 %v2741_v50 }
 0x2ff   :  { %3275 = vmatpush1.bf16.msra.mxu0 %v2740_v17 }
 0x300   :  { %v2166_v19 = vpop.permute.xlu0 %2165 }
 0x301   :  { %v2175_v42 = vsel %vm2167_vm13, %v2164_v25, %v2166_v19 }
 0x302   :  { %3346 = vmatprep.subr.bf16.mxu1 %v2175_v42 }
 0x303   :  { %3347 = vmatpush1.bf16.msra.mxu1 %v2174_v20 }
 0x304   :  { %v2278_v12 = vpop.permute.xlu1 %2277 }
 0x305   :  { %v2800_v18 = vpop.permute.xlu0 %2799  ;;  %v2288_v40 = vsel %vm2281_vm8, %v11692_v13, %v2278_v12 }
 0x306   :  { %v2811_v32 = vsel %vm16171_vm12, %v2798_v48, %v2800_v18  ;;  %vm16181_vm12 = vmmov %vm16180_vm2 }
 0x307   :  { %3276 = vmatprep.subr.bf16.mxu0 %v2811_v32 }
 0x308   :  { %3277 = vmatpush1.bf16.msra.mxu0 %v2810_v59  ;;  %v2392_v30 = vpop.permute.xlu1 %2391 }
 0x309   :  { %v2280_v47 = vpop.permute.xlu0 %2279  ;;  %v2402_v16 = vsel %vm2395_vm14, %v11701_v31, %v2392_v30  ;;  %v15762_v31 = vlaneseq }
 0x30a   :  { %v2289_v22 = vsel %vm2281_vm8, %v2278_v12, %v2280_v47 }
 0x30b   :  { %3293 = vmatmul.mubr.bf16.vlgmr.msra.gmra.mrb[4].mxu0 %v11158_v8  ;;  %3348 = vmatprep.subr.bf16.mxu1 %v2289_v22  ;;  %v11755_v27 = vshrl.u32 %v15762_v31, 7 }
 0x30c   :  { %3349 = vmatpush1.bf16.msra.mxu1 %v2288_v40 }
 0x30d   :  { %v2394_v7 = vpop.permute.xlu0 %2393  ;;  %v3394_v55 = vsub.s32 0, %v11755_v27  ;;  %v3398_v1 = vsub.s32 1, %v11755_v27  ;;  %v3402_v3 = vsub.s32 2, %v11755_v27  ;;  %v3406_v58 = vsub.s32 3, %v11755_v27 }
 0x30e   :  { %v2403_v60 = vsel %vm2395_vm14, %v2392_v30, %v2394_v7  ;;  %v3410_v48 = vsub.s32 4, %v11755_v27 }
 0x30f   :  { %3350 = vmatprep.subr.bf16.mxu1 %v2403_v60  ;;  %v11779_v10 = vrot.slane %v11763_v54, %v3402_v3 }
 0x310   :  { %3351 = vmatpush1.bf16.msra.mxu1 %v2402_v16  ;;  %v3414_v16 = vsub.s32 5, %v11755_v27 }
 0x317   :  { %v2508_v44 = vpop.permute.xlu0 %2507 }
 0x318   :  { %v2506_v37 = vpop.permute.xlu1 %2505 }
 0x319   :  { %v2516_v34 = vsel %vm380_vm4, %v2506_v37, %v2508_v44  ;;  %v2515_v46 = vsel %vm380_vm4, %v2504_v2, %v2506_v37  ;;  %vm16173_vm4 = vmmov %vm16172_vm3  ;;  %v11768_v2 = vrot.slane %v11763_v54, %v3394_v55  ;;  %v3418_v44 = vsub.s32 6, %v11755_v27 }
 0x31a   :  { %3352 = vmatprep.subr.bf16.mxu1 %v2516_v34  ;;  %vm16182_vm3 = vcmask 171008  }
 0x31b   :  { %3353 = vmatpush1.bf16.msra.mxu1 %v2515_v46  ;;  %v2621_v62 = vpop.permute.xlu0 %2620  ;;  %v11856_v46 = vrot.slane %v11763_v54, %v3414_v16 }
 0x31c   :  { %v2619_v6 = vpop.permute.xlu1 %2618 }
 0x31d   :  { %v2629_v33 = vsel %vm495_vm5, %v2619_v6, %v2621_v62  ;;  %v2628_v0 = vsel %vm495_vm5, %v2617_v26, %v2619_v6  ;;  %16175 = vst [vmem:[#allocation7_spill] sm:$0xff] %v11856_v46  ;;  %v11860_v6 = vrot.slane %v11763_v54, %v3418_v44  ;;  %vm3710_vm5 = vcmask 900096  }
 0x31e   :  { %3354 = vmatprep.subr.bf16.mxu1 %v2629_v33 }
 0x31f   :  { %3355 = vmatpush1.bf16.msra.mxu1 %v2628_v0  ;;  %v2734_v13 = vpop.permute.xlu0 %2733  ;;  %16176 = vst [vmem:[#allocation8_spill] sm:$0xff] %v11860_v6 }
 0x320   :  { %v2732_v15 = vpop.permute.xlu1 %2731 }
 0x321   :  { %v2743_v56 = vsel %vm2735_vm9, %v2732_v15, %v2734_v13  ;;  %v2742_v39 = vsel %vm2735_vm9, %v2730_v29, %v2732_v15  ;;  %v11805_v29 = vrot.slane %v11763_v54, %v3406_v58  ;;  %vm4954_vm9 = vcmask 654336  }
 0x322   :  { %3356 = vmatprep.subr.bf16.mxu1 %v2743_v56 }
 0x323   :  { %3357 = vmatpush1.bf16.msra.mxu1 %v2742_v39  ;;  %v2804_v36 = vpop.permute.xlu0 %2803 }
 0x324   :  { %v2802_v38 = vpop.permute.xlu1 %2801 }
 0x325   :  { %v2813_v53 = vsel %vm16173_vm4, %v2802_v38, %v2804_v36  ;;  %v2812_v49 = vsel %vm16174_vm15, %v2800_v18, %v2802_v38  ;;  %v11824_v18 = vrot.slane %v11763_v54, %v3410_v48  ;;  %vm16183_vm4 = vmmov %vm16182_vm3  ;;  %vm16184_vm15 = vcmask 15360  }
 0x326   :  { %3358 = vmatprep.subr.bf16.mxu1 %v2813_v53 }
 0x327   :  { %3359 = vmatpush1.bf16.msra.mxu1 %v2812_v49 }
 0x32a   :  { %3375 = vmatmul.mubr.bf16.vlgmr.msra.gmra.mrb[4].mxu1 %v11158_v8  ;;  %v11771_v8 = vrot.slane %v11763_v54, %v3398_v1 }
 0x334   :  { %v3212_v14 = vpop.f32.mrb[0].mxu1 }
 0x335   :  { %v11765_v11 = vpop.permute.xlu1 %3035  ;;  %v3214_v23 = vpop.f32.mrb[1].mxu1 }
 0x336   :  { %v8468_v4 = vadd.f32 %v11722_v63, %v11765_v11  ;;  %v8469_v57 = vadd.f32 %v11724_v41, %v11765_v11  ;;  %v8470_v52 = vadd.f32 %v3212_v14, %v11765_v11  ;;  %v3216_v28 = vpop.f32.mrb[2].mxu1  ;;  %v8471_v9 = vadd.f32 %v3214_v23, %v11765_v11 }
 0x337   :  { %v3217_v5 = vpop.f32.mrb[3].mxu1 }
 0x338   :  { %v3383_v26 = vmax.f32 %v8468_v4, 0.0  ;;  %v3384_v61 = vmax.f32 %v8469_v57, 0.0  ;;  %v3385_v35 = vmax.f32 %v8470_v52, 0.0  ;;  %v3386_v25 = vmax.f32 %v8471_v9, 0.0 }
 0x33a   :  { %v11782_v43 = vmul.f32 %v11768_v2, %v3383_v26  ;;  %v11785_v24 = vmul.f32 %v11771_v8, %v3384_v61  ;;  %v11788_v63 = vmul.f32 %v11779_v10, %v3385_v35  ;;  %v11808_v50 = vmul.f32 %v11805_v29, %v3386_v25 }
 0x33c   :  { %v9066_v41 = vpack.i.bf16 %v16074_v21, %v11788_v63  ;;  %v9061_v51 = vpack.i.bf16 %v11785_v24, %v11782_v43  ;;  %v9126_v17 = vpack.i.bf16 %v11782_v43, %v11808_v50  ;;  %v9121_v19 = vpack.i.bf16 %v11788_v63, %v11785_v24 }
 0x33d   :  { %v9141_v7 = vpack.i.bf16 %v11808_v50, %v11808_v50 }
 0x33e   :  { %9067 = vrot.lane.b32.xlu1 %v9066_v41, %s9473_s27  ;;  %9062 = vrot.lane.b32.xlu0 %v9061_v51, %s9473_s27 }
 0x342   :  { %9077 = vrot.lane.b32.xlu1 %v9066_v41, %s9473_s27  ;;  %9072 = vrot.lane.b32.xlu0 %v9061_v51, %s9473_s27 }
 0x346   :  { %9087 = vrot.lane.b32.xlu1 %v9066_v41, %s9500_s1  ;;  %9082 = vrot.lane.b32.xlu0 %v9061_v51, %s9500_s1 }
 0x34a   :  { %9097 = vrot.lane.b32.xlu1 %v9066_v41, %s9473_s27  ;;  %9092 = vrot.lane.b32.xlu0 %v9061_v51, %s9473_s27 }
 0x34e   :  { %9107 = vrot.lane.b32.xlu1 %v9066_v41, %s9473_s27  ;;  %9102 = vrot.lane.b32.xlu0 %v9061_v51, %s9473_s27 }
 0x352   :  { %9117 = vrot.lane.b32.xlu1 %v9066_v41, %s9473_s27  ;;  %9112 = vrot.lane.b32.xlu0 %v9061_v51, %s9473_s27 }
 0x356   :  { %9127 = vrot.lane.b32.xlu1 %v9126_v17, %s9500_s1  ;;  %9122 = vrot.lane.b32.xlu0 %v9121_v19, %s9500_s1 }
 0x35a   :  { %9137 = vrot.lane.b32.xlu1 %v9121_v19, %s9473_s27 }
 0x3b0   :  { %v11865_v56 = vpop.permute.xlu1 %9067  ;;  %v9063_v39 = vpop.permute.xlu0 %9062 }
 0x3b1   :  { %v9069_v49 = vunpack.i.l.bf16 %v11865_v56  ;;  %v9065_v55 = vunpack.i.h.bf16 %v9063_v39  ;;  %v9064_v1 = vunpack.i.l.bf16 %v9063_v39  ;;  %v9070_v14 = vunpack.i.h.bf16 %v11865_v56 }
 0x3b3   :  { %v3486_v4 = vsel %vm98_vm0, %v9065_v55, %v9069_v49  ;;  %v3485_v57 = vsel %vm98_vm0, %v9064_v1, %v9065_v55  ;;  %v3484_v26 = vsel %vm98_vm0, %v9070_v14, %v9064_v1 }
 0x3b4   :  { %v9073_v52 = vpop.permute.xlu0 %9072  ;;  %v3503_v23 = vpack.c.bf16 %v3486_v4, %v11785_v24  ;;  %v3502_v28 = vpack.c.bf16 %v3485_v57, %v11782_v43  ;;  %v11898_v5 = vpop.permute.xlu1 %9077  ;;  %v3501_v41 = vpack.c.bf16 %v3484_v26, %v16074_v21 }
 0x3b5   :  { %v9075_v61 = vunpack.i.h.bf16 %v9073_v52  ;;  %v9074_v35 = vunpack.i.l.bf16 %v9073_v52  ;;  %v9079_v51 = vunpack.i.l.bf16 %v11898_v5  ;;  %v9080_v25 = vunpack.i.h.bf16 %v11898_v5 }
 0x3b7   :  { %v3598_v9 = vsel %vm98_vm0, %v9074_v35, %v9075_v61 }
 0x3b8   :  { %v3615_v58 = vpack.c.bf16 %v3598_v9, %v11782_v43  ;;  %v9083_v48 = vpop.permute.xlu0 %9082 }
 0x3bc   :  { %v9093_v16 = vpop.permute.xlu0 %9092 }
 0x3c0   :  { %v9103_v1 = vpop.permute.xlu0 %9102 }
 0x3c1   :  { %v9105_v52 = vunpack.i.h.bf16 %v9103_v1 }
 0x3de   :  { %v3294_v42 = vpop.f32.mrb[4].mxu0 }
 0x3df   :  { %v8472_v20 = vadd.f32 %v3294_v42, %v11765_v11  ;;  %v3296_v12 = vpop.f32.mrb[5].mxu0 }
 0x3e0   :  { %v3298_v32 = vpop.f32.mrb[6].mxu0  ;;  %v8473_v60 = vadd.f32 %v3296_v12, %v11765_v11 }
 0x3e1   :  { %v3387_v59 = vmax.f32 %v8472_v20, 0.0  ;;  %v3299_v47 = vpop.f32.mrb[7].mxu0  ;;  %v3597_v20 = vsel %vm98_vm0, %v9080_v25, %v9074_v35  ;;  %v9085_v32 = vunpack.i.h.bf16 %v9083_v48 }
 0x3e2   :  { %v3388_v34 = vmax.f32 %v8473_v60, 0.0  ;;  %v3614_v47 = vpack.c.bf16 %v3597_v20, %v16074_v21 }
 0x3e3   :  { %v11827_v22 = vmul.f32 %v11824_v18, %v3387_v59  ;;  %v9084_v59 = vunpack.i.l.bf16 %v9083_v48 }
 0x3e4   :  { %v11868_v36 = vmul.f32 %v11856_v46, %v3388_v34 }
 0x3e5   :  { %v9146_v40 = vpack.i.bf16 %v11782_v43, %v11827_v22  ;;  %v11833_v30 = vpack.i.bf16 %v11827_v22, %v11808_v50  ;;  %v3712_v60 = vsel %vm3710_vm5, %v9084_v59, %v9085_v32 }
 0x3e6   :  { %v11884_v3 = vpack.i.bf16 %v11868_v36, %v11827_v22  ;;  %v3729_v44 = vpack.c.bf16 %v3712_v60, %v11782_v43 }
 0x3e7   :  { %9147 = vrot.lane.b32.xlu1 %v9146_v40, %s9473_s27  ;;  %9132 = vrot.lane.b32.xlu0 %v11833_v30, %s9473_s27 }
 0x3eb   :  { %9157 = vrot.lane.b32.xlu1 %v9126_v17, %s9473_s27  ;;  %9142 = vrot.lane.b32.xlu0 %v9141_v7, %s9473_s27  ;;  %v3599_v17 = vsel %vm98_vm0, %v9075_v61, %v9079_v51  ;;  %v3422_v61 = vsub.s32 7, %v11755_v27 }
 0x3ec   :  { %v3616_v42 = vpack.c.bf16 %v3599_v17, %v11785_v24 }
 0x3ef   :  { %9167 = vrot.lane.b32.xlu1 %v9121_v19, %s9473_s27  ;;  %9152 = vrot.lane.b32.xlu0 %v9121_v19, %s9473_s27 }
 0x3f3   :  { %9177 = vrot.lane.b32.xlu1 %v9146_v40, %s9473_s27  ;;  %9162 = vrot.lane.b32.xlu0 %v11833_v30, %s9500_s1 }
 0x3f7   :  { %9187 = vrot.lane.b32.xlu1 %v9141_v7, %s9473_s27  ;;  %9172 = vrot.lane.b32.xlu0 %v9141_v7, %s9473_s27 }
 0x3fb   :  { %9197 = vrot.lane.b32.xlu1 %v11833_v30, %s9473_s27  ;;  %9182 = vrot.lane.b32.xlu0 %v9121_v19, %s9473_s27  ;;  %v11913_v19 = vpop.permute.xlu1 %9087 }
 0x3fc   :  { %v9089_v12 = vunpack.i.l.bf16 %v11913_v19 }
 0x3fd   :  { %v3376_v37 = vpop.f32.mrb[4].mxu1 }
 0x3fe   :  { %v8474_v62 = vadd.f32 %v3376_v37, %v11765_v11  ;;  %v11862_v33 = vpop.f32.mrb[5].mxu1  ;;  %v3713_v7 = vsel %vm3710_vm5, %v9085_v32, %v9089_v12  ;;  %v9113_v32 = vpop.permute.xlu0 %9112 }
 0x3ff   :  { %9192 = vrot.lane.b32.xlu0 %v9146_v40, %s9473_s27  ;;  %v3380_v0 = vpop.f32.mrb[6].mxu1  ;;  %v9090_v40 = vunpack.i.h.bf16 %v11913_v19  ;;  %v3730_v37 = vpack.c.bf16 %v3713_v7, %v11785_v24  ;;  %v8475_v26 = vadd.f32 %v11862_v33, %v11765_v11  ;;  %v11968_v11 = vrot.slane %v11763_v54, %v3422_v61 }
 0x400   :  { %v3389_v13 = vmax.f32 %v8474_v62, 0.0  ;;  %v3381_v15 = vpop.f32.mrb[7].mxu1  ;;  %v9095_v62 = vunpack.i.h.bf16 %v9093_v16  ;;  %v9094_v0 = vunpack.i.l.bf16 %v9093_v16  ;;  %v9114_v7 = vunpack.i.l.bf16 %v9113_v32 }
 0x401   :  { %v3711_v34 = vsel %vm3710_vm5, %v9090_v40, %v9084_v59  ;;  %v3390_v17 = vmax.f32 %v8475_v26, 0.0  ;;  %16177 = vst [vmem:[#allocation9_spill] sm:$0xff] %v11968_v11  ;;  %v9115_v40 = vunpack.i.h.bf16 %v9113_v32 }
 0x402   :  { %v11871_v38 = vmul.f32 %v11860_v6, %v3389_v13  ;;  %v11936_v13 = vpop.permute.xlu1 %9097  ;;  %v3728_v15 = vpack.c.bf16 %v3711_v34, %v16074_v21  ;;  %v3825_v55 = vsel %vm98_vm0, %v9094_v0, %v9095_v62 }
 0x403   :  { %v9099_v39 = vunpack.i.l.bf16 %v11936_v13  ;;  %v3842_v14 = vpack.c.bf16 %v3825_v55, %v11782_v43  ;;  %v9100_v4 = vunpack.i.h.bf16 %v11936_v13  ;;  %v11981_v54 = vmul.f32 %v11968_v11, %v3390_v17 }
 0x404   :  { %v11875_v53 = vpack.i.bf16 %v11871_v38, %v11868_v36  ;;  %v4051_v34 = vsel %vm98_vm0, %v9114_v7, %v9115_v40 }
 0x405   :  { %v3826_v57 = vsel %vm98_vm0, %v9095_v62, %v9099_v39  ;;  %v11990_v60 = vpack.i.bf16 %v11981_v54, %v11871_v38  ;;  %v9261_v16 = vpack.i.bf16 %v11785_v24, %v11981_v54  ;;  %v4068_v62 = vpack.c.bf16 %v4051_v34, %v11782_v43 }
 0x406   :  { %9207 = vrot.lane.b32.xlu1 %v11875_v53, %s9473_s27  ;;  %9202 = vrot.lane.b32.xlu0 %v11875_v53, %s9473_s27  ;;  %v3843_v35 = vpack.c.bf16 %v3826_v57, %v11785_v24  ;;  %v9276_v57 = vpack.i.bf16 %v11871_v38, %v11981_v54  ;;  %v12022_v61 = vpack.i.bf16 %v16074_v21, %v11981_v54 }
 0x40a   :  { %9217 = vrot.lane.b32.xlu1 %v11875_v53, %s9500_s1  ;;  %9212 = vrot.lane.b32.xlu0 %v11884_v3, %s9500_s1 }
 0x40e   :  { %3523 = vrot.lane.b32.xlu1 %v3503_v23, %s9480_s21  ;;  %3521 = vrot.lane.b32.xlu0 %v3502_v28, %s9480_s21  ;;  %v9104_v23 = vunpack.i.l.bf16 %v9103_v1  ;;  %v11951_v28 = vpop.permute.xlu1 %9107  ;;  %v9266_v1 = vpack.i.bf16 %v11782_v43, %v11788_v63 }
 0x40f   :  { %v9110_v9 = vunpack.i.h.bf16 %v11951_v28 }
 0x410   :  { %v3938_v25 = vsel %vm98_vm0, %v9104_v23, %v9105_v52 }
 0x411   :  { %v3955_v33 = vpack.c.bf16 %v3938_v25, %v11782_v43 }
 0x412   :  { %9222 = vrot.lane.b32.xlu0 %v11884_v3, %s9473_s27  ;;  %3519 = vrot.lane.b32.xlu1 %v3501_v41, %s9480_s21  ;;  %v3824_v41 = vsel %vm98_vm0, %v9100_v4, %v9094_v0  ;;  %v11976_v20 = vpop.permute.xlu1 %9117  ;;  %v9123_v4 = vpop.permute.xlu0 %9122 }
 0x413   :  { %v3841_v27 = vpack.c.bf16 %v3824_v41, %v16074_v21  ;;  %v9124_v26 = vunpack.i.l.bf16 %v9123_v4 }
 0x416   :  { %9227 = vrot.lane.b32.xlu0 %v11875_v53, %s9473_s27  ;;  %3634 = vrot.lane.b32.xlu1 %v3615_v58, %s9481_s22  ;;  %v9109_v58 = vunpack.i.l.bf16 %v11951_v28 }
 0x418   :  { %v3939_v48 = vsel %vm98_vm0, %v9105_v52, %v9109_v58 }
 0x41a   :  { %3636 = vrot.lane.b32.xlu0 %v3616_v42, %s9481_s22  ;;  %9232 = vrot.lane.b32.xlu1 %v11884_v3, %s9473_s27  ;;  %v3937_v42 = vsel %vm98_vm0, %v9110_v9, %v9104_v23  ;;  %v9125_v23 = vunpack.i.h.bf16 %v9123_v4 }
 0x41b   :  { %v3954_v59 = vpack.c.bf16 %v3937_v42, %v16074_v21 }
 0x41c   :  { %v4240_v41 = vsel %vm3710_vm5, %v9124_v26, %v9125_v23 }
 0x41d   :  { %v4257_v9 = vpack.c.bf16 %v4240_v41, %v11785_v24 }
 0x41e   :  { %3632 = vrot.lane.b32.xlu0 %v3614_v47, %s9481_s22  ;;  %9237 = vrot.lane.b32.xlu1 %v11875_v53, %s9473_s27  ;;  %v9119_v47 = vunpack.i.l.bf16 %v11976_v20 }
 0x422   :  { %3748 = vrot.lane.b32.xlu0 %v3729_v44, %s16085_s2  ;;  %3750 = vrot.lane.b32.xlu1 %v3730_v37, %s16085_s2  ;;  %v9120_v44 = vunpack.i.h.bf16 %v11976_v20  ;;  %v4052_v37 = vsel %vm98_vm0, %v9115_v40, %v9119_v47 }
 0x423   :  { %v4069_v0 = vpack.c.bf16 %v4052_v37, %v11785_v24 }
 0x426   :  { %9242 = vrot.lane.b32.xlu0 %v11884_v3, %s9473_s27  ;;  %3746 = vrot.lane.b32.xlu1 %v3728_v15, %s16085_s2  ;;  %v4050_v15 = vsel %vm98_vm0, %v9120_v44, %v9114_v7 }
 0x427   :  { %v4067_v55 = vpack.c.bf16 %v4050_v15, %v16074_v21  ;;  %v9291_v15 = vpack.i.bf16 %v11981_v54, %v11981_v54 }
 0x42a   :  { %9247 = vrot.lane.b32.xlu0 %v11875_v53, %s9473_s27  ;;  %3861 = vrot.lane.b32.xlu1 %v3842_v14, %s9484_s25  ;;  %v12010_v14 = vpop.permute.xlu1 %9127 }
 0x42b   :  { %v9129_v52 = vunpack.i.l.bf16 %v12010_v14 }
 0x42e   :  { %3863 = vrot.lane.b32.xlu0 %v3843_v35, %s9484_s25  ;;  %9252 = vrot.lane.b32.xlu1 %v11884_v3, %s9473_s27  ;;  %v3956_v3 = vpack.c.bf16 %v3939_v48, %v11785_v24  ;;  %v4241_v35 = vsel %vm3710_vm5, %v9125_v23, %v9129_v52  ;;  %v9138_v17 = vpop.permute.xlu1 %9137  ;;  %v9130_v48 = vunpack.i.h.bf16 %v12010_v14 }
 0x42f   :  { %v4258_v25 = vpack.c.bf16 %v4241_v35, %v11788_v63  ;;  %v9140_v34 = vunpack.i.h.bf16 %v9138_v17 }
 0x430   :  { %v4239_v37 = vsel %vm3710_vm5, %v9130_v48, %v9124_v26 }
 0x432   :  { %3859 = vrot.lane.b32.xlu0 %v3841_v27, %s9484_s25  ;;  %3974 = vrot.lane.b32.xlu1 %v3955_v33, %s9485_s26 }
 0x436   :  { %3976 = vrot.lane.b32.xlu0 %v3956_v3, %s9485_s26  ;;  %3972 = vrot.lane.b32.xlu1 %v3954_v59, %s9485_s26 }
 0x43a   :  { %9257 = vrot.lane.b32.xlu0 %v11990_v60, %s9500_s1  ;;  %9262 = vrot.lane.b32.xlu1 %v9261_v16, %s9473_s27 }
 0x43e   :  { %4087 = vrot.lane.b32.xlu0 %v4068_v62, %s16101_s29  ;;  %4089 = vrot.lane.b32.xlu1 %v4069_v0, %s16101_s29  ;;  %v9139_v62 = vunpack.i.l.bf16 %v9138_v17  ;;  %v4256_v0 = vpack.c.bf16 %v4239_v37, %v11782_v43 }
 0x442   :  { %4085 = vrot.lane.b32.xlu0 %v4067_v55, %s16101_s29  ;;  %9267 = vrot.lane.b32.xlu1 %v9266_v1, %s9473_s27  ;;  %v4353_v55 = vsel %vm98_vm0, %v9139_v62, %v9140_v34 }
 0x443   :  { %v4370_v35 = vpack.c.bf16 %v4353_v55, %v11785_v24 }
 0x446   :  { %9272 = vrot.lane.b32.xlu0 %v11990_v60, %s9473_s27  ;;  %9277 = vrot.lane.b32.xlu1 %v9276_v57, %s9473_s27 }
 0x44a   :  { %9282 = vrot.lane.b32.xlu0 %v9276_v57, %s9473_s27  ;;  %9287 = vrot.lane.b32.xlu1 %v12022_v61, %s9500_s1 }
 0x44e   :  { %4276 = vrot.lane.b32.xlu0 %v4257_v9, %s9488_s19  ;;  %4278 = vrot.lane.b32.xlu1 %v4258_v25, %s9488_s19 }
 0x459   :  { %v12035_v27 = vpop.permute.xlu1 %9147  ;;  %v12037_v33 = vpop.permute.xlu0 %9132 }
 0x45a   :  { %v9135_v42 = vunpack.i.h.bf16 %v12037_v33  ;;  %v9134_v32 = vunpack.i.l.bf16 %v12037_v33  ;;  %v9149_v23 = vunpack.i.l.bf16 %v12035_v27  ;;  %v9150_v9 = vunpack.i.h.bf16 %v12035_v27 }
 0x45c   :  { %v3487_v3 = vsel %vm98_vm0, %v9069_v49, %v9134_v32  ;;  %v3488_v59 = vsel %vm98_vm0, %v9134_v32, %v9135_v42  ;;  %v4352_v5 = vsel %vm98_vm0, %v9150_v9, %v9139_v62 }
 0x45d   :  { %v12048_v40 = vpop.permute.xlu1 %9157  ;;  %v12050_v7 = vpop.permute.xlu0 %9142  ;;  %v3504_v16 = vpack.c.bf16 %v3487_v3, %v11788_v63  ;;  %v3505_v44 = vpack.c.bf16 %v3488_v59, %v11808_v50 }
 0x45e   :  { %v9144_v56 = vunpack.i.l.bf16 %v12050_v7  ;;  %v9145_v1 = vunpack.i.h.bf16 %v12050_v7  ;;  %v9159_v62 = vunpack.i.l.bf16 %v12048_v40  ;;  %v9160_v9 = vunpack.i.h.bf16 %v12048_v40 }
 0x45f   :  { %3525 = vrot.lane.b32.xlu0 %v3504_v16, %s9480_s21  ;;  %3527 = vrot.lane.b32.xlu1 %v3505_v44, %s9480_s21  ;;  %v4369_v44 = vpack.c.bf16 %v4352_v5, %v11782_v43 }
 0x460   :  { %v4354_v4 = vsel %vm98_vm0, %v9140_v34, %v9144_v56  ;;  %v3600_v25 = vsel %vm98_vm0, %v9079_v51, %v9145_v1  ;;  %v3601_v17 = vsel %vm98_vm0, %v9145_v1, %v9149_v23 }
 0x461   :  { %v9153_v49 = vpop.permute.xlu0 %9152  ;;  %v12066_v57 = vpop.permute.xlu1 %9167  ;;  %v4371_v41 = vpack.c.bf16 %v4354_v4, %v11788_v63  ;;  %v3617_v3 = vpack.c.bf16 %v3600_v25, %v11788_v63  ;;  %v3618_v59 = vpack.c.bf16 %v3601_v17, %v11808_v50 }
 0x462   :  { %v9155_v16 = vunpack.i.h.bf16 %v9153_v49  ;;  %v9154_v51 = vunpack.i.l.bf16 %v9153_v49  ;;  %v9169_v19 = vunpack.i.l.bf16 %v12066_v57 }
 0x463   :  { %4274 = vrot.lane.b32.xlu0 %v4256_v0, %s9488_s19  ;;  %9292 = vrot.lane.b32.xlu1 %v9291_v15, %s9473_s27 }
 0x464   :  { %v4466_v37 = vsel %vm98_vm0, %v9154_v51, %v9155_v16  ;;  %v4467_v1 = vsel %vm98_vm0, %v9155_v16, %v9159_v62 }
 0x465   :  { %v12071_v26 = vpop.permute.xlu0 %9162  ;;  %v12084_v48 = vpop.permute.xlu1 %9177  ;;  %v4483_v49 = vpack.c.bf16 %v4466_v37, %v11785_v24  ;;  %v4484_v25 = vpack.c.bf16 %v4467_v1, %v11788_v63 }
 0x466   :  { %v9164_v34 = vunpack.i.l.bf16 %v12071_v26  ;;  %v9165_v4 = vunpack.i.h.bf16 %v12071_v26 }
 0x467   :  { %4389 = vrot.lane.b32.xlu0 %v4370_v35, %s16111_s16  ;;  %4391 = vrot.lane.b32.xlu1 %v4371_v41, %s16111_s16 }
 0x468   :  { %v3714_v35 = vsel %vm3710_vm5, %v9089_v12, %v9164_v34  ;;  %v3715_v12 = vsel %vm3710_vm5, %v9164_v34, %v9165_v4 }
 0x469   :  { %v12086_v32 = vpop.permute.xlu0 %9172  ;;  %v12096_v0 = vpop.permute.xlu1 %9187  ;;  %v3731_v17 = vpack.c.bf16 %v3714_v35, %v11788_v63  ;;  %v9179_v35 = vunpack.i.l.bf16 %v12084_v48 }
 0x46a   :  { %v9175_v37 = vunpack.i.h.bf16 %v12086_v32  ;;  %v9190_v31 = vunpack.i.h.bf16 %v12096_v0 }
 0x46b   :  { %3638 = vrot.lane.b32.xlu0 %v3617_v3, %s9481_s22  ;;  %3640 = vrot.lane.b32.xlu1 %v3618_v59, %s9481_s22  ;;  %v9170_v3 = vunpack.i.h.bf16 %v12066_v57  ;;  %v15767_v59 = vunpack.i.l.bf16 %v12086_v32 }
 0x46d   :  { %v12098_v55 = vpop.permute.xlu0 %9182  ;;  %v12114_v41 = vpop.permute.xlu1 %9197  ;;  %v4579_v57 = vsel %vm98_vm0, %v9169_v19, %v9170_v3 }
 0x46f   :  { %4387 = vrot.lane.b32.xlu0 %v4369_v44, %s16111_s16  ;;  %9297 = vrot.lane.b32.xlu1 %v11990_v60, %s9473_s27  ;;  %v3732_v44 = vpack.c.bf16 %v3715_v12, %v11808_v50  ;;  %v3828_v12 = vsel %vm98_vm0, %v9175_v37, %v9179_v35 }
 0x471   :  { %v12116_v60 = vpop.permute.xlu0 %9192 }
 0x473   :  { %9302 = vrot.lane.b32.xlu0 %v9291_v15, %s9473_s27  ;;  %4502 = vrot.lane.b32.xlu1 %v4483_v49, %s16115_s15  ;;  %v4465_v15 = vsel %vm98_vm0, %v9160_v9, %v9154_v51  ;;  %v4580_v51 = vsel %vm98_vm0, %v9170_v3, %v15767_v59  ;;  %v4596_v9 = vpack.c.bf16 %v4579_v57, %v11785_v24 }
 0x474   :  { %v4482_v34 = vpack.c.bf16 %v4465_v15, %v11782_v43  ;;  %v4597_v3 = vpack.c.bf16 %v4580_v51, %v11788_v63  ;;  %v9185_v15 = vunpack.i.h.bf16 %v12098_v55 }
 0x477   :  { %4504 = vrot.lane.b32.xlu0 %v4484_v25, %s16115_s15  ;;  %3752 = vrot.lane.b32.xlu1 %v3731_v17, %s16085_s2  ;;  %v9180_v25 = vunpack.i.h.bf16 %v12084_v48  ;;  %v3827_v17 = vsel %vm98_vm0, %v9099_v39, %v9175_v37  ;;  %v3845_v37 = vpack.c.bf16 %v3828_v12, %v11808_v50  ;;  %v9194_v12 = vunpack.i.l.bf16 %v12116_v60 }
 0x478   :  { %v12130_v5 = vpop.permute.xlu1 %9207  ;;  %v12132_v16 = vpop.permute.xlu0 %9202  ;;  %v3844_v13 = vpack.c.bf16 %v3827_v17, %v11788_v63 }
 0x479   :  { %v4578_v51 = vsel %vm98_vm0, %v9180_v25, %v9169_v19  ;;  %v15769_v33 = vunpack.i.h.bf16 %v12130_v5 }
 0x47a   :  { %v4595_v19 = vpack.c.bf16 %v4578_v51, %v11782_v43 }
 0x47b   :  { %3754 = vrot.lane.b32.xlu0 %v3732_v44, %s16085_s2  ;;  %4500 = vrot.lane.b32.xlu1 %v4482_v34, %s16115_s15  ;;  %v9184_v44 = vunpack.i.l.bf16 %v12098_v55 }
 0x47c   :  { %v12143_v49 = vpop.permute.xlu1 %9217  ;;  %v12145_v1 = vpop.permute.xlu0 %9212 }
 0x47d   :  { %v4692_v55 = vsel %vm98_vm0, %v9184_v44, %v9185_v15  ;;  %v9215_v27 = vunpack.i.h.bf16 %v12145_v1 }
 0x47f   :  { %4615 = vrot.lane.b32.xlu0 %v4596_v9, %s16122_s28  ;;  %4617 = vrot.lane.b32.xlu1 %v4597_v3, %s16122_s28  ;;  %v15765_v9 = vunpack.i.l.bf16 %v12096_v0 }
 0x480   :  { %v12161_v57 = vpop.permute.xlu1 %3523  ;;  %v3522_v34 = vpop.permute.xlu0 %3521 }
 0x481   :  { %v3538_v39 = vsel %vm609_vm6, %v3522_v34, %v12161_v57  ;;  %v4693_v25 = vsel %vm98_vm0, %v9185_v15, %v15765_v9 }
 0x482   :  { %4958 = vmatprep.subr.bf16.mxu0 %v3538_v39  ;;  %v4709_v39 = vpack.c.bf16 %v4692_v55, %v11785_v24  ;;  %v4710_v15 = vpack.c.bf16 %v4693_v25, %v11788_v63  ;;  %v3941_v55 = vsel %vm98_vm0, %v9190_v31, %v9194_v12 }
 0x483   :  { %3865 = vrot.lane.b32.xlu0 %v3844_v13, %s9484_s25  ;;  %3867 = vrot.lane.b32.xlu1 %v3845_v37, %s9484_s25  ;;  %v3940_v13 = vsel %vm98_vm0, %v9109_v58, %v9190_v31  ;;  %v9195_v37 = vunpack.i.h.bf16 %v12116_v60 }
 0x484   :  { %v12173_v3 = vpop.permute.xlu0 %9222  ;;  %v3520_v17 = vpop.permute.xlu1 %3519 }
 0x485   :  { %v3537_v45 = vsel %vm609_vm6, %v3520_v17, %v3522_v34  ;;  %v4691_v28 = vsel %vm98_vm0, %v9195_v37, %v9184_v44  ;;  %v15766_v44 = vunpack.i.h.bf16 %v12114_v41 }
 0x486   :  { %4959 = vmatpush1.bf16.msra.mxu0 %v3537_v45  ;;  %v3957_v45 = vpack.c.bf16 %v3940_v13, %v11788_v63  ;;  %v4708_v31 = vpack.c.bf16 %v4691_v28, %v11782_v43 }
 0x487   :  { %4613 = vrot.lane.b32.xlu0 %v4595_v19, %s16122_s28  ;;  %4728 = vrot.lane.b32.xlu1 %v4709_v39, %s9494_s14  ;;  %v3958_v19 = vpack.c.bf16 %v3941_v55, %v11808_v50  ;;  %v9199_v39 = vunpack.i.l.bf16 %v12114_v41  ;;  %v4778_v55 = vpack.c.bf16 %v11785_v24, %v11785_v24 }
 0x488   :  { %v12188_v34 = vpop.permute.xlu0 %9227  ;;  %v3635_v51 = vpop.permute.xlu1 %3634 }
 0x489   :  { %v4053_v28 = vsel %vm98_vm0, %v9119_v47, %v9199_v39 }
 0x48a   :  { %v4070_v47 = vpack.c.bf16 %v4053_v28, %v11788_v63 }
 0x48b   :  { %4730 = vrot.lane.b32.xlu0 %v4710_v15, %s9494_s14  ;;  %3978 = vrot.lane.b32.xlu1 %v3957_v45, %s9485_s26  ;;  %v12218_v45 = vld [vmem:[%s15660_s4] sm:$0xff] }
 0x48c   :  { %v12198_v58 = vpop.permute.xlu0 %3636  ;;  %v12200_v17 = vpop.permute.xlu1 %9232 }
 0x48d   :  { %v3651_v25 = vsel %vm723_vm7, %v3635_v51, %v12198_v58 }
 0x48e   :  { %4960 = vmatprep.subr.bf16.mxu0 %v3651_v25  ;;  %v4054_v25 = vsel %vm98_vm0, %v9199_v39, %v15766_v44  ;;  %v9204_v39 = vunpack.i.l.bf16 %v12132_v16  ;;  %v4777_v44 = vpack.c.bf16 %v11782_v43, %v11782_v43 }
 0x48f   :  { %3980 = vrot.lane.b32.xlu0 %v3958_v19, %s9485_s26  ;;  %4726 = vrot.lane.b32.xlu1 %v4708_v31, %s9494_s14  ;;  %v4779_v19 = vpack.c.bf16 %v11788_v63, %v11788_v63 }
 0x490   :  { %v3633_v13 = vpop.permute.xlu0 %3632  ;;  %v12210_v37 = vpop.permute.xlu1 %9237  ;;  %v3489_v59 = vsel %vm98_vm0, %v9135_v42, %v9204_v39 }
 0x491   :  { %v3650_v15 = vsel %vm723_vm7, %v3633_v13, %v3635_v51  ;;  %v12227_v51 = vcombine.high %v12218_v45, %v12218_v45 }
 0x492   :  { %4961 = vmatpush1.bf16.msra.mxu0 %v3650_v15  ;;  %v4071_v15 = vpack.c.bf16 %v4054_v25, %v11808_v50  ;;  %v9209_v25 = vunpack.i.l.bf16 %v12130_v5 }
 0x493   :  { %4797 = vrot.lane.b32.xlu0 %v4778_v55, %s9495_s20  ;;  %4799 = vrot.lane.b32.xlu1 %v4779_v19, %s9495_s20  ;;  %v15768_v55 = vunpack.i.h.bf16 %v12132_v16 }
 0x494   :  { %v3749_v31 = vpop.permute.xlu0 %3748  ;;  %v12234_v20 = vpop.permute.xlu1 %3750  ;;  %8064 = vmatprep.mubr.msk.bf16.mxu0 %vm4954_vm9, %v12227_v51  ;;  %8065 = vmatprep.mubr.msk.bf16.mxu1 %vm4954_vm9, %v12227_v51 }
 0x495   :  { %v3765_v13 = vsel %vm16178_vm1, %v3749_v31, %v12234_v20  ;;  %vm16185_vm1 = vmmov %vm16184_vm15 }
 0x496   :  { %4962 = vmatprep.subr.bf16.mxu0 %v3765_v13 }
 0x497   :  { %4091 = vrot.lane.b32.xlu0 %v4070_v47, %s16101_s29  ;;  %4093 = vrot.lane.b32.xlu1 %v4071_v15, %s16101_s29  ;;  %v3490_v47 = vsel %vm98_vm0, %v9204_v39, %v15768_v55  ;;  %v3506_v15 = vpack.c.bf16 %v3489_v59, %v11827_v22  ;;  %v9214_v39 = vunpack.i.l.bf16 %v12145_v1 }
 0x498   :  { %v12248_v19 = vpop.permute.xlu0 %9242  ;;  %v3747_v28 = vpop.permute.xlu1 %3746  ;;  %v3507_v42 = vpack.c.bf16 %v3490_v47, %v11868_v36  ;;  %v9219_v47 = vunpack.i.l.bf16 %v12143_v49 }
 0x499   :  { %v3764_v9 = vsel %vm16179_vm11, %v3747_v28, %v3749_v31  ;;  %v3603_v28 = vsel %vm98_vm0, %v9209_v25, %v15769_v33  ;;  %vm16187_vm11 = vcmask 1031168  }
 0x49a   :  { %4963 = vmatpush1.bf16.msra.mxu0 %v3764_v9  ;;  %v3602_v9 = vsel %vm98_vm0, %v9149_v23, %v9209_v25  ;;  %v3620_v33 = vpack.c.bf16 %v3603_v28, %v11868_v36 }
 0x49b   :  { %4795 = vrot.lane.b32.xlu0 %v4777_v44, %s9495_s20  ;;  %9307 = vrot.lane.b32.xlu1 %v11833_v30, %s9473_s27  ;;  %v3619_v23 = vpack.c.bf16 %v3602_v9, %v11827_v22  ;;  %v15770_v9 = vunpack.i.h.bf16 %v12143_v49 }
 0x49c   :  { %v12263_v31 = vpop.permute.xlu0 %9247  ;;  %v3862_v13 = vpop.permute.xlu1 %3861 }
 0x49d   :  { %v3717_v26 = vsel %vm3710_vm5, %v9219_v47, %v15770_v9 }
 0x49f   :  { %3529 = vrot.lane.b32.xlu0 %v3506_v15, %s9480_s21  ;;  %3531 = vrot.lane.b32.xlu1 %v3507_v42, %s9480_s21  ;;  %v4242_v15 = vsel %vm3710_vm5, %v9129_v52, %v9214_v39  ;;  %v3716_v52 = vsel %vm3710_vm5, %v9165_v4, %v9219_v47  ;;  %v9224_v4 = vunpack.i.l.bf16 %v12173_v3  ;;  %v3734_v47 = vpack.c.bf16 %v3717_v26, %v11868_v36 }
 0x4a0   :  { %v12274_v30 = vpop.permute.xlu0 %3863  ;;  %v12276_v44 = vpop.permute.xlu1 %9252  ;;  %v4259_v14 = vpack.c.bf16 %v4242_v15, %v11808_v50  ;;  %v15771_v15 = vunpack.i.h.bf16 %v12173_v3  ;;  %v9234_v26 = vunpack.i.l.bf16 %v12200_v17 }
 0x4a1   :  { %v3878_v59 = vsel %vm16180_vm2, %v3862_v13, %v12274_v30  ;;  %vm16191_vm2 = vmmov %vm16187_vm11 }
 0x4a2   :  { %4964 = vmatprep.subr.bf16.mxu0 %v3878_v59  ;;  %v4243_v59 = vsel %vm3710_vm5, %v9214_v39, %v9215_v27 }
 0x4a3   :  { %9312 = vrot.lane.b32.xlu0 %v16074_v21, %s9473_s27  ;;  %3642 = vrot.lane.b32.xlu1 %v3619_v23, %s9481_s22  ;;  %v4260_v39 = vpack.c.bf16 %v4243_v59, %v11827_v22  ;;  %v9229_v59 = vunpack.i.l.bf16 %v12188_v34 }
 0x4a4   :  { %v3860_v42 = vpop.permute.xlu0 %3859  ;;  %v3975_v55 = vpop.permute.xlu1 %3974 }
 0x4a5   :  { %v3877_v25 = vsel %vm16181_vm12, %v3860_v42, %v3862_v13  ;;  %v3829_v7 = vsel %vm98_vm0, %v9179_v35, %v9229_v59  ;;  %vm16195_vm12 = vcmask 859136  }
 0x4a6   :  { %4965 = vmatpush1.bf16.msra.mxu0 %v3877_v25 }
 0x4a7   :  { %3644 = vrot.lane.b32.xlu0 %v3620_v33, %s9481_s22  ;;  %4280 = vrot.lane.b32.xlu1 %v4259_v14, %s9488_s19  ;;  %v3733_v33 = vpack.c.bf16 %v3716_v52, %v11827_v22  ;;  %v4355_v14 = vsel %vm98_vm0, %v9144_v56, %v9224_v4  ;;  %v4356_v52 = vsel %vm98_vm0, %v9224_v4, %v15771_v15 }
 0x4a8   :  { %v12304_v13 = vpop.permute.xlu0 %3976  ;;  %v3973_v28 = vpop.permute.xlu1 %3972  ;;  %v4373_v4 = vpack.c.bf16 %v4356_v52, %v11827_v22 }
 0x4a9   :  { %v3990_v23 = vsel %vm16182_vm3, %v3973_v28, %v3975_v55  ;;  %v3991_v42 = vsel %vm16183_vm4, %v3975_v55, %v12304_v13  ;;  %v15772_v28 = vunpack.i.h.bf16 %v12188_v34  ;;  %vm16197_vm3 = vcmask 343040   ;;  %vm16198_vm4 = vmmov %vm16195_vm12 }
 0x4aa   :  { %4966 = vmatprep.subr.bf16.mxu0 %v3991_v42 }
 0x4ab   :  { %4282 = vrot.lane.b32.xlu0 %v4260_v39, %s9488_s19  ;;  %4967 = vmatpush1.bf16.msra.mxu0 %v3990_v23  ;;  %v4372_v39 = vpack.c.bf16 %v4355_v14, %v11808_v50  ;;  %v3846_v14 = vpack.c.bf16 %v3829_v7, %v11827_v22 }
 0x4ac   :  { %3756 = vrot.lane.b32.xlu1 %v3733_v33, %s16085_s2  ;;  %v12318_v25 = vpop.permute.xlu0 %9257  ;;  %v12320_v55 = vpop.permute.xlu1 %9262  ;;  %v3830_v33 = vsel %vm98_vm0, %v9229_v59, %v15772_v28  ;;  %v4468_v59 = vsel %vm98_vm0, %v9159_v62, %v9234_v26  ;;  %v9240_v28 = vunpack.i.h.bf16 %v12210_v37 }
 0x4ad   :  { %v9265_v9 = vunpack.i.h.bf16 %v12320_v55 }
 0x4af   :  { %3758 = vrot.lane.b32.xlu0 %v3734_v47, %s16085_s2  ;;  %v9235_v47 = vunpack.i.h.bf16 %v12200_v17 }
 0x4b0   :  { %9317 = vrot.lane.b32.xlu1 %v16074_v21, %s9473_s27  ;;  %v4088_v23 = vpop.permute.xlu0 %4087  ;;  %v12334_v42 = vpop.permute.xlu1 %4089 }
 0x4b1   :  { %v4104_v56 = vsel %vm16184_vm15, %v4088_v23, %v12334_v42  ;;  %v4469_v7 = vsel %vm98_vm0, %v9234_v26, %v9235_v47  ;;  %vm16199_vm15 = vmmov %vm16197_vm3 }
 0x4b2   :  { %4968 = vmatprep.subr.bf16.mxu0 %v4104_v56 }
 0x4b3   :  { %4393 = vrot.lane.b32.xlu0 %v4372_v39, %s16111_s16  ;;  %v9239_v39 = vunpack.i.l.bf16 %v12210_v37 }
 0x4b4   :  { %4395 = vrot.lane.b32.xlu1 %v4373_v4, %s16111_s16  ;;  %v4086_v48 = vpop.permute.xlu0 %4085  ;;  %v12350_v35 = vpop.permute.xlu1 %9267  ;;  %v3847_v4 = vpack.c.bf16 %v3830_v33, %v11868_v36 }
 0x4b5   :  { %v4103_v52 = vsel %vm16185_vm1, %v4086_v48, %v4088_v23  ;;  %v9270_v56 = vunpack.i.h.bf16 %v12350_v35  ;;  %v15773_v15 = vunpack.i.l.bf16 %v12350_v35  ;;  %vm16200_vm1 = vcmask 187392  }
 0x4b6   :  { %4969 = vmatpush1.bf16.msra.mxu0 %v4103_v52  ;;  %v4485_v52 = vpack.c.bf16 %v4468_v59, %v11808_v50 }
 0x4b7   :  { %v4171_v23 = vsel %vm98_vm0, %v9270_v56, %v9265_v9  ;;  %3869 = vrot.lane.b32.xlu0 %v3846_v14, %s9484_s25  ;;  %v4172_v40 = vsel %vm98_vm0, %v9265_v9, %v15773_v15  ;;  %v3942_v14 = vsel %vm98_vm0, %v9194_v12, %v9239_v39  ;;  %v9244_v56 = vunpack.i.l.bf16 %v12248_v19 }
 0x4b8   :  { %3871 = vrot.lane.b32.xlu1 %v3847_v4, %s9484_s25  ;;  %v12372_v62 = vpop.permute.xlu0 %9272  ;;  %v12374_v33 = vpop.permute.xlu1 %9277  ;;  %v4188_v48 = vpack.c.bf16 %v4172_v40, %v11785_v24  ;;  %v4187_v26 = vpack.c.bf16 %v4171_v23, %v11782_v43  ;;  %v4486_v9 = vpack.c.bf16 %v4469_v7, %v11827_v22  ;;  %v3943_v4 = vsel %vm98_vm0, %v9239_v39, %v9240_v28 }
 0x4b9   :  { %v9245_v15 = vunpack.i.h.bf16 %v12248_v19  ;;  %v3959_v60 = vpack.c.bf16 %v3942_v14, %v11827_v22  ;;  %v16186_v12 = vunpack.i.l.bf16 %v12086_v32  ;;  %v9249_v7 = vunpack.i.l.bf16 %v12263_v31 }
 0x4ba   :  { %4970 = vmatprep.subr.bf16.mxu0 %v4188_v48  ;;  %v3960_v39 = vpack.c.bf16 %v3943_v4, %v11868_v36  ;;  %v9250_v40 = vunpack.i.h.bf16 %v12263_v31  ;;  %v16188_v14 = vunpack.i.h.bf16 %v12114_v41  ;;  %v16189_v41 = vunpack.i.l.bf16 %v12096_v0 }
 0x4bb   :  { %4506 = vrot.lane.b32.xlu0 %v4485_v52, %s16115_s15  ;;  %4971 = vmatpush1.bf16.msra.mxu0 %v4187_v26  ;;  %v4581_v59 = vsel %vm98_vm0, %v16186_v12, %v9244_v56  ;;  %v4582_v23 = vsel %vm98_vm0, %v9244_v56, %v9245_v15  ;;  %v9254_v56 = vunpack.i.l.bf16 %v12276_v44  ;;  %v9255_v12 = vunpack.i.h.bf16 %v12276_v44 }
 0x4bc   :  { %4508 = vrot.lane.b32.xlu1 %v4486_v9, %s16115_s15  ;;  %v12390_v43 = vpop.permute.xlu0 %9282  ;;  %v12392_v24 = vpop.permute.xlu1 %9287  ;;  %v4598_v52 = vpack.c.bf16 %v4581_v59, %v11808_v50  ;;  %v4055_v9 = vsel %vm98_vm0, %v16188_v14, %v9249_v7  ;;  %v4599_v4 = vpack.c.bf16 %v4582_v23, %v11827_v22  ;;  %v9259_v14 = vunpack.i.l.bf16 %v12318_v25 }
 0x4bd   :  { %v4072_v59 = vpack.c.bf16 %v4055_v9, %v11827_v22  ;;  %v4695_v23 = vsel %vm98_vm0, %v9254_v56, %v9255_v12  ;;  %v9260_v0 = vunpack.i.h.bf16 %v12318_v25  ;;  %v4780_v9 = vpack.c.bf16 %v11808_v50, %v11808_v50 }
 0x4bf   :  { %3982 = vrot.lane.b32.xlu0 %v3959_v60, %s9485_s26  ;;  %v4056_v60 = vsel %vm98_vm0, %v9249_v7, %v9250_v40 }
 0x4c0   :  { %3984 = vrot.lane.b32.xlu1 %v3960_v39, %s9485_s26  ;;  %v4277_v48 = vpop.permute.xlu0 %4276  ;;  %v12406_v26 = vpop.permute.xlu1 %4278  ;;  %v4694_v39 = vsel %vm98_vm0, %v16189_v41, %v9254_v56  ;;  %v4244_v56 = vsel %vm3710_vm5, %v9215_v27, %v9259_v14  ;;  %v4781_v41 = vpack.c.bf16 %v11827_v22, %v11827_v22 }
 0x4c1   :  { %v4293_v32 = vsel %vm16187_vm11, %v4277_v48, %v12406_v26  ;;  %v4711_v7 = vpack.c.bf16 %v4694_v39, %v11808_v50  ;;  %v4245_v39 = vsel %vm3710_vm5, %v9259_v14, %v9260_v0  ;;  %v4261_v27 = vpack.c.bf16 %v4244_v56, %v11868_v36  ;;  %vm16201_vm11 = vmmov %vm16200_vm1 }
 0x4c2   :  { %4972 = vmatprep.subr.bf16.mxu0 %v4293_v32  ;;  %v4073_v32 = vpack.c.bf16 %v4056_v60, %v11868_v36  ;;  %v4262_v14 = vpack.c.bf16 %v4245_v39, %v11871_v38  ;;  %v16192_v56 = vunpack.i.h.bf16 %v12173_v3 }
 0x4c3   :  { %4619 = vrot.lane.b32.xlu0 %v4598_v52, %s16122_s28  ;;  %v4712_v52 = vpack.c.bf16 %v4695_v23, %v11827_v22  ;;  %v9274_v23 = vunpack.i.l.bf16 %v12372_v62 }
 0x4c4   :  { %4621 = vrot.lane.b32.xlu1 %v4599_v4, %s16122_s28  ;;  %v9264_v4 = vunpack.i.l.bf16 %v12320_v55  ;;  %v16190_v55 = vunpack.i.h.bf16 %v12132_v16 }
 0x4c7   :  { %4095 = vrot.lane.b32.xlu0 %v4072_v59, %s16101_s29 }
 0x4c8   :  { %4097 = vrot.lane.b32.xlu1 %v4073_v32, %s16101_s29  ;;  %v3491_v32 = vsel %vm98_vm0, %v16190_v55, %v9264_v4  ;;  %v9280_v55 = vunpack.i.h.bf16 %v12374_v33 }
 0x4c9   :  { %v3508_v16 = vpack.c.bf16 %v3491_v32, %v11871_v38  ;;  %v16193_v32 = vunpack.i.h.bf16 %v12130_v5 }
 0x4cb   :  { %4732 = vrot.lane.b32.xlu0 %v4711_v7, %s9494_s14 }
 0x4cc   :  { %4734 = vrot.lane.b32.xlu1 %v4712_v52, %s9494_s14 }
 0x4cf   :  { %9322 = vrot.lane.b32.xlu0 %v11875_v53, %s9473_s27 }
 0x4d0   :  { %4801 = vrot.lane.b32.xlu1 %v4780_v9, %s9495_s20  ;;  %v9275_v9 = vunpack.i.h.bf16 %v12372_v62 }
 0x4d1   :  { %v3526_v60 = vpop.permute.xlu0 %3525  ;;  %v12447_v59 = vpop.permute.xlu1 %3527 }
 0x4d2   :  { %v3540_v1 = vsel %vm609_vm6, %v3526_v60, %v12447_v59  ;;  %v3539_v53 = vsel %vm609_vm6, %v12161_v57, %v3526_v60  ;;  %v4357_v60 = vsel %vm98_vm0, %v16192_v56, %v9274_v23  ;;  %v4470_v56 = vsel %vm98_vm0, %v9235_v47, %v9280_v55 }
 0x4d3   :  { %4999 = vmatprep.subr.bf16.mxu1 %v3540_v1  ;;  %4803 = vrot.lane.b32.xlu0 %v4781_v41, %s9495_s20  ;;  %v9279_v41 = vunpack.i.l.bf16 %v12374_v33  ;;  %v3509_v1 = vpack.c.bf16 %v9264_v4, %v11981_v54  ;;  %v4487_v47 = vpack.c.bf16 %v4470_v56, %v11868_v36 }
 0x4d4   :  { %4284 = vrot.lane.b32.xlu1 %v4261_v27, %s9488_s19  ;;  %5000 = vmatpush1.bf16.msra.mxu1 %v3539_v53  ;;  %v4374_v53 = vpack.c.bf16 %v4357_v60, %v11868_v36  ;;  %v9289_v60 = vunpack.i.l.bf16 %v12392_v24 }
 0x4d5   :  { %v4275_v7 = vpop.permute.xlu0 %4274  ;;  %v12465_v52 = vpop.permute.xlu1 %9292 }
 0x4d6   :  { %v4292_v57 = vsel %vm16191_vm2, %v4275_v7, %v4277_v48  ;;  %v4358_v48 = vsel %vm98_vm0, %v9274_v23, %v9275_v9  ;;  %v3604_v7 = vsel %vm98_vm0, %v16193_v32, %v9279_v41  ;;  %v16194_v32 = vunpack.i.h.bf16 %v12143_v49 }
 0x4d7   :  { %4973 = vmatpush1.bf16.msra.mxu0 %v4292_v57  ;;  %4286 = vrot.lane.b32.xlu0 %v4262_v14, %s9488_s19  ;;  %v4375_v23 = vpack.c.bf16 %v4358_v48, %v11871_v38  ;;  %v9284_v57 = vunpack.i.l.bf16 %v12390_v43  ;;  %v3621_v33 = vpack.c.bf16 %v3604_v7, %v11871_v38  ;;  %vm16202_vm2 = vcmask 171008  }
 0x4d8   :  { %3533 = vrot.lane.b32.xlu1 %v3508_v16, %s9480_s21  ;;  %v3718_v7 = vsel %vm3710_vm5, %v16194_v32, %v9289_v60 }
 0x4d9   :  { %v4390_v39 = vpop.permute.xlu0 %4389  ;;  %v12478_v27 = vpop.permute.xlu1 %4391 }
 0x4da   :  { %v4406_v3 = vsel %vm1825_vm10, %v4390_v39, %v12478_v27 }
 0x4db   :  { %4974 = vmatprep.subr.bf16.mxu0 %v4406_v3  ;;  %3535 = vrot.lane.b32.xlu0 %v3509_v1, %s9480_s21  ;;  %v3622_v1 = vpack.c.bf16 %v9279_v41, %v11981_v54 }
 0x4dc   :  { %4397 = vrot.lane.b32.xlu1 %v4374_v53, %s16111_s16  ;;  %v9285_v53 = vunpack.i.h.bf16 %v12390_v43 }
 0x4dd   :  { %v3639_v4 = vpop.permute.xlu0 %3638  ;;  %v12492_v14 = vpop.permute.xlu1 %3640 }
 0x4de   :  { %v3653_v16 = vsel %vm723_vm7, %v3639_v4, %v12492_v14  ;;  %v3652_v5 = vsel %vm723_vm7, %v12198_v58, %v3639_v4  ;;  %v4471_v58 = vsel %vm98_vm0, %v9280_v55, %v9284_v57  ;;  %v4583_v49 = vsel %vm98_vm0, %v9245_v15, %v9285_v53 }
 0x4df   :  { %5001 = vmatprep.subr.bf16.mxu1 %v3653_v16  ;;  %4399 = vrot.lane.b32.xlu0 %v4375_v23, %s16111_s16  ;;  %v4488_v55 = vpack.c.bf16 %v4471_v58, %v11871_v38  ;;  %v3735_v23 = vpack.c.bf16 %v3718_v7, %v11871_v38  ;;  %v9295_v16 = vunpack.i.h.bf16 %v12465_v52  ;;  %v4600_v15 = vpack.c.bf16 %v4583_v49, %v11868_v36 }
 0x4e0   :  { %3646 = vrot.lane.b32.xlu1 %v3621_v33, %s9481_s22  ;;  %5002 = vmatpush1.bf16.msra.mxu1 %v3652_v5  ;;  %v3736_v33 = vpack.c.bf16 %v9289_v60, %v11981_v54 }
 0x4e1   :  { %v4388_v48 = vpop.permute.xlu0 %4387  ;;  %v12508_v3 = vpop.permute.xlu1 %9297 }
 0x4e2   :  { %v4405_v17 = vsel %vm1825_vm10, %v4388_v48, %v4390_v39  ;;  %v9294_v39 = vunpack.i.l.bf16 %v12465_v52  ;;  %v16196_v48 = vunpack.i.h.bf16 %v12188_v34 }
 0x4e3   :  { %4975 = vmatpush1.bf16.msra.mxu0 %v4405_v17  ;;  %3648 = vrot.lane.b32.xlu0 %v3622_v1, %s9481_s22  ;;  %v9299_v17 = vunpack.i.l.bf16 %v12508_v3 }
 0x4e4   :  { %4510 = vrot.lane.b32.xlu1 %v4487_v47, %s16115_s15  ;;  %v4584_v1 = vsel %vm98_vm0, %v9285_v53, %v9294_v39  ;;  %v3831_v58 = vsel %vm98_vm0, %v16196_v48, %v9295_v16  ;;  %v9300_v53 = vunpack.i.h.bf16 %v12508_v3 }
 0x4e5   :  { %v12521_v41 = vpop.permute.xlu0 %9302  ;;  %v4503_v4 = vpop.permute.xlu1 %4502  ;;  %v4601_v47 = vpack.c.bf16 %v4584_v1, %v11871_v38  ;;  %v3848_v34 = vpack.c.bf16 %v3831_v58, %v11871_v38  ;;  %v3849_v1 = vpack.c.bf16 %v9295_v16, %v11981_v54 }
 0x4e6   :  { %v4697_v44 = vsel %vm98_vm0, %v9299_v17, %v9300_v53 }
 0x4e7   :  { %4512 = vrot.lane.b32.xlu0 %v4488_v55, %s16115_s15  ;;  %v4696_v55 = vsel %vm98_vm0, %v9255_v12, %v9299_v17  ;;  %v4714_v16 = vpack.c.bf16 %v4697_v44, %v11871_v38 }
 0x4e8   :  { %3760 = vrot.lane.b32.xlu1 %v3735_v23, %s16085_s2  ;;  %v9304_v23 = vunpack.i.l.bf16 %v12521_v41 }
 0x4e9   :  { %v12533_v5 = vpop.permute.xlu0 %4504  ;;  %v3753_v56 = vpop.permute.xlu1 %3752 }
 0x4ea   :  { %v4519_v19 = vsel %vm16195_vm12, %v4503_v4, %v12533_v5  ;;  %vm16203_vm12 = vmmov %vm16202_vm2 }
 0x4eb   :  { %4976 = vmatprep.subr.bf16.mxu0 %v4519_v19  ;;  %3762 = vrot.lane.b32.xlu0 %v3736_v33, %s16085_s2  ;;  %v3766_v33 = vsel %vm16199_vm15, %v12234_v20, %v3753_v56 }
 0x4ec   :  { %4623 = vrot.lane.b32.xlu1 %v4600_v15, %s16122_s28  ;;  %v3944_v15 = vsel %vm98_vm0, %v9240_v28, %v9304_v23  ;;  %v9305_v28 = vunpack.i.h.bf16 %v12521_v41 }
 0x4ed   :  { %v12547_v60 = vpop.permute.xlu0 %3754  ;;  %v4501_v32 = vpop.permute.xlu1 %4500  ;;  %v3961_v58 = vpack.c.bf16 %v3944_v15, %v11871_v38 }
 0x4ee   :  { %v3767_v7 = vsel %vm16197_vm3, %v3753_v56, %v12547_v60  ;;  %v4518_v49 = vsel %vm16198_vm4, %v4501_v32, %v4503_v4  ;;  %v4713_v4 = vpack.c.bf16 %v4696_v55, %v11868_v36  ;;  %v4057_v41 = vsel %vm98_vm0, %v9250_v40, %v9305_v28 }
 0x4ef   :  { %5003 = vmatprep.subr.bf16.mxu1 %v3767_v7  ;;  %4625 = vrot.lane.b32.xlu0 %v4601_v47, %s16122_s28  ;;  %v3962_v47 = vpack.c.bf16 %v9304_v23, %v11981_v54  ;;  %v4783_v23 = vpack.c.bf16 %v11871_v38, %v11871_v38  ;;  %v4074_v31 = vpack.c.bf16 %v4057_v41, %v11871_v38  ;;  %vm16207_vm4 = vcmask 1031168  }
 0x4f0   :  { %4977 = vmatpush1.bf16.msra.mxu0 %v4518_v49  ;;  %3873 = vrot.lane.b32.xlu1 %v3848_v34, %s9484_s25  ;;  %v9290_v49 = vunpack.i.h.bf16 %v12392_v24  ;;  %v4075_v40 = vpack.c.bf16 %v9305_v28, %v11981_v54  ;;  %vm16208_vm15 = vmmov %vm16207_vm4 }
 0x4f1   :  { %5004 = vmatpush1.bf16.msra.mxu1 %v3766_v33  ;;  %v4616_v19 = vpop.permute.xlu0 %4615  ;;  %v12567_v12 = vpop.permute.xlu1 %4617 }
 0x4f2   :  { %v4632_v48 = vsel %vm2167_vm13, %v4616_v19, %v12567_v12  ;;  %v4246_v44 = vsel %vm3710_vm5, %v9260_v0, %v9290_v49  ;;  %vm16204_vm5 = vcmask 15360  }
 0x4f3   :  { %3875 = vrot.lane.b32.xlu0 %v3849_v1, %s9484_s25  ;;  %4978 = vmatprep.subr.bf16.mxu0 %v4632_v48  ;;  %v4263_v0 = vpack.c.bf16 %v4246_v44, %v11981_v54  ;;  %vm16205_vm3 = vmmov %vm16204_vm5 }
 0x4f4   :  { %4736 = vrot.lane.b32.xlu1 %v4713_v4, %s9494_s14 }
 0x4f5   :  { %v3866_v20 = vpop.permute.xlu0 %3865  ;;  %v12578_v56 = vpop.permute.xlu1 %3867 }
 0x4f6   :  { %v3879_v37 = vsel %vm16200_vm1, %v12274_v30, %v3866_v20  ;;  %v3880_v17 = vsel %vm16201_vm11, %v3866_v20, %v12578_v56  ;;  %v4782_v30 = vpack.c.bf16 %v11868_v36, %v11868_v36  ;;  %v4264_v20 = vpack.c.bf16 %v9290_v49, %v16074_v21 }
 0x4f7   :  { %4738 = vrot.lane.b32.xlu0 %v4714_v16, %s9494_s14  ;;  %5005 = vmatprep.subr.bf16.mxu1 %v3880_v17  ;;  %vm16209_vm1 = vcmask 343040  }
 0x4f8   :  { %3986 = vrot.lane.b32.xlu1 %v3961_v58, %s9485_s26  ;;  %5006 = vmatpush1.bf16.msra.mxu1 %v3879_v37  ;;  %vm16210_vm11 = vmmov %vm16209_vm1 }
 0x4f9   :  { %v4614_v32 = vpop.permute.xlu0 %4613  ;;  %v4729_v34 = vpop.permute.xlu1 %4728 }
 0x4fa   :  { %v4631_v7 = vsel %vm2167_vm13, %v4614_v32, %v4616_v19 }
 0x4fb   :  { %4979 = vmatpush1.bf16.msra.mxu0 %v4631_v7  ;;  %3988 = vrot.lane.b32.xlu0 %v3962_v47, %s9485_s26  ;;  %v12640_v7 = vcombine.low %v12218_v45, %v12218_v45 }
 0x4fc   :  { %4805 = vrot.lane.b32.xlu1 %v4782_v30, %s9495_s20 }
 0x4fd   :  { %v12597_v55 = vpop.permute.xlu0 %4730  ;;  %v3979_v33 = vpop.permute.xlu1 %3978 }
 0x4fe   :  { %v4745_v1 = vsel %vm2281_vm8, %v4729_v34, %v12597_v55  ;;  %v3992_v48 = vsel %vm16203_vm12, %v12304_v13, %v3979_v33 }
 0x4ff   :  { %4980 = vmatprep.subr.bf16.mxu0 %v4745_v1  ;;  %4807 = vrot.lane.b32.xlu0 %v4783_v23, %s9495_s20 }
 0x500   :  { %4099 = vrot.lane.b32.xlu1 %v4074_v31, %s16101_s29 }
 0x501   :  { %v12608_v19 = vpop.permute.xlu0 %3980  ;;  %v4727_v24 = vpop.permute.xlu1 %4726 }
 0x502   :  { %v3993_v4 = vsel %vm16202_vm2, %v3979_v33, %v12608_v19  ;;  %v4744_v15 = vsel %vm2281_vm8, %v4727_v24, %v4729_v34  ;;  %vm16211_vm2 = vcmask 187392  }
 0x503   :  { %5007 = vmatprep.subr.bf16.mxu1 %v3993_v4  ;;  %4101 = vrot.lane.b32.xlu0 %v4075_v40, %s16101_s29  ;;  %vm16212_vm12 = vmmov %vm16211_vm2 }
 0x504   :  { %4981 = vmatpush1.bf16.msra.mxu0 %v4744_v15  ;;  %9327 = vrot.lane.b32.xlu1 %v12022_v61, %s9473_s27 }
 0x505   :  { %5008 = vmatpush1.bf16.msra.mxu1 %v3992_v48  ;;  %v4798_v25 = vpop.permute.xlu0 %4797  ;;  %v12623_v16 = vpop.permute.xlu1 %4799 }
 0x506   :  { %v4814_v58 = vsel %vm2395_vm14, %v4798_v25, %v12623_v16 }
 0x507   :  { %4288 = vrot.lane.b32.xlu0 %v4263_v0, %s9488_s19  ;;  %4982 = vmatprep.subr.bf16.mxu0 %v4814_v58 }
 0x508   :  { %4290 = vrot.lane.b32.xlu1 %v4264_v20, %s9488_s19 }
 0x509   :  { %v4092_v61 = vpop.permute.xlu0 %4091  ;;  %v12629_v37 = vpop.permute.xlu1 %4093 }
 0x50a   :  { %v4105_v13 = vsel %vm16204_vm5, %v12334_v42, %v4092_v61  ;;  %v4106_v28 = vsel %vm16205_vm3, %v4092_v61, %v12629_v37  ;;  %v16206_v42 = vunpack.i.l.bf16 %v12350_v35  ;;  %vm16213_vm5 = vcmask 859136  }
 0x50b   :  { %5009 = vmatprep.subr.bf16.mxu1 %v4106_v28  ;;  %vm16214_vm3 = vmmov %vm16213_vm5 }
 0x50c   :  { %5010 = vmatpush1.bf16.msra.mxu1 %v4105_v13 }
 0x50d   :  { %v4796_v17 = vpop.permute.xlu0 %4795  ;;  %v12635_v47 = vpop.permute.xlu1 %9307 }
 0x50e   :  { %v4813_v32 = vsel %vm2395_vm14, %v4796_v17, %v4798_v25  ;;  %v9310_v34 = vunpack.i.h.bf16 %v12635_v47  ;;  %v9309_v30 = vunpack.i.l.bf16 %v12635_v47 }
 0x50f   :  { %4983 = vmatpush1.bf16.msra.mxu0 %v4813_v32 }
 0x510   :  { %v4173_v41 = vsel %vm98_vm0, %v16206_v42, %v9309_v30  ;;  %v4174_v49 = vsel %vm98_vm0, %v9309_v30, %v9310_v34 }
 0x511   :  { %v3530_v23 = vpop.permute.xlu0 %3529  ;;  %v12650_v33 = vpop.permute.xlu1 %3531  ;;  %v4190_v45 = vpack.c.bf16 %v4174_v49, %v11808_v50  ;;  %v4189_v1 = vpack.c.bf16 %v4173_v41, %v11788_v63 }
 0x512   :  { %4991 = vmatmul.mubr.bf16.vlgmr.msra.gmra.mrb[8].mxu0 %v12640_v7  ;;  %v3541_v31 = vsel %vm609_vm6, %v12447_v59, %v3530_v23  ;;  %v3542_v35 = vsel %vm609_vm6, %v3530_v23, %v12650_v33 }
 0x513   :  { %8066 = vmatprep.mubr.msk.bf16.mxu0 %vm4954_vm9, %v12227_v51  ;;  %5011 = vmatprep.subr.bf16.mxu1 %v4190_v45 }
 0x514   :  { %5040 = vmatprep.subr.bf16.mxu0 %v3542_v35  ;;  %5012 = vmatpush1.bf16.msra.mxu1 %v4189_v1 }
 0x515   :  { %5041 = vmatpush1.bf16.msra.mxu0 %v3541_v31  ;;  %v9313_v40 = vpop.permute.xlu0 %9312  ;;  %v3643_v44 = vpop.permute.xlu1 %3642 }
 0x516   :  { %v9315_v24 = vunpack.i.h.bf16 %v9313_v40  ;;  %v9314_v4 = vunpack.i.l.bf16 %v9313_v40  ;;  %v3654_v62 = vsel %vm723_vm7, %v12492_v14, %v3643_v44 }
 0x518   :  { %v4359_v63 = vsel %vm98_vm0, %v9275_v9, %v9314_v4  ;;  %v4377_v50 = vpack.c.bf16 %v9314_v4, %v16074_v21  ;;  %v4472_v48 = vsel %vm98_vm0, %v9284_v57, %v9315_v24  ;;  %v4490_v9 = vpack.c.bf16 %v9315_v24, %v16074_v21 }
 0x519   :  { %v12665_v59 = vpop.permute.xlu0 %3644  ;;  %v4376_v15 = vpack.c.bf16 %v4359_v63, %v11981_v54  ;;  %v4281_v25 = vpop.permute.xlu1 %4280  ;;  %v4489_v43 = vpack.c.bf16 %v4472_v48, %v11981_v54  ;;  %v16215_v4 = vmov 0.0|0.0  }
 0x51a   :  { %4403 = vrot.lane.b32.xlu1 %v4377_v50, %s16111_s16  ;;  %v3655_v0 = vsel %vm723_vm7, %v3643_v44, %v12665_v59  ;;  %v4294_v61 = vsel %vm16208_vm15, %v12406_v26, %v4281_v25  ;;  %v4784_v44 = vpack.c.bf16 %v11981_v54, %v11981_v54  ;;  %v4942_v50 = vld [vmem:[%s15661_s5] sm:$0xff]  ;;  %s9501_s5 = smov 108  }
 0x51b   :  { %5042 = vmatprep.subr.bf16.mxu0 %v3655_v0  ;;  %4401 = vrot.lane.b32.xlu0 %v4376_v15, %s16111_s16 }
 0x51c   :  { %5043 = vmatpush1.bf16.msra.mxu0 %v3654_v62 }
 0x51d   :  { %v12678_v20 = vpop.permute.xlu0 %4282 }
 0x51e   :  { %v3757_v57 = vpop.permute.xlu1 %3756  ;;  %4516 = vrot.lane.b32.xlu1 %v4490_v9, %s16115_s15  ;;  %v4295_v58 = vsel %vm16207_vm4, %v4281_v25, %v12678_v20  ;;  %vm16216_vm4 = vcmask 171008  }
 0x51f   :  { %5013 = vmatprep.subr.bf16.mxu1 %v4295_v58  ;;  %4514 = vrot.lane.b32.xlu0 %v4489_v43, %s16115_s15  ;;  %v3768_v30 = vsel %vm16210_vm11, %v12547_v60, %v3757_v57  ;;  %vm16217_vm15 = vmmov %vm16216_vm4 }
 0x520   :  { %5014 = vmatpush1.bf16.msra.mxu1 %v4294_v61 }
 0x521   :  { %v12687_v14 = vpop.permute.xlu0 %3758 }
 0x522   :  { %v9318_v13 = vpop.permute.xlu1 %9317  ;;  %v3769_v28 = vsel %vm16209_vm1, %v3757_v57, %v12687_v14  ;;  %vm16218_vm1 = vcmask 15360  }
 0x523   :  { %v9320_v17 = vunpack.i.h.bf16 %v9318_v13  ;;  %v9319_v32 = vunpack.i.l.bf16 %v9318_v13  ;;  %5044 = vmatprep.subr.bf16.mxu0 %v3769_v28  ;;  %vm16219_vm11 = vmmov %vm16218_vm1 }
 0x524   :  { %5045 = vmatpush1.bf16.msra.mxu0 %v3768_v30 }
 0x525   :  { %v4585_v42 = vsel %vm98_vm0, %v9294_v39, %v9319_v32  ;;  %v4603_v26 = vpack.c.bf16 %v9319_v32, %v16074_v21  ;;  %v4394_v41 = vpop.permute.xlu0 %4393  ;;  %v4716_v1 = vpack.c.bf16 %v9320_v17, %v16074_v21  ;;  %v4698_v60 = vsel %vm98_vm0, %v9300_v53, %v9320_v17 }
 0x526   :  { %v12697_v23 = vpop.permute.xlu1 %4395  ;;  %v4602_v49 = vpack.c.bf16 %v4585_v42, %v11981_v54  ;;  %v4407_v45 = vsel %vm1825_vm10, %v12478_v27, %v4394_v41  ;;  %v4715_v27 = vpack.c.bf16 %v4698_v60, %v11981_v54 }
 0x527   :  { %4629 = vrot.lane.b32.xlu1 %v4603_v26, %s16122_s28  ;;  %v4408_v52 = vsel %vm1825_vm10, %v4394_v41, %v12697_v23 }
 0x528   :  { %5015 = vmatprep.subr.bf16.mxu1 %v4408_v52  ;;  %4627 = vrot.lane.b32.xlu0 %v4602_v49, %s16122_s28 }
 0x529   :  { %5016 = vmatpush1.bf16.msra.mxu1 %v4407_v45  ;;  %v3870_v39 = vpop.permute.xlu0 %3869 }
 0x52a   :  { %v12710_v31 = vpop.permute.xlu1 %3871  ;;  %v3881_v35 = vsel %vm16211_vm2, %v12578_v56, %v3870_v39  ;;  %vm16220_vm2 = vcmask 1031168  }
 0x52b   :  { %4742 = vrot.lane.b32.xlu1 %v4716_v1, %s9494_s14  ;;  %v3882_v3 = vsel %vm16212_vm12, %v3870_v39, %v12710_v31  ;;  %vm16221_vm12 = vmmov %vm16220_vm2 }
 0x52c   :  { %5046 = vmatprep.subr.bf16.mxu0 %v3882_v3  ;;  %4740 = vrot.lane.b32.xlu0 %v4715_v27, %s9494_s14 }
 0x52d   :  { %5047 = vmatpush1.bf16.msra.mxu0 %v3881_v35  ;;  %v4507_v53 = vpop.permute.xlu0 %4506 }
 0x52e   :  { %v12719_v40 = vpop.permute.xlu1 %4508  ;;  %v4520_v24 = vsel %vm16213_vm5, %v12533_v5, %v4507_v53  ;;  %vm16223_vm5 = vmmov %vm16214_vm3 }
 0x52f   :  { %v4521_v56 = vsel %vm16214_vm3, %v4507_v53, %v12719_v40  ;;  %4811 = vrot.lane.b32.xlu1 %v16215_v4, %s9495_s20 }
 0x530   :  { %5017 = vmatprep.subr.bf16.mxu1 %v4521_v56  ;;  %4809 = vrot.lane.b32.xlu0 %v4784_v44, %s9495_s20 }
 0x531   :  { %5018 = vmatpush1.bf16.msra.mxu1 %v4520_v24  ;;  %v3983_v63 = vpop.permute.xlu0 %3982 }
 0x532   :  { %v12733_v15 = vpop.permute.xlu1 %3984  ;;  %v3994_v5 = vsel %vm16216_vm4, %v12608_v19, %v3983_v63 }
 0x533   :  { %v3995_v48 = vsel %vm16217_vm15, %v3983_v63, %v12733_v15 }
 0x534   :  { %5048 = vmatprep.subr.bf16.mxu0 %v3995_v48  ;;  %4945 = vperm.xlu0 %9331, %v4942_v50  }
 0x535   :  { %5049 = vmatpush1.bf16.msra.mxu0 %v3994_v5  ;;  %v4620_v25 = vpop.permute.xlu0 %4619 }
 0x536   :  { %v12739_v0 = vpop.permute.xlu1 %4621  ;;  %v4633_v62 = vsel %vm2167_vm13, %v12567_v12, %v4620_v25 }
 0x537   :  { %v4634_v9 = vsel %vm2167_vm13, %v4620_v25, %v12739_v0 }
 0x538   :  { %5019 = vmatprep.subr.bf16.mxu1 %v4634_v9 }
 0x539   :  { %5020 = vmatpush1.bf16.msra.mxu1 %v4633_v62  ;;  %v4096_v43 = vpop.permute.xlu0 %4095 }
 0x53a   :  { %v12745_v57 = vpop.permute.xlu1 %4097  ;;  %v4107_v19 = vsel %vm16218_vm1, %v12629_v37, %v4096_v43  ;;  %vm16228_vm1 = vcmask 171008  }
 0x53b   :  { %v4108_v58 = vsel %vm16219_vm11, %v4096_v43, %v12745_v57  ;;  %vm16229_vm11 = vmmov %vm16228_vm1 }
 0x53c   :  { %5050 = vmatprep.subr.bf16.mxu0 %v4108_v58 }
 0x53d   :  { %5051 = vmatpush1.bf16.msra.mxu0 %v4107_v19  ;;  %v4733_v61 = vpop.permute.xlu0 %4732 }
 0x53e   :  { %v12751_v13 = vpop.permute.xlu1 %4734  ;;  %v4746_v12 = vsel %vm2281_vm8, %v12597_v55, %v4733_v61 }
 0x53f   :  { %v4747_v28 = vsel %vm2281_vm8, %v4733_v61, %v12751_v13 }
 0x540   :  { %5021 = vmatprep.subr.bf16.mxu1 %v4747_v28 }
 0x541   :  { %5022 = vmatpush1.bf16.msra.mxu1 %v4746_v12  ;;  %v12757_v17 = vpop.permute.xlu0 %9322 }
 0x542   :  { %v4802_v32 = vpop.permute.xlu1 %4801  ;;  %v9325_v37 = vunpack.i.h.bf16 %v12757_v17  ;;  %v9324_v30 = vunpack.i.l.bf16 %v12757_v17 }
 0x543   :  { %v4815_v47 = vsel %vm2395_vm14, %v12623_v16, %v4802_v32 }
 0x544   :  { %v4175_v42 = vsel %vm98_vm0, %v9310_v34, %v9324_v30  ;;  %v4176_v55 = vsel %vm98_vm0, %v9324_v30, %v9325_v37 }
 0x545   :  { %v12767_v26 = vpop.permute.xlu0 %4803  ;;  %v4192_v41 = vpack.c.bf16 %v4176_v55, %v11868_v36  ;;  %v4191_v49 = vpack.c.bf16 %v4175_v42, %v11827_v22 }
 0x546   :  { %v4285_v45 = vpop.permute.xlu1 %4284  ;;  %v4816_v1 = vsel %vm2395_vm14, %v4802_v32, %v12767_v26 }
 0x547   :  { %5023 = vmatprep.subr.bf16.mxu1 %v4816_v1  ;;  %5052 = vmatprep.subr.bf16.mxu0 %v4192_v41  ;;  %v4296_v22 = vsel %vm16221_vm12, %v12678_v20, %v4285_v45 }
 0x548   :  { %5024 = vmatpush1.bf16.msra.mxu1 %v4815_v47  ;;  %5053 = vmatpush1.bf16.msra.mxu0 %v4191_v49 }
 0x549   :  { %v12775_v34 = vpop.permute.xlu0 %4286 }
 0x54a   :  { %v3534_v60 = vpop.permute.xlu1 %3533  ;;  %v4297_v52 = vsel %vm16220_vm2, %v4285_v45, %v12775_v34  ;;  %vm16230_vm2 = vcmask 15360  }
 0x54b   :  { %5032 = vmatmul.mubr.bf16.vlgmr.msra.gmra.mrb[8].mxu1 %v12640_v7  ;;  %5054 = vmatprep.subr.bf16.mxu0 %v4297_v52  ;;  %v3543_v27 = vsel %vm609_vm6, %v12650_v33, %v3534_v60  ;;  %vm16231_vm12 = vmmov %vm16230_vm2 }
 0x54c   :  { %5055 = vmatpush1.bf16.msra.mxu0 %v4296_v22  ;;  %8067 = vmatprep.mubr.msk.bf16.mxu1 %vm4954_vm9, %v12227_v51 }
 0x54d   :  { %v3536_v36 = vpop.permute.xlu0 %3535 }
 0x54e   :  { %v4398_v16 = vpop.permute.xlu1 %4397  ;;  %v3544_v39 = vsel %vm609_vm6, %v3534_v60, %v3536_v36  ;;  %vm16222_vm6 = vmmov %vm16214_vm3  ;;  %vm16224_vm3 = vcmask 343040   ;;  %v16232_v36 = vmov 0  }
 0x54f   :  { %5081 = vmatprep.subr.bf16.mxu1 %v3544_v39  ;;  %v4409_v20 = vsel %vm1825_vm10, %v12697_v23, %v4398_v16  ;;  %vm16225_vm4 = vmmov %vm16224_vm3 }
 0x550   :  { %5082 = vmatpush1.bf16.msra.mxu1 %v3543_v27 }
 0x551   :  { %v12787_v35 = vpop.permute.xlu0 %4399 }
 0x552   :  { %v3647_v3 = vpop.permute.xlu1 %3646  ;;  %v4410_v53 = vsel %vm1825_vm10, %v4398_v16, %v12787_v35 }
 0x553   :  { %5056 = vmatprep.subr.bf16.mxu0 %v4410_v53  ;;  %v3656_v33 = vsel %vm723_vm7, %v12665_v59, %v3647_v3 }
 0x554   :  { %5057 = vmatpush1.bf16.msra.mxu0 %v4409_v20 }
 0x555   :  { %v3649_v51 = vpop.permute.xlu0 %3648 }
 0x556   :  { %v4511_v44 = vpop.permute.xlu1 %4510  ;;  %v3657_v24 = vsel %vm723_vm7, %v3647_v3, %v3649_v51  ;;  %vm16226_vm7 = vcmask 187392  }
 0x557   :  { %5083 = vmatprep.subr.bf16.mxu1 %v3657_v24  ;;  %v4522_v23 = vsel %vm16223_vm5, %v12719_v40, %v4511_v44  ;;  %vm16227_vm15 = vmmov %vm16226_vm7 }
 0x558   :  { %5084 = vmatpush1.bf16.msra.mxu1 %v3656_v33 }
 0x559   :  { %v12796_v56 = vpop.permute.xlu0 %4512 }
 0x55a   :  { %v3761_v63 = vpop.permute.xlu1 %3760  ;;  %v4523_v50 = vsel %vm16222_vm6, %v4511_v44, %v12796_v56  ;;  %vm16233_vm6 = vcmask 1031168  }
 0x55b   :  { %5058 = vmatprep.subr.bf16.mxu0 %v4523_v50  ;;  %v3770_v59 = vsel %vm16225_vm4, %v12687_v14, %v3761_v63  ;;  %vm16234_vm5 = vmmov %vm16233_vm6 }
 0x55c   :  { %5059 = vmatpush1.bf16.msra.mxu0 %v4522_v23 }
 0x55d   :  { %v3763_v5 = vpop.permute.xlu0 %3762 }
 0x55e   :  { %v4624_v48 = vpop.permute.xlu1 %4623  ;;  %v3771_v25 = vsel %vm16224_vm3, %v3761_v63, %v3763_v5  ;;  %vm16235_vm3 = vcmask 859136  }
 0x55f   :  { %5085 = vmatprep.subr.bf16.mxu1 %v3771_v25  ;;  %v4635_v19 = vsel %vm2167_vm13, %v12739_v0, %v4624_v48  ;;  %vm16236_vm4 = vmmov %vm16235_vm3 }
 0x560   :  { %5086 = vmatpush1.bf16.msra.mxu1 %v3770_v59 }
 0x561   :  { %v12805_v62 = vpop.permute.xlu0 %4625 }
 0x562   :  { %v3874_v9 = vpop.permute.xlu1 %3873  ;;  %v4636_v43 = vsel %vm2167_vm13, %v4624_v48, %v12805_v62 }
 0x563   :  { %5060 = vmatprep.subr.bf16.mxu0 %v4636_v43  ;;  %v3883_v12 = vsel %vm16227_vm15, %v12710_v31, %v3874_v9  ;;  %vm16240_vm15 = vmmov %vm16228_vm1 }
 0x564   :  { %5061 = vmatpush1.bf16.msra.mxu0 %v4635_v19 }
 0x565   :  { %v3876_v40 = vpop.permute.xlu0 %3875 }
 0x566   :  { %v4737_v58 = vpop.permute.xlu1 %4736  ;;  %v3884_v61 = vsel %vm16226_vm7, %v3874_v9, %v3876_v40 }
 0x567   :  { %5087 = vmatprep.subr.bf16.mxu1 %v3884_v61  ;;  %v4748_v30 = vsel %vm2281_vm8, %v12751_v13, %v4737_v58 }
 0x568   :  { %5088 = vmatpush1.bf16.msra.mxu1 %v3883_v12 }
 0x569   :  { %v4739_v14 = vpop.permute.xlu0 %4738 }
 0x56a   :  { %v3987_v28 = vpop.permute.xlu1 %3986  ;;  %v4749_v32 = vsel %vm2281_vm8, %v4737_v58, %v4739_v14 }
 0x56b   :  { %5062 = vmatprep.subr.bf16.mxu0 %v4749_v32  ;;  %v3996_v41 = vsel %vm16229_vm11, %v12733_v15, %v3987_v28 }
 0x56c   :  { %5063 = vmatpush1.bf16.msra.mxu0 %v4748_v30 }
 0x56d   :  { %v3989_v0 = vpop.permute.xlu0 %3988 }
 0x56e   :  { %v4806_v42 = vpop.permute.xlu1 %4805  ;;  %v3997_v55 = vsel %vm16228_vm1, %v3987_v28, %v3989_v0 }
 0x56f   :  { %5089 = vmatprep.subr.bf16.mxu1 %v3997_v55  ;;  %v4817_v1 = vsel %vm2395_vm14, %v12767_v26, %v4806_v42 }
 0x570   :  { %5090 = vmatpush1.bf16.msra.mxu1 %v3996_v41 }
 0x571   :  { %v4808_v31 = vpop.permute.xlu0 %4807 }
 0x572   :  { %v4100_v49 = vpop.permute.xlu1 %4099  ;;  %v4818_v45 = vsel %vm2395_vm14, %v4806_v42, %v4808_v31 }
 0x573   :  { %5064 = vmatprep.subr.bf16.mxu0 %v4818_v45  ;;  %v4109_v52 = vsel %vm16231_vm12, %v12745_v57, %v4100_v49 }
 0x574   :  { %5065 = vmatpush1.bf16.msra.mxu0 %v4817_v1 }
 0x575   :  { %v4102_v13 = vpop.permute.xlu0 %4101 }
 0x576   :  { %v9328_v47 = vpop.permute.xlu1 %9327  ;;  %v4110_v60 = vsel %vm16230_vm2, %v4100_v49, %v4102_v13 }
 0x577   :  { %v9330_v22 = vunpack.i.h.bf16 %v9328_v47  ;;  %v9329_v15 = vunpack.i.l.bf16 %v9328_v47  ;;  %5073 = vmatmul.mubr.bf16.vlgmr.msra.gmra.mrb[12].mxu0 %v12640_v7  ;;  %5091 = vmatprep.subr.bf16.mxu1 %v4110_v60 }
 0x578   :  { %5092 = vmatpush1.bf16.msra.mxu1 %v4109_v52  ;;  %5713 = vmatprep.mubr.bf16.mxu0 %v16232_v36 }
 0x579   :  { %v4177_v26 = vsel %vm98_vm0, %v9325_v37, %v9329_v15  ;;  %v4178_v16 = vsel %vm98_vm0, %v9329_v15, %v9330_v22  ;;  %v4289_v3 = vpop.permute.xlu0 %4288 }
 0x57a   :  { %v4193_v39 = vpack.c.bf16 %v4177_v26, %v11871_v38  ;;  %v4291_v27 = vpop.permute.xlu1 %4290  ;;  %v4194_v57 = vpack.c.bf16 %v4178_v16, %v11981_v54  ;;  %v4298_v20 = vsel %vm16234_vm5, %v12775_v34, %v4289_v3  ;;  %vm16246_vm5 = vmmov %vm16235_vm3 }
 0x57b   :  { %v4299_v53 = vsel %vm16233_vm6, %v4289_v3, %v4291_v27  ;;  %vm16245_vm6 = vmmov %vm16235_vm3 }
 0x57c   :  { %5093 = vmatprep.subr.bf16.mxu1 %v4194_v57 }
 0x57d   :  { %5094 = vmatpush1.bf16.msra.mxu1 %v4193_v39 }
 0x57e   :  { %5095 = vmatprep.subr.bf16.mxu1 %v4299_v53 }
 0x581   :  { %5096 = vmatpush1.bf16.msra.mxu1 %v4298_v20 }
 0x58c   :  { %v4404_v17 = vpop.permute.xlu1 %4403 }
 0x58d   :  { %v4402_v51 = vpop.permute.xlu0 %4401 }
 0x58e   :  { %v4411_v37 = vsel %vm1825_vm10, %v12787_v35, %v4402_v51  ;;  %v4412_v38 = vsel %vm1825_vm10, %v4402_v51, %v4404_v17 }
 0x58f   :  { %5097 = vmatprep.subr.bf16.mxu1 %v4412_v38 }
 0x590   :  { %v4517_v44 = vpop.permute.xlu1 %4516  ;;  %5098 = vmatpush1.bf16.msra.mxu1 %v4411_v37 }
 0x591   :  { %v4515_v54 = vpop.permute.xlu0 %4514 }
 0x592   :  { %v4524_v24 = vsel %vm16235_vm3, %v12796_v56, %v4515_v54  ;;  %v4525_v33 = vsel %vm16236_vm4, %v4515_v54, %v4517_v44  ;;  %vm16247_vm4 = vmmov %vm16235_vm3 }
 0x593   :  { %5099 = vmatprep.subr.bf16.mxu1 %v4525_v33 }
 0x594   :  { %5100 = vmatpush1.bf16.msra.mxu1 %v4524_v24 }
 0x599   :  { %v4630_v34 = vpop.permute.xlu1 %4629 }
 0x59a   :  { %v4628_v63 = vpop.permute.xlu0 %4627 }
 0x59b   :  { %v4637_v50 = vsel %vm2167_vm13, %v12805_v62, %v4628_v63  ;;  %v4638_v35 = vsel %vm2167_vm13, %v4628_v63, %v4630_v34  ;;  %vm16237_vm13 = vmmov %vm16226_vm7 }
 0x59c   :  { %5101 = vmatprep.subr.bf16.mxu1 %v4638_v35 }
 0x59d   :  { %v4743_v23 = vpop.permute.xlu1 %4742  ;;  %5102 = vmatpush1.bf16.msra.mxu1 %v4637_v50 }
 0x59e   :  { %v4741_v5 = vpop.permute.xlu0 %4740 }
 0x59f   :  { %v4750_v48 = vsel %vm2281_vm8, %v4739_v14, %v4741_v5  ;;  %v4751_v25 = vsel %vm2281_vm8, %v4741_v5, %v4743_v23  ;;  %vm5295_vm8 = vcmask 883712  }
 0x5a0   :  { %5103 = vmatprep.subr.bf16.mxu1 %v4751_v25 }
 0x5a1   :  { %5104 = vmatpush1.bf16.msra.mxu1 %v4750_v48  ;;  %v4812_v56 = vpop.permute.xlu1 %4811 }
 0x5a2   :  { %v4810_v59 = vpop.permute.xlu0 %4809 }
 0x5a3   :  { %v4819_v9 = vsel %vm2395_vm14, %v4808_v31, %v4810_v59  ;;  %v4820_v43 = vsel %vm2395_vm14, %v4810_v59, %v4812_v56  ;;  %vm16238_vm14 = vmmov %vm16226_vm7 }
 0x5a4   :  { %5105 = vmatprep.subr.bf16.mxu1 %v4820_v43  ;;  %vm16239_vm7 = vmmov %vm16228_vm1 }
 0x5a5   :  { %5106 = vmatpush1.bf16.msra.mxu1 %v4819_v9  ;;  %vm16241_vm1 = vmmov %vm16237_vm13 }
 0x5a6   :  { %vm16242_vm11 = vmmov %vm16241_vm1 }
 0x5a7   :  { %vm16243_vm2 = vmmov %vm16239_vm7 }
 0x5a8   :  { %5114 = vmatmul.mubr.bf16.vlgmr.msra.gmra.mrb[12].mxu1 %v12640_v7  ;;  %vm16244_vm12 = vmmov %vm16243_vm2 }
 0x5a9   :  { %5754 = vmatprep.mubr.bf16.mxu1 %v16232_v36 }
 0x5b3   :  { %v4946_v62 = vpop.permute.xlu0 %4945 }
 0x5e5   :  { %v4992_v19 = vpop.f32.mrb[8].mxu0 }
 0x5e6   :  { %v4994_v40 = vpop.f32.mrb[9].mxu0  ;;  %v4993_v58 = vadd.f32 %v4992_v19, %v4946_v62 }
 0x5e7   :  { %v4995_v61 = vadd.f32 %v4994_v40, %v4946_v62  ;;  %v4996_v12 = vpop.f32.mrb[10].mxu0 }
 0x5e8   :  { %v5122_v14 = vmax.f32 %v4993_v58, 0.0  ;;  %v4997_v28 = vpop.f32.mrb[11].mxu0 }
 0x5e9   :  { %v5123_v32 = vmax.f32 %v4995_v61, 0.0 }
 0x5ea   :  { %v12853_v30 = vmul.f32 %v5122_v14, %v11768_v2 }
 0x5eb   :  { %v12856_v0 = vmul.f32 %v5123_v32, %v11771_v8 }
 0x5ec   :  { %v5571_v28 = vpack.c.bf16 %v12853_v30, %v12853_v30 }
 0x5ed   :  { %v9332_v7 = vpack.i.bf16 %v12856_v0, %v12853_v30  ;;  %v5572_v14 = vpack.c.bf16 %v12856_v0, %v12856_v0 }
 0x5ef   :  { %9333 = vrot.lane.b32.xlu1 %v9332_v7, %s9473_s27 }
 0x61e   :  { %v5033_v42 = vpop.f32.mrb[8].mxu1 }
 0x61f   :  { %v5034_v55 = vadd.f32 %v5033_v42, %v4946_v62  ;;  %v5035_v41 = vpop.f32.mrb[9].mxu1 }
 0x620   :  { %v5037_v31 = vpop.f32.mrb[10].mxu1  ;;  %v5036_v47 = vadd.f32 %v5035_v41, %v4946_v62 }
 0x621   :  { %v5124_v49 = vmax.f32 %v5034_v55, 0.0  ;;  %v5038_v45 = vpop.f32.mrb[11].mxu1 }
 0x622   :  { %v5125_v52 = vmax.f32 %v5036_v47, 0.0 }
 0x623   :  { %v12862_v1 = vmul.f32 %v5124_v49, %v11779_v10 }
 0x624   :  { %v12869_v27 = vmul.f32 %v5125_v52, %v11805_v29 }
 0x625   :  { %v9337_v13 = vpack.i.bf16 %v16074_v21, %v12862_v1  ;;  %v9362_v37 = vpack.i.bf16 %v12862_v1, %v12856_v0 }
 0x626   :  { %v9367_v17 = vpack.i.bf16 %v12853_v30, %v12869_v27 }
 0x627   :  { %9338 = vrot.lane.b32.xlu1 %v9337_v13, %s9473_s27 }
 0x62b   :  { %9343 = vrot.lane.b32.xlu1 %v9332_v7, %s9501_s5 }
 0x64a   :  { %v5074_v60 = vpop.f32.mrb[12].mxu0 }
 0x64b   :  { %v5075_v22 = vadd.f32 %v5074_v60, %v4946_v62  ;;  %v5076_v15 = vpop.f32.mrb[13].mxu0 }
 0x64c   :  { %v5078_v26 = vpop.f32.mrb[14].mxu0  ;;  %v5077_v57 = vadd.f32 %v5076_v15, %v4946_v62 }
 0x64d   :  { %v5126_v16 = vmax.f32 %v5075_v22, 0.0  ;;  %v5079_v39 = vpop.f32.mrb[15].mxu0 }
 0x64e   :  { %v5127_v20 = vmax.f32 %v5077_v57, 0.0 }
 0x64f   :  { %v12872_v3 = vmul.f32 %v5126_v16, %v11824_v18 }
 0x650   :  { %v12883_v51 = vmul.f32 %v5127_v20, %v11856_v46 }
 0x651   :  { %v9347_v53 = vpack.i.bf16 %v12872_v3, %v12869_v27 }
 0x652   :  { %v9372_v38 = vpack.i.bf16 %v12883_v51, %v12872_v3 }
 0x653   :  { %9348 = vrot.lane.b32.xlu0 %v9347_v53, %s9473_s27  ;;  %9358 = vrot.lane.b32.xlu1 %v9347_v53, %s9501_s5 }
 0x657   :  { %9353 = vrot.lane.b32.xlu0 %v9337_v13, %s9501_s5  ;;  %9368 = vrot.lane.b32.xlu1 %v9367_v17, %s9473_s27 }
 0x65b   :  { %9363 = vrot.lane.b32.xlu0 %v9362_v37, %s9473_s27 }
 0x65f   :  { %9373 = vrot.lane.b32.xlu0 %v9372_v38, %s9473_s27 }
 0x661   :  { %v9334_v34 = vpop.permute.xlu1 %9333 }
 0x662   :  { %v9336_v23 = vunpack.i.h.bf16 %v9334_v34  ;;  %v9335_v5 = vunpack.i.l.bf16 %v9334_v34 }
 0x67b   :  { %v5115_v44 = vpop.f32.mrb[12].mxu1 }
 0x67c   :  { %v5117_v54 = vpop.f32.mrb[13].mxu1  ;;  %v5116_v63 = vadd.f32 %v5115_v44, %v4946_v62  ;;  %v5575_v44 = vpack.c.bf16 %v12872_v3, %v12872_v3 }
 0x67d   :  { %v5119_v24 = vpop.f32.mrb[14].mxu1  ;;  %v5118_v50 = vadd.f32 %v5117_v54, %v4946_v62  ;;  %v5183_v62 = vsel %vm98_vm0, %v9335_v5, %v9336_v23 }
 0x67e   :  { %v5120_v33 = vpop.f32.mrb[15].mxu1  ;;  %v5128_v9 = vmax.f32 %v5116_v63, 0.0  ;;  %v5200_v40 = vpack.c.bf16 %v5183_v62, %v12853_v30 }
 0x67f   :  { %v5129_v43 = vmax.f32 %v5118_v50, 0.0 }
 0x680   :  { %v12906_v58 = vmul.f32 %v5128_v9, %v11860_v6 }
 0x681   :  { %v12909_v61 = vmul.f32 %v5129_v43, %v11968_v11 }
 0x682   :  { %v9377_v38 = vpack.i.bf16 %v12906_v58, %v12883_v51 }
 0x683   :  { %v9387_v12 = vpack.i.bf16 %v12906_v58, %v12909_v61  ;;  %v9402_v62 = vpack.i.bf16 %v16074_v21, %v12909_v61 }
 0x699   :  { %v12891_v35 = vpop.permute.xlu1 %9338 }
 0x69a   :  { %v9341_v48 = vunpack.i.h.bf16 %v12891_v35  ;;  %v9340_v25 = vunpack.i.l.bf16 %v12891_v35 }
 0x69c   :  { %v5182_v56 = vsel %vm98_vm0, %v9341_v48, %v9335_v5  ;;  %v12899_v59 = vsel %vm98_vm0, %v9336_v23, %v9340_v25  ;;  %v9397_v48 = vpack.i.bf16 %v12869_v27, %v12853_v30 }
 0x69d   :  { %v5199_v19 = vpack.c.bf16 %v5182_v56, %v16074_v21  ;;  %v9344_v7 = vpop.permute.xlu1 %9343 }
 0x69e   :  { %v9346_v42 = vunpack.i.h.bf16 %v9344_v7  ;;  %v9345_v55 = vunpack.i.l.bf16 %v9344_v7 }
 0x69f   :  { %5217 = vrot.lane.b32.xlu0 %v5199_v19, %s9484_s25 }
 0x6a0   :  { %v5297_v15 = vsel %vm5295_vm8, %v9345_v55, %v9346_v42 }
 0x6a1   :  { %v5314_v39 = vpack.c.bf16 %v5297_v15, %v12853_v30 }
 0x6a3   :  { %5219 = vrot.lane.b32.xlu0 %v5200_v40, %s9484_s25 }
 0x6a7   :  { %9388 = vrot.lane.b32.xlu0 %v9387_v12, %s9473_s27 }
 0x6ab   :  { %5293 = vrot.lane.b32.xlu0 %v12909_v61, %s9501_s5 }
 0x6af   :  { %9393 = vrot.lane.b32.xlu0 %v9362_v37, %s9473_s27 }
 0x6b3   :  { %5407 = vrot.lane.b32.xlu0 %v12872_v3, %s9473_s27 }
 0x6b7   :  { %5591 = vrot.lane.b32.xlu0 %v5572_v14, %s16115_s15  ;;  %v5573_v14 = vpack.c.bf16 %v12862_v1, %v12862_v1 }
 0x6bb   :  { %5589 = vrot.lane.b32.xlu0 %v5571_v28, %s16115_s15  ;;  %v5201_v28 = vpack.c.bf16 %v12899_v59, %v12856_v0 }
 0x6c5   :  { %v12926_v32 = vpop.permute.xlu0 %9348  ;;  %v12938_v16 = vpop.permute.xlu1 %9358 }
 0x6c6   :  { %v9351_v31 = vunpack.i.h.bf16 %v12926_v32  ;;  %v9350_v49 = vunpack.i.l.bf16 %v12926_v32  ;;  %v9361_v20 = vunpack.i.h.bf16 %v12938_v16  ;;  %v9360_v17 = vunpack.i.l.bf16 %v12938_v16 }
 0x6c8   :  { %v5186_v26 = vsel %vm98_vm0, %v9350_v49, %v9351_v31  ;;  %v5300_v54 = vsel %vm5295_vm8, %v9360_v17, %v9361_v20 }
 0x6c9   :  { %v9354_v41 = vpop.permute.xlu0 %9353  ;;  %v5203_v57 = vpack.c.bf16 %v5186_v26, %v12869_v27  ;;  %v9369_v37 = vpop.permute.xlu1 %9368  ;;  %v5317_v63 = vpack.c.bf16 %v5300_v54, %v12869_v27 }
 0x6ca   :  { %v9356_v45 = vunpack.i.h.bf16 %v9354_v41  ;;  %v9355_v13 = vunpack.i.l.bf16 %v9354_v41  ;;  %v9370_v34 = vunpack.i.l.bf16 %v9369_v37  ;;  %v9371_v43 = vunpack.i.h.bf16 %v9369_v37 }
 0x6cc   :  { %v5296_v47 = vsel %vm5295_vm8, %v9356_v45, %v9345_v55  ;;  %v5298_v60 = vsel %vm5295_vm8, %v9346_v42, %v9355_v13  ;;  %v5185_v55 = vsel %vm98_vm0, %v9340_v25, %v9350_v49  ;;  %v5299_v45 = vsel %vm5295_vm8, %v9355_v13, %v9360_v17 }
 0x6cd   :  { %v5313_v52 = vpack.c.bf16 %v5296_v47, %v16074_v21  ;;  %v5315_v22 = vpack.c.bf16 %v5298_v60, %v12856_v0  ;;  %v9364_v53 = vpop.permute.xlu0 %9363  ;;  %v5202_v41 = vpack.c.bf16 %v5185_v55, %v12862_v1  ;;  %v5316_v59 = vpack.c.bf16 %v5299_v45, %v12862_v1 }
 0x6ce   :  { %v9366_v24 = vunpack.i.h.bf16 %v9364_v53  ;;  %v9365_v56 = vunpack.i.l.bf16 %v9364_v53  ;;  %v5574_v60 = vpack.c.bf16 %v12869_v27, %v12869_v27 }
 0x6cf   :  { %5331 = vrot.lane.b32.xlu1 %v5313_v52, %s9485_s26  ;;  %5335 = vrot.lane.b32.xlu0 %v5315_v22, %s9485_s26 }
 0x6d0   :  { %v5487_v50 = vsel %vm98_vm0, %v9366_v24, %v9370_v34  ;;  %v5485_v40 = vsel %vm98_vm0, %v9371_v43, %v9365_v56  ;;  %v5486_v7 = vsel %vm98_vm0, %v9365_v56, %v9366_v24 }
 0x6d1   :  { %v12955_v33 = vpop.permute.xlu0 %9373  ;;  %v5504_v5 = vpack.c.bf16 %v5487_v50, %v12862_v1  ;;  %v5502_v12 = vpack.c.bf16 %v5485_v40, %v12853_v30  ;;  %v5503_v42 = vpack.c.bf16 %v5486_v7, %v12856_v0 }
 0x6d2   :  { %v9375_v23 = vunpack.i.l.bf16 %v12955_v33  ;;  %v9376_v47 = vunpack.i.h.bf16 %v12955_v33 }
 0x6d3   :  { %5333 = vrot.lane.b32.xlu1 %v5314_v39, %s9485_s26  ;;  %5225 = vrot.lane.b32.xlu0 %v5203_v57, %s9484_s25 }
 0x6d4   :  { %v5488_v9 = vsel %vm98_vm0, %v9370_v34, %v9375_v23  ;;  %v5489_v35 = vsel %vm98_vm0, %v9375_v23, %v9376_v47 }
 0x6d5   :  { %v5505_v19 = vpack.c.bf16 %v5488_v9, %v12869_v27  ;;  %v5506_v25 = vpack.c.bf16 %v5489_v35, %v12872_v3 }
 0x6d7   :  { %9378 = vrot.lane.b32.xlu1 %v9377_v38, %s9473_s27  ;;  %5597 = vrot.lane.b32.xlu0 %v5575_v44, %s16115_s15 }
 0x6db   :  { %9383 = vrot.lane.b32.xlu1 %v9377_v38, %s9501_s5  ;;  %5339 = vrot.lane.b32.xlu0 %v5317_v63, %s9485_s26 }
 0x6df   :  { %9398 = vrot.lane.b32.xlu1 %v9397_v48, %s9473_s27  ;;  %5524 = vrot.lane.b32.xlu0 %v5504_v5, %s16111_s16 }
 0x6e3   :  { %9403 = vrot.lane.b32.xlu1 %v9402_v62, %s9473_s27  ;;  %5526 = vrot.lane.b32.xlu0 %v5505_v19, %s16111_s16 }
 0x6e7   :  { %5520 = vrot.lane.b32.xlu1 %v5502_v12, %s16111_s16  ;;  %9413 = vrot.lane.b32.xlu0 %v9402_v62, %s9473_s27 }
 0x6eb   :  { %5593 = vrot.lane.b32.xlu1 %v5573_v14, %s16115_s15 }
 0x6ef   :  { %5221 = vrot.lane.b32.xlu1 %v5201_v28, %s9484_s25 }
 0x6f3   :  { %5522 = vrot.lane.b32.xlu1 %v5503_v42, %s16111_s16 }
 0x6f7   :  { %5223 = vrot.lane.b32.xlu1 %v5202_v41, %s9484_s25 }
 0x6fb   :  { %5337 = vrot.lane.b32.xlu1 %v5316_v59, %s9485_s26 }
 0x6ff   :  { %5595 = vrot.lane.b32.xlu1 %v5574_v60, %s16115_s15 }
 0x703   :  { %5528 = vrot.lane.b32.xlu1 %v5506_v25, %s16111_s16 }
 0x707   :  { %9408 = vrot.lane.b32.xlu1 %v9377_v38, %s9473_s27 }
 0x711   :  { %v13004_v49 = vpop.permute.xlu0 %5217 }
 0x715   :  { %v5220_v13 = vpop.permute.xlu0 %5219 }
 0x719   :  { %v9389_v52 = vpop.permute.xlu0 %9388 }
 0x71a   :  { %v9390_v24 = vunpack.i.l.bf16 %v9389_v52 }
 0x71d   :  { %v5294_v22 = vpop.permute.xlu0 %5293 }
 0x71e   :  { %v5321_v19 = vpack.c.bf16 %v5294_v22, %v12909_v61 }
 0x721   :  { %v13006_v15 = vpop.permute.xlu0 %9393 }
 0x725   :  { %v13010_v39 = vpop.permute.xlu0 %5407 }
 0x729   :  { %v13014_v53 = vpop.permute.xlu0 %5591 }
 0x72d   :  { %v13022_v5 = vpop.permute.xlu0 %5589 }
 0x741   :  { %v13008_v26 = vpop.permute.xlu1 %5331  ;;  %v13034_v43 = vpop.permute.xlu0 %5335 }
 0x745   :  { %v13012_v57 = vpop.permute.xlu1 %5333  ;;  %v13044_v28 = vpop.permute.xlu0 %5225 }
 0x749   :  { %v9379_v17 = vpop.permute.xlu1 %9378  ;;  %v13055_v25 = vpop.permute.xlu0 %5597 }
 0x74a   :  { %v9381_v37 = vunpack.i.h.bf16 %v9379_v17  ;;  %v9380_v44 = vunpack.i.l.bf16 %v9379_v17 }
 0x74c   :  { %v5187_v38 = vsel %vm98_vm0, %v9351_v31, %v9380_v44  ;;  %v5188_v54 = vsel %vm98_vm0, %v9380_v44, %v9381_v37  ;;  %v5207_v31 = vpack.c.bf16 %v9390_v24, %v12909_v61  ;;  %v5189_v40 = vsel %vm98_vm0, %v9381_v37, %v9390_v24 }
 0x74d   :  { %v5204_v33 = vpack.c.bf16 %v5187_v38, %v12872_v3  ;;  %v5205_v34 = vpack.c.bf16 %v5188_v54, %v12883_v51  ;;  %v9384_v63 = vpop.permute.xlu1 %9383  ;;  %v5206_v7 = vpack.c.bf16 %v5189_v40, %v12906_v58  ;;  %v5576_v37 = vpack.c.bf16 %v12883_v51, %v12883_v51 }
 0x74e   :  { %v9386_v50 = vunpack.i.h.bf16 %v9384_v63  ;;  %v9385_v23 = vunpack.i.l.bf16 %v9384_v63  ;;  %v5235_v24 = vsel %vm16238_vm14, %v13004_v49, %v5220_v13  ;;  %v13076_v63 = vpop.permute.xlu0 %5339  ;;  %v5577_v49 = vpack.c.bf16 %v12906_v58, %v12906_v58  ;;  %vm16250_vm14 = vmmov %vm16243_vm2 }
 0x74f   :  { %5227 = vrot.lane.b32.xlu1 %v5204_v33, %s9484_s25  ;;  %5229 = vrot.lane.b32.xlu0 %v5205_v34, %s9484_s25 }
 0x750   :  { %v5301_v32 = vsel %vm5295_vm8, %v9361_v20, %v9385_v23  ;;  %v5302_v9 = vsel %vm5295_vm8, %v9385_v23, %v9386_v50  ;;  %v9391_v20 = vunpack.i.h.bf16 %v9389_v52  ;;  %v5303_v41 = vsel %vm5295_vm8, %v9386_v50, %v5294_v22  ;;  %vm16248_vm8 = vmmov %vm16241_vm1 }
 0x751   :  { %v5318_v48 = vpack.c.bf16 %v5301_v32, %v12872_v3  ;;  %v13031_v56 = vpop.permute.xlu1 %9398  ;;  %v5319_v16 = vpack.c.bf16 %v5302_v9, %v12883_v51  ;;  %v5320_v60 = vpack.c.bf16 %v5303_v41, %v12906_v58  ;;  %v9395_v22 = vunpack.i.l.bf16 %v13006_v15 }
 0x752   :  { %v5490_v55 = vsel %vm98_vm0, %v9376_v47, %v9391_v20  ;;  %v9396_v47 = vunpack.i.h.bf16 %v13006_v15  ;;  %v9400_v33 = vunpack.i.l.bf16 %v13031_v56  ;;  %v5350_v15 = vsel %vm16239_vm7, %v13012_v57, %v13034_v43  ;;  %vm16251_vm7 = vmmov %vm16243_vm2 }
 0x753   :  { %5341 = vrot.lane.b32.xlu1 %v5318_v48, %s9485_s26  ;;  %5233 = vrot.lane.b32.xlu0 %v5207_v31, %s9484_s25  ;;  %v5507_v59 = vpack.c.bf16 %v5490_v55, %v12883_v51  ;;  %v9401_v48 = vunpack.i.h.bf16 %v13031_v56  ;;  %v5672_v56 = vld [vmem:[%s15663_s7] sm:$0xff] }
 0x754   :  { %v5418_v34 = vsel %vm98_vm0, %v9395_v22, %v9396_v47  ;;  %v5417_v32 = vsel %vm98_vm0, %v9400_v33, %v9395_v22 }
 0x755   :  { %v9404_v62 = vpop.permute.xlu1 %9403  ;;  %v5434_v31 = vpack.c.bf16 %v5418_v34, %v12856_v0  ;;  %v5420_v40 = vsel %vm98_vm0, %v9401_v48, %v13010_v39 }
 0x756   :  { %v9406_v12 = vunpack.i.h.bf16 %v9404_v62  ;;  %v9405_v45 = vunpack.i.l.bf16 %v9404_v62  ;;  %v5525_v62 = vpop.permute.xlu0 %5524  ;;  %v5436_v41 = vpack.c.bf16 %v5420_v40, %v12869_v27  ;;  %v5880_v27 = vld [vmem:[%s15665_s9 + $0x18] sm:$0xff] }
 0x757   :  { %5347 = vrot.lane.b32.xlu1 %v5321_v19, %s9485_s26  ;;  %5343 = vrot.lane.b32.xlu0 %v5319_v16, %s9485_s26  ;;  %v5578_v19 = vpack.c.bf16 %v12909_v61, %v12909_v61  ;;  %v5433_v16 = vpack.c.bf16 %v5417_v32, %v12853_v30 }
 0x758   :  { %v5510_v14 = vpack.c.bf16 %v9406_v12, %v16074_v21  ;;  %v5491_v52 = vsel %vm98_vm0, %v9391_v20, %v9405_v45  ;;  %v5492_v44 = vsel %vm98_vm0, %v9405_v45, %v9406_v12  ;;  %v5877_v20 = vld [vmem:[%s15665_s9] sm:$0xff] }
 0x759   :  { %v5521_v42 = vpop.permute.xlu1 %5520  ;;  %v5508_v38 = vpack.c.bf16 %v5491_v52, %v12906_v58  ;;  %v5509_v50 = vpack.c.bf16 %v5492_v44, %v12909_v61  ;;  %v13133_v52 = vld [vmem:[%s15662_s6] sm:$0xf]  ;;  %v5883_v44 = vld [vmem:[%s15665_s9 + $0x30] sm:$0xff] }
 0x75b   :  { %5231 = vrot.lane.b32.xlu1 %v5206_v7, %s9484_s25  ;;  %5536 = vrot.lane.b32.xlu0 %v5510_v14, %s16111_s16  ;;  %v5419_v7 = vsel %vm98_vm0, %v9396_v47, %v9401_v48  ;;  %v5527_v47 = vpop.permute.xlu0 %5526 }
 0x75d   :  { %v13053_v35 = vpop.permute.xlu1 %5593 }
 0x75e   :  { %v5608_v55 = vsel %vm16245_vm6, %v13014_v53, %v13053_v35 }
 0x75f   :  { %5530 = vrot.lane.b32.xlu1 %v5507_v59, %s16111_s16  ;;  %5345 = vrot.lane.b32.xlu0 %v5320_v60, %s9485_s26  ;;  %v5607_v59 = vsel %vm16246_vm5, %v13022_v5, %v13014_v53  ;;  %v5435_v60 = vpack.c.bf16 %v5419_v7, %v12862_v1  ;;  %v5881_v1 = vld [vmem:[%s15665_s9 + $0x20] sm:$0xff]  ;;  %v5540_v5 = vsel %vm1825_vm10, %v5525_v62, %v5527_v47 }
 0x761   :  { %v5222_v17 = vpop.permute.xlu1 %5221 }
 0x762   :  { %v5236_v54 = vsel %vm16237_vm13, %v5220_v13, %v5222_v17  ;;  %v5349_v13 = vsel %vm16240_vm15, %v13008_v26, %v13012_v57  ;;  %vm16249_vm13 = vmmov %vm16241_vm1 }
 0x763   :  { %5681 = vmatprep.subr.bf16.mxu0 %v5236_v54  ;;  %5599 = vrot.lane.b32.xlu1 %v5576_v37, %s16115_s15  ;;  %v5884_v54 = vld [vmem:[%s15665_s9 + $0x38] sm:$0xff]  ;;  %vm16252_vm15 = vmmov %vm16241_vm1 }
 0x764   :  { %5532 = vrot.lane.b32.xlu0 %v5508_v38, %s16111_s16  ;;  %5682 = vmatpush1.bf16.msra.mxu0 %v5235_v24  ;;  %v9414_v24 = vpop.permute.xlu0 %9413 }
 0x765   :  { %v5523_v23 = vpop.permute.xlu1 %5522  ;;  %5683 = vmatprep.subr.bf16.mxu0 %v5350_v15 }
 0x766   :  { %v5539_v0 = vsel %vm1825_vm10, %v5523_v23, %v5525_v62  ;;  %v5538_v14 = vsel %vm1825_vm10, %v5521_v42, %v5523_v23  ;;  %v5879_v42 = vld [vmem:[%s15665_s9 + $0x10] sm:$0xff]  ;;  %v9415_v62 = vunpack.i.l.bf16 %v9414_v24 }
 0x767   :  { %5534 = vrot.lane.b32.xlu1 %v5509_v50, %s16111_s16 }
 0x768   :  { %5601 = vrot.lane.b32.xlu0 %v5577_v49, %s16115_s15  ;;  %5684 = vmatpush1.bf16.msra.mxu0 %v5349_v13 }
 0x769   :  { %v5224_v9 = vpop.permute.xlu1 %5223  ;;  %5685 = vmatprep.subr.bf16.mxu0 %v5434_v31 }
 0x76a   :  { %v5237_v26 = vsel %vm16241_vm1, %v5222_v17, %v5224_v9  ;;  %v5238_v57 = vsel %vm16242_vm11, %v5224_v9, %v13044_v28  ;;  %v5882_v17 = vld [vmem:[%s15665_s9 + $0x28] sm:$0xff]  ;;  %vm16253_vm11 = vmmov %vm16243_vm2 }
 0x76b   :  { %5603 = vrot.lane.b32.xlu1 %v5578_v19, %s16115_s15  ;;  %5722 = vmatprep.subr.bf16.mxu1 %v5238_v57  ;;  %v9416_v57 = vunpack.i.h.bf16 %v9414_v24 }
 0x76c   :  { %5605 = vrot.lane.b32.xlu0 %v16215_v4, %s16115_s15  ;;  %5686 = vmatpush1.bf16.msra.mxu0 %v5433_v16 }
 0x76d   :  { %5723 = vmatpush1.bf16.msra.mxu1 %v5237_v26  ;;  %v5338_v30 = vpop.permute.xlu1 %5337  ;;  %5687 = vmatprep.subr.bf16.mxu0 %v5539_v0 }
 0x76e   :  { %v5351_v4 = vsel %vm16243_vm2, %v13034_v43, %v5338_v30  ;;  %v5352_v12 = vsel %vm16244_vm12, %v5338_v30, %v13076_v63  ;;  %v5878_v43 = vld [vmem:[%s15665_s9 + $0x8] sm:$0xff] }
 0x76f   :  { %5675 = vperm.xlu1 %9060, %v5672_v56   ;;  %5724 = vmatprep.subr.bf16.mxu1 %v5352_v12 }
 0x770   :  { %5887 = vperm.xlu0 %9331, %v5877_v20   ;;  %5688 = vmatpush1.bf16.msra.mxu0 %v5538_v14 }
 0x771   :  { %5725 = vmatpush1.bf16.msra.mxu1 %v5351_v4  ;;  %v5596_v45 = vpop.permute.xlu1 %5595  ;;  %5689 = vmatprep.subr.bf16.mxu0 %v5608_v55 }
 0x772   :  { %5726 = vmatprep.subr.bf16.mxu1 %v5436_v41  ;;  %v5610_v37 = vsel %vm16235_vm3, %v5596_v45, %v13055_v25  ;;  %v5609_v38 = vsel %vm16247_vm4, %v13053_v35, %v5596_v45  ;;  %vm6619_vm4 = vcmask 1040384  }
 0x773   :  { %5892 = vperm.xlu1 %9060, %v5878_v43  }
 0x774   :  { %5897 = vperm.xlu0 %9331, %v5879_v42   ;;  %5690 = vmatpush1.bf16.msra.mxu0 %v5607_v59 }
 0x775   :  { %5727 = vmatpush1.bf16.msra.mxu1 %v5435_v60  ;;  %v13135_v22 = vpop.permute.xlu1 %5528 }
 0x776   :  { %v5541_v53 = vsel %vm1825_vm10, %v5527_v47, %v13135_v22 }
 0x777   :  { %5902 = vperm.xlu1 %9060, %v5880_v27   ;;  %8068 = vmatmul.mubr.msk.bf16.vlgmr.msra.gmra.mrb[16].mxu0 %vm4954_vm9, %v13133_v52 }
 0x778   :  { %5907 = vperm.xlu0 %9331, %v5881_v1   ;;  %5728 = vmatprep.subr.bf16.mxu1 %v5541_v53 }
 0x779   :  { %5729 = vmatpush1.bf16.msra.mxu1 %v5540_v5  ;;  %5795 = vmatprep.mubr.bf16.mxu0 %v16232_v36  ;;  %v9409_v33 = vpop.permute.xlu1 %9408 }
 0x77a   :  { %5730 = vmatprep.subr.bf16.mxu1 %v5610_v37  ;;  %v9411_v23 = vunpack.i.h.bf16 %v9409_v33  ;;  %v9410_v49 = vunpack.i.l.bf16 %v9409_v33 }
 0x77b   :  { %5912 = vperm.xlu1 %9060, %v5882_v17  }
 0x77c   :  { %5917 = vperm.xlu0 %9331, %v5883_v44   ;;  %v5422_v31 = vsel %vm98_vm0, %v9410_v49, %v9411_v23  ;;  %v5421_v16 = vsel %vm98_vm0, %v13010_v39, %v9410_v49  ;;  %v5424_v39 = vsel %vm98_vm0, %v9415_v62, %v9416_v57  ;;  %v5423_v14 = vsel %vm98_vm0, %v9411_v23, %v9415_v62  ;;  %vm16254_vm0 = vmmov %vm16235_vm3 }
 0x77d   :  { %5731 = vmatpush1.bf16.msra.mxu1 %v5609_v38  ;;  %v5438_v26 = vpack.c.bf16 %v5422_v31, %v12883_v51  ;;  %v5437_v30 = vpack.c.bf16 %v5421_v16, %v12872_v3  ;;  %v5440_v3 = vpack.c.bf16 %v5424_v39, %v12909_v61  ;;  %v5439_v55 = vpack.c.bf16 %v5423_v14, %v12906_v58  ;;  %vm16255_vm12 = vmmov %vm16254_vm0 }
 0x77e   :  { %vm16256_vm6 = vmmov %vm16254_vm0  ;;  %vm6473_vm3 = vcmask 523264  }
 0x77f   :  { %5922 = vperm.xlu1 %9060, %v5884_v54   ;;  %vm16257_vm5 = vmmov %vm16254_vm0 }
 0x780   :  { %8069 = vmatmul.mubr.msk.bf16.vlgmr.msra.gmra.mrb[16].mxu1 %vm4954_vm9, %v13133_v52 }
 0x781   :  { %5836 = vmatprep.mubr.bf16.mxu1 %v16232_v36 }
 0x7c1   :  { %v5228_v15 = vpop.permute.xlu1 %5227  ;;  %v5230_v34 = vpop.permute.xlu0 %5229 }
 0x7c2   :  { %v5239_v50 = vsel %vm16248_vm8, %v13044_v28, %v5228_v15  ;;  %v5240_v35 = vsel %vm16249_vm13, %v5228_v15, %v5230_v34 }
 0x7c3   :  { %5763 = vmatprep.subr.bf16.mxu0 %v5240_v35 }
 0x7c4   :  { %5764 = vmatpush1.bf16.msra.mxu0 %v5239_v50 }
 0x7c5   :  { %v5342_v13 = vpop.permute.xlu1 %5341  ;;  %v5234_v32 = vpop.permute.xlu0 %5233 }
 0x7c6   :  { %v5353_v28 = vsel %vm16251_vm7, %v13076_v63, %v5342_v13 }
 0x7c9   :  { %v5348_v48 = vpop.permute.xlu1 %5347  ;;  %v5344_v9 = vpop.permute.xlu0 %5343 }
 0x7ca   :  { %v5354_v19 = vsel %vm16250_vm14, %v5342_v13, %v5344_v9 }
 0x7cb   :  { %5765 = vmatprep.subr.bf16.mxu0 %v5354_v19 }
 0x7cc   :  { %5766 = vmatpush1.bf16.msra.mxu0 %v5353_v28 }
 0x7cd   :  { %v5232_v0 = vpop.permute.xlu1 %5231  ;;  %5767 = vmatprep.subr.bf16.mxu0 %v5438_v26  ;;  %v5537_v56 = vpop.permute.xlu0 %5536 }
 0x7ce   :  { %v5241_v20 = vsel %vm16252_vm15, %v5230_v34, %v5232_v0  ;;  %v5242_v40 = vsel %vm16241_vm1, %v5232_v0, %v5234_v32  ;;  %v13209_v32 = vld [vmem:[%s15664_s8] sm:$0xff]   ;;  %vm8034_vm15 = vcmask 24576  }
 0x7cf   :  { %5804 = vmatprep.subr.bf16.mxu1 %v5242_v40 }
 0x7d0   :  { %5768 = vmatpush1.bf16.msra.mxu0 %v5437_v30  ;;  %5805 = vmatpush1.bf16.msra.mxu1 %v5241_v20  ;;  %v9425_v30 = vld [vmem:[%s15664_s8 + $0x10] sm:$0xff]   ;;  %v9426_v20 = vld [vmem:[%s15664_s8 + $0x18] sm:$0xff]  }
 0x7d1   :  { %v5531_v63 = vpop.permute.xlu1 %5530  ;;  %v5346_v4 = vpop.permute.xlu0 %5345 }
 0x7d2   :  { %v5355_v51 = vsel %vm16253_vm11, %v5344_v9, %v5346_v4  ;;  %v5356_v12 = vsel %vm16243_vm2, %v5346_v4, %v5348_v48  ;;  %v5542_v45 = vsel %vm1825_vm10, %v13135_v22, %v5531_v63 }
 0x7d3   :  { %5806 = vmatprep.subr.bf16.mxu1 %v5356_v12 }
 0x7d4   :  { %5807 = vmatpush1.bf16.msra.mxu1 %v5355_v51 }
 0x7d5   :  { %v5600_v7 = vpop.permute.xlu1 %5599  ;;  %5808 = vmatprep.subr.bf16.mxu1 %v5440_v3 }
 0x7d6   :  { %v5533_v41 = vpop.permute.xlu0 %5532  ;;  %v5611_v58 = vsel %vm16255_vm12, %v13055_v25, %v5600_v7 }
 0x7d7   :  { %v5543_v43 = vsel %vm1825_vm10, %v5531_v63, %v5533_v41 }
 0x7d8   :  { %5769 = vmatprep.subr.bf16.mxu0 %v5543_v43  ;;  %5809 = vmatpush1.bf16.msra.mxu1 %v5439_v55 }
 0x7d9   :  { %5770 = vmatpush1.bf16.msra.mxu0 %v5542_v45  ;;  %v5535_v42 = vpop.permute.xlu1 %5534 }
 0x7da   :  { %v5544_v59 = vsel %vm1825_vm10, %v5533_v41, %v5535_v42  ;;  %v5602_v60 = vpop.permute.xlu0 %5601  ;;  %v5545_v61 = vsel %vm1825_vm10, %v5535_v42, %v5537_v56  ;;  %vm5958_vm10 = vcmask 1043456   ;;  %v9424_v56 = vld [vmem:[%s15664_s8 + $0x8] sm:$0xff]  }
 0x7db   :  { %v5612_v27 = vsel %vm16254_vm0, %v5600_v7, %v5602_v60  ;;  %5810 = vmatprep.subr.bf16.mxu1 %v5545_v61 }
 0x7dc   :  { %5771 = vmatprep.subr.bf16.mxu0 %v5612_v27  ;;  %5811 = vmatpush1.bf16.msra.mxu1 %v5544_v59 }
 0x7dd   :  { %5772 = vmatpush1.bf16.msra.mxu0 %v5611_v58  ;;  %v5604_v47 = vpop.permute.xlu1 %5603 }
 0x7de   :  { %v5613_v22 = vsel %vm16256_vm6, %v5602_v60, %v5604_v47  ;;  %v5606_v1 = vpop.permute.xlu0 %5605 }
 0x7df   :  { %v5614_v53 = vsel %vm16257_vm5, %v5604_v47, %v5606_v1 }
 0x7e0   :  { %8070 = vmatmul.mubr.msk.bf16.vlgmr.msra.gmra.mrb[20].mxu0 %vm4954_vm9, %v13133_v52  ;;  %5812 = vmatprep.subr.bf16.mxu1 %v5614_v53 }
 0x7e1   :  { %5813 = vmatpush1.bf16.msra.mxu1 %v5613_v22  ;;  %6015 = vmatprep.mubr.bf16.mxu0 %v16232_v36 }
 0x7e4   :  { %8071 = vmatmul.mubr.msk.bf16.vlgmr.msra.gmra.mrb[20].mxu1 %vm4954_vm9, %v13133_v52  ;;  %vm5945_vm9 = vcmask 64512  }
 0x7e5   :  { %6088 = vmatprep.mubr.bf16.mxu1 %v16232_v36 }
 0x7ee   :  { %v13197_v25 = vpop.permute.xlu1 %5675 }
 0x84a   :  { %v5715_v5 = vpop.f32.mrb[16].mxu0 }
 0x84b   :  { %v5716_v17 = vadd.f32 %v5715_v5, %v13197_v25  ;;  %v5717_v37 = vpop.f32.mrb[17].mxu0 }
 0x84c   :  { %v5718_v44 = vadd.f32 %v5717_v37, %v13197_v25  ;;  %v5719_v38 = vpop.f32.mrb[18].mxu0 }
 0x84d   :  { %v5845_v54 = vmax.f32 %v5716_v17, 0.0  ;;  %v5720_v24 = vpop.f32.mrb[19].mxu0 }
 0x84e   :  { %v5846_v33 = vmax.f32 %v5718_v44, 0.0  ;;  %v13276_v24 = vpop.permute.xlu1 %5892 }
 0x84f   :  { %v5853_v15 = vmul.f32 %v5845_v54, %v11768_v2 }
 0x850   :  { %v5854_v34 = vmul.f32 %v5846_v33, %v11771_v8 }
 0x851   :  { %v5869_v52 = vpack.c.bf16 %v5853_v15, %v5853_v15 }
 0x852   :  { %v5870_v50 = vpack.c.bf16 %v5854_v34, %v5854_v34 }
 0x853   :  { %v5756_v35 = vpop.f32.mrb[16].mxu1  ;;  %v5960_v23 = vsel %vm5958_vm10, %v5869_v52, 0 }
 0x854   :  { %v5757_v49 = vadd.f32 %v5756_v35, %v13197_v25  ;;  %v5758_v13 = vpop.f32.mrb[17].mxu1  ;;  %8076 = vmatprep.subr.msk.bf16.mxu0 %vm5958_vm10, %v5870_v50 }
 0x855   :  { %v5759_v31 = vadd.f32 %v5758_v13, %v13197_v25  ;;  %5984 = vmatpush1.bf16.msra.mxu0 %v5960_v23  ;;  %v5760_v48 = vpop.f32.mrb[18].mxu1  ;;  %v13284_v23 = vld [vmem:[%s15666_s10] sm:$0xff] }
 0x856   :  { %v5847_v9 = vmax.f32 %v5757_v49, 0.0  ;;  %v5761_v19 = vpop.f32.mrb[19].mxu1  ;;  %16258 = vst [vmem:[#allocation14_spill] sm:$0xff] %v13284_v23  ;;  %v8102_v49 = vld [vmem:[%s15666_s10 + $0x100] sm:$0xff]  ;;  %v13298_v48 = vld [vmem:[%s15666_s10 + $0x8] sm:$0xff] }
 0x857   :  { %v5848_v16 = vmax.f32 %v5759_v31, 0.0  ;;  %v8139_v13 = vld [vmem:[%s15666_s10 + $0x200] sm:$0xff]  ;;  %16259 = vst [vmem:[#allocation12_spill] sm:$0xff] %v13298_v48  ;;  %v8140_v19 = vld [vmem:[%s15666_s10 + $0x208] sm:$0xff] }
 0x858   :  { %v5855_v28 = vmul.f32 %v5847_v9, %v11779_v10  ;;  %8077 = vmatmul.mubr.msk.bf16.vlgmr.msra.gmra.mrb[24].mxu0 %vm5945_vm9, %v13209_v32  ;;  %v8103_v9 = vld [vmem:[%s15666_s10 + $0x108] sm:$0xff] }
 0x859   :  { %v5856_v26 = vmul.f32 %v5848_v16, %v11805_v29  ;;  %6025 = vmatprep.mubr.bf16.mxu0 %v16232_v36 }
 0x85a   :  { %v5871_v57 = vpack.c.bf16 %v5855_v28, %v5855_v28 }
 0x85b   :  { %v5872_v62 = vpack.c.bf16 %v5856_v26, %v5856_v26  ;;  %v13312_v26 = vld [vmem:[%s15666_s10 + $0x20] sm:$0xff] }
 0x85c   :  { %v5966_v0 = vsel %vm5958_vm10, %v5871_v57, 0  ;;  %16260 = vst [vmem:[#allocation10_spill] sm:$0xff] %v13312_v26  ;;  %v8106_v57 = vld [vmem:[%s15666_s10 + $0x120] sm:$0xff] }
 0x85d   :  { %8081 = vmatprep.subr.msk.bf16.mxu1 %vm5958_vm10, %v5872_v62  ;;  %v8143_v62 = vld [vmem:[%s15666_s10 + $0x220] sm:$0xff] }
 0x85e   :  { %6057 = vmatpush1.bf16.msra.mxu1 %v5966_v0 }
 0x860   :  { %8078 = vmatmul.mubr.msk.bf16.gmra.mrb[28].mxu0 %vm5945_vm9, %v9424_v56 }
 0x861   :  { %8082 = vmatmul.mubr.msk.bf16.vlgmr.msra.gmra.mrb[24].mxu1 %vm5945_vm9, %v13209_v32  ;;  %6035 = vmatprep.mubr.bf16.mxu0 %v16232_v36 }
 0x862   :  { %6098 = vmatprep.mubr.bf16.mxu1 %v16232_v36 }
 0x868   :  { %8079 = vmatmul.mubr.msk.bf16.gmra.mrb[32].mxu0 %vm5945_vm9, %v9425_v30 }
 0x869   :  { %8083 = vmatmul.mubr.msk.bf16.gmra.mrb[28].mxu1 %vm5945_vm9, %v9424_v56  ;;  %6045 = vmatprep.mubr.bf16.mxu0 %v16232_v36 }
 0x86a   :  { %6108 = vmatprep.mubr.bf16.mxu1 %v16232_v36 }
 0x870   :  { %8080 = vmatmul.mubr.msk.bf16.gmra.mrb[36].mxu0 %vm5945_vm9, %v9426_v20 }
 0x871   :  { %8084 = vmatmul.mubr.msk.bf16.gmra.mrb[32].mxu1 %vm5945_vm9, %v9425_v30  ;;  %6161 = vmatprep.mubr.bf16.mxu0 %v16232_v36 }
 0x872   :  { %6118 = vmatprep.mubr.bf16.mxu1 %v16232_v36 }
 0x879   :  { %8085 = vmatmul.mubr.msk.bf16.gmra.mrb[36].mxu1 %vm5945_vm9, %v9426_v20 }
 0x87a   :  { %6234 = vmatprep.mubr.bf16.mxu1 %v16232_v36 }
 0x8b3   :  { %v5797_v40 = vpop.f32.mrb[20].mxu0 }
 0x8b4   :  { %v5798_v39 = vadd.f32 %v5797_v40, %v13197_v25  ;;  %v5799_v63 = vpop.f32.mrb[21].mxu0  ;;  %v8107_v40 = vld [vmem:[%s15666_s10 + $0x128] sm:$0xff] }
 0x8b5   :  { %v5800_v4 = vadd.f32 %v5799_v63, %v13197_v25  ;;  %v5801_v51 = vpop.f32.mrb[22].mxu0 }
 0x8b6   :  { %v5849_v12 = vmax.f32 %v5798_v39, 0.0  ;;  %v5802_v14 = vpop.f32.mrb[23].mxu0 }
 0x8b7   :  { %v5850_v3 = vmax.f32 %v5800_v4, 0.0  ;;  %v5838_v7 = vpop.f32.mrb[20].mxu1  ;;  %v13343_v4 = vpop.permute.xlu1 %5902 }
 0x8b8   :  { %v5857_v55 = vmul.f32 %v5849_v12, %v11824_v18  ;;  %v5839_v41 = vadd.f32 %v5838_v7, %v13197_v25  ;;  %v5840_v43 = vpop.f32.mrb[21].mxu1  ;;  %16265 = vst [vmem:[#allocation17_spill] sm:$0xff] %v13343_v4 }
 0x8b9   :  { %v5858_v45 = vmul.f32 %v5850_v3, %v11856_v46  ;;  %v5841_v42 = vadd.f32 %v5840_v43, %v13197_v25  ;;  %v5842_v59 = vpop.f32.mrb[22].mxu1  ;;  %v13273_v25 = vpop.permute.xlu0 %5887 }
 0x8ba   :  { %v5873_v60 = vpack.c.bf16 %v5857_v55, %v5857_v55  ;;  %v5851_v61 = vmax.f32 %v5839_v41, 0.0  ;;  %v5843_v27 = vpop.f32.mrb[23].mxu1 }
 0x8bb   :  { %v5874_v58 = vpack.c.bf16 %v5858_v45, %v5858_v45  ;;  %v5852_v47 = vmax.f32 %v5841_v42, 0.0 }
 0x8bc   :  { %v5859_v22 = vmul.f32 %v5851_v61, %v11860_v6  ;;  %v5972_v1 = vsel %vm5958_vm10, %v5873_v60, 0 }
 0x8bd   :  { %v5860_v53 = vmul.f32 %v5852_v47, %v11968_v11  ;;  %8086 = vmatprep.subr.msk.bf16.mxu0 %vm5958_vm10, %v5874_v58  ;;  %v13320_v0 = vpop.permute.xlu0 %5897 }
 0x8be   :  { %v5875_v5 = vpack.c.bf16 %v5859_v22, %v5859_v22  ;;  %6130 = vmatpush1.bf16.msra.mxu0 %v5972_v1  ;;  %16261 = vst [vmem:[#allocation13_spill] sm:$0xff] %v13320_v0 }
 0x8bf   :  { %v5876_v17 = vpack.c.bf16 %v5860_v53, %v5860_v53 }
 0x8c0   :  { %v5978_v37 = vsel %vm5958_vm10, %v5875_v5, 0 }
 0x8c1   :  { %8087 = vmatmul.mubr.msk.bf16.vlgmr.msra.gmra.mrb[40].mxu0 %vm5945_vm9, %v13209_v32  ;;  %8091 = vmatprep.subr.msk.bf16.mxu1 %vm5958_vm10, %v5876_v17 }
 0x8c2   :  { %6203 = vmatpush1.bf16.msra.mxu1 %v5978_v37  ;;  %6171 = vmatprep.mubr.bf16.mxu0 %v16232_v36 }
 0x8c5   :  { %8092 = vmatmul.mubr.msk.bf16.vlgmr.msra.gmra.mrb[40].mxu1 %vm5945_vm9, %v13209_v32 }
 0x8c6   :  { %6244 = vmatprep.mubr.bf16.mxu1 %v16232_v36 }
 0x8c9   :  { %8088 = vmatmul.mubr.msk.bf16.gmra.mrb[44].mxu0 %vm5945_vm9, %v9424_v56 }
 0x8ca   :  { %6181 = vmatprep.mubr.bf16.mxu0 %v16232_v36 }
 0x8cd   :  { %8093 = vmatmul.mubr.msk.bf16.gmra.mrb[44].mxu1 %vm5945_vm9, %v9424_v56 }
 0x8ce   :  { %6254 = vmatprep.mubr.bf16.mxu1 %v16232_v36 }
 0x8d1   :  { %8089 = vmatmul.mubr.msk.bf16.gmra.mrb[48].mxu0 %vm5945_vm9, %v9425_v30 }
 0x8d2   :  { %6191 = vmatprep.mubr.bf16.mxu0 %v16232_v36 }
 0x8d5   :  { %8094 = vmatmul.mubr.msk.bf16.gmra.mrb[48].mxu1 %vm5945_vm9, %v9425_v30  ;;  %v13328_v30 = vld [vmem:[%s15666_s10 + $0x28] sm:$0xff] }
 0x8d6   :  { %6264 = vmatprep.mubr.bf16.mxu1 %v16232_v36  ;;  %16262 = vst [vmem:[#allocation15_spill] sm:$0xff] %v13328_v30 }
 0x8d9   :  { %8090 = vmatmul.mubr.msk.bf16.gmra.mrb[52].mxu0 %vm5945_vm9, %v9426_v20 }
 0x8da   :  { %6541 = vmatprep.mubr.f32.mxu0 %v16074_v21 }
 0x8dd   :  { %8095 = vmatmul.mubr.msk.bf16.gmra.mrb[52].mxu1 %vm5945_vm9, %v9426_v20 }
 0x8de   :  { %6612 = vmatprep.mubr.f32.mxu1 %v16074_v21 }
 0x92b   :  { %v6017_v44 = vpop.f32.mrb[24].mxu0 }
 0x92c   :  { %v6018_v38 = vadd.f32 %v6017_v44, %v13273_v25  ;;  %v6019_v54 = vpop.f32.mrb[25].mxu0 }
 0x92d   :  { %v6020_v33 = vadd.f32 %v6019_v54, %v13273_v25  ;;  %v6021_v15 = vpop.f32.mrb[26].mxu0 }
 0x92e   :  { %v6275_v36 = vmax.f32 %v6018_v38, 0.0  ;;  %v6022_v34 = vadd.f32 %v6021_v15, %v13276_v24  ;;  %v6023_v52 = vpop.f32.mrb[27].mxu0 }
 0x92f   :  { %v6276_v50 = vmax.f32 %v6020_v33, 0.0  ;;  %v6024_v35 = vadd.f32 %v6023_v52, %v13276_v24 }
 0x930   :  { %v13293_v32 = vmul.f32 %v6275_v36, %v11768_v2  ;;  %v6283_v31 = vmax.f32 %v6022_v34, 0.0 }
 0x931   :  { %v13307_v16 = vmul.f32 %v6276_v50, %v11771_v8  ;;  %v6284_v28 = vmax.f32 %v6024_v35, 0.0 }
 0x932   :  { %v13323_v56 = vmul.f32 %v6283_v31, %v11768_v2  ;;  %v13332_v20 = vmul.f32 %v13284_v23, %v13293_v32  ;;  %v13338_v39 = vmul.f32 %v8102_v49, %v13293_v32  ;;  %v13341_v63 = vmul.f32 %v8139_v13, %v13293_v32  ;;  %v13384_v49 = vld [vmem:[%s15666_s10 + $0x48] sm:$0xff]  ;;  %v13389_v13 = vld [vmem:[%s15666_s10 + $0x40] sm:$0xff] }
 0x933   :  { %v13346_v51 = vmul.f32 %v6284_v28, %v11771_v8  ;;  %v6027_v12 = vpop.f32.mrb[28].mxu0  ;;  %v6442_v14 = vmul.f32 %v13298_v48, %v13307_v16  ;;  %v13351_v3 = vmul.f32 %v8103_v9, %v13307_v16  ;;  %v13354_v7 = vmul.f32 %v8140_v19, %v13307_v16  ;;  %16271 = vst [vmem:[#allocation23_spill] sm:$0xff] %v13384_v49 }
 0x934   :  { %16263 = vst [vmem:[#allocation11_spill] sm:$0xff] %v13338_v39  ;;  %16264 = vst [vmem:[#allocation16_spill] sm:$0xff] %v13341_v63  ;;  %v6028_v55 = vadd.f32 %v6027_v12, %v13320_v0  ;;  %v6090_v41 = vpop.f32.mrb[24].mxu1  ;;  %v6029_v43 = vpop.f32.mrb[29].mxu0  ;;  %v6445_v45 = vmul.f32 %v13312_v26, %v13323_v56  ;;  %v13360_v42 = vmul.f32 %v8106_v57, %v13323_v56  ;;  %v13400_v57 = vld [vmem:[%s15666_s10 + $0x18] sm:$0xff] }
 0x935   :  { %16266 = vst [vmem:[#allocation18_spill] sm:$0xff] %v13351_v3  ;;  %16267 = vst [vmem:[#allocation19_spill] sm:$0xff] %v13354_v7  ;;  %v13363_v59 = vmul.f32 %v8143_v62, %v13323_v56  ;;  %v6091_v60 = vadd.f32 %v6090_v41, %v13273_v25  ;;  %v6030_v61 = vadd.f32 %v6029_v43, %v13320_v0  ;;  %v6092_v27 = vpop.f32.mrb[25].mxu1  ;;  %v6031_v58 = vpop.f32.mrb[30].mxu0  ;;  %v6421_v62 = vld [vmem:[%s15666_s10 + $0x60] sm:$0xff]  ;;  %v13416_v43 = vld [vmem:[%s15666_s10 + $0x68] sm:$0xff] }
 0x936   :  { %16268 = vst [vmem:[#allocation20_spill] sm:$0xff] %v13360_v42  ;;  %v6446_v47 = vmul.f32 %v13328_v30, %v13346_v51  ;;  %v13370_v22 = vmul.f32 %v8107_v40, %v13346_v51  ;;  %v6291_v1 = vmax.f32 %v6028_v55, 0.0  ;;  %v6093_v53 = vadd.f32 %v6092_v27, %v13273_v25  ;;  %v6094_v17 = vpop.f32.mrb[26].mxu1  ;;  %v6033_v37 = vpop.f32.mrb[31].mxu0  ;;  %16272 = vst [vmem:[#allocation24_spill] sm:$0xff] %v13389_v13  ;;  %v13721_v3 = vld [vmem:[%s15666_s10 + $0x130] sm:$0xff] }
 0x937   :  { %16269 = vst [vmem:[#allocation21_spill] sm:$0xff] %v13363_v59  ;;  %v6032_v5 = vadd.f32 %v6031_v58, %v13343_v4  ;;  %v8214_v44 = vpack.c.bf16 %v6445_v45, %v13332_v20  ;;  %v6277_v38 = vmax.f32 %v6091_v60, 0.0  ;;  %v6292_v54 = vmax.f32 %v6030_v61, 0.0  ;;  %v6096_v36 = vpop.f32.mrb[27].mxu1  ;;  %16273 = vst [vmem:[#allocation25_spill] sm:$0xff] %v13400_v57  ;;  %v13405_v20 = vpop.permute.xlu0 %5907  ;;  %v13421_v45 = vld [vmem:[%s15666_s10 + $0x10] sm:$0xff] }
 0x938   :  { %16270 = vst [vmem:[#allocation22_spill] sm:$0xff] %v13370_v22  ;;  %v6095_v33 = vadd.f32 %v6094_v17, %v13276_v24  ;;  %v6034_v15 = vadd.f32 %v6033_v37, %v13343_v4  ;;  %v13378_v34 = vmul.f32 %v6291_v1, %v11768_v2  ;;  %v6278_v52 = vmax.f32 %v6093_v53, 0.0  ;;  %16274 = vst [vmem:[#allocation26_spill] sm:$0xff] %v13405_v20  ;;  %v13423_v60 = vpop.permute.xlu1 %5912 }
 0x939   :  { %v6299_v50 = vmax.f32 %v6032_v5, 0.0  ;;  %v6097_v35 = vadd.f32 %v6096_v36, %v13276_v24  ;;  %v13392_v31 = vmul.f32 %v6277_v38, %v11779_v10  ;;  %v13395_v9 = vmul.f32 %v6292_v54, %v11771_v8  ;;  %16275 = vst [vmem:[#allocation27_spill] sm:$0xff] %v13416_v43  ;;  %16276 = vst [vmem:[#allocation28_spill] sm:$0xff] %v13421_v45 }
 0x93a   :  { %v6285_v19 = vmax.f32 %v6095_v33, 0.0  ;;  %v6300_v28 = vmax.f32 %v6034_v15, 0.0  ;;  %v13408_v40 = vmul.f32 %v6278_v52, %v11805_v29  ;;  %v8212_v41 = vpack.c.bf16 %v6446_v47, %v6442_v14  ;;  %16277 = vst [vmem:[#allocation29_spill] sm:$0xff] %v13423_v60  ;;  %v13436_v47 = vld [vmem:[%s15666_s10 + $0x38] sm:$0xff]  ;;  %16307 = vst [vmem:[#allocation59_spill] sm:$0xff] %v13721_v3 }
 0x93b   :  { %v13411_v12 = vmul.f32 %v6299_v50, %v11768_v2  ;;  %v6286_v55 = vmax.f32 %v6097_v35, 0.0  ;;  %v6037_v58 = vpop.f32.mrb[32].mxu0  ;;  %v6450_v14 = vmul.f32 %v13384_v49, %v13395_v9  ;;  %16278 = vst [vmem:[#allocation30_spill] sm:$0xff] %v13436_v47  ;;  %v6449_v1 = vmul.f32 %v13389_v13, %v13378_v34 }
 0x93c   :  { %v13426_v61 = vmul.f32 %v6285_v19, %v11779_v10  ;;  %v13429_v27 = vmul.f32 %v6300_v28, %v11771_v8  ;;  %8213 = vmatprep.subr.bf16.mxu0 %v8212_v41  ;;  %v6038_v5 = vadd.f32 %v6037_v58, %v13405_v20  ;;  %v6100_v17 = vpop.f32.mrb[28].mxu1  ;;  %v6039_v37 = vpop.f32.mrb[33].mxu0  ;;  %v6444_v38 = vmul.f32 %v13400_v57, %v13408_v40 }
 0x93d   :  { %v13441_v53 = vmul.f32 %v6286_v55, %v11805_v29  ;;  %v6453_v54 = vmul.f32 %v6421_v62, %v13411_v12  ;;  %8215 = vmatpush1.bf16.msra.mxu0 %v8214_v44  ;;  %v6101_v33 = vadd.f32 %v6100_v17, %v13320_v0  ;;  %v6040_v15 = vadd.f32 %v6039_v37, %v13405_v20  ;;  %v6102_v36 = vpop.f32.mrb[29].mxu1  ;;  %v6041_v52 = vpop.f32.mrb[34].mxu0 }
 0x93e   :  { %v6454_v50 = vmul.f32 %v13416_v43, %v13429_v27  ;;  %v6443_v35 = vmul.f32 %v13421_v45, %v13392_v31  ;;  %v6307_v19 = vmax.f32 %v6038_v5, 0.0  ;;  %v6103_v28 = vadd.f32 %v6102_v36, %v13320_v0  ;;  %v6104_v41 = vpop.f32.mrb[30].mxu1  ;;  %v6043_v62 = vpop.f32.mrb[35].mxu0 }
 0x93f   :  { %v6042_v55 = vadd.f32 %v6041_v52, %v13423_v60  ;;  %v6448_v44 = vmul.f32 %v13436_v47, %v13441_v53  ;;  %v6293_v58 = vmax.f32 %v6101_v33, 0.0  ;;  %v6308_v17 = vmax.f32 %v6040_v15, 0.0  ;;  %v6106_v43 = vpop.f32.mrb[31].mxu1 }
 0x940   :  { %v6105_v37 = vadd.f32 %v6104_v41, %v13343_v4  ;;  %v6044_v13 = vadd.f32 %v6043_v62, %v13423_v60  ;;  %v13460_v49 = vmul.f32 %v6307_v19, %v11768_v2  ;;  %v6294_v5 = vmax.f32 %v6103_v28, 0.0  ;;  %v13472_v41 = vld [vmem:[%s15666_s10 + $0x30] sm:$0xff]  ;;  %v13477_v19 = vld [vmem:[%s15666_s10 + $0x88] sm:$0xff]  ;;  %v13479_v28 = vpop.permute.xlu0 %5917 }
 0x941   :  { %v6315_v45 = vmax.f32 %v6042_v55, 0.0  ;;  %v6107_v36 = vadd.f32 %v6106_v43, %v13343_v4  ;;  %v13464_v52 = vmul.f32 %v6293_v58, %v11779_v10  ;;  %v13467_v57 = vmul.f32 %v6308_v17, %v11771_v8  ;;  %16279 = vst [vmem:[#allocation31_spill] sm:$0xff] %v13472_v41  ;;  %16280 = vst [vmem:[#allocation32_spill] sm:$0xff] %v13477_v19  ;;  %v13490_v58 = vld [vmem:[%s15666_s10 + $0xa8] sm:$0xff]  ;;  %v13492_v17 = vpop.permute.xlu1 %5922 }
 0x942   :  { %v6301_v33 = vmax.f32 %v6105_v37, 0.0  ;;  %v6316_v15 = vmax.f32 %v6044_v13, 0.0  ;;  %16281 = vst [vmem:[#allocation33_spill] sm:$0xff] %v13479_v28  ;;  %v13482_v43 = vmul.f32 %v6294_v5, %v11805_v29  ;;  %v8216_v13 = vpack.c.bf16 %v6454_v50, %v6450_v14  ;;  %16282 = vst [vmem:[#allocation34_spill] sm:$0xff] %v13490_v58 }
 0x943   :  { %v13485_v55 = vmul.f32 %v6315_v45, %v11768_v2  ;;  %v6302_v62 = vmax.f32 %v6107_v36, 0.0  ;;  %v8228_v5 = vpack.c.bf16 %v6448_v44, %v6444_v38  ;;  %v8218_v4 = vpack.c.bf16 %v6453_v54, %v6449_v1  ;;  %v6047_v30 = vpop.f32.mrb[36].mxu0 }
 0x944   :  { %v13495_v37 = vmul.f32 %v6301_v33, %v11779_v10  ;;  %v13498_v47 = vmul.f32 %v6316_v15, %v11771_v8  ;;  %8217 = vmatprep.subr.bf16.mxu0 %v8216_v13  ;;  %v6447_v14 = vmul.f32 %v13472_v41, %v13426_v61  ;;  %v6048_v50 = vadd.f32 %v6047_v30, %v13479_v28  ;;  %v6110_v36 = vpop.f32.mrb[32].mxu1  ;;  %v6049_v11 = vpop.f32.mrb[37].mxu0 }
 0x945   :  { %v13501_v45 = vmul.f32 %v6302_v62, %v11805_v29  ;;  %v6458_v33 = vmul.f32 %v13477_v19, %v13467_v57  ;;  %8229 = vmatprep.subr.bf16.mxu1 %v8228_v5  ;;  %8219 = vmatpush1.bf16.msra.mxu0 %v8218_v4  ;;  %v6111_v38 = vadd.f32 %v6110_v36, %v13405_v20  ;;  %v6112_v54 = vpop.f32.mrb[33].mxu1  ;;  %v6051_v44 = vpop.f32.mrb[38].mxu0 }
 0x946   :  { %v6050_v1 = vadd.f32 %v6049_v11, %v13479_v28  ;;  %v6462_v15 = vmul.f32 %v13490_v58, %v13498_v47  ;;  %v8230_v62 = vpack.c.bf16 %v6447_v14, %v6443_v35  ;;  %v6323_v13 = vmax.f32 %v6048_v50, 0.0  ;;  %v6114_v26 = vpop.f32.mrb[34].mxu1  ;;  %v6053_v0 = vpop.f32.mrb[39].mxu0  ;;  %v13523_v50 = vld [vmem:[%s15666_s10 + $0x58] sm:$0xff] }
 0x947   :  { %v6113_v30 = vadd.f32 %v6112_v54, %v13405_v20  ;;  %v6052_v41 = vadd.f32 %v6051_v44, %v13492_v17  ;;  %v6309_v19 = vmax.f32 %v6111_v38, 0.0  ;;  %v6115_v4 = vadd.f32 %v6114_v26, %v13423_v60  ;;  %v6116_v11 = vpop.f32.mrb[35].mxu1  ;;  %16283 = vst [vmem:[#allocation35_spill] sm:$0xff] %v13523_v50  ;;  %v13528_v26 = vld [vmem:[%s15666_s10 + $0x78] sm:$0xff]  ;;  %v13539_v54 = vld [vmem:[%s15666_s10 + $0x80] sm:$0xff] }
 0x948   :  { %v6324_v5 = vmax.f32 %v6050_v1, 0.0  ;;  %v6054_v36 = vadd.f32 %v6053_v0, %v13492_v17  ;;  %8231 = vmatpush1.bf16.msra.mxu1 %v8230_v62  ;;  %v13517_v6 = vmul.f32 %v6323_v13, %v11768_v2  ;;  %v6117_v14 = vadd.f32 %v6116_v11, %v13423_v60  ;;  %16284 = vst [vmem:[#allocation36_spill] sm:$0xff] %v13528_v26  ;;  %v13544_v44 = vld [vmem:[%s15666_s10 + $0xa0] sm:$0xff] }
 0x949   :  { %v6310_v58 = vmax.f32 %v6113_v30, 0.0  ;;  %v6331_v35 = vmax.f32 %v6052_v41, 0.0  ;;  %v13531_v0 = vmul.f32 %v6309_v19, %v11779_v10  ;;  %v6317_v1 = vmax.f32 %v6115_v4, 0.0  ;;  %16285 = vst [vmem:[#allocation37_spill] sm:$0xff] %v13539_v54  ;;  %16286 = vst [vmem:[#allocation38_spill] sm:$0xff] %v13544_v44  ;;  %v13549_v19 = vld [vmem:[%s15666_s10 + $0x50] sm:$0xff] }
 0x94a   :  { %v13534_v38 = vmul.f32 %v6324_v5, %v11771_v8  ;;  %v6332_v41 = vmax.f32 %v6054_v36, 0.0  ;;  %16287 = vst [vmem:[#allocation39_spill] sm:$0xff] %v13549_v19  ;;  %v6318_v30 = vmax.f32 %v6117_v14, 0.0  ;;  %v8220_v5 = vpack.c.bf16 %v6462_v15, %v6458_v33  ;;  %v13560_v4 = vld [vmem:[%s15666_s10 + $0x70] sm:$0xff]  ;;  %v13565_v36 = vld [vmem:[%s15666_s10 + $0xc8] sm:$0xff] }
 0x94b   :  { %v13552_v62 = vmul.f32 %v6310_v58, %v11805_v29  ;;  %v13555_v13 = vmul.f32 %v6331_v35, %v11768_v2  ;;  %16288 = vst [vmem:[#allocation40_spill] sm:$0xff] %v13560_v4  ;;  %16289 = vst [vmem:[#allocation41_spill] sm:$0xff] %v13565_v36  ;;  %v13568_v11 = vmul.f32 %v6317_v1, %v11779_v10  ;;  %v13580_v15 = vld [vmem:[%s15666_s10 + $0xe8] sm:$0xff]  ;;  %v13585_v35 = vld [vmem:[%s15666_s10 + $0x98] sm:$0xff] }
 0x94c   :  { %v13571_v58 = vmul.f32 %v6332_v41, %v11771_v8  ;;  %v6452_v2 = vmul.f32 %v13523_v50, %v13482_v43  ;;  %v6456_v33 = vmul.f32 %v13528_v26, %v13501_v45  ;;  %16290 = vst [vmem:[#allocation42_spill] sm:$0xff] %v13580_v15  ;;  %16291 = vst [vmem:[#allocation43_spill] sm:$0xff] %v13585_v35  ;;  %8221 = vmatprep.subr.bf16.mxu0 %v8220_v5  ;;  %v6120_v26 = vpop.f32.mrb[36].mxu1  ;;  %v13599_v50 = vld [vmem:[%s15666_s10 + $0xb8] sm:$0xff] }
 0x94d   :  { %v13588_v14 = vmul.f32 %v6318_v30, %v11805_v29  ;;  %v6457_v8 = vmul.f32 %v13539_v54, %v13460_v49  ;;  %v6461_v1 = vmul.f32 %v13544_v44, %v13485_v55  ;;  %v6451_v41 = vmul.f32 %v13549_v19, %v13464_v52  ;;  %16292 = vst [vmem:[#allocation44_spill] sm:$0xff] %v13599_v50  ;;  %v6122_v20 = vpop.f32.mrb[37].mxu1  ;;  %v13609_v44 = vld [vmem:[%s15666_s10 + $0xc0] sm:$0xff] }
 0x94e   :  { %v8232_v60 = vpack.c.bf16 %v6456_v33, %v6452_v2  ;;  %v6455_v30 = vmul.f32 %v13560_v4, %v13495_v37  ;;  %v6121_v5 = vadd.f32 %v6120_v26, %v13479_v28  ;;  %v6466_v54 = vmul.f32 %v13565_v36, %v13534_v38  ;;  %16293 = vst [vmem:[#allocation45_spill] sm:$0xff] %v13609_v44  ;;  %v6124_v23 = vpop.f32.mrb[38].mxu1  ;;  %v13619_v33 = vld [vmem:[%s15666_s10 + $0xe0] sm:$0xff] }
 0x94f   :  { %v8222_v19 = vpack.c.bf16 %v6461_v1, %v6457_v8  ;;  %v6123_v48 = vadd.f32 %v6122_v20, %v13479_v28  ;;  %v6470_v2 = vmul.f32 %v13580_v15, %v13571_v58  ;;  %v6460_v26 = vmul.f32 %v13585_v35, %v13552_v62  ;;  %16294 = vst [vmem:[#allocation46_spill] sm:$0xff] %v13619_v33  ;;  %v6126_v8 = vpop.f32.mrb[39].mxu1  ;;  %v13627_v1 = vld [vmem:[%s15666_s10 + $0x90] sm:$0xff] }
 0x950   :  { %8233 = vmatprep.subr.bf16.mxu1 %v8232_v60  ;;  %v8234_v36 = vpack.c.bf16 %v6455_v30, %v6451_v41  ;;  %v6325_v4 = vmax.f32 %v6121_v5, 0.0  ;;  %v6125_v46 = vadd.f32 %v6124_v23, %v13492_v17  ;;  %v6464_v20 = vmul.f32 %v13599_v50, %v13588_v14  ;;  %16295 = vst [vmem:[#allocation47_spill] sm:$0xff] %v13627_v1  ;;  %v13632_v15 = vld [vmem:[%s15666_s10 + $0xb0] sm:$0xff] }
 0x951   :  { %16296 = vst [vmem:[#allocation48_spill] sm:$0xff] %v13632_v15  ;;  %8223 = vmatpush1.bf16.msra.mxu0 %v8222_v19  ;;  %v6326_v60 = vmax.f32 %v6123_v48, 0.0  ;;  %v6127_v41 = vadd.f32 %v6126_v8, %v13492_v17  ;;  %v8224_v30 = vpack.c.bf16 %v6470_v2, %v6466_v54  ;;  %v6465_v23 = vmul.f32 %v13609_v44, %v13517_v6  ;;  %v13640_v5 = vld [vmem:[%s15666_s10 + $0xd0] sm:$0xff]  ;;  %v13650_v54 = vld [vmem:[%s15666_s10 + $0xd8] sm:$0xff] }
 0x952   :  { %16297 = vst [vmem:[#allocation49_spill] sm:$0xff] %v13640_v5  ;;  %8235 = vmatpush1.bf16.msra.mxu1 %v8234_v36  ;;  %v13643_v50 = vmul.f32 %v6325_v4, %v11779_v10  ;;  %v6333_v35 = vmax.f32 %v6125_v46, 0.0  ;;  %v8236_v28 = vpack.c.bf16 %v6464_v20, %v6460_v26  ;;  %v6469_v48 = vmul.f32 %v13619_v33, %v13555_v13  ;;  %v13655_v19 = vld [vmem:[%s15666_s10 + $0xf8] sm:$0xff]  ;;  %v13660_v4 = vld [vmem:[%s15666_s10 + $0x148] sm:$0xff]  ;;  %v13672_v8 = vld [vmem:[%s15666_s10 + $0xf0] sm:$0xff] }
 0x953   :  { %16298 = vst [vmem:[#allocation50_spill] sm:$0xff] %v13655_v19  ;;  %16299 = vst [vmem:[#allocation51_spill] sm:$0xff] %v13660_v4  ;;  %v13663_v46 = vmul.f32 %v6326_v60, %v11805_v29  ;;  %v6334_v36 = vmax.f32 %v6127_v41, 0.0  ;;  %8225 = vmatprep.subr.bf16.mxu0 %v8224_v30  ;;  %v6459_v2 = vmul.f32 %v13627_v1, %v13531_v0  ;;  %v13677_v20 = vld [vmem:[%s15666_s10 + $0x168] sm:$0xff]  ;;  %v13682_v60 = vld [vmem:[%s15666_s10 + $0x118] sm:$0xff] }
 0x954   :  { %v6463_v26 = vmul.f32 %v13632_v15, %v13568_v11  ;;  %16300 = vst [vmem:[#allocation52_spill] sm:$0xff] %v13672_v8  ;;  %16301 = vst [vmem:[#allocation53_spill] sm:$0xff] %v13677_v20  ;;  %v13685_v41 = vmul.f32 %v6333_v35, %v11779_v10  ;;  %8237 = vmatprep.subr.bf16.mxu1 %v8236_v28  ;;  %v8226_v30 = vpack.c.bf16 %v6469_v48, %v6465_v23  ;;  %v13694_v15 = vld [vmem:[%s15666_s10 + $0x138] sm:$0xff]  ;;  %v13699_v1 = vld [vmem:[%s15666_s10 + $0x140] sm:$0xff] }
 0x955   :  { %16302 = vst [vmem:[#allocation54_spill] sm:$0xff] %v13682_v60  ;;  %v6467_v33 = vmul.f32 %v13640_v5, %v13643_v50  ;;  %16303 = vst [vmem:[#allocation55_spill] sm:$0xff] %v13694_v15  ;;  %v13704_v10 = vld [vmem:[%s15666_s10 + $0x160] sm:$0xff]  ;;  %v13707_v28 = vmul.f32 %v6334_v36, %v11805_v29  ;;  %v6468_v23 = vmul.f32 %v13650_v54, %v13663_v46  ;;  %v13716_v44 = vld [vmem:[%s15666_s10 + $0x110] sm:$0xff] }
 0x956   :  { %16304 = vst [vmem:[#allocation56_spill] sm:$0xff] %v13699_v1  ;;  %16305 = vst [vmem:[#allocation57_spill] sm:$0xff] %v13704_v10  ;;  %v8238_v35 = vpack.c.bf16 %v6463_v26, %v6459_v2  ;;  %8227 = vmatpush1.bf16.msra.mxu0 %v8226_v30  ;;  %v6471_v29 = vmul.f32 %v13672_v8, %v13685_v41  ;;  %v13727_v36 = vmul.f32 %v13660_v4, %v13395_v9  ;;  %v13740_v48 = vld [vmem:[%s15666_s10 + $0x188] sm:$0xff]  ;;  %v13745_v30 = vld [vmem:[%s15666_s10 + $0x180] sm:$0xff] }
 0x957   :  { %16306 = vst [vmem:[#allocation58_spill] sm:$0xff] %v13716_v44  ;;  %v13731_v2 = vmul.f32 %v13677_v20, %v13429_v27  ;;  %v13735_v26 = vmul.f32 %v13682_v60, %v13408_v40  ;;  %16311 = vst [vmem:[#allocation63_spill] sm:$0xff] %v13745_v30  ;;  %v6472_v39 = vmul.f32 %v13655_v19, %v13707_v28  ;;  %v13764_v20 = vld [vmem:[%s15666_s10 + $0x1a8] sm:$0xff]  ;;  %v13789_v5 = vld [vmem:[%s15666_s10 + $0x1a0] sm:$0xff] }
 0x958   :  { %16308 = vst [vmem:[#allocation60_spill] sm:$0xff] %v13727_v36  ;;  %8239 = vmatpush1.bf16.msra.mxu1 %v8238_v35  ;;  %v13751_v42 = vmul.f32 %v13694_v15, %v13441_v53  ;;  %v13755_v60 = vmul.f32 %v13699_v1, %v13378_v34  ;;  %v13759_v22 = vmul.f32 %v13704_v10, %v13411_v12  ;;  %16314 = vst [vmem:[#allocation66_spill] sm:$0xff] %v13764_v20  ;;  %v13769_v35 = vld [vmem:[%s15666_s10 + $0x158] sm:$0xff]  ;;  %v15834_v36 = vmov 1.0   ;;  %v13814_v19 = vld [vmem:[%s15666_s10 + $0x1c8] sm:$0xff] }
 0x959   :  { %16309 = vst [vmem:[#allocation61_spill] sm:$0xff] %v13731_v2  ;;  %16310 = vst [vmem:[#allocation62_spill] sm:$0xff] %v13735_v26  ;;  %v13774_v15 = vld [vmem:[%s15666_s10 + $0x178] sm:$0xff]  ;;  %v8242_v1 = vpack.c.bf16 %v6471_v29, %v6467_v33  ;;  %v13780_v4 = vmul.f32 %v13716_v44, %v13392_v31  ;;  %v13784_v8 = vmul.f32 %v13721_v3, %v13426_v61  ;;  %v13794_v33 = vld [vmem:[%s15666_s10 + $0x150] sm:$0xff]  ;;  %8097 = vmatmul.mubr.msk.f32.vlgmr.msra.gmra.mrb[56].mxu0 %vm6473_vm3, %v15834_v36 }
 0x95a   :  { %16312 = vst [vmem:[#allocation64_spill] sm:$0xff] %v13755_v60  ;;  %16313 = vst [vmem:[#allocation65_spill] sm:$0xff] %v13759_v22  ;;  %v13799_v29 = vld [vmem:[%s15666_s10 + $0x170] sm:$0xff]  ;;  %v8240_v10 = vpack.c.bf16 %v6472_v39, %v6468_v23  ;;  %v13809_v44 = vmul.f32 %v13740_v48, %v13467_v57  ;;  %v13819_v39 = vld [vmem:[%s15666_s10 + $0x1e8] sm:$0xff]  ;;  %6727 = vmatprep.mubr.f32.mxu0 %v16074_v21  ;;  %v13826_v3 = vmul.f32 %v13764_v20, %v13498_v47 }
 0x95b   :  { %16315 = vst [vmem:[#allocation67_spill] sm:$0xff] %v13769_v35  ;;  %16316 = vst [vmem:[#allocation68_spill] sm:$0xff] %v13774_v15  ;;  %v13830_v2 = vmul.f32 %v13769_v35, %v13482_v43  ;;  %v13834_v36 = vmul.f32 %v13774_v15, %v13501_v45  ;;  %v13839_v60 = vld [vmem:[%s15666_s10 + $0x198] sm:$0xff]  ;;  %v13848_v22 = vmul.f32 %v13745_v30, %v13460_v49  ;;  %v13870_v30 = vld [vmem:[%s15666_s10 + $0x1e0] sm:$0xff] }
 0x95c   :  { %16317 = vst [vmem:[#allocation69_spill] sm:$0xff] %v13780_v4  ;;  %16318 = vst [vmem:[#allocation70_spill] sm:$0xff] %v13784_v8  ;;  %v13844_v23 = vld [vmem:[%s15666_s10 + $0x1b8] sm:$0xff]  ;;  %8241 = vmatprep.subr.bf16.mxu1 %v8240_v10  ;;  %v13852_v4 = vmul.f32 %v13789_v5, %v13485_v55  ;;  %v13856_v8 = vmul.f32 %v13794_v33, %v13464_v52  ;;  %v13860_v15 = vmul.f32 %v13799_v29, %v13495_v37  ;;  %v13865_v10 = vld [vmem:[%s15666_s10 + $0x1c0] sm:$0xff] }
 0x95d   :  { %16319 = vst [vmem:[#allocation71_spill] sm:$0xff] %v13789_v5  ;;  %16320 = vst [vmem:[#allocation72_spill] sm:$0xff] %v13794_v33  ;;  %v13875_v5 = vld [vmem:[%s15666_s10 + $0x190] sm:$0xff]  ;;  %8243 = vmatpush1.bf16.msra.mxu1 %v8242_v1  ;;  %v13883_v35 = vmul.f32 %v13814_v19, %v13534_v38  ;;  %v13887_v20 = vmul.f32 %v13819_v39, %v13571_v58  ;;  %v13897_v1 = vld [vmem:[%s15666_s10 + $0x1d8] sm:$0xff] }
 0x95e   :  { %16321 = vst [vmem:[#allocation73_spill] sm:$0xff] %v13799_v29  ;;  %16322 = vst [vmem:[#allocation74_spill] sm:$0xff] %v13809_v44  ;;  %v13892_v26 = vld [vmem:[%s15666_s10 + $0x1b0] sm:$0xff]  ;;  %v13902_v29 = vld [vmem:[%s15666_s10 + $0x1f8] sm:$0xff] }
 0x95f   :  { %16323 = vst [vmem:[#allocation75_spill] sm:$0xff] %v13814_v19  ;;  %16324 = vst [vmem:[#allocation76_spill] sm:$0xff] %v13819_v39  ;;  %v13924_v33 = vld [vmem:[%s15666_s10 + $0x1f0] sm:$0xff]  ;;  %v13929_v44 = vld [vmem:[%s15666_s10 + $0x228] sm:$0xff] }
 0x960   :  { %16325 = vst [vmem:[#allocation77_spill] sm:$0xff] %v13826_v3  ;;  %16326 = vst [vmem:[#allocation78_spill] sm:$0xff] %v13830_v2  ;;  %v13910_v3 = vmul.f32 %v13839_v60, %v13552_v62  ;;  %v13914_v2 = vmul.f32 %v13844_v23, %v13588_v14  ;;  %v14024_v39 = vld [vmem:[%s15666_s10 + $0x230] sm:$0xff]  ;;  %v14029_v19 = vld [vmem:[%s15666_s10 + $0x288] sm:$0xff] }
 0x961   :  { %16327 = vst [vmem:[#allocation79_spill] sm:$0xff] %v13834_v36  ;;  %16328 = vst [vmem:[#allocation80_spill] sm:$0xff] %v13839_v60  ;;  %v13919_v36 = vld [vmem:[%s15666_s10 + $0x1d0] sm:$0xff]  ;;  %v16350_v60 = vmov 1.0  }
 0x962   :  { %16329 = vst [vmem:[#allocation81_spill] sm:$0xff] %v13844_v23  ;;  %16330 = vst [vmem:[#allocation82_spill] sm:$0xff] %v13848_v22  ;;  %v13948_v23 = vld [vmem:[%s15666_s10 + $0x248] sm:$0xff]  ;;  %8098 = vmatmul.mubr.msk.f32.vlgmr.msra.gmra.mrb[56].mxu1 %vm6473_vm3, %v16350_v60  ;;  %v13974_v22 = vld [vmem:[%s15666_s10 + $0x218] sm:$0xff] }
 0x963   :  { %16331 = vst [vmem:[#allocation83_spill] sm:$0xff] %v13852_v4  ;;  %16332 = vst [vmem:[#allocation84_spill] sm:$0xff] %v13856_v8  ;;  %v13935_v4 = vmul.f32 %v13865_v10, %v13517_v6  ;;  %v13939_v8 = vmul.f32 %v13870_v30, %v13555_v13  ;;  %6798 = vmatprep.mubr.f32.mxu1 %v16074_v21  ;;  %v14046_v59 = vmul.f32 %v13974_v22, %v13408_v40 }
 0x964   :  { %16333 = vst [vmem:[#allocation85_spill] sm:$0xff] %v13860_v15  ;;  %16334 = vst [vmem:[#allocation86_spill] sm:$0xff] %v13865_v10  ;;  %v13943_v15 = vmul.f32 %v13875_v5, %v13531_v0  ;;  %v13999_v10 = vld [vmem:[%s15666_s10 + $0x238] sm:$0xff] }
 0x965   :  { %16335 = vst [vmem:[#allocation87_spill] sm:$0xff] %v13870_v30  ;;  %16336 = vst [vmem:[#allocation88_spill] sm:$0xff] %v13875_v5  ;;  %v13964_v5 = vmul.f32 %v13902_v29, %v13707_v28  ;;  %v13969_v30 = vld [vmem:[%s15666_s10 + $0x268] sm:$0xff] }
 0x966   :  { %16337 = vst [vmem:[#allocation89_spill] sm:$0xff] %v13883_v35  ;;  %16338 = vst [vmem:[#allocation90_spill] sm:$0xff] %v13887_v20  ;;  %v13956_v35 = vmul.f32 %v13892_v26, %v13568_v11  ;;  %v13960_v20 = vmul.f32 %v13897_v1, %v13663_v46  ;;  %v14042_v63 = vmul.f32 %v13969_v30, %v13429_v27 }
 0x967   :  { %16339 = vst [vmem:[#allocation91_spill] sm:$0xff] %v13892_v26  ;;  %16340 = vst [vmem:[#allocation92_spill] sm:$0xff] %v13897_v1  ;;  %v13990_v1 = vmul.f32 %v13924_v33, %v13685_v41  ;;  %v13994_v26 = vmul.f32 %v13929_v44, %v13346_v51 }
 0x968   :  { %16341 = vst [vmem:[#allocation93_spill] sm:$0xff] %v13902_v29  ;;  %16342 = vst [vmem:[#allocation94_spill] sm:$0xff] %v13910_v3  ;;  %v13979_v3 = vld [vmem:[%s15666_s10 + $0x240] sm:$0xff]  ;;  %v13986_v29 = vmul.f32 %v13919_v36, %v13643_v50 }
 0x969   :  { %16343 = vst [vmem:[#allocation95_spill] sm:$0xff] %v13914_v2  ;;  %16344 = vst [vmem:[#allocation96_spill] sm:$0xff] %v13919_v36  ;;  %v14004_v2 = vld [vmem:[%s15666_s10 + $0x260] sm:$0xff]  ;;  %v14019_v36 = vmul.f32 %v13948_v23, %v13395_v9  ;;  %v14064_v7 = vmul.f32 %v13979_v3, %v13378_v34 }
 0x96a   :  { %16345 = vst [vmem:[#allocation97_spill] sm:$0xff] %v13924_v33  ;;  %16346 = vst [vmem:[#allocation98_spill] sm:$0xff] %v13929_v44  ;;  %v14034_v44 = vld [vmem:[%s15666_s10 + $0x2a8] sm:$0xff]  ;;  %v14056_v33 = vld [vmem:[%s15666_s10 + $0x278] sm:$0xff] }
 0x96b   :  { %16347 = vst [vmem:[#allocation99_spill] sm:$0xff] %v13935_v4  ;;  %16348 = vst [vmem:[#allocation100_spill] sm:$0xff] %v13939_v8  ;;  %v14009_v4 = vld [vmem:[%s15666_s10 + $0x210] sm:$0xff]  ;;  %v14060_v8 = vmul.f32 %v13999_v10, %v13441_v53 }
 0x96c   :  { %16349 = vst [vmem:[#allocation101_spill] sm:$0xff] %v13943_v15  ;;  %16351 = vst [vmem:[#allocation102_spill] sm:$0xff] %v13956_v35  ;;  %v14096_v15 = vmul.f32 %v14034_v44, %v13498_v47  ;;  %v14101_v35 = vld [vmem:[%s15666_s10 + $0x250] sm:$0xff] }
 0x96d   :  { %16352 = vst [vmem:[#allocation103_spill] sm:$0xff] %v13960_v20  ;;  %16353 = vst [vmem:[#allocation104_spill] sm:$0xff] %v13964_v5  ;;  %v14051_v20 = vld [vmem:[%s15666_s10 + $0x258] sm:$0xff]  ;;  %v14082_v5 = vld [vmem:[%s15666_s10 + $0x2a0] sm:$0xff] }
 0x96e   :  { %16354 = vst [vmem:[#allocation105_spill] sm:$0xff] %v13979_v3  ;;  %16355 = vst [vmem:[#allocation106_spill] sm:$0xff] %v13986_v29  ;;  %v14072_v29 = vmul.f32 %v14009_v4, %v13392_v31  ;;  %v14106_v3 = vld [vmem:[%s15666_s10 + $0x270] sm:$0xff] }
 0x96f   :  { %16356 = vst [vmem:[#allocation107_spill] sm:$0xff] %v13990_v1  ;;  %16357 = vst [vmem:[#allocation108_spill] sm:$0xff] %v13994_v26  ;;  %v14068_v26 = vmul.f32 %v14004_v2, %v13411_v12  ;;  %v14077_v1 = vld [vmem:[%s15666_s10 + $0x280] sm:$0xff] }
 0x970   :  { %16358 = vst [vmem:[#allocation109_spill] sm:$0xff] %v13999_v10  ;;  %16359 = vst [vmem:[#allocation110_spill] sm:$0xff] %v14004_v2  ;;  %v14088_v2 = vmul.f32 %v14024_v39, %v13426_v61  ;;  %v14128_v10 = vld [vmem:[%s15666_s10 + $0x2e8] sm:$0xff] }
 0x971   :  { %16360 = vst [vmem:[#allocation111_spill] sm:$0xff] %v14009_v4  ;;  %16361 = vst [vmem:[#allocation112_spill] sm:$0xff] %v14019_v36  ;;  %v14092_v4 = vmul.f32 %v14029_v19, %v13467_v57  ;;  %v14111_v36 = vld [vmem:[%s15666_s10 + $0x2c8] sm:$0xff] }
 0x972   :  { %16362 = vst [vmem:[#allocation113_spill] sm:$0xff] %v14024_v39  ;;  %16363 = vst [vmem:[#allocation114_spill] sm:$0xff] %v14029_v19  ;;  %v14119_v19 = vmul.f32 %v14051_v20, %v13482_v43  ;;  %v14123_v39 = vmul.f32 %v14056_v33, %v13501_v45 }
 0x973   :  { %16364 = vst [vmem:[#allocation115_spill] sm:$0xff] %v14034_v44  ;;  %16365 = vst [vmem:[#allocation116_spill] sm:$0xff] %v14042_v63  ;;  %v14133_v63 = vld [vmem:[%s15666_s10 + $0x298] sm:$0xff] }
 0x974   :  { %16366 = vst [vmem:[#allocation117_spill] sm:$0xff] %v14046_v59  ;;  %16367 = vst [vmem:[#allocation118_spill] sm:$0xff] %v14051_v20  ;;  %v14138_v44 = vld [vmem:[%s15666_s10 + $0x2b8] sm:$0xff]  ;;  %v14146_v59 = vmul.f32 %v14077_v1, %v13460_v49  ;;  %v14264_v20 = vld [vmem:[%s15666_s10 + $0x320] sm:$0xff] }
 0x975   :  { %16368 = vst [vmem:[#allocation119_spill] sm:$0xff] %v14056_v33  ;;  %16369 = vst [vmem:[#allocation120_spill] sm:$0xff] %v14060_v8  ;;  %v14150_v8 = vmul.f32 %v14082_v5, %v13485_v55  ;;  %v14155_v33 = vld [vmem:[%s15666_s10 + $0x2c0] sm:$0xff] }
 0x976   :  { %16370 = vst [vmem:[#allocation121_spill] sm:$0xff] %v14064_v7  ;;  %16371 = vst [vmem:[#allocation122_spill] sm:$0xff] %v14068_v26  ;;  %v14160_v7 = vld [vmem:[%s15666_s10 + $0x2e0] sm:$0xff]  ;;  %v14165_v26 = vld [vmem:[%s15666_s10 + $0x290] sm:$0xff] }
 0x977   :  { %16372 = vst [vmem:[#allocation123_spill] sm:$0xff] %v14072_v29  ;;  %16373 = vst [vmem:[#allocation124_spill] sm:$0xff] %v14077_v1  ;;  %v14175_v29 = vmul.f32 %v14106_v3, %v13495_v37  ;;  %v14237_v1 = vld [vmem:[%s15666_s10 + $0x308] sm:$0xff] }
 0x978   :  { %16374 = vst [vmem:[#allocation125_spill] sm:$0xff] %v14082_v5  ;;  %16375 = vst [vmem:[#allocation126_spill] sm:$0xff] %v14088_v2  ;;  %v14179_v2 = vmul.f32 %v14111_v36, %v13534_v38  ;;  %v14184_v5 = vld [vmem:[%s15666_s10 + $0x2b0] sm:$0xff] }
 0x979   :  { %16376 = vst [vmem:[#allocation127_spill] sm:$0xff] %v14092_v4  ;;  %16377 = vst [vmem:[#allocation128_spill] sm:$0xff] %v14096_v15  ;;  %v14171_v15 = vmul.f32 %v14101_v35, %v13464_v52  ;;  %v14189_v4 = vld [vmem:[%s15666_s10 + $0x2d8] sm:$0xff] }
 0x97a   :  { %16378 = vst [vmem:[#allocation129_spill] sm:$0xff] %v14101_v35  ;;  %16379 = vst [vmem:[#allocation130_spill] sm:$0xff] %v14106_v3  ;;  %v14203_v3 = vmul.f32 %v14138_v44, %v13588_v14  ;;  %v14208_v35 = vld [vmem:[%s15666_s10 + $0x2f8] sm:$0xff] }
 0x97b   :  { %16380 = vst [vmem:[#allocation131_spill] sm:$0xff] %v14111_v36  ;;  %16381 = vst [vmem:[#allocation132_spill] sm:$0xff] %v14119_v19  ;;  %v14199_v36 = vmul.f32 %v14133_v63, %v13552_v62  ;;  %v14213_v19 = vld [vmem:[%s15666_s10 + $0x2d0] sm:$0xff] }
 0x97c   :  { %16382 = vst [vmem:[#allocation133_spill] sm:$0xff] %v14123_v39  ;;  %16383 = vst [vmem:[#allocation134_spill] sm:$0xff] %v14128_v10  ;;  %v14195_v39 = vmul.f32 %v14128_v10, %v13571_v58  ;;  %v14232_v10 = vmul.f32 %v14165_v26, %v13531_v0 }
 0x97d   :  { %16384 = vst [vmem:[#allocation135_spill] sm:$0xff] %v14133_v63  ;;  %16385 = vst [vmem:[#allocation136_spill] sm:$0xff] %v14138_v44  ;;  %v14224_v44 = vmul.f32 %v14155_v33, %v13517_v6  ;;  %v14228_v63 = vmul.f32 %v14160_v7, %v13555_v13 }
 0x97e   :  { %16386 = vst [vmem:[#allocation137_spill] sm:$0xff] %v14146_v59  ;;  %16387 = vst [vmem:[#allocation138_spill] sm:$0xff] %v14150_v8  ;;  %v14218_v59 = vld [vmem:[%s15666_s10 + $0x2f0] sm:$0xff]  ;;  %v14242_v8 = vld [vmem:[%s15666_s10 + $0x328] sm:$0xff] }
 0x97f   :  { %16388 = vst [vmem:[#allocation139_spill] sm:$0xff] %v14155_v33  ;;  %16389 = vst [vmem:[#allocation140_spill] sm:$0xff] %v14160_v7  ;;  %v14255_v7 = vmul.f32 %v14184_v5, %v13568_v11  ;;  %v14259_v33 = vmul.f32 %v14189_v4, %v13663_v46 }
 0x980   :  { %16390 = vst [vmem:[#allocation141_spill] sm:$0xff] %v14165_v26  ;;  %16391 = vst [vmem:[#allocation142_spill] sm:$0xff] %v14171_v15  ;;  %v14247_v15 = vld [vmem:[%s15666_s10 + $0x300] sm:$0xff]  ;;  %v14293_v26 = vld [vmem:[%s15666_s10 + $0x318] sm:$0xff] }
 0x981   :  { %16392 = vst [vmem:[#allocation143_spill] sm:$0xff] %v14175_v29  ;;  %16393 = vst [vmem:[#allocation144_spill] sm:$0xff] %v14179_v2  ;;  %v14269_v29 = vld [vmem:[%s15666_s10 + $0x348] sm:$0xff]  ;;  %v14275_v2 = vmul.f32 %v14208_v35, %v13707_v28 }
 0x982   :  { %16394 = vst [vmem:[#allocation145_spill] sm:$0xff] %v14184_v5  ;;  %16395 = vst [vmem:[#allocation146_spill] sm:$0xff] %v14189_v4  ;;  %v14317_v4 = vld [vmem:[%s15666_s10 + $0x340] sm:$0xff] }
 0x983   :  { %16396 = vst [vmem:[#allocation147_spill] sm:$0xff] %v14195_v39  ;;  %16397 = vst [vmem:[#allocation148_spill] sm:$0xff] %v14199_v36  ;;  %v14279_v39 = vmul.f32 %v14213_v19, %v13643_v50  ;;  %v14283_v36 = vmul.f32 %v14218_v59, %v13685_v41 }
 0x984   :  { %16398 = vst [vmem:[#allocation149_spill] sm:$0xff] %v14203_v3  ;;  %16399 = vst [vmem:[#allocation150_spill] sm:$0xff] %v14208_v35  ;;  %v14288_v3 = vld [vmem:[%s15666_s10 + $0x368] sm:$0xff]  ;;  %v14312_v35 = vmul.f32 %v14247_v15, %v13293_v32  ;;  %v14373_v32 = vld [vmem:[%s15666_s10 + $0x358] sm:$0xff] }
 0x985   :  { %16400 = vst [vmem:[#allocation151_spill] sm:$0xff] %v14213_v19  ;;  %16401 = vst [vmem:[#allocation152_spill] sm:$0xff] %v14218_v59  ;;  %v14304_v59 = vmul.f32 %v14237_v1, %v13307_v16  ;;  %v14308_v19 = vmul.f32 %v14242_v8, %v13346_v51  ;;  %v14327_v16 = vld [vmem:[%s15666_s10 + $0x310] sm:$0xff]  ;;  %v14349_v51 = vld [vmem:[%s15666_s10 + $0x388] sm:$0xff] }
 0x986   :  { %16402 = vst [vmem:[#allocation153_spill] sm:$0xff] %v14224_v44  ;;  %16403 = vst [vmem:[#allocation154_spill] sm:$0xff] %v14228_v63  ;;  %v14298_v44 = vld [vmem:[%s15666_s10 + $0x338] sm:$0xff]  ;;  %v14322_v63 = vld [vmem:[%s15666_s10 + $0x360] sm:$0xff] }
 0x987   :  { %16404 = vst [vmem:[#allocation155_spill] sm:$0xff] %v14232_v10  ;;  %16405 = vst [vmem:[#allocation156_spill] sm:$0xff] %v14237_v1  ;;  %v14335_v10 = vmul.f32 %v14264_v20, %v13323_v56  ;;  %v14355_v56 = vmul.f32 %v14288_v3, %v13429_v27  ;;  %v14378_v27 = vld [vmem:[%s15666_s10 + $0x378] sm:$0xff]  ;;  %v16539_v1 = vld [vmem:[#allocation60_spill] sm:$0xff] }
 0x988   :  { %16406 = vst [vmem:[#allocation157_spill] sm:$0xff] %v14242_v8  ;;  %16407 = vst [vmem:[#allocation158_spill] sm:$0xff] %v14247_v15  ;;  %v14344_v15 = vld [vmem:[%s15666_s10 + $0x330] sm:$0xff] }
 0x989   :  { %16408 = vst [vmem:[#allocation159_spill] sm:$0xff] %v14255_v7  ;;  %16409 = vst [vmem:[#allocation160_spill] sm:$0xff] %v14259_v33  ;;  %v14339_v7 = vmul.f32 %v14269_v29, %v13395_v9  ;;  %v14359_v9 = vmul.f32 %v14293_v26, %v13408_v40  ;;  %v14397_v33 = vld [vmem:[%s15666_s10 + $0x380] sm:$0xff] }
 0x98a   :  { %16410 = vst [vmem:[#allocation161_spill] sm:$0xff] %v14264_v20  ;;  %16411 = vst [vmem:[#allocation162_spill] sm:$0xff] %v14269_v29  ;;  %v14402_v40 = vld [vmem:[%s15666_s10 + $0x3a0] sm:$0xff] }
 0x98b   :  { %16412 = vst [vmem:[#allocation163_spill] sm:$0xff] %v14275_v2  ;;  %16413 = vst [vmem:[#allocation164_spill] sm:$0xff] %v14279_v39  ;;  %v14363_v39 = vmul.f32 %v14298_v44, %v13441_v53  ;;  %v14384_v53 = vmul.f32 %v14317_v4, %v13378_v34  ;;  %v14407_v34 = vld [vmem:[%s15666_s10 + $0x350] sm:$0xff] }
 0x98c   :  { %16414 = vst [vmem:[#allocation165_spill] sm:$0xff] %v14283_v36  ;;  %16415 = vst [vmem:[#allocation166_spill] sm:$0xff] %v14288_v3  ;;  %v14368_v36 = vld [vmem:[%s15666_s10 + $0x3a8] sm:$0xff]  ;;  %v14424_v2 = vld [vmem:[%s15666_s10 + $0x370] sm:$0xff] }
 0x98d   :  { %16416 = vst [vmem:[#allocation167_spill] sm:$0xff] %v14293_v26  ;;  %16417 = vst [vmem:[#allocation168_spill] sm:$0xff] %v14298_v44 }
 0x98e   :  { %16418 = vst [vmem:[#allocation169_spill] sm:$0xff] %v14304_v59  ;;  %16419 = vst [vmem:[#allocation170_spill] sm:$0xff] %v14308_v19  ;;  %v14388_v59 = vmul.f32 %v14322_v63, %v13411_v12  ;;  %v14392_v19 = vmul.f32 %v14327_v16, %v13392_v31  ;;  %v14429_v12 = vld [vmem:[%s15666_s10 + $0x3c8] sm:$0xff]  ;;  %v14453_v31 = vld [vmem:[%s15666_s10 + $0x398] sm:$0xff] }
 0x98f   :  { %16420 = vst [vmem:[#allocation171_spill] sm:$0xff] %v14312_v35  ;;  %16421 = vst [vmem:[#allocation172_spill] sm:$0xff] %v14317_v4  ;;  %v14415_v35 = vmul.f32 %v14344_v15, %v13426_v61  ;;  %v14435_v61 = vmul.f32 %v14368_v36, %v13498_v47  ;;  %v14458_v47 = vld [vmem:[%s15666_s10 + $0x3b8] sm:$0xff] }
 0x990   :  { %16422 = vst [vmem:[#allocation173_spill] sm:$0xff] %v14322_v63  ;;  %16423 = vst [vmem:[#allocation174_spill] sm:$0xff] %v14327_v16 }
 0x991   :  { %16424 = vst [vmem:[#allocation175_spill] sm:$0xff] %v14335_v10  ;;  %16425 = vst [vmem:[#allocation176_spill] sm:$0xff] %v14339_v7  ;;  %v14419_v10 = vmul.f32 %v14349_v51, %v13467_v57  ;;  %v14439_v57 = vmul.f32 %v14373_v32, %v13482_v43  ;;  %v14443_v7 = vmul.f32 %v14378_v27, %v13501_v45  ;;  %v14482_v43 = vld [vmem:[%s15666_s10 + $0x3e0] sm:$0xff] }
 0x992   :  { %16426 = vst [vmem:[#allocation177_spill] sm:$0xff] %v14344_v15  ;;  %16427 = vst [vmem:[#allocation178_spill] sm:$0xff] %v14349_v51  ;;  %v14464_v45 = vmul.f32 %v14397_v33, %v13460_v49  ;;  %v14487_v49 = vld [vmem:[%s15666_s10 + $0x390] sm:$0xff] }
 0x993   :  { %16428 = vst [vmem:[#allocation179_spill] sm:$0xff] %v14355_v56  ;;  %16429 = vst [vmem:[#allocation180_spill] sm:$0xff] %v14359_v9  ;;  %v14448_v56 = vld [vmem:[%s15666_s10 + $0x3e8] sm:$0xff]  ;;  %v14477_v9 = vld [vmem:[%s15666_s10 + $0x3c0] sm:$0xff] }
 0x994   :  { %16430 = vst [vmem:[#allocation181_spill] sm:$0xff] %v14363_v39  ;;  %16431 = vst [vmem:[#allocation182_spill] sm:$0xff] %v14368_v36  ;;  %v14504_v39 = vld [vmem:[%s15666_s10 + $0x3b0] sm:$0xff] }
 0x995   :  { %16432 = vst [vmem:[#allocation183_spill] sm:$0xff] %v14373_v32  ;;  %16433 = vst [vmem:[#allocation184_spill] sm:$0xff] %v14378_v27  ;;  %v16493_v51 = vld [vmem:[#allocation33_spill] sm:$0xff] }
 0x996   :  { %16434 = vst [vmem:[#allocation185_spill] sm:$0xff] %v14384_v53  ;;  %16435 = vst [vmem:[#allocation186_spill] sm:$0xff] %v14388_v59  ;;  %v14468_v53 = vmul.f32 %v14402_v40, %v13485_v55  ;;  %v14472_v59 = vmul.f32 %v14407_v34, %v13464_v52  ;;  %v14509_v55 = vld [vmem:[%s15666_s10 + $0x3d8] sm:$0xff]  ;;  %v14533_v52 = vld [vmem:[%s15666_s10 + $0x3d0] sm:$0xff] }
 0x997   :  { %16436 = vst [vmem:[#allocation187_spill] sm:$0xff] %v14392_v19  ;;  %16437 = vst [vmem:[#allocation188_spill] sm:$0xff] %v14397_v33  ;;  %v14495_v19 = vmul.f32 %v14424_v2, %v13495_v37  ;;  %v14515_v37 = vmul.f32 %v14448_v56, %v13571_v58  ;;  %v14538_v58 = vld [vmem:[%s15666_s10 + $0x3f0] sm:$0xff] }
 0x998   :  { %16438 = vst [vmem:[#allocation189_spill] sm:$0xff] %v14402_v40  ;;  %16439 = vst [vmem:[#allocation190_spill] sm:$0xff] %v14407_v34 }
 0x999   :  { %16440 = vst [vmem:[#allocation191_spill] sm:$0xff] %v14415_v35  ;;  %16441 = vst [vmem:[#allocation192_spill] sm:$0xff] %v14419_v10  ;;  %v14499_v35 = vmul.f32 %v14429_v12, %v13534_v38  ;;  %v14519_v38 = vmul.f32 %v14453_v31, %v13552_v62  ;;  %v14523_v10 = vmul.f32 %v14458_v47, %v13588_v14 }
 0x99a   :  { %16442 = vst [vmem:[#allocation193_spill] sm:$0xff] %v14424_v2  ;;  %16443 = vst [vmem:[#allocation194_spill] sm:$0xff] %v14429_v12  ;;  %v14544_v14 = vmul.f32 %v14477_v9, %v13517_v6  ;;  %v14560_v62 = vmul.f32 %v14504_v39, %v13568_v11  ;;  %v14564_v6 = vmul.f32 %v14509_v55, %v13663_v46 }
 0x99b   :  { %16444 = vst [vmem:[#allocation195_spill] sm:$0xff] %v14435_v61  ;;  %16445 = vst [vmem:[#allocation196_spill] sm:$0xff] %v14439_v57  ;;  %v14528_v61 = vld [vmem:[%s15666_s10 + $0x3f8] sm:$0xff]  ;;  %v14574_v57 = vmul.f32 %v14533_v52, %v13643_v50 }
 0x99c   :  { %16446 = vst [vmem:[#allocation197_spill] sm:$0xff] %v14443_v7  ;;  %16447 = vst [vmem:[#allocation198_spill] sm:$0xff] %v14448_v56  ;;  %v14578_v7 = vmul.f32 %v14538_v58, %v13685_v41 }
 0x99d   :  { %16448 = vst [vmem:[#allocation199_spill] sm:$0xff] %v14453_v31  ;;  %16449 = vst [vmem:[#allocation200_spill] sm:$0xff] %v14458_v47 }
 0x99e   :  { %16450 = vst [vmem:[#allocation201_spill] sm:$0xff] %v14464_v45  ;;  %16451 = vst [vmem:[#allocation202_spill] sm:$0xff] %v14468_v53  ;;  %v14548_v45 = vmul.f32 %v14482_v43, %v13555_v13  ;;  %v14552_v53 = vmul.f32 %v14487_v49, %v13531_v0  ;;  %v14570_v0 = vmul.f32 %v14528_v61, %v13707_v28 }
 0x99f   :  { %16452 = vst [vmem:[#allocation203_spill] sm:$0xff] %v14472_v59  ;;  %16453 = vst [vmem:[#allocation204_spill] sm:$0xff] %v14477_v9 }
 0x9a0   :  { %16454 = vst [vmem:[#allocation205_spill] sm:$0xff] %v14482_v43  ;;  %16455 = vst [vmem:[#allocation206_spill] sm:$0xff] %v14487_v49  ;;  %v16482_v49 = vld [vmem:[#allocation17_spill] sm:$0xff] }
 0x9a1   :  { %16456 = vst [vmem:[#allocation207_spill] sm:$0xff] %v14495_v19  ;;  %16457 = vst [vmem:[#allocation208_spill] sm:$0xff] %v14499_v35  ;;  %v16477_v19 = vld [vmem:[#allocation8_spill] sm:$0xff] }
 0x9a2   :  { %16458 = vst [vmem:[#allocation209_spill] sm:$0xff] %v14504_v39  ;;  %16459 = vst [vmem:[#allocation210_spill] sm:$0xff] %v14509_v55  ;;  %v16480_v55 = vld [vmem:[#allocation9_spill] sm:$0xff]  ;;  %v16481_v39 = vld [vmem:[#allocation15_spill] sm:$0xff] }
 0x9a3   :  { %16460 = vst [vmem:[#allocation211_spill] sm:$0xff] %v14515_v37  ;;  %16461 = vst [vmem:[#allocation212_spill] sm:$0xff] %v14519_v38 }
 0x9a4   :  { %16462 = vst [vmem:[#allocation213_spill] sm:$0xff] %v14523_v10  ;;  %16463 = vst [vmem:[#allocation214_spill] sm:$0xff] %v14528_v61  ;;  %v16479_v61 = vld [vmem:[#allocation10_spill] sm:$0xff] }
 0x9a5   :  { %16464 = vst [vmem:[#allocation215_spill] sm:$0xff] %v14533_v52  ;;  %16465 = vst [vmem:[#allocation216_spill] sm:$0xff] %v14538_v58  ;;  %v16478_v58 = vld [vmem:[#allocation13_spill] sm:$0xff] }
 0x9a6   :  { %16466 = vst [vmem:[#allocation217_spill] sm:$0xff] %v14544_v14  ;;  %16467 = vst [vmem:[#allocation218_spill] sm:$0xff] %v14548_v45  ;;  %v6163_v14 = vpop.f32.mrb[40].mxu0 }
 0x9a7   :  { %16468 = vst [vmem:[#allocation219_spill] sm:$0xff] %v14552_v53  ;;  %16469 = vst [vmem:[#allocation220_spill] sm:$0xff] %v14560_v62  ;;  %v6164_v28 = vadd.f32 %v6163_v14, %v13273_v25  ;;  %v6165_v45 = vpop.f32.mrb[41].mxu0  ;;  %v6236_v53 = vpop.f32.mrb[40].mxu1  ;;  %v16474_v14 = vld [vmem:[#allocation7_spill] sm:$0xff] }
 0x9a8   :  { %16470 = vst [vmem:[#allocation221_spill] sm:$0xff] %v14564_v6  ;;  %16471 = vst [vmem:[#allocation222_spill] sm:$0xff] %v14570_v0  ;;  %v6166_v50 = vadd.f32 %v6165_v45, %v13273_v25  ;;  %v6167_v35 = vpop.f32.mrb[42].mxu0  ;;  %v6237_v13 = vadd.f32 %v6236_v53, %v13273_v25 }
 0x9a9   :  { %16472 = vst [vmem:[#allocation223_spill] sm:$0xff] %v14574_v57  ;;  %16473 = vst [vmem:[#allocation224_spill] sm:$0xff] %v14578_v7  ;;  %v6279_v37 = vmax.f32 %v6164_v28, 0.0  ;;  %v6168_v41 = vadd.f32 %v6167_v35, %v13276_v24  ;;  %v6169_v38 = vpop.f32.mrb[43].mxu0  ;;  %v6238_v57 = vpop.f32.mrb[41].mxu1 }
 0x9aa   :  { %v6280_v10 = vmax.f32 %v6166_v50, 0.0  ;;  %v6170_v11 = vadd.f32 %v6169_v38, %v13276_v24  ;;  %v6239_v28 = vadd.f32 %v6238_v57, %v13273_v25  ;;  %v6240_v0 = vpop.f32.mrb[42].mxu1  ;;  %v6281_v50 = vmax.f32 %v6237_v13, 0.0  ;;  %v16476_v25 = vld [vmem:[#allocation12_spill] sm:$0xff] }
 0x9ab   :  { %v14591_v46 = vmul.f32 %v6279_v37, %v11824_v18  ;;  %v6287_v6 = vmax.f32 %v6168_v41, 0.0  ;;  %v6241_v38 = vadd.f32 %v6240_v0, %v13276_v24  ;;  %v6242_v62 = vpop.f32.mrb[43].mxu1  ;;  %v16475_v37 = vld [vmem:[#allocation14_spill] sm:$0xff] }
 0x9ac   :  { %v14595_v7 = vmul.f32 %v6280_v10, %v16474_v14  ;;  %v6288_v45 = vmax.f32 %v6170_v11, 0.0  ;;  %v6282_v59 = vmax.f32 %v6239_v28, 0.0  ;;  %v6243_v10 = vadd.f32 %v6242_v62, %v13276_v24  ;;  %v6173_v11 = vpop.f32.mrb[44].mxu0  ;;  %v6246_v47 = vpop.f32.mrb[44].mxu1 }
 0x9ad   :  { %v14599_v35 = vmul.f32 %v6287_v6, %v11824_v18  ;;  %v6631_v41 = vmul.f32 %v16475_v37, %v14591_v46  ;;  %v14611_v6 = vmul.f32 %v6281_v50, %v16477_v19  ;;  %v6289_v13 = vmax.f32 %v6241_v38, 0.0  ;;  %v6175_v52 = vpop.f32.mrb[45].mxu0  ;;  %v6248_v56 = vpop.f32.mrb[45].mxu1 }
 0x9ae   :  { %v14605_v53 = vmul.f32 %v6288_v45, %v16474_v14  ;;  %v6632_v57 = vmul.f32 %v16476_v25, %v14595_v7  ;;  %v6174_v0 = vadd.f32 %v6173_v11, %v16478_v58  ;;  %v14617_v45 = vmul.f32 %v6282_v59, %v16480_v55  ;;  %v6177_v62 = vpop.f32.mrb[46].mxu0 }
 0x9af   :  { %v6635_v37 = vmul.f32 %v16479_v61, %v14599_v35  ;;  %v6290_v28 = vmax.f32 %v6243_v10, 0.0  ;;  %v6176_v24 = vadd.f32 %v6175_v52, %v16478_v58  ;;  %v14623_v50 = vmul.f32 %v6289_v13, %v16477_v19  ;;  %v6179_v43 = vpop.f32.mrb[47].mxu0 }
 0x9b0   :  { %v6636_v25 = vmul.f32 %v16481_v39, %v14605_v53  ;;  %v6295_v38 = vmax.f32 %v6174_v0, 0.0  ;;  %v6178_v11 = vadd.f32 %v6177_v62, %v16482_v49  ;;  %v6180_v10 = vadd.f32 %v6179_v43, %v16482_v49  ;;  %v16483_v0 = vld [vmem:[#allocation25_spill] sm:$0xff]  ;;  %v16484_v43 = vld [vmem:[#allocation30_spill] sm:$0xff] }
 0x9b1   :  { %v8246_v9 = vpack.c.bf16 %v6635_v37, %v6631_v41  ;;  %v14627_v61 = vmul.f32 %v6290_v28, %v16480_v55  ;;  %v6296_v59 = vmax.f32 %v6176_v24, 0.0  ;;  %v6247_v13 = vadd.f32 %v6246_v47, %v16478_v58  ;;  %v6250_v24 = vpop.f32.mrb[46].mxu1 }
 0x9b2   :  { %v8244_v52 = vpack.c.bf16 %v6636_v25, %v6632_v57  ;;  %v14631_v31 = vmul.f32 %v6295_v38, %v11824_v18  ;;  %v6303_v39 = vmax.f32 %v6178_v11, 0.0  ;;  %v6634_v62 = vmul.f32 %v16483_v0, %v14617_v45  ;;  %v6252_v11 = vpop.f32.mrb[47].mxu1  ;;  %v16485_v0 = vld [vmem:[#allocation28_spill] sm:$0xff] }
 0x9b3   :  { %v14637_v41 = vmul.f32 %v6296_v59, %v16474_v14  ;;  %v6304_v37 = vmax.f32 %v6180_v10, 0.0  ;;  %v6249_v28 = vadd.f32 %v6248_v56, %v16478_v58  ;;  %v6638_v57 = vmul.f32 %v16484_v43, %v14627_v61 }
 0x9b4   :  { %8245 = vmatprep.subr.bf16.mxu0 %v8244_v52  ;;  %v14643_v25 = vmul.f32 %v6303_v39, %v11824_v18  ;;  %v6297_v38 = vmax.f32 %v6247_v13, 0.0  ;;  %v6251_v47 = vadd.f32 %v6250_v24, %v16482_v49  ;;  %v6633_v59 = vmul.f32 %v16485_v0, %v14611_v6  ;;  %v6183_v52 = vpop.f32.mrb[48].mxu0  ;;  %v16486_v13 = vld [vmem:[#allocation26_spill] sm:$0xff] }
 0x9b5   :  { %8247 = vmatpush1.bf16.msra.mxu0 %v8246_v9  ;;  %v14649_v10 = vmul.f32 %v6304_v37, %v16474_v14  ;;  %v6298_v56 = vmax.f32 %v6249_v28, 0.0  ;;  %v6253_v58 = vadd.f32 %v6252_v11, %v16482_v49  ;;  %v8260_v12 = vpack.c.bf16 %v6638_v57, %v6634_v62  ;;  %v6185_v24 = vpop.f32.mrb[49].mxu0  ;;  %v16487_v9 = vld [vmem:[#allocation31_spill] sm:$0xff] }
 0x9b6   :  { %v14653_v43 = vmul.f32 %v6297_v38, %v16477_v19  ;;  %v6305_v39 = vmax.f32 %v6251_v47, 0.0  ;;  %v6184_v2 = vadd.f32 %v6183_v52, %v16486_v13  ;;  %v6637_v34 = vmul.f32 %v16487_v9, %v14623_v50  ;;  %v6187_v40 = vpop.f32.mrb[50].mxu0  ;;  %v16488_v49 = vld [vmem:[#allocation23_spill] sm:$0xff]  ;;  %v16489_v47 = vld [vmem:[#allocation29_spill] sm:$0xff] }
 0x9b7   :  { %v14659_v0 = vmul.f32 %v6298_v56, %v16480_v55  ;;  %v6306_v37 = vmax.f32 %v6253_v58, 0.0  ;;  %v6186_v28 = vadd.f32 %v6185_v24, %v16486_v13  ;;  %8261 = vmatprep.subr.bf16.mxu1 %v8260_v12  ;;  %v6640_v62 = vmul.f32 %v16488_v49, %v14637_v41  ;;  %v6189_v52 = vpop.f32.mrb[51].mxu0  ;;  %v6256_v24 = vpop.f32.mrb[48].mxu1  ;;  %v16490_v12 = vld [vmem:[#allocation27_spill] sm:$0xff] }
 0x9b8   :  { %v14665_v57 = vmul.f32 %v6305_v39, %v16477_v19  ;;  %v6311_v38 = vmax.f32 %v6184_v2, 0.0  ;;  %v6188_v11 = vadd.f32 %v6187_v40, %v16489_v47  ;;  %v8262_v33 = vpack.c.bf16 %v6637_v34, %v6633_v59  ;;  %v6258_v40 = vpop.f32.mrb[49].mxu1  ;;  %v16491_v34 = vld [vmem:[#allocation24_spill] sm:$0xff] }
 0x9b9   :  { %v14669_v9 = vmul.f32 %v6306_v37, %v16480_v55  ;;  %v6312_v56 = vmax.f32 %v6186_v28, 0.0  ;;  %v6190_v58 = vadd.f32 %v6189_v52, %v16489_v47  ;;  %v6644_v27 = vmul.f32 %v16490_v12, %v14649_v10  ;;  %v6260_v32 = vpop.f32.mrb[50].mxu1 }
 0x9ba   :  { %v14675_v49 = vmul.f32 %v6311_v38, %v11824_v18  ;;  %v6319_v39 = vmax.f32 %v6188_v11, 0.0  ;;  %8263 = vmatpush1.bf16.msra.mxu1 %v8262_v33  ;;  %v6257_v2 = vadd.f32 %v6256_v24, %v16486_v13  ;;  %v6639_v59 = vmul.f32 %v16491_v34, %v14631_v31  ;;  %v6262_v11 = vpop.f32.mrb[51].mxu1  ;;  %v9441_v24 = vld [vmem:[%s15666_s10 + $0x60] sm:$0xff] }
 0x9bb   :  { %v14681_v37 = vmul.f32 %v6312_v56, %v16474_v14  ;;  %v6320_v28 = vmax.f32 %v6190_v58, 0.0  ;;  %v6259_v52 = vadd.f32 %v6258_v40, %v16486_v13  ;;  %v8248_v36 = vpack.c.bf16 %v6644_v27, %v6640_v62  ;;  %v6193_v13 = vpop.f32.mrb[52].mxu0  ;;  %v16492_v62 = vld [vmem:[#allocation35_spill] sm:$0xff]  ;;  %v6266_v4 = vpop.f32.mrb[52].mxu1 }
 0x9bc   :  { %v14685_v12 = vmul.f32 %v6319_v39, %v11824_v18  ;;  %v6313_v38 = vmax.f32 %v6257_v2, 0.0  ;;  %v6261_v33 = vadd.f32 %v6260_v32, %v16489_v47  ;;  %v6643_v34 = vmul.f32 %v9441_v24, %v14643_v25  ;;  %v6195_v16 = vpop.f32.mrb[53].mxu0  ;;  %v6268_v44 = vpop.f32.mrb[53].mxu1 }
 0x9bd   :  { %v14693_v56 = vmul.f32 %v6320_v28, %v16474_v14  ;;  %v6314_v58 = vmax.f32 %v6259_v52, 0.0  ;;  %8249 = vmatprep.subr.bf16.mxu0 %v8248_v36  ;;  %v6263_v27 = vadd.f32 %v6262_v11, %v16489_v47  ;;  %v6642_v39 = vmul.f32 %v16492_v62, %v14659_v0  ;;  %v6197_v52 = vpop.f32.mrb[54].mxu0  ;;  %v16494_v47 = vld [vmem:[#allocation36_spill] sm:$0xff] }
 0x9be   :  { %v14699_v32 = vmul.f32 %v6313_v38, %v16477_v19  ;;  %v6321_v2 = vmax.f32 %v6261_v33, 0.0  ;;  %v8250_v40 = vpack.c.bf16 %v6643_v34, %v6639_v59  ;;  %v6194_v15 = vadd.f32 %v6193_v13, %v16493_v51  ;;  %v6199_v33 = vpop.f32.mrb[55].mxu0  ;;  %v16495_v34 = vld [vmem:[#allocation39_spill] sm:$0xff] }
 0x9bf   :  { %v14703_v24 = vmul.f32 %v6314_v58, %v16480_v55  ;;  %v6322_v28 = vmax.f32 %v6263_v27, 0.0  ;;  %v6196_v36 = vadd.f32 %v6195_v16, %v16493_v51  ;;  %v6646_v11 = vmul.f32 %v16494_v47, %v14669_v9 }
 0x9c0   :  { %v14709_v62 = vmul.f32 %v6321_v2, %v16477_v19  ;;  %8251 = vmatpush1.bf16.msra.mxu0 %v8250_v40  ;;  %v6327_v38 = vmax.f32 %v6194_v15, 0.0  ;;  %v6198_v59 = vadd.f32 %v6197_v52, %v13492_v17  ;;  %v6641_v13 = vmul.f32 %v16495_v34, %v14653_v43  ;;  %v16496_v15 = vld [vmem:[#allocation40_spill] sm:$0xff] }
 0x9c1   :  { %v14715_v58 = vmul.f32 %v6322_v28, %v16480_v55  ;;  %v6328_v27 = vmax.f32 %v6196_v36, 0.0  ;;  %v8264_v16 = vpack.c.bf16 %v6646_v11, %v6642_v39  ;;  %v6200_v63 = vadd.f32 %v6199_v33, %v13492_v17  ;;  %v6270_v36 = vpop.f32.mrb[54].mxu1  ;;  %v16497_v11 = vld [vmem:[#allocation32_spill] sm:$0xff] }
 0x9c2   :  { %v14719_v47 = vmul.f32 %v6327_v38, %v11824_v18  ;;  %v6335_v2 = vmax.f32 %v6198_v59, 0.0  ;;  %v6645_v40 = vmul.f32 %v16496_v15, %v14665_v57  ;;  %v6267_v52 = vadd.f32 %v6266_v4, %v16493_v51  ;;  %v6272_v4 = vpop.f32.mrb[55].mxu1 }
 0x9c3   :  { %v14725_v34 = vmul.f32 %v6328_v27, %v16474_v14  ;;  %8265 = vmatprep.subr.bf16.mxu1 %v8264_v16  ;;  %v6336_v28 = vmax.f32 %v6200_v63, 0.0  ;;  %v6269_v39 = vadd.f32 %v6268_v44, %v16493_v51  ;;  %v6648_v33 = vmul.f32 %v16497_v11, %v14681_v37  ;;  %v16498_v63 = vld [vmem:[#allocation34_spill] sm:$0xff] }
 0x9c4   :  { %v14731_v38 = vmul.f32 %v6335_v2, %v11824_v18  ;;  %v8266_v59 = vpack.c.bf16 %v6645_v40, %v6641_v13  ;;  %v6329_v26 = vmax.f32 %v6267_v52, 0.0  ;;  %v6271_v15 = vadd.f32 %v6270_v36, %v13492_v17  ;;  %v16499_v13 = vld [vmem:[#allocation37_spill] sm:$0xff]  ;;  %v16500_v40 = vld [vmem:[#allocation38_spill] sm:$0xff]  ;;  %v16501_v36 = vld [vmem:[#allocation43_spill] sm:$0xff] }
 0x9c5   :  { %v14735_v3 = vmul.f32 %v6336_v28, %v16474_v14  ;;  %v6330_v27 = vmax.f32 %v6269_v39, 0.0  ;;  %v6652_v16 = vmul.f32 %v16498_v63, %v14693_v56  ;;  %v6273_v44 = vadd.f32 %v6272_v4, %v13492_v17  ;;  %v16503_v4 = vld [vmem:[#allocation47_spill] sm:$0xff] }
 0x9c6   :  { %8267 = vmatpush1.bf16.msra.mxu1 %v8266_v59  ;;  %v14741_v51 = vmul.f32 %v6329_v26, %v16477_v19  ;;  %v6337_v18 = vmax.f32 %v6271_v15, 0.0  ;;  %v6647_v2 = vmul.f32 %v16499_v13, %v14675_v49  ;;  %v6651_v52 = vmul.f32 %v16500_v40, %v14685_v12  ;;  %v16502_v59 = vld [vmem:[#allocation44_spill] sm:$0xff]  ;;  %v16508_v40 = vld [vmem:[#allocation45_spill] sm:$0xff] }
 0x9c7   :  { %v14748_v14 = vmul.f32 %v6330_v27, %v16480_v55  ;;  %v8252_v28 = vpack.c.bf16 %v6652_v16, %v6648_v33  ;;  %v6338_v39 = vmax.f32 %v6273_v44, 0.0  ;;  %v6650_v11 = vmul.f32 %v16501_v36, %v14703_v24  ;;  %v16505_v33 = vld [vmem:[#allocation48_spill] sm:$0xff]  ;;  %v16506_v16 = vld [vmem:[#allocation41_spill] sm:$0xff]  ;;  %v16509_v36 = vld [vmem:[#allocation46_spill] sm:$0xff] }
 0x9c8   :  { %v14753_v17 = vmul.f32 %v6337_v18, %v16477_v19  ;;  %v8254_v26 = vpack.c.bf16 %v6651_v52, %v6647_v2  ;;  %v6654_v15 = vmul.f32 %v16502_v59, %v14715_v58  ;;  %v6649_v63 = vmul.f32 %v16503_v4, %v14699_v32  ;;  %v16507_v19 = vld [vmem:[#allocation42_spill] sm:$0xff] }
 0x9c9   :  { %8253 = vmatprep.subr.bf16.mxu0 %v8252_v28  ;;  %v14760_v13 = vmul.f32 %v6338_v39, %v16480_v55  ;;  %v6653_v27 = vmul.f32 %v16505_v33, %v14709_v62  ;;  %v6656_v44 = vmul.f32 %v16506_v16, %v14725_v34  ;;  %v6660_v18 = vmul.f32 %v16507_v19, %v14735_v3  ;;  %v16510_v4 = vld [vmem:[#allocation50_spill] sm:$0xff]  ;;  %v16511_v16 = vld [vmem:[#allocation49_spill] sm:$0xff]  ;;  %v9442_v19 = vld [vmem:[%s15666_s10 + $0x108] sm:$0xff] }
 0x9ca   :  { %8255 = vmatpush1.bf16.msra.mxu0 %v8254_v26  ;;  %v8268_v2 = vpack.c.bf16 %v6654_v15, %v6650_v11  ;;  %v6655_v52 = vmul.f32 %v16508_v40, %v14719_v47  ;;  %v6659_v28 = vmul.f32 %v16509_v36, %v14731_v38  ;;  %v6658_v55 = vmul.f32 %v13650_v54, %v14748_v14  ;;  %v16512_v11 = vld [vmem:[#allocation52_spill] sm:$0xff] }
 0x9cb   :  { %16504 = vst [vmem:[#allocation7_spill] sm:$0xff] %v14760_v13  ;;  %v8270_v39 = vpack.c.bf16 %v6653_v27, %v6649_v63  ;;  %v8256_v59 = vpack.c.bf16 %v6660_v18, %v6656_v44  ;;  %v6662_v33 = vmul.f32 %v16510_v4, %v14760_v13  ;;  %v6657_v29 = vmul.f32 %v16511_v16, %v14741_v51  ;;  %v9443_v54 = vld [vmem:[%s15666_s10 + $0x128] sm:$0xff]  ;;  %v9444_v44 = vld [vmem:[%s15666_s10 + $0x100] sm:$0xff] }
 0x9cc   :  { %8269 = vmatprep.subr.bf16.mxu1 %v8268_v2  ;;  %v8258_v26 = vpack.c.bf16 %v6659_v28, %v6655_v52  ;;  %v6661_v15 = vmul.f32 %v16512_v11, %v14753_v17  ;;  %v14784_v40 = vmul.f32 %v9442_v19, %v14595_v7  ;;  %v14790_v63 = vmul.f32 %v9443_v54, %v14605_v53  ;;  %v9445_v2 = vld [vmem:[%s15666_s10 + $0x120] sm:$0xff] }
 0x9cd   :  { %8271 = vmatpush1.bf16.msra.mxu1 %v8270_v39  ;;  %8257 = vmatprep.subr.bf16.mxu0 %v8256_v59  ;;  %v8272_v27 = vpack.c.bf16 %v6662_v33, %v6658_v55  ;;  %v14796_v18 = vmul.f32 %v9444_v44, %v14591_v46  ;;  %v14802_v52 = vmul.f32 %v9445_v2, %v14599_v35  ;;  %v16513_v55 = vld [vmem:[#allocation51_spill] sm:$0xff]  ;;  %v16514_v59 = vld [vmem:[#allocation53_spill] sm:$0xff]  ;;  %v16515_v33 = vld [vmem:[#allocation22_spill] sm:$0xff] }
 0x9ce   :  { %8259 = vmatpush1.bf16.msra.mxu0 %v8258_v26  ;;  %v8274_v36 = vpack.c.bf16 %v6661_v15, %v6657_v29  ;;  %v14808_v39 = vmul.f32 %v16513_v55, %v14637_v41  ;;  %v14812_v4 = vmul.f32 %v16514_v59, %v14649_v10  ;;  %v16516_v16 = vld [vmem:[#allocation18_spill] sm:$0xff]  ;;  %v16519_v19 = vld [vmem:[#allocation55_spill] sm:$0xff]  ;;  %v16520_v2 = vld [vmem:[#allocation56_spill] sm:$0xff] }
 0x9cf   :  { %v16517_v11 = vpack.c.bf16 %v16515_v33, %v16516_v16  ;;  %8273 = vmatprep.subr.bf16.mxu1 %v8272_v27  ;;  %v16518_v29 = vld [vmem:[#allocation54_spill] sm:$0xff]  ;;  %v14825_v54 = vmul.f32 %v16519_v19, %v14627_v61  ;;  %v14831_v55 = vmul.f32 %v16520_v2, %v14631_v31  ;;  %v16522_v27 = vld [vmem:[#allocation57_spill] sm:$0xff]  ;;  %v14851_v2 = vmul.f32 %v13740_v48, %v14681_v37  ;;  %v16530_v44 = vld [vmem:[#allocation11_spill] sm:$0xff] }
 0x9d0   :  { %v14821_v15 = vmul.f32 %v16518_v29, %v14617_v45  ;;  %v14835_v59 = vmul.f32 %v16522_v27, %v14643_v25  ;;  %v16524_v33 = vld [vmem:[#allocation58_spill] sm:$0xff]  ;;  %v16526_v29 = vld [vmem:[#allocation59_spill] sm:$0xff]  ;;  %v16529_v27 = vld [vmem:[#allocation20_spill] sm:$0xff] }
 0x9d1   :  { %8277 = vmatprep.subr.bf16.mxu0 %v16517_v11  ;;  %16521 = vst [vmem:[#allocation14_spill] sm:$0xff] %v14831_v55  ;;  %v14839_v16 = vmul.f32 %v16524_v33, %v14611_v6  ;;  %8099 = vmatmul.mubr.msk.f32.vlgmr.msra.gmra.mrb[58].mxu0 %vm6473_vm3, %v16350_v60  ;;  %v14847_v19 = vmul.f32 %v16526_v29, %v14623_v50  ;;  %16528 = vst [vmem:[#allocation10_spill] sm:$0xff] %v14851_v2  ;;  %v16532_v33 = vld [vmem:[#allocation62_spill] sm:$0xff]  ;;  %v16536_v29 = vld [vmem:[#allocation67_spill] sm:$0xff] }
 0x9d2   :  { %16523 = vst [vmem:[#allocation12_spill] sm:$0xff] %v14835_v59  ;;  %8275 = vmatpush1.bf16.msra.mxu1 %v8274_v36  ;;  %v16531_v26 = vpack.c.bf16 %v16529_v27, %v16530_v44  ;;  %v16533_v28 = vpack.c.bf16 %v13751_v42, %v16532_v33  ;;  %v16534_v11 = vld [vmem:[#allocation66_spill] sm:$0xff]  ;;  %v14867_v8 = vmul.f32 %v16536_v29, %v14659_v0  ;;  %v16538_v48 = vld [vmem:[#allocation61_spill] sm:$0xff]  ;;  %v16543_v44 = vld [vmem:[#allocation63_spill] sm:$0xff] }
 0x9d3   :  { %16525 = vst [vmem:[#allocation8_spill] sm:$0xff] %v14839_v16  ;;  %16527 = vst [vmem:[#allocation13_spill] sm:$0xff] %v14847_v19  ;;  %v14863_v20 = vmul.f32 %v16534_v11, %v14693_v56  ;;  %v16540_v5 = vpack.c.bf16 %v16538_v48, %v16539_v1  ;;  %6948 = vmatprep.mubr.f32.mxu0 %v16074_v21  ;;  %v14881_v11 = vmul.f32 %v16543_v44, %v14675_v49  ;;  %v16547_v33 = vld [vmem:[#allocation72_spill] sm:$0xff]  ;;  %v16549_v48 = vld [vmem:[#allocation73_spill] sm:$0xff] }
 0x9d4   :  { %8279 = vmatpush1.bf16.msra.mxu0 %v16531_v26  ;;  %8293 = vmatprep.subr.bf16.mxu1 %v16533_v28  ;;  %16537 = vst [vmem:[#allocation15_spill] sm:$0xff] %v14867_v8  ;;  %v16541_v28 = vld [vmem:[#allocation68_spill] sm:$0xff]  ;;  %v14893_v29 = vmul.f32 %v16547_v33, %v14653_v43  ;;  %v16551_v44 = vld [vmem:[#allocation70_spill] sm:$0xff]  ;;  %v16552_v36 = vld [vmem:[#allocation69_spill] sm:$0xff] }
 0x9d5   :  { %16535 = vst [vmem:[#allocation9_spill] sm:$0xff] %v14863_v20  ;;  %8281 = vmatprep.subr.bf16.mxu0 %v16540_v5  ;;  %v14877_v26 = vmul.f32 %v16541_v28, %v14669_v9  ;;  %16544 = vst [vmem:[#allocation25_spill] sm:$0xff] %v14881_v11  ;;  %8100 = vmatmul.mubr.msk.f32.vlgmr.msra.gmra.mrb[58].mxu1 %vm6473_vm3, %v16350_v60  ;;  %v16545_v5 = vld [vmem:[#allocation71_spill] sm:$0xff]  ;;  %v14897_v28 = vmul.f32 %v16549_v48, %v14665_v57  ;;  %v16556_v33 = vld [vmem:[#allocation76_spill] sm:$0xff] }
 0x9d6   :  { %v14889_v27 = vmul.f32 %v16545_v5, %v14685_v12  ;;  %16548 = vst [vmem:[#allocation28_spill] sm:$0xff] %v14893_v29  ;;  %v16553_v42 = vpack.c.bf16 %v16551_v44, %v16552_v36  ;;  %7019 = vmatprep.mubr.f32.mxu1 %v16074_v21  ;;  %v16554_v5 = vld [vmem:[#allocation75_spill] sm:$0xff]  ;;  %v14911_v20 = vmul.f32 %v16556_v33, %v14735_v3  ;;  %v16558_v55 = vld [vmem:[#allocation65_spill] sm:$0xff]  ;;  %v16559_v48 = vld [vmem:[#allocation64_spill] sm:$0xff] }
 0x9d7   :  { %16542 = vst [vmem:[#allocation17_spill] sm:$0xff] %v14877_v26  ;;  %16550 = vst [vmem:[#allocation26_spill] sm:$0xff] %v14897_v28  ;;  %v14907_v2 = vmul.f32 %v16554_v5, %v14725_v34  ;;  %v16560_v59 = vpack.c.bf16 %v16558_v55, %v16559_v48  ;;  %v16561_v16 = vld [vmem:[#allocation79_spill] sm:$0xff]  ;;  %v16562_v36 = vld [vmem:[#allocation78_spill] sm:$0xff] }
 0x9d8   :  { %16546 = vst [vmem:[#allocation30_spill] sm:$0xff] %v14889_v27  ;;  %8295 = vmatpush1.bf16.msra.mxu1 %v16553_v42  ;;  %16557 = vst [vmem:[#allocation23_spill] sm:$0xff] %v14911_v20  ;;  %v16563_v42 = vpack.c.bf16 %v16561_v16, %v16562_v36  ;;  %v16564_v5 = vld [vmem:[#allocation80_spill] sm:$0xff]  ;;  %v16565_v33 = vld [vmem:[#allocation77_spill] sm:$0xff] }
 0x9d9   :  { %16555 = vst [vmem:[#allocation31_spill] sm:$0xff] %v14907_v2  ;;  %8283 = vmatpush1.bf16.msra.mxu0 %v16560_v59  ;;  %v14925_v8 = vmul.f32 %v16564_v5, %v14703_v24  ;;  %v16566_v26 = vld [vmem:[#allocation74_spill] sm:$0xff]  ;;  %v16568_v59 = vld [vmem:[#allocation81_spill] sm:$0xff]  ;;  %v16573_v5 = vld [vmem:[#allocation88_spill] sm:$0xff] }
 0x9da   :  { %8297 = vmatprep.subr.bf16.mxu1 %v16563_v42  ;;  %v16567_v19 = vpack.c.bf16 %v16565_v33, %v16566_v26  ;;  %v14934_v16 = vmul.f32 %v16568_v59, %v14715_v58  ;;  %v16569_v48 = vld [vmem:[#allocation86_spill] sm:$0xff]  ;;  %v16571_v42 = vld [vmem:[#allocation87_spill] sm:$0xff]  ;;  %v14946_v1 = vmul.f32 %v16573_v5, %v14699_v32  ;;  %v16576_v33 = vld [vmem:[#allocation92_spill] sm:$0xff] }
 0x9db   :  { %v14938_v36 = vmul.f32 %v16569_v48, %v14719_v47  ;;  %v14942_v44 = vmul.f32 %v16571_v42, %v14731_v38  ;;  %v14954_v59 = vmul.f32 %v16576_v33, %v14748_v14  ;;  %v16578_v55 = vld [vmem:[#allocation93_spill] sm:$0xff]  ;;  %v16581_v20 = vld [vmem:[#allocation84_spill] sm:$0xff]  ;;  %v16588_v28 = vld [vmem:[#allocation82_spill] sm:$0xff] }
 0x9dc   :  { %8285 = vmatprep.subr.bf16.mxu0 %v16567_v19  ;;  %16574 = vst [vmem:[#allocation24_spill] sm:$0xff] %v14946_v1  ;;  %v16575_v19 = vld [vmem:[#allocation91_spill] sm:$0xff]  ;;  %v14958_v48 = vmul.f32 %v16578_v55, %v14760_v13  ;;  %v16580_v2 = vld [vmem:[#allocation85_spill] sm:$0xff]  ;;  %v16601_v5 = vld [vmem:[#allocation102_spill] sm:$0xff] }
 0x9dd   :  { %16570 = vst [vmem:[#allocation29_spill] sm:$0xff] %v14938_v36  ;;  %16572 = vst [vmem:[#allocation27_spill] sm:$0xff] %v14942_v44  ;;  %v14950_v26 = vmul.f32 %v16575_v19, %v14709_v62  ;;  %v16582_v42 = vpack.c.bf16 %v16580_v2, %v16581_v20  ;;  %v16583_v19 = vld [vmem:[#allocation96_spill] sm:$0xff]  ;;  %v16585_v33 = vld [vmem:[#allocation97_spill] sm:$0xff] }
 0x9de   :  { %16577 = vst [vmem:[#allocation35_spill] sm:$0xff] %v14954_v59  ;;  %16579 = vst [vmem:[#allocation33_spill] sm:$0xff] %v14958_v48  ;;  %v14969_v27 = vmul.f32 %v16583_v19, %v14741_v51  ;;  %v14973_v29 = vmul.f32 %v16585_v33, %v14753_v17  ;;  %v16587_v55 = vld [vmem:[#allocation83_spill] sm:$0xff]  ;;  %v16591_v2 = vld [vmem:[#allocation94_spill] sm:$0xff] }
 0x9df   :  { %8299 = vmatpush1.bf16.msra.mxu1 %v16582_v42  ;;  %v16589_v13 = vpack.c.bf16 %v16587_v55, %v16588_v28  ;;  %v16590_v20 = vld [vmem:[#allocation95_spill] sm:$0xff]  ;;  %v16593_v36 = vld [vmem:[#allocation90_spill] sm:$0xff]  ;;  %v16594_v28 = vld [vmem:[#allocation89_spill] sm:$0xff] }
 0x9e0   :  { %16584 = vst [vmem:[#allocation36_spill] sm:$0xff] %v14969_v27  ;;  %16586 = vst [vmem:[#allocation39_spill] sm:$0xff] %v14973_v29  ;;  %v16592_v42 = vpack.c.bf16 %v16590_v20, %v16591_v2  ;;  %v9446_v19 = vld [vmem:[%s15666_s10 + $0x208] sm:$0xff]  ;;  %v16596_v20 = vld [vmem:[#allocation98_spill] sm:$0xff] }
 0x9e1   :  { %8287 = vmatpush1.bf16.msra.mxu0 %v16589_v13  ;;  %v14989_v33 = vmul.f32 %v9446_v19, %v14595_v7  ;;  %v16595_v13 = vpack.c.bf16 %v16593_v36, %v16594_v28  ;;  %v14998_v2 = vmul.f32 %v16596_v20, %v14605_v53  ;;  %v9448_v19 = vld [vmem:[%s15666_s10 + $0x220] sm:$0xff]  ;;  %v15014_v28 = vmul.f32 %v13948_v23, %v14637_v41  ;;  %v16602_v27 = vld [vmem:[#allocation101_spill] sm:$0xff] }
 0x9e2   :  { %8301 = vmatprep.subr.bf16.mxu1 %v16592_v42  ;;  %v9447_v42 = vld [vmem:[%s15666_s10 + $0x200] sm:$0xff]  ;;  %v15010_v36 = vmul.f32 %v9448_v19, %v14599_v35  ;;  %v15022_v20 = vmul.f32 %v13974_v22, %v14617_v45  ;;  %v16603_v19 = vpack.c.bf16 %v16601_v5, %v16602_v27  ;;  %v16611_v27 = vld [vmem:[#allocation104_spill] sm:$0xff] }
 0x9e3   :  { %8289 = vmatprep.subr.bf16.mxu0 %v16595_v13  ;;  %v15004_v11 = vmul.f32 %v9447_v42, %v14591_v46  ;;  %16598 = vst [vmem:[#allocation32_spill] sm:$0xff] %v15014_v28  ;;  %v15018_v13 = vmul.f32 %v13969_v30, %v14649_v10  ;;  %v16600_v42 = vld [vmem:[#allocation109_spill] sm:$0xff]  ;;  %v16606_v22 = vld [vmem:[#allocation110_spill] sm:$0xff]  ;;  %v16609_v44 = vld [vmem:[#allocation99_spill] sm:$0xff] }
 0x9e4   :  { %v15026_v55 = vmul.f32 %v16600_v42, %v14627_v61  ;;  %8303 = vmatpush1.bf16.msra.mxu1 %v16603_v19  ;;  %v16604_v30 = vld [vmem:[#allocation105_spill] sm:$0xff]  ;;  %v15041_v48 = vmul.f32 %v16606_v22, %v14643_v25  ;;  %v16608_v42 = vld [vmem:[#allocation100_spill] sm:$0xff]  ;;  %v16612_v5 = vld [vmem:[#allocation103_spill] sm:$0xff]  ;;  %v16615_v22 = vpack.c.bf16 %v14790_v63, %v14784_v40 }
 0x9e5   :  { %16597 = vst [vmem:[#allocation40_spill] sm:$0xff] %v15004_v11  ;;  %16599 = vst [vmem:[#allocation34_spill] sm:$0xff] %v15018_v13  ;;  %v15037_v59 = vmul.f32 %v16604_v30, %v14631_v31  ;;  %v16610_v1 = vpack.c.bf16 %v16608_v42, %v16609_v44  ;;  %v16613_v19 = vpack.c.bf16 %v16611_v27, %v16612_v5  ;;  %v16614_v30 = vld [vmem:[#allocation111_spill] sm:$0xff]  ;;  %v16616_v44 = vld [vmem:[#allocation113_spill] sm:$0xff] }
 0x9e6   :  { %16607 = vst [vmem:[#allocation38_spill] sm:$0xff] %v15041_v48  ;;  %v15055_v11 = vmul.f32 %v16614_v30, %v14611_v6  ;;  %v15064_v42 = vmul.f32 %v16616_v44, %v14623_v50  ;;  %v16617_v27 = vld [vmem:[#allocation114_spill] sm:$0xff]  ;;  %v16622_v40 = vld [vmem:[#allocation119_spill] sm:$0xff]  ;;  %v16633_v13 = vpack.c.bf16 %v14825_v54, %v14821_v15 }
 0x9e7   :  { %16605 = vst [vmem:[#allocation37_spill] sm:$0xff] %v15037_v59  ;;  %8291 = vmatpush1.bf16.msra.mxu0 %v16610_v1  ;;  %8305 = vmatprep.subr.bf16.mxu1 %v16613_v19  ;;  %v15068_v5 = vmul.f32 %v16617_v27, %v14681_v37  ;;  %v16619_v19 = vld [vmem:[#allocation115_spill] sm:$0xff]  ;;  %v16621_v30 = vld [vmem:[#allocation118_spill] sm:$0xff]  ;;  %v15080_v63 = vmul.f32 %v16622_v40, %v14669_v9  ;;  %v16625_v1 = vld [vmem:[#allocation125_spill] sm:$0xff] }
 0x9e8   :  { %8309 = vmatprep.subr.bf16.mxu0 %v16615_v22  ;;  %v15072_v23 = vmul.f32 %v16619_v19, %v14693_v56  ;;  %v15076_v29 = vmul.f32 %v16621_v30, %v14659_v0  ;;  %v16623_v22 = vld [vmem:[#allocation124_spill] sm:$0xff]  ;;  %v15088_v27 = vmul.f32 %v16625_v1, %v14685_v12  ;;  %v16627_v19 = vld [vmem:[#allocation107_spill] sm:$0xff]  ;;  %v16628_v59 = vld [vmem:[#allocation106_spill] sm:$0xff]  ;;  %v16632_v1 = vpack.c.bf16 %v14802_v52, %v14796_v18 }
 0x9e9   :  { %16618 = vst [vmem:[#allocation43_spill] sm:$0xff] %v15068_v5  ;;  %v15084_v44 = vmul.f32 %v16623_v22, %v14675_v49  ;;  %v16629_v48 = vpack.c.bf16 %v16627_v19, %v16628_v59  ;;  %v16630_v22 = vld [vmem:[#allocation129_spill] sm:$0xff]  ;;  %v16634_v19 = vld [vmem:[#allocation130_spill] sm:$0xff]  ;;  %v16637_v18 = vld [vmem:[#allocation131_spill] sm:$0xff] }
 0x9ea   :  { %16620 = vst [vmem:[#allocation44_spill] sm:$0xff] %v15072_v23  ;;  %16626 = vst [vmem:[#allocation48_spill] sm:$0xff] %v15088_v27  ;;  %8134 = vmatmul.mubr.msk.f32.vlgmr.msra.gmra.mrb[60].mxu0 %vm6473_vm3, %v16350_v60  ;;  %v15101_v28 = vmul.f32 %v16630_v22, %v14653_v43  ;;  %v15115_v40 = vmul.f32 %v16634_v19, %v14665_v57  ;;  %v16636_v22 = vpack.c.bf16 %v14812_v4, %v14808_v39  ;;  %v16639_v15 = vld [vmem:[#allocation134_spill] sm:$0xff]  ;;  %v16642_v4 = vld [vmem:[#allocation136_spill] sm:$0xff] }
 0x9eb   :  { %16624 = vst [vmem:[#allocation47_spill] sm:$0xff] %v15084_v44  ;;  %8307 = vmatpush1.bf16.msra.mxu1 %v16629_v48  ;;  %8311 = vmatpush1.bf16.msra.mxu0 %v16632_v1  ;;  %v15123_v52 = vmul.f32 %v16637_v18, %v14725_v34  ;;  %v15127_v54 = vmul.f32 %v16639_v15, %v14735_v3  ;;  %v16645_v15 = vld [vmem:[#allocation140_spill] sm:$0xff]  ;;  %v16657_v5 = vld [vmem:[#allocation17_spill] sm:$0xff] }
 0x9ec   :  { %16631 = vst [vmem:[#allocation41_spill] sm:$0xff] %v15101_v28  ;;  %8325 = vmatprep.subr.bf16.mxu1 %v16633_v13  ;;  %16635 = vst [vmem:[#allocation42_spill] sm:$0xff] %v15115_v40  ;;  %8313 = vmatprep.subr.bf16.mxu0 %v16636_v22  ;;  %v16641_v13 = vld [vmem:[#allocation135_spill] sm:$0xff]  ;;  %v15139_v19 = vmul.f32 %v16642_v4, %v14715_v58  ;;  %v15147_v48 = vmul.f32 %v16645_v15, %v14731_v38  ;;  %v16648_v59 = vld [vmem:[#allocation8_spill] sm:$0xff] }
 0x9ed   :  { %7133 = vmatprep.mubr.f32.mxu0 %v16074_v21  ;;  %16638 = vst [vmem:[#allocation45_spill] sm:$0xff] %v15123_v52  ;;  %16640 = vst [vmem:[#allocation46_spill] sm:$0xff] %v15127_v54  ;;  %v15131_v1 = vmul.f32 %v16641_v13, %v14703_v24  ;;  %v16643_v22 = vld [vmem:[#allocation139_spill] sm:$0xff]  ;;  %v16647_v13 = vld [vmem:[#allocation13_spill] sm:$0xff] }
 0x9ee   :  { %8135 = vmatmul.mubr.msk.f32.vlgmr.msra.gmra.mrb[60].mxu1 %vm6473_vm3, %v16350_v60  ;;  %v15143_v18 = vmul.f32 %v16643_v22, %v14719_v47  ;;  %16646 = vst [vmem:[#allocation49_spill] sm:$0xff] %v15147_v48  ;;  %v16649_v30 = vpack.c.bf16 %v16647_v13, %v16648_v59  ;;  %v16650_v4 = vld [vmem:[#allocation141_spill] sm:$0xff]  ;;  %v16654_v28 = vld [vmem:[#allocation12_spill] sm:$0xff]  ;;  %v16655_v15 = vld [vmem:[#allocation14_spill] sm:$0xff] }
 0x9ef   :  { %7204 = vmatprep.mubr.f32.mxu1 %v16074_v21  ;;  %v15157_v44 = vmul.f32 %v16650_v4, %v14699_v32  ;;  %v16652_v22 = vld [vmem:[#allocation145_spill] sm:$0xff]  ;;  %v16656_v40 = vpack.c.bf16 %v16654_v28, %v16655_v15  ;;  %v16658_v59 = vld [vmem:[#allocation15_spill] sm:$0xff]  ;;  %v16660_v4 = vld [vmem:[#allocation146_spill] sm:$0xff] }
 0x9f0   :  { %16644 = vst [vmem:[#allocation50_spill] sm:$0xff] %v15143_v18  ;;  %8327 = vmatpush1.bf16.msra.mxu1 %v16649_v30  ;;  %v15161_v27 = vmul.f32 %v16652_v22, %v14709_v62  ;;  %v16659_v30 = vpack.c.bf16 %v16657_v5, %v16658_v59  ;;  %v15175_v52 = vmul.f32 %v16660_v4, %v14748_v14  ;;  %v16661_v22 = vld [vmem:[#allocation9_spill] sm:$0xff]  ;;  %v16662_v54 = vld [vmem:[#allocation10_spill] sm:$0xff]  ;;  %v16666_v59 = vld [vmem:[#allocation151_spill] sm:$0xff] }
 0x9f1   :  { %16651 = vst [vmem:[#allocation52_spill] sm:$0xff] %v15157_v44  ;;  %8315 = vmatpush1.bf16.msra.mxu0 %v16656_v40  ;;  %v16663_v23 = vpack.c.bf16 %v16661_v22, %v16662_v54  ;;  %v16664_v40 = vld [vmem:[#allocation7_spill] sm:$0xff]  ;;  %v16665_v5 = vld [vmem:[#allocation150_spill] sm:$0xff]  ;;  %v16667_v39 = vld [vmem:[#allocation152_spill] sm:$0xff] }
 0x9f2   :  { %16653 = vst [vmem:[#allocation51_spill] sm:$0xff] %v15161_v27  ;;  %8329 = vmatprep.subr.bf16.mxu1 %v16659_v30  ;;  %v15184_v15 = vmul.f32 %v16665_v5, %v16664_v40  ;;  %v15188_v30 = vmul.f32 %v16666_v59, %v14741_v51  ;;  %v15192_v13 = vmul.f32 %v16667_v39, %v14753_v17  ;;  %v16668_v4 = vld [vmem:[#allocation156_spill] sm:$0xff]  ;;  %v16670_v22 = vld [vmem:[#allocation158_spill] sm:$0xff]  ;;  %v16671_v28 = vld [vmem:[#allocation161_spill] sm:$0xff] }
 0x9f3   :  { %8317 = vmatprep.subr.bf16.mxu0 %v16663_v23  ;;  %v15196_v18 = vmul.f32 %v16668_v4, %v14595_v7  ;;  %v16669_v23 = vld [vmem:[#allocation157_spill] sm:$0xff]  ;;  %v15204_v5 = vmul.f32 %v16670_v22, %v14591_v46  ;;  %v15208_v59 = vmul.f32 %v16671_v28, %v14599_v35  ;;  %v16672_v48 = vld [vmem:[#allocation26_spill] sm:$0xff]  ;;  %v16673_v44 = vld [vmem:[#allocation28_spill] sm:$0xff] }
 0x9f4   :  { %v15200_v54 = vmul.f32 %v16669_v23, %v14605_v53  ;;  %v16674_v39 = vpack.c.bf16 %v16672_v48, %v16673_v44  ;;  %v16675_v53 = vld [vmem:[#allocation162_spill] sm:$0xff]  ;;  %v16678_v28 = vld [vmem:[#allocation25_spill] sm:$0xff]  ;;  %v16680_v44 = vpack.c.bf16 %v14934_v16, %v14925_v8  ;;  %v16685_v8 = vld [vmem:[#allocation168_spill] sm:$0xff] }
 0x9f5   :  { %v15219_v23 = vmul.f32 %v16675_v53, %v14637_v41  ;;  %v16676_v46 = vld [vmem:[#allocation166_spill] sm:$0xff]  ;;  %v16681_v41 = vld [vmem:[#allocation167_spill] sm:$0xff]  ;;  %v15246_v16 = vmul.f32 %v16685_v8, %v14627_v61  ;;  %v16757_v7 = vld [vmem:[#allocation144_spill] sm:$0xff] }
 0x9f6   :  { %8331 = vmatpush1.bf16.msra.mxu1 %v16674_v39  ;;  %v15223_v22 = vmul.f32 %v16676_v46, %v14649_v10  ;;  %v16677_v35 = vld [vmem:[#allocation30_spill] sm:$0xff]  ;;  %v15237_v53 = vmul.f32 %v16681_v41, %v14617_v45  ;;  %v16682_v10 = vld [vmem:[#allocation23_spill] sm:$0xff] }
 0x9f7   :  { %v16679_v27 = vpack.c.bf16 %v16677_v35, %v16678_v28  ;;  %8333 = vmatprep.subr.bf16.mxu1 %v16680_v44  ;;  %v16683_v46 = vld [vmem:[#allocation31_spill] sm:$0xff]  ;;  %v16686_v35 = vld [vmem:[#allocation172_spill] sm:$0xff]  ;;  %v16687_v44 = vld [vmem:[#allocation173_spill] sm:$0xff] }
 0x9f8   :  { %v16684_v4 = vpack.c.bf16 %v16682_v10, %v16683_v46  ;;  %v15250_v28 = vmul.f32 %v16686_v35, %v14631_v31  ;;  %v15254_v39 = vmul.f32 %v16687_v44, %v14643_v25  ;;  %v16688_v45 = vld [vmem:[#allocation174_spill] sm:$0xff]  ;;  %v16692_v35 = vld [vmem:[#allocation24_spill] sm:$0xff] }
 0x9f9   :  { %8319 = vmatpush1.bf16.msra.mxu0 %v16679_v27  ;;  %v15258_v41 = vmul.f32 %v16688_v45, %v14611_v6  ;;  %v16690_v46 = vld [vmem:[#allocation178_spill] sm:$0xff]  ;;  %v16693_v25 = vpack.c.bf16 %v14950_v26, %v16692_v35  ;;  %v16699_v26 = vld [vmem:[#allocation33_spill] sm:$0xff]  ;;  %v16700_v35 = vld [vmem:[#allocation35_spill] sm:$0xff] }
 0x9fa   :  { %8321 = vmatprep.subr.bf16.mxu0 %v16684_v4  ;;  %v16689_v4 = vld [vmem:[#allocation177_spill] sm:$0xff]  ;;  %v15266_v61 = vmul.f32 %v16690_v46, %v14681_v37  ;;  %v16691_v8 = vld [vmem:[#allocation182_spill] sm:$0xff]  ;;  %v16695_v37 = vld [vmem:[#allocation184_spill] sm:$0xff] }
 0x9fb   :  { %v15262_v10 = vmul.f32 %v16689_v4, %v14623_v50  ;;  %v15270_v31 = vmul.f32 %v16691_v8, %v14693_v56  ;;  %8335 = vmatpush1.bf16.msra.mxu1 %v16693_v25  ;;  %v16694_v50 = vld [vmem:[#allocation183_spill] sm:$0xff]  ;;  %v15285_v4 = vmul.f32 %v16695_v37, %v14669_v9  ;;  %v16697_v46 = vld [vmem:[#allocation29_spill] sm:$0xff]  ;;  %v16701_v25 = vpack.c.bf16 %v16699_v26, %v16700_v35  ;;  %v16703_v9 = vld [vmem:[#allocation108_spill] sm:$0xff] }
 0x9fc   :  { %v15281_v45 = vmul.f32 %v16694_v50, %v14659_v0  ;;  %v16696_v56 = vld [vmem:[#allocation27_spill] sm:$0xff]  ;;  %v16702_v0 = vld [vmem:[#allocation188_spill] sm:$0xff]  ;;  %v16707_v26 = vld [vmem:[#allocation190_spill] sm:$0xff] }
 0x9fd   :  { %v16698_v8 = vpack.c.bf16 %v16696_v56, %v16697_v46  ;;  %8337 = vmatprep.subr.bf16.mxu1 %v16701_v25  ;;  %v15299_v50 = vmul.f32 %v16702_v0, %v14675_v49  ;;  %v16704_v37 = vld [vmem:[#allocation19_spill] sm:$0xff]  ;;  %v16706_v46 = vld [vmem:[#allocation189_spill] sm:$0xff]  ;;  %v15312_v35 = vmul.f32 %v16707_v26, %v14653_v43  ;;  %v16709_v49 = vld [vmem:[#allocation194_spill] sm:$0xff] }
 0x9fe   :  { %v16705_v6 = vpack.c.bf16 %v16703_v9, %v16704_v37  ;;  %v16708_v25 = vld [vmem:[#allocation193_spill] sm:$0xff]  ;;  %v15320_v0 = vmul.f32 %v16709_v49, %v14725_v34  ;;  %v16711_v37 = vld [vmem:[#allocation199_spill] sm:$0xff]  ;;  %v16714_v26 = vld [vmem:[#allocation36_spill] sm:$0xff] }
 0x9ff   :  { %8323 = vmatpush1.bf16.msra.mxu0 %v16698_v8  ;;  %v15308_v8 = vmul.f32 %v16706_v46, %v14685_v12  ;;  %v15316_v44 = vmul.f32 %v16708_v25, %v14665_v57  ;;  %v15328_v12 = vmul.f32 %v16711_v37, %v14703_v24  ;;  %v16712_v46 = vld [vmem:[#allocation200_spill] sm:$0xff]  ;;  %v16713_v57 = vld [vmem:[#allocation39_spill] sm:$0xff]  ;;  %v16721_v56 = vld [vmem:[#allocation117_spill] sm:$0xff] }
 0xa00   :  { %8341 = vmatprep.subr.bf16.mxu0 %v16705_v6  ;;  %v16710_v6 = vld [vmem:[#allocation198_spill] sm:$0xff]  ;;  %v15332_v43 = vmul.f32 %v16712_v46, %v14715_v58  ;;  %v16715_v25 = vpack.c.bf16 %v16713_v57, %v16714_v26  ;;  %v16716_v24 = vld [vmem:[#allocation204_spill] sm:$0xff]  ;;  %v16741_v57 = vld [vmem:[#allocation133_spill] sm:$0xff] }
 0xa01   :  { %v15324_v9 = vmul.f32 %v16710_v6, %v14735_v3  ;;  %v15345_v49 = vmul.f32 %v16716_v24, %v14719_v47  ;;  %v16717_v6 = vld [vmem:[#allocation21_spill] sm:$0xff]  ;;  %v16718_v58 = vld [vmem:[#allocation16_spill] sm:$0xff]  ;;  %v16747_v26 = vld [vmem:[#allocation143_spill] sm:$0xff] }
 0xa02   :  { %8136 = vmatmul.mubr.msk.f32.vlgmr.msra.gmra.mrb[62].mxu0 %vm6473_vm3, %v16350_v60  ;;  %8339 = vmatpush1.bf16.msra.mxu1 %v16715_v25  ;;  %v16719_v37 = vpack.c.bf16 %v16717_v6, %v16718_v58  ;;  %v16720_v46 = vld [vmem:[#allocation120_spill] sm:$0xff]  ;;  %v16723_v25 = vld [vmem:[#allocation205_spill] sm:$0xff]  ;;  %v16727_v6 = vld [vmem:[#allocation206_spill] sm:$0xff] }
 0xa03   :  { %v16722_v27 = vpack.c.bf16 %v16720_v46, %v16721_v56  ;;  %v15359_v34 = vmul.f32 %v16723_v25, %v14731_v38  ;;  %v16724_v47 = vld [vmem:[#allocation116_spill] sm:$0xff]  ;;  %7354 = vmatprep.mubr.f32.mxu0 %v16074_v21  ;;  %v15367_v56 = vmul.f32 %v16727_v6, %v14699_v32  ;;  %v16732_v32 = vld [vmem:[#allocation215_spill] sm:$0xff]  ;;  %v16738_v38 = vld [vmem:[#allocation122_spill] sm:$0xff] }
 0xa04   :  { %8343 = vmatpush1.bf16.msra.mxu0 %v16719_v37  ;;  %v16725_v24 = vld [vmem:[#allocation112_spill] sm:$0xff]  ;;  %v16729_v37 = vld [vmem:[#allocation210_spill] sm:$0xff]  ;;  %v16736_v6 = vld [vmem:[#allocation123_spill] sm:$0xff] }
 0xa05   :  { %8357 = vmatprep.subr.bf16.mxu1 %v16722_v27  ;;  %v16726_v3 = vpack.c.bf16 %v16724_v47, %v16725_v24  ;;  %v16728_v27 = vld [vmem:[#allocation209_spill] sm:$0xff]  ;;  %v15375_v46 = vmul.f32 %v16729_v37, %v14748_v14  ;;  %8137 = vmatmul.mubr.msk.f32.vlgmr.msra.gmra.mrb[62].mxu1 %vm6473_vm3, %v16350_v60  ;;  %v15387_v47 = vmul.f32 %v16732_v32, %v14741_v51  ;;  %v16735_v14 = vld [vmem:[#allocation126_spill] sm:$0xff]  ;;  %v16742_v51 = vld [vmem:[#allocation132_spill] sm:$0xff] }
 0xa06   :  { %v15371_v58 = vmul.f32 %v16728_v27, %v14709_v62  ;;  %v16734_v62 = vld [vmem:[#allocation216_spill] sm:$0xff]  ;;  %v16737_v27 = vpack.c.bf16 %v16735_v14, %v16736_v6  ;;  %7425 = vmatprep.mubr.f32.mxu1 %v16074_v21  ;;  %v16743_v32 = vpack.c.bf16 %v16741_v57, %v16742_v51  ;;  %v16745_v6 = vld [vmem:[#allocation127_spill] sm:$0xff]  ;;  %v16748_v37 = vld [vmem:[#allocation142_spill] sm:$0xff] }
 0xa07   :  { %8345 = vmatprep.subr.bf16.mxu0 %v16726_v3  ;;  %16730 = vst [vmem:[#allocation53_spill] sm:$0xff] %v15375_v46  ;;  %v16731_v3 = vld [vmem:[#allocation214_spill] sm:$0xff]  ;;  %16733 = vst [vmem:[#allocation22_spill] sm:$0xff] %v15387_v47  ;;  %v15391_v24 = vmul.f32 %v16734_v62, %v14753_v17  ;;  %v16744_v14 = vld [vmem:[#allocation128_spill] sm:$0xff]  ;;  %v16749_v48 = vpack.c.bf16 %v16747_v26, %v16748_v37 }
 0xa08   :  { %v15383_v25 = vmul.f32 %v16731_v3, %v16664_v40  ;;  %8359 = vmatpush1.bf16.msra.mxu1 %v16737_v27  ;;  %v16739_v40 = vld [vmem:[#allocation121_spill] sm:$0xff]  ;;  %v16746_v27 = vpack.c.bf16 %v16744_v14, %v16745_v6  ;;  %v16754_v51 = vld [vmem:[#allocation148_spill] sm:$0xff]  ;;  %v16756_v17 = vld [vmem:[#allocation147_spill] sm:$0xff] }
 0xa09   :  { %v16740_v3 = vpack.c.bf16 %v16738_v38, %v16739_v40  ;;  %8361 = vmatprep.subr.bf16.mxu1 %v16743_v32  ;;  %v16750_v38 = vld [vmem:[#allocation138_spill] sm:$0xff]  ;;  %v16751_v40 = vld [vmem:[#allocation137_spill] sm:$0xff]  ;;  %v16758_v46 = vpack.c.bf16 %v16756_v17, %v16757_v7  ;;  %v16759_v62 = vld [vmem:[#allocation159_spill] sm:$0xff] }
 0xa0a   :  { %v16753_v57 = vld [vmem:[#allocation149_spill] sm:$0xff]  ;;  %v16760_v47 = vld [vmem:[#allocation155_spill] sm:$0xff]  ;;  %v16762_v6 = vld [vmem:[#allocation154_spill] sm:$0xff] }
 0xa0b   :  { %8347 = vmatpush1.bf16.msra.mxu0 %v16740_v3  ;;  %v16752_v3 = vpack.c.bf16 %v16750_v38, %v16751_v40  ;;  %v16755_v32 = vpack.c.bf16 %v16753_v57, %v16754_v51  ;;  %v16761_v14 = vpack.c.bf16 %v16759_v62, %v16760_v47  ;;  %v16766_v37 = vld [vmem:[#allocation160_spill] sm:$0xff]  ;;  %v16768_v40 = vpack.c.bf16 %v14998_v2, %v14989_v33  ;;  %v16769_v7 = vld [vmem:[#allocation165_spill] sm:$0xff]  ;;  %v16775_v57 = vld [vmem:[#allocation34_spill] sm:$0xff] }
 0xa0c   :  { %8349 = vmatprep.subr.bf16.mxu0 %v16746_v27  ;;  %8363 = vmatpush1.bf16.msra.mxu1 %v16749_v48  ;;  %v16763_v27 = vld [vmem:[#allocation153_spill] sm:$0xff]  ;;  %v16765_v48 = vld [vmem:[#allocation163_spill] sm:$0xff]  ;;  %v16772_v47 = vld [vmem:[#allocation40_spill] sm:$0xff]  ;;  %v16778_v33 = vpack.c.bf16 %v15064_v42, %v15055_v11 }
 0xa0d   :  { %8365 = vmatprep.subr.bf16.mxu1 %v16755_v32  ;;  %v16764_v26 = vpack.c.bf16 %v16762_v6, %v16763_v27  ;;  %v16767_v38 = vpack.c.bf16 %v16765_v48, %v16766_v37  ;;  %v16773_v62 = vpack.c.bf16 %v15010_v36, %v16772_v47  ;;  %v16776_v51 = vld [vmem:[#allocation32_spill] sm:$0xff]  ;;  %v16779_v2 = vld [vmem:[#allocation38_spill] sm:$0xff]  ;;  %v16780_v36 = vld [vmem:[#allocation37_spill] sm:$0xff] }
 0xa0e   :  { %v16777_v32 = vpack.c.bf16 %v16775_v57, %v16776_v51  ;;  %v16784_v6 = vld [vmem:[#allocation43_spill] sm:$0xff]  ;;  %v16787_v48 = vld [vmem:[#allocation41_spill] sm:$0xff]  ;;  %v16789_v11 = vld [vmem:[#allocation48_spill] sm:$0xff]  ;;  %v16802_v51 = vpack.c.bf16 %v15184_v15, %v15175_v52 }
 0xa0f   :  { %8351 = vmatpush1.bf16.msra.mxu0 %v16752_v3  ;;  %v16774_v3 = vpack.c.bf16 %v15026_v55, %v15022_v20  ;;  %v16782_v55 = vpack.c.bf16 %v15080_v63, %v15076_v29  ;;  %v16783_v20 = vld [vmem:[#allocation44_spill] sm:$0xff]  ;;  %v16790_v42 = vld [vmem:[#allocation47_spill] sm:$0xff] }
 0xa10   :  { %8353 = vmatprep.subr.bf16.mxu0 %v16758_v46  ;;  %8367 = vmatpush1.bf16.msra.mxu1 %v16761_v14  ;;  %v16770_v46 = vld [vmem:[#allocation164_spill] sm:$0xff]  ;;  %v16781_v14 = vpack.c.bf16 %v16779_v2, %v16780_v36  ;;  %v16785_v27 = vpack.c.bf16 %v16783_v20, %v16784_v6  ;;  %v16796_v63 = vld [vmem:[#allocation51_spill] sm:$0xff] }
 0xa11   :  { %8369 = vmatprep.subr.bf16.mxu1 %v16767_v38  ;;  %v16771_v17 = vpack.c.bf16 %v16769_v7, %v16770_v46  ;;  %v16791_v38 = vpack.c.bf16 %v16789_v11, %v16790_v42  ;;  %v16793_v7 = vld [vmem:[#allocation46_spill] sm:$0xff]  ;;  %v16794_v46 = vld [vmem:[#allocation45_spill] sm:$0xff]  ;;  %v16807_v2 = vld [vmem:[#allocation175_spill] sm:$0xff] }
 0xa12   :  { %v16795_v29 = vpack.c.bf16 %v16793_v7, %v16794_v46  ;;  %v16808_v36 = vld [vmem:[#allocation171_spill] sm:$0xff]  ;;  %v16811_v20 = vld [vmem:[#allocation180_spill] sm:$0xff]  ;;  %v16822_v42 = vld [vmem:[#allocation197_spill] sm:$0xff] }
 0xa13   :  { %8355 = vmatpush1.bf16.msra.mxu0 %v16764_v26  ;;  %v16786_v26 = vld [vmem:[#allocation42_spill] sm:$0xff]  ;;  %v16813_v52 = vld [vmem:[#allocation179_spill] sm:$0xff]  ;;  %v16814_v15 = vld [vmem:[#allocation176_spill] sm:$0xff] }
 0xa14   :  { %8373 = vmatprep.subr.bf16.mxu0 %v16768_v40  ;;  %8371 = vmatpush1.bf16.msra.mxu1 %v16771_v17  ;;  %v16788_v37 = vpack.c.bf16 %v16786_v26, %v16787_v48  ;;  %v16792_v40 = vpack.c.bf16 %v15139_v19, %v15131_v1  ;;  %v16797_v17 = vld [vmem:[#allocation52_spill] sm:$0xff]  ;;  %v16806_v19 = vpack.c.bf16 %v15192_v13, %v15188_v30  ;;  %v16816_v26 = vld [vmem:[#allocation191_spill] sm:$0xff]  ;;  %v16819_v48 = vld [vmem:[#allocation186_spill] sm:$0xff] }
 0xa15   :  { %8389 = vmatprep.subr.bf16.mxu1 %v16774_v3  ;;  %v16798_v47 = vpack.c.bf16 %v16796_v63, %v16797_v17  ;;  %v16800_v3 = vld [vmem:[#allocation50_spill] sm:$0xff]  ;;  %v16817_v13 = vld [vmem:[#allocation187_spill] sm:$0xff]  ;;  %v16826_v46 = vld [vmem:[#allocation192_spill] sm:$0xff] }
 0xa16   :  { %8171 = vmatmul.mubr.msk.f32.vlgmr.msra.gmra.mrb[64].mxu0 %vm6473_vm3, %v16350_v60  ;;  %v16818_v30 = vpack.c.bf16 %v16816_v26, %v16817_v13  ;;  %v16825_v7 = vld [vmem:[#allocation195_spill] sm:$0xff]  ;;  %v16849_v13 = vpack.c.bf16 %v15200_v54, %v15196_v18  ;;  %v16856_v18 = vpack.c.bf16 %v15262_v10, %v15258_v41  ;;  %v16857_v54 = vpack.c.bf16 %v15254_v39, %v15250_v28  ;;  %v16866_v41 = vld [vmem:[#allocation53_spill] sm:$0xff] }
 0xa17   :  { %8375 = vmatpush1.bf16.msra.mxu0 %v16773_v62  ;;  %7539 = vmatprep.mubr.f32.mxu0 %v16074_v21  ;;  %v16799_v62 = vld [vmem:[#allocation49_spill] sm:$0xff]  ;;  %v16828_v63 = vld [vmem:[#allocation207_spill] sm:$0xff]  ;;  %v16862_v39 = vpack.c.bf16 %v15332_v43, %v15328_v12  ;;  %v16865_v28 = vpack.c.bf16 %v15359_v34, %v15345_v49  ;;  %v16867_v10 = vpack.c.bf16 %v15383_v25, %v16866_v41 }
 0xa18   :  { %8377 = vmatprep.subr.bf16.mxu0 %v16777_v32  ;;  %8172 = vmatmul.mubr.msk.f32.vlgmr.msra.gmra.mrb[64].mxu1 %vm6473_vm3, %v16350_v60  ;;  %v16801_v57 = vpack.c.bf16 %v16799_v62, %v16800_v3  ;;  %v16803_v32 = vld [vmem:[#allocation170_spill] sm:$0xff]  ;;  %v16829_v17 = vld [vmem:[#allocation203_spill] sm:$0xff]  ;;  %v16832_v3 = vld [vmem:[#allocation201_spill] sm:$0xff] }
 0xa19   :  { %8391 = vmatpush1.bf16.msra.mxu1 %v16778_v33  ;;  %7610 = vmatprep.mubr.f32.mxu1 %v16074_v21  ;;  %v16804_v33 = vld [vmem:[#allocation169_spill] sm:$0xff]  ;;  %v16831_v62 = vld [vmem:[#allocation202_spill] sm:$0xff] }
 0xa1a   :  { %8393 = vmatprep.subr.bf16.mxu1 %v16782_v55  ;;  %v16805_v1 = vpack.c.bf16 %v16803_v32, %v16804_v33  ;;  %v16810_v55 = vld [vmem:[#allocation181_spill] sm:$0xff]  ;;  %v16835_v32 = vld [vmem:[#allocation212_spill] sm:$0xff] }
 0xa1b   :  { %8379 = vmatpush1.bf16.msra.mxu0 %v16781_v14  ;;  %v16809_v14 = vpack.c.bf16 %v16807_v2, %v16808_v36  ;;  %v16812_v6 = vpack.c.bf16 %v16810_v55, %v16811_v20  ;;  %v16840_v36 = vld [vmem:[#allocation220_spill] sm:$0xff]  ;;  %v16843_v20 = vld [vmem:[#allocation218_spill] sm:$0xff] }
 0xa1c   :  { %8381 = vmatprep.subr.bf16.mxu0 %v16785_v27  ;;  %v16815_v27 = vpack.c.bf16 %v16813_v52, %v16814_v15  ;;  %v16846_v15 = vld [vmem:[#allocation222_spill] sm:$0xff] }
 0xa1d   :  { %8395 = vmatpush1.bf16.msra.mxu1 %v16788_v37  ;;  %v16820_v37 = vld [vmem:[#allocation185_spill] sm:$0xff] }
 0xa1e   :  { %8397 = vmatprep.subr.bf16.mxu1 %v16792_v40  ;;  %v16821_v11 = vpack.c.bf16 %v16819_v48, %v16820_v37  ;;  %v16851_v48 = vld [vmem:[#allocation223_spill] sm:$0xff] }
 0xa1f   :  { %8383 = vmatpush1.bf16.msra.mxu0 %v16791_v38  ;;  %v16823_v38 = vld [vmem:[#allocation196_spill] sm:$0xff] }
 0xa20   :  { %8385 = vmatprep.subr.bf16.mxu0 %v16795_v29  ;;  %v16824_v40 = vpack.c.bf16 %v16822_v42, %v16823_v38  ;;  %v16827_v29 = vpack.c.bf16 %v16825_v7, %v16826_v46  ;;  %v16854_v42 = vpack.c.bf16 %v15246_v16, %v15237_v53  ;;  %v16855_v38 = vpack.c.bf16 %v15223_v22, %v15219_v23 }
 0xa21   :  { %8399 = vmatpush1.bf16.msra.mxu1 %v16798_v47  ;;  %v16830_v47 = vpack.c.bf16 %v16828_v63, %v16829_v17  ;;  %v16860_v23 = vpack.c.bf16 %v15316_v44, %v15312_v35  ;;  %v16861_v22 = vpack.c.bf16 %v15308_v8, %v15299_v50  ;;  %v16863_v53 = vpack.c.bf16 %v15324_v9, %v15320_v0 }
 0xa22   :  { %8401 = vmatprep.subr.bf16.mxu1 %v16802_v51  ;;  %v16834_v51 = vld [vmem:[#allocation213_spill] sm:$0xff]  ;;  %v16864_v16 = vpack.c.bf16 %v15371_v58, %v15367_v56 }
 0xa23   :  { %8387 = vmatpush1.bf16.msra.mxu0 %v16801_v57  ;;  %v16833_v57 = vpack.c.bf16 %v16831_v62, %v16832_v3  ;;  %v16836_v33 = vpack.c.bf16 %v16834_v51, %v16835_v32 }
 0xa24   :  { %8405 = vmatprep.subr.bf16.mxu0 %v16805_v1  ;;  %v16837_v1 = vld [vmem:[#allocation211_spill] sm:$0xff] }
 0xa25   :  { %8403 = vmatpush1.bf16.msra.mxu1 %v16806_v19  ;;  %v16838_v19 = vld [vmem:[#allocation208_spill] sm:$0xff] }
 0xa26   :  { %8173 = vmatmul.mubr.msk.f32.vlgmr.msra.gmra.mrb[66].mxu0 %vm6473_vm3, %v16350_v60  ;;  %8421 = vmatprep.subr.bf16.mxu1 %v16812_v6  ;;  %v16839_v2 = vpack.c.bf16 %v16837_v1, %v16838_v19  ;;  %v16844_v6 = vld [vmem:[#allocation217_spill] sm:$0xff] }
 0xa27   :  { %8407 = vmatpush1.bf16.msra.mxu0 %v16809_v14  ;;  %7760 = vmatprep.mubr.f32.mxu0 %v16074_v21  ;;  %v16841_v14 = vld [vmem:[#allocation219_spill] sm:$0xff]  ;;  %v16845_v52 = vpack.c.bf16 %v16843_v20, %v16844_v6 }
 0xa28   :  { %8409 = vmatprep.subr.bf16.mxu0 %v16815_v27  ;;  %8174 = vmatmul.mubr.msk.f32.vlgmr.msra.gmra.mrb[66].mxu1 %vm6473_vm3, %v16350_v60  ;;  %v16842_v55 = vpack.c.bf16 %v16840_v36, %v16841_v14  ;;  %v16847_v27 = vld [vmem:[#allocation221_spill] sm:$0xff] }
 0xa29   :  { %8423 = vmatpush1.bf16.msra.mxu1 %v16818_v30  ;;  %7831 = vmatprep.mubr.f32.mxu1 %v16074_v21  ;;  %v16848_v26 = vpack.c.bf16 %v16846_v15, %v16847_v27  ;;  %v16850_v30 = vld [vmem:[#allocation224_spill] sm:$0xff] }
 0xa2a   :  { %8425 = vmatprep.subr.bf16.mxu1 %v16824_v40  ;;  %v16852_v37 = vpack.c.bf16 %v16850_v30, %v16851_v48 }
 0xa2b   :  { %8411 = vmatpush1.bf16.msra.mxu0 %v16821_v11  ;;  %v16853_v11 = vpack.c.bf16 %v15208_v59, %v15204_v5  ;;  %v16858_v5 = vpack.c.bf16 %v15285_v4, %v15281_v45  ;;  %v16859_v59 = vpack.c.bf16 %v15270_v31, %v15266_v61  ;;  %v16868_v61 = vld [vmem:[#allocation22_spill] sm:$0xff] }
 0xa2c   :  { %8413 = vmatprep.subr.bf16.mxu0 %v16827_v29  ;;  %v16869_v31 = vpack.c.bf16 %v15391_v24, %v16868_v61  ;;  %v6543_v44 = vpop.f32.mrb[56].mxu0 }
 0xa2d   :  { %8427 = vmatpush1.bf16.msra.mxu1 %v16830_v47  ;;  %v6620_v45 = vsel %vm6619_vm4, %v6543_v44, 0.0  ;;  %v6545_v4 = vpop.f32.mrb[57].mxu0 }
 0xa2e   :  { %8429 = vmatprep.subr.bf16.mxu1 %v16836_v33  ;;  %v6621_v50 = vsel %vm6619_vm4, %v6545_v4, 0.0 }
 0xa2f   :  { %8415 = vmatpush1.bf16.msra.mxu0 %v16833_v57  ;;  %v6622_v8 = vadd.f32 %v6621_v50, %v6620_v45 }
 0xa30   :  { %8417 = vmatprep.subr.bf16.mxu0 %v16839_v2 }
 0xa31   :  { %8431 = vmatpush1.bf16.msra.mxu1 %v16842_v55 }
 0xa32   :  { %8433 = vmatprep.subr.bf16.mxu1 %v16848_v26 }
 0xa33   :  { %8419 = vmatpush1.bf16.msra.mxu0 %v16845_v52 }
 0xa34   :  { %8437 = vmatprep.subr.bf16.mxu0 %v16849_v13 }
 0xa35   :  { %8435 = vmatpush1.bf16.msra.mxu1 %v16852_v37  ;;  %v6614_v35 = vpop.f32.mrb[56].mxu1 }
 0xa36   :  { %8208 = vmatmul.mubr.msk.f32.vlgmr.msra.gmra.mrb[68].mxu0 %vm6473_vm3, %v16350_v60  ;;  %8453 = vmatprep.subr.bf16.mxu1 %v16854_v42  ;;  %v6623_v0 = vsel %vm6619_vm4, %v6614_v35, 0.0  ;;  %v6616_v9 = vpop.f32.mrb[57].mxu1 }
 0xa37   :  { %8439 = vmatpush1.bf16.msra.mxu0 %v16853_v11  ;;  %7945 = vmatprep.mubr.f32.mxu0 %v16074_v21  ;;  %v6624_v12 = vadd.f32 %v6623_v0, %v6622_v8  ;;  %v6625_v43 = vsel %vm6619_vm4, %v6616_v9, 0.0 }
 0xa38   :  { %8441 = vmatprep.subr.bf16.mxu0 %v16855_v38  ;;  %8209 = vmatmul.mubr.msk.f32.vlgmr.msra.gmra.mrb[68].mxu1 %vm6473_vm3, %v16350_v60 }
 0xa39   :  { %8455 = vmatpush1.bf16.msra.mxu1 %v16856_v18  ;;  %8016 = vmatprep.mubr.f32.mxu1 %v16074_v21  ;;  %v6626_v34 = vadd.f32 %v6625_v43, %v6624_v12 }
 0xa3a   :  { %8457 = vmatprep.subr.bf16.mxu1 %v16858_v5 }
 0xa3b   :  { %8443 = vmatpush1.bf16.msra.mxu0 %v16857_v54  ;;  %6627 = vadd.xlane.f32.xlu0 %v6626_v34 }
 0xa3c   :  { %8445 = vmatprep.subr.bf16.mxu0 %v16859_v59 }
 0xa3d   :  { %8459 = vmatpush1.bf16.msra.mxu1 %v16860_v23 }
 0xa3e   :  { %8461 = vmatprep.subr.bf16.mxu1 %v16862_v39 }
 0xa3f   :  { %8447 = vmatpush1.bf16.msra.mxu0 %v16861_v22 }
 0xa40   :  { %8449 = vmatprep.subr.bf16.mxu0 %v16863_v53 }
 0xa41   :  { %8463 = vmatpush1.bf16.msra.mxu1 %v16864_v16 }
 0xa42   :  { %8465 = vmatprep.subr.bf16.mxu1 %v16867_v10 }
 0xa43   :  { %8451 = vmatpush1.bf16.msra.mxu0 %v16865_v28 }
 0xa45   :  { %8467 = vmatpush1.bf16.msra.mxu1 %v16869_v31 }
 0xa46   :  { %8210 = vmatmul.mubr.msk.f32.vlgmr.msra.gmra.mrb[70].mxu0 %vm6473_vm3, %v16350_v60 }
 0xa48   :  { %8211 = vmatmul.mubr.msk.f32.vlgmr.msra.gmra.mrb[70].mxu1 %vm6473_vm3, %v16350_v60 }
 0xaa4   :  { %v6729_v49 = vpop.f32.mrb[58].mxu0 }
 0xaa5   :  { %v6805_v60 = vsel %vm6619_vm4, %v6729_v49, 0.0  ;;  %v6731_v56 = vpop.f32.mrb[59].mxu0 }
 0xaa6   :  { %v6806_v58 = vsel %vm6619_vm4, %v6731_v56, 0.0 }
 0xaa7   :  { %v6807_v25 = vadd.f32 %v6806_v58, %v6805_v60 }
 0xaa8   :  { %v6800_v24 = vpop.f32.mrb[58].mxu1 }
 0xaa9   :  { %v6808_v40 = vsel %vm6619_vm4, %v6800_v24, 0.0  ;;  %v6802_v7 = vpop.f32.mrb[59].mxu1 }
 0xaaa   :  { %v6809_v46 = vadd.f32 %v6808_v40, %v6807_v25  ;;  %v6810_v29 = vsel %vm6619_vm4, %v6802_v7, 0.0 }
 0xaac   :  { %v6811_v63 = vadd.f32 %v6810_v29, %v6809_v46 }
 0xaae   :  { %6812 = vadd.xlane.f32.xlu1 %v6811_v63 }
 0xabd   :  { %v6950_v17 = vpop.f32.mrb[60].mxu0 }
 0xabe   :  { %v7026_v47 = vsel %vm6619_vm4, %v6950_v17, 0.0  ;;  %v6952_v62 = vpop.f32.mrb[61].mxu0 }
 0xabf   :  { %v7027_v3 = vsel %vm6619_vm4, %v6952_v62, 0.0 }
 0xac0   :  { %v7028_v57 = vadd.f32 %v7027_v3, %v7026_v47  ;;  %v16870_v3 = vlaneseq }
 0xac1   :  { %v7021_v51 = vpop.f32.mrb[60].mxu1 }
 0xac2   :  { %v7029_v32 = vsel %vm6619_vm4, %v7021_v51, 0.0  ;;  %v7023_v33 = vpop.f32.mrb[61].mxu1 }
 0xac3   :  { %v7030_v1 = vadd.f32 %v7029_v32, %v7028_v57  ;;  %v7031_v19 = vsel %vm6619_vm4, %v7023_v33, 0.0  ;;  %v6404_v57 = vand.u32 127, %v16870_v3 }
 0xac5   :  { %v7032_v2 = vadd.f32 %v7031_v19, %v7030_v1  ;;  %vm6406_vm8 = vcmp.eq.s32.totalorder %v6404_v57, 0  ;;  %vm6816_vm13 = vcmp.eq.s32.totalorder %v6404_v57, 1  ;;  %vm7222_vm14 = vcmp.eq.s32.totalorder %v6404_v57, 2 }
 0xac6   :  { %v8096_v32 = vsel %vm6406_vm8, 1.0, %v16074_v21  ;;  %v8101_v1 = vsel %vm6816_vm13, 1.0, %v16074_v21  ;;  %vm7628_vm7 = vcmp.eq.s32.totalorder %v6404_v57, 3 }
 0xac7   :  { %7033 = vadd.xlane.f32.xlu0 %v7032_v2 }
 0xac8   :  { %v6628_v51 = vpop.xlane.xlu0 %6627 }
 0xac9   :  { %v6629_v2 = vmul.f32 %v8096_v32, %v6628_v51 }
 0xad5   :  { %v7135_v36 = vpop.f32.mrb[62].mxu0 }
 0xad6   :  { %v7211_v14 = vsel %vm6619_vm4, %v7135_v36, 0.0  ;;  %v7137_v55 = vpop.f32.mrb[63].mxu0  ;;  %v6405_v36 = vld [vmem:[%s15667_s11] sm:$0x1]  ;;  %s9503_s11 = smov [#allocation4]  }
 0xad7   :  { %v7212_v20 = vsel %vm6619_vm4, %v7137_v55, 0.0  ;;  %s8043_s1 = sshll.u32 %s9503_s11, 4  ;;  %s8044_s1 = int_to_ptr.vmem [resolvable:$true] %s8043_s1 }
 0xad8   :  { %v7213_v6 = vadd.f32 %v7212_v20, %v7211_v14  ;;  %v7206_v52 = vpop.f32.mrb[62].mxu1  ;;  %v8138_v14 = vsel %vm7222_vm14, 1.0, %v16074_v21  ;;  %s9449_s30 = scalar_lea.vmem %s8044_s1, 32  ;;  %p9454_p1 = scmp.lt.s32.totalorder %s8044_s1, %s8044_s1 }
 0xad9   :  { %v7214_v15 = vsel %vm6619_vm4, %v7206_v52, 0.0  ;;  %v7208_v27 = vpop.f32.mrb[63].mxu1  ;;  %p9450_p0 = scmp.ne.s32.totalorder %s8044_s1, %s9449_s30  ;;  %p9455_p2 = scmp.lt.s32.totalorder %s9449_s30, %s9449_s30 }
 0xada   :  { %v7215_v26 = vadd.f32 %v7214_v15, %v7213_v6  ;;  %v7216_v13 = vsel %vm6619_vm4, %v7208_v27, 0.0  ;;  %v6630_v6 = vadd.f32 %v6629_v2, %v6405_v36  ;;  %v8175_v15 = vsel %vm7628_vm7, 1.0, %v16074_v21 }
 0xadb   :  { %p9456_p3 = por %p9455_p2, %p9454_p1 }
 0xadc   :  { %v7217_v30 = vadd.f32 %v7216_v13, %v7215_v26 }
 0xadd   :  { %p9457_p4 = pnand %p9456_p3, %p9450_p0 }
 0xade   :  { %7218 = vadd.xlane.f32.xlu0 %v7217_v30 }
 0xae9   :  { %v7356_v48 = vpop.f32.mrb[64].mxu0 }
 0xaea   :  { %v7432_v37 = vsel %vm6619_vm4, %v7356_v48, 0.0  ;;  %v7358_v11 = vpop.f32.mrb[65].mxu0 }
 0xaeb   :  { %v7433_v42 = vsel %vm6619_vm4, %v7358_v11, 0.0  ;;  %v7427_v18 = vpop.f32.mrb[64].mxu1 }
 0xaec   :  { %v7434_v38 = vadd.f32 %v7433_v42, %v7432_v37  ;;  %v7435_v54 = vsel %vm6619_vm4, %v7427_v18, 0.0  ;;  %v7429_v5 = vpop.f32.mrb[65].mxu1 }
 0xaed   :  { %v7437_v23 = vsel %vm6619_vm4, %v7429_v5, 0.0 }
 0xaee   :  { %v7436_v59 = vadd.f32 %v7435_v54, %v7434_v38 }
 0xaf0   :  { %v7438_v22 = vadd.f32 %v7437_v23, %v7436_v59 }
 0xaf2   :  { %7439 = vadd.xlane.f32.xlu1 %v7438_v22 }
 0xaf9   :  { %v7541_v39 = vpop.f32.mrb[66].mxu0 }
 0xafa   :  { %v7617_v53 = vsel %vm6619_vm4, %v7541_v39, 0.0  ;;  %v7543_v16 = vpop.f32.mrb[67].mxu0 }
 0xafb   :  { %v7618_v28 = vsel %vm6619_vm4, %v7543_v16, 0.0  ;;  %v7612_v10 = vpop.f32.mrb[66].mxu1 }
 0xafc   :  { %v7619_v41 = vadd.f32 %v7618_v28, %v7617_v53  ;;  %v7620_v61 = vsel %vm6619_vm4, %v7612_v10, 0.0  ;;  %v7614_v31 = vpop.f32.mrb[67].mxu1 }
 0xafd   :  { %v7622_v45 = vsel %vm6619_vm4, %v7614_v31, 0.0 }
 0xafe   :  { %v7621_v44 = vadd.f32 %v7620_v61, %v7619_v41 }
 0xb00   :  { %v7623_v4 = vadd.f32 %v7622_v45, %v7621_v44 }
 0xb02   :  { %7624 = vadd.xlane.f32.xlu0 %v7623_v4 }
 0xb09   :  { %v7762_v50 = vpop.f32.mrb[68].mxu0 }
 0xb0a   :  { %v7838_v8 = vsel %vm6619_vm4, %v7762_v50, 0.0  ;;  %v7764_v35 = vpop.f32.mrb[69].mxu0 }
 0xb0b   :  { %v7839_v0 = vsel %vm6619_vm4, %v7764_v35, 0.0  ;;  %v7833_v12 = vpop.f32.mrb[68].mxu1 }
 0xb0c   :  { %v7840_v9 = vadd.f32 %v7839_v0, %v7838_v8  ;;  %v7841_v43 = vsel %vm6619_vm4, %v7833_v12, 0.0  ;;  %v7835_v34 = vpop.f32.mrb[69].mxu1 }
 0xb0d   :  { %v7843_v60 = vsel %vm6619_vm4, %v7835_v34, 0.0 }
 0xb0e   :  { %v7842_v49 = vadd.f32 %v7841_v43, %v7840_v9 }
 0xb10   :  { %v7844_v56 = vadd.f32 %v7843_v60, %v7842_v49 }
 0xb12   :  { %7845 = vadd.xlane.f32.xlu1 %v7844_v56 }
 0xb19   :  { %v7947_v58 = vpop.f32.mrb[70].mxu0 }
 0xb1a   :  { %v8023_v25 = vsel %vm6619_vm4, %v7947_v58, 0.0  ;;  %v7949_v24 = vpop.f32.mrb[71].mxu0 }
 0xb1b   :  { %v8024_v40 = vsel %vm6619_vm4, %v7949_v24, 0.0  ;;  %v8018_v46 = vpop.f32.mrb[70].mxu1 }
 0xb1c   :  { %v8025_v7 = vadd.f32 %v8024_v40, %v8023_v25  ;;  %v8026_v29 = vsel %vm6619_vm4, %v8018_v46, 0.0  ;;  %v8020_v63 = vpop.f32.mrb[71].mxu1 }
 0xb1d   :  { %v8028_v47 = vsel %vm6619_vm4, %v8020_v63, 0.0 }
 0xb1e   :  { %v8027_v17 = vadd.f32 %v8026_v29, %v8025_v7 }
 0xb20   :  { %v8029_v62 = vadd.f32 %v8028_v47, %v8027_v17 }
 0xb22   :  { %8030 = vadd.xlane.f32.xlu0 %v8029_v62 }
 0xb3b   :  { %v6813_v33 = vpop.xlane.xlu1 %6812 }
 0xb3c   :  { %v6814_v11 = vmul.f32 %v8096_v32, %v6813_v33 }
 0xb3e   :  { %v6815_v18 = vadd.f32 %v6814_v11, %v6405_v36 }
 0xb54   :  { %v7034_v19 = vpop.xlane.xlu0 %7033 }
 0xb55   :  { %v7035_v20 = vmul.f32 %v8101_v1, %v7034_v19 }
 0xb57   :  { %v7036_v27 = vadd.f32 %v7035_v20, %v6630_v6 }
 0xb6b   :  { %v7219_v37 = vpop.xlane.xlu0 %7218 }
 0xb6c   :  { %v7220_v38 = vmul.f32 %v8101_v1, %v7219_v37 }
 0xb6e   :  { %v7221_v5 = vadd.f32 %v7220_v38, %v6815_v18 }
 0xb7f   :  { %v7440_v55 = vpop.xlane.xlu1 %7439 }
 0xb80   :  { %v7441_v52 = vmul.f32 %v8138_v14, %v7440_v55 }
 0xb82   :  { %v7442_v13 = vadd.f32 %v7441_v52, %v7036_v27 }
 0xb8f   :  { %v7625_v42 = vpop.xlane.xlu0 %7624 }
 0xb90   :  { %v7626_v54 = vmul.f32 %v8138_v14, %v7625_v42 }
 0xb92   :  { %v7627_v23 = vadd.f32 %v7626_v54, %v7221_v5 }
 0xb9f   :  { %v7846_v26 = vpop.xlane.xlu1 %7845 }
 0xba0   :  { %v7847_v30 = vmul.f32 %v8175_v15, %v7846_v26 }
 0xba2   :  { %v7848_v48 = vadd.f32 %v7847_v30, %v7442_v13 }
 0xba4   :  { %8035 = vst.msk [vmem:[#allocation4] sm:$0x1] %vm8034_vm15, %v7848_v48 }
 0xbaf   :  { %v8031_v59 = vpop.xlane.xlu0 %8030 }
 0xbb0   :  { %v8032_v21 = vmul.f32 %v8175_v15, %v8031_v59 }
 0xbb2   :  { %v8033_v22 = vadd.f32 %v8032_v21, %v7627_v23 }
 0xbb4   :  { %8037 = vst.msk [vmem:[#allocation4 + $0x1] sm:$0x1] %vm8034_vm15, %v8033_v22 }
 0xbb5   :  { %9460 = shalt.err (!%p9457_p4)
}
 0xbb6   :  { %s9461_s21 = scalar_lea.hbm %s15668_s12, 32 }
 0xbb7   :  { %p9462_p5 = scmp.ne.s32.totalorder %s15668_s12, %s9461_s21  ;;  %p9465_p6 = scmp.lt.u32.totalorder %s9461_s21, %s15668_s12 }
 0xbb9   :  { %p9467_p7 = pnand %p9465_p6, %p9462_p5 }
 0xbbb   :  { %9470 = shalt.err (!%p9467_p7)
}
 0xbbc   :  { %s9504_s25 = smov 16   ;;  %s9505_s26 = smov 1  }
 0xbbd   :  { %8049 = dma.vmem_to_hbm [thread:$0]  %s8044_s1, 32, %s15668_s12, [#allocation5], %s9504_s25, %s9504_s25, %s9505_s26  }
 0xbbe   :  { %9471 = dma.done.wait [#allocation5], 32  }
 0xbbf   :  { %9472 = vsyncadd [#allocation5], 4294967264 }
 0xbc0   :  { %8053 = vsyncpa [#allocation5], 1 }

</bundles_post_ra>
